<compile_context>
chip_gen: v6e
topology: v6e:2x2x1
jax: 0.10.0
libtpu: 0.0.40
codegen_flags: <defaults>
</compile_context>

<pallas_src>
import jax
import jax.numpy as jnp
from jax.experimental import pallas as pl
from jax.experimental.pallas import tpu as pltpu

NUM_ROWS, NUM_COLS, NUM_BLOCKS = 6, 7, 5
HW = NUM_ROWS * NUM_COLS          # 42 board cells
BN_EPS = 1e-5
PAD = 8                           # sublane padding for the shifted-window scratch


# ----------------------------- Pallas kernel --------------------------------
def connectnet_kernel(
    x0_ref, c1w_ref, c1b_ref, tapm_ref, resw_ref,
    hvw_ref, hvb_ref, hpw_ref, hpb_ref,
    rvsel_ref, maskv_ref, agg_ref,
    fc1w_ref, fc1b_ref, fc2w_ref, fc2b_ref,
    fcpw_ref, fcpb_ref, maskp_ref, gsum_ref,
    pol_ref, val_ref,
    h_ref, hpad_ref,
):
    f32, bf16 = jnp.float32, jnp.bfloat16
    M = x0_ref.shape[0]
    i = pl.program_id(0)

    def bn(y):
        # Training-mode BatchNorm, one-pass variance: E[x^2] - mean^2.
        mean = jnp.mean(y, axis=0, keepdims=True)
        var = jnp.mean(y * y, axis=0, keepdims=True) - mean * mean
        return (y - mean) * jax.lax.rsqrt(var + BN_EPS)

    def conv3x3(h, woff):
        # Stage the conv input into the padded scratch so the 9 taps become
        # cheap offset-window reads (+ VPU mask) instead of MXU shift-matmuls.
        hpad_ref[PAD:PAD + M, :] = h

        def tap(k):
            dy, dx = k // 3 - 1, k % 3 - 1
            sft = dy * NUM_COLS + dx
            if sft == 0:                       # center tap: identity, no mask
                return h.astype(bf16)
            win = hpad_ref[PAD + sft:PAD + sft + M, :]
            # mask kills board-boundary / cross-board reads (and pad rows)
            return jnp.where(tapm_ref[k] != 0.0, win, 0.0).astype(bf16)

        # Pairwise K=256 accumulation: full MXU depth on v6e/v7x, two perfect
        # 128-deep passes on v5e; only ~2 tap tiles live at a time.
        acc = None
        for g in range(4):
            pair = jnp.concatenate([tap(2 * g), tap(2 * g + 1)], axis=1)   # (M,256)
            w = resw_ref[0, woff + 256 * g:woff + 256 * (g + 1), :]
            d = jnp.dot(pair, w, preferred_element_type=f32)
            acc = d if acc is None else acc + d
        return acc + jnp.dot(tap(8), resw_ref[0, woff + 1024:woff + 1152, :],
                             preferred_element_type=f32)

    # -- ConvBlock prologue (grid step 0 only) --------------------------------
    @pl.when(i == 0)
    def _():
        hpad_ref[0:PAD, :] = jnp.zeros((PAD, 128), f32)
        hpad_ref[PAD + M:PAD + M + PAD, :] = jnp.zeros((PAD, 128), f32)
        x = jnp.dot(x0_ref[...], c1w_ref[...], preferred_element_type=f32)
        h_ref[...] = jnp.maximum(bn(x + c1b_ref[...]), 0.0)

    # -- ResBlock i: conv -> BN -> relu -> conv -> BN -> (+res) -> relu -------
    res = h_ref[...]
    t = jnp.maximum(bn(conv3x3(res, 0)), 0.0)
    h_new = jnp.maximum(bn(conv3x3(t, 1152)) + res, 0.0)
    h_ref[...] = h_new

    # -- OutBlock epilogue (last grid step only), fully fused -----------------
    @pl.when(i == NUM_BLOCKS - 1)
    def _():
        hb = h_new.astype(bf16)
        agg = agg_ref[...]                                    # (B, M) 0/1 batch aggregator

        # value head: 1x1 conv -> BN -> relu -> fc1 -> relu -> fc2 -> tanh
        v = jnp.maximum(bn(jnp.dot(hb, hvw_ref[...], preferred_element_type=f32)
                           + hvb_ref[...]), 0.0)              # (M, 3)
        # flatten (B, 3*HW) realized via selection matmuls (exact 0/1 operands)
        v_exp = jnp.dot(v.astype(bf16), rvsel_ref[...],
                        preferred_element_type=f32)           # (M, 126): V[m, g%3]
        v_in = jnp.dot(agg, v_exp * maskv_ref[...],
                       preferred_element_type=f32)            # (B, 126)
        v1 = jnp.maximum(jnp.dot(v_in.astype(bf16), fc1w_ref[...],
                                 preferred_element_type=f32) + fc1b_ref[...], 0.0)
        val_ref[...] = jnp.tanh(jnp.dot(v1.astype(bf16), fc2w_ref[...],
                                        preferred_element_type=f32) + fc2b_ref[...])

        # policy head: 1x1 conv -> BN -> relu -> fc -> softmax
        p = jnp.maximum(bn(jnp.dot(hb, hpw_ref[...], preferred_element_type=f32)
                           + hpb_ref[...]), 0.0)              # (M, 32)
        gp = jnp.dot(p.astype(bf16), fcpw_ref[...],
                     preferred_element_type=f32)              # (M, HW*7) per-pos partials
        aggp = jnp.dot(agg, gp * maskp_ref[...],
                       preferred_element_type=f32)            # (B, HW*7) own-pos selected
        logits = jnp.dot(aggp, gsum_ref[...],
                         preferred_element_type=f32) + fcpb_ref[...]     # (B, 7)
        mx = jnp.max(logits, axis=-1, keepdims=True)
        e = jnp.exp(logits - mx)
        pol_ref[...] = e / jnp.sum(e, axis=-1, keepdims=True)  # logsoftmax(x).exp()


# ------------------------------- JAX glue -----------------------------------
def im2col_3x3(x_nhwc):
    """3x3, stride 1, pad 1 patches. (B,H,W,C) -> (B*H*W, 9*C), col=(dy*3+dx)*C+ci."""
    B, H, W, C = x_nhwc.shape
    xp = jnp.pad(x_nhwc, ((0, 0), (1, 1), (1, 1), (0, 0)))
    cols = [xp[:, dy:dy + H, dx:dx + W, :] for dy in range(3) for dx in range(3)]
    return jnp.concatenate(cols, axis=-1).reshape(B * H * W, 9 * C)


def build_geometry(B):
    """Tiny geometry constants (masks / selectors).  All are 0/1 so every use
    inside the kernel is exact; XLA constant-folds them under jit."""
    M = B * HW
    m = jnp.arange(M)
    pos = m % HW
    y = pos // NUM_COLS
    x = pos % NUM_COLS
    masks = []
    for dy in (-1, 0, 1):
        for dx in (-1, 0, 1):
            ok = ((y + dy >= 0) & (y + dy < NUM_ROWS) &
                  (x + dx >= 0) & (x + dx < NUM_COLS))
            masks.append(ok)
    tap_mask = jnp.stack(masks).astype(jnp.float32)[:, :, None]              # (9, M, 1)
    agg = (m[None, :] // HW == jnp.arange(B)[:, None]).astype(jnp.float32)   # (B, M)
    gv = jnp.arange(3 * HW)
    rv_sel = (gv[None, :] % 3 == jnp.arange(3)[:, None]).astype(jnp.bfloat16)  # (3, 126)
    mask_v = (gv[None, :] // 3 == pos[:, None]).astype(jnp.float32)            # (M, 126)
    gp = jnp.arange(NUM_COLS * HW)
    mask_p = (gp[None, :] // NUM_COLS == pos[:, None]).astype(jnp.float32)     # (M, 294)
    gsum = (gp[:, None] % NUM_COLS ==
            jnp.arange(NUM_COLS)[None, :]).astype(jnp.float32)                 # (294, 7)
    return dict(tap_mask=tap_mask, agg=agg, rv_sel=rv_sel,
                mask_v=mask_v, mask_p=mask_p, gsum=gsum)


def init_params(key):
    """Deterministic synthetic parameters in PyTorch-native layouts."""
    keys = iter(jax.random.split(key, 24))

    def nrm(shape, fan_in):
        return jax.random.normal(next(keys), shape, jnp.float32) / jnp.sqrt(float(fan_in))

    p = {}
    p["conv1_w"] = nrm((128, 3, 3, 3), 27)            # (Cout, Cin, KH, KW)
    p["conv1_b"] = nrm((128,), 27)
    for i in range(NUM_BLOCKS):
        p[f"res{i}_w1"] = nrm((128, 128, 3, 3), 9 * 128)
        p[f"res{i}_w2"] = nrm((128, 128, 3, 3), 9 * 128)
    p["conv_v_w"] = nrm((3, 128, 1, 1), 128)
    p["conv_v_b"] = nrm((3,), 128)
    p["conv_p_w"] = nrm((32, 128, 1, 1), 128)
    p["conv_p_b"] = nrm((32,), 128)
    p["fc1_w"] = nrm((32, 3 * HW), 3 * HW)            # torch Linear: (out, in)
    p["fc1_b"] = nrm((32,), 3 * HW)
    p["fc2_w"] = nrm((1, 32), 32)
    p["fc2_b"] = nrm((1,), 32)
    p["fc_w"] = nrm((NUM_COLS, 32 * HW), 32 * HW)
    p["fc_b"] = nrm((NUM_COLS,), 32 * HW)
    return p


def prep_params(p):
    """torch-layout params -> kernel-ready layouts (bf16 matmul weights, conv
    weights as (tap,cin)xcout matrices, FC weights permuted so the in-kernel
    position-major flatten is consumed directly)."""
    bf16 = jnp.bfloat16

    def conv_w_to_mat(w):          # (Cout, Cin, 3, 3) -> (9*Cin, Cout), tap-major
        cout, cin = w.shape[0], w.shape[1]
        return jnp.transpose(w, (2, 3, 1, 0)).reshape(9 * cin, cout).astype(bf16)

    k = {}
    k["conv1_w"] = conv_w_to_mat(p["conv1_w"])                        # (27, 128)
    k["conv1_b"] = p["conv1_b"].reshape(1, -1)
    res_list = []
    for i in range(NUM_BLOCKS):
        w1 = conv_w_to_mat(p[f"res{i}_w1"])
        w2 = conv_w_to_mat(p[f"res{i}_w2"])
        res_list.append(jnp.concatenate([w1, w2], axis=0))            # (2304, 128)
    k["res_w"] = jnp.stack(res_list)                                  # (5, 2304, 128)
    k["head_v_w"] = p["conv_v_w"][:, :, 0, 0].T.astype(bf16)          # (128, 3)
    k["head_v_b"] = p["conv_v_b"].reshape(1, -1)
    k["head_p_w"] = p["conv_p_w"][:, :, 0, 0].T.astype(bf16)          # (128, 32)
    k["head_p_b"] = p["conv_p_b"].reshape(1, -1)
    # fc1: (out,in)->(in,out), rows permuted NCHW-flatten -> position-major.
    fc1 = p["fc1_w"].T.reshape(3, HW, 32).transpose(1, 0, 2).reshape(3 * HW, 32)
    k["fc1_w"] = fc1.astype(bf16)
    k["fc1_b"] = p["fc1_b"].reshape(1, -1)
    k["fc2_w"] = p["fc2_w"].T.astype(bf16)                            # (32, 1)
    k["fc2_b"] = p["fc2_b"].reshape(1, -1)
    # fc (policy): (7, 32*HW) -> (32, HW*7) with column index pos*7 + action.
    fcp = p["fc_w"].reshape(NUM_COLS, 32, HW).transpose(1, 2, 0).reshape(32, HW * NUM_COLS)
    k["fc_p_w"] = fcp.astype(bf16)
    k["fc_p_b"] = p["fc_b"].reshape(1, -1)
    return k


def connectnet_forward(kp, s):
    """s: (B, 3, 6, 7) NCHW.  Returns (policy (B,7), value (B,1))."""
    x = s.reshape(-1, 3, NUM_ROWS, NUM_COLS)          # torch: s.view(-1, 3, H, W)
    B = x.shape[0]
    M = B * HW
    x_nhwc = jnp.transpose(x, (0, 2, 3, 1))
    x0 = im2col_3x3(x_nhwc).astype(jnp.bfloat16)      # first-layer patches (M, 27)
    geo = build_geometry(B)

    args = [
        x0, kp["conv1_w"], kp["conv1_b"], geo["tap_mask"], kp["res_w"],
        kp["head_v_w"], kp["head_v_b"], kp["head_p_w"], kp["head_p_b"],
        geo["rv_sel"], geo["mask_v"], geo["agg"],
        kp["fc1_w"], kp["fc1_b"], kp["fc2_w"], kp["fc2_b"],
        kp["fc_p_w"], kp["fc_p_b"], geo["mask_p"], geo["gsum"],
    ]
    RES_W_IDX = 4
    in_specs = []
    for idx, a in enumerate(args):
        if idx == RES_W_IDX:
            # stream one residual block's conv weights per grid step
            in_specs.append(pl.BlockSpec((1,) + a.shape[1:], lambda i: (i, 0, 0)))
        else:
            nd = a.ndim
            in_specs.append(pl.BlockSpec(a.shape, lambda i, nd=nd: (0,) * nd))

    grid_spec = pltpu.PrefetchScalarGridSpec(
        num_scalar_prefetch=0,
        grid=(NUM_BLOCKS,),
        in_specs=in_specs,
        out_specs=(pl.BlockSpec((B, NUM_COLS), lambda i: (0, 0)),
                   pl.BlockSpec((B, 1), lambda i: (0, 0))),
        scratch_shapes=[pltpu.VMEM((M, 128), jnp.float32),             # carried h
                        pltpu.VMEM((M + 2 * PAD, 128), jnp.float32)],  # shift staging
    )
    policy, value = pl.pallas_call(
        connectnet_kernel,
        grid_spec=grid_spec,
        out_shape=(jax.ShapeDtypeStruct((B, NUM_COLS), jnp.float32),
                   jax.ShapeDtypeStruct((B, 1), jnp.float32)),
        compiler_params=pltpu.CompilerParams(dimension_semantics=("arbitrary",)),
    )(*args)
    return policy, value


# --------------------- pure-JAX reference (for validation) ------------------
def _bf16_matmul(a, b):
    return jnp.dot(a.astype(jnp.bfloat16), b.astype(jnp.bfloat16),
                   preferred_element_type=jnp.float32)


def reference_forward(params, s):
    x = s.reshape(-1, 3, NUM_ROWS, NUM_COLS)
    B = x.shape[0]
    x = jnp.transpose(x, (0, 2, 3, 1))                # NHWC

    def bn(y):
        mean = jnp.mean(y, axis=0, keepdims=True)
        var = jnp.mean(jnp.square(y - mean), axis=0, keepdims=True)
        return (y - mean) * jax.lax.rsqrt(var + BN_EPS)

    def conv3x3(h_nhwc, w_torch):
        cin, cout = w_torch.shape[1], w_torch.shape[0]
        wmat = jnp.transpose(w_torch, (2, 3, 1, 0)).reshape(9 * cin, cout)
        return _bf16_matmul(im2col_3x3(h_nhwc), wmat)

    h = jnp.maximum(bn(conv3x3(x, params["conv1_w"]) + params["conv1_b"][None, :]), 0.0)
    h = h.reshape(B, NUM_ROWS, NUM_COLS, 128)
    for i in range(NUM_BLOCKS):
        res = h.reshape(B * HW, 128)
        t = jnp.maximum(bn(conv3x3(h, params[f"res{i}_w1"])), 0.0)
        t = t.reshape(B, NUM_ROWS, NUM_COLS, 128)
        h = jnp.maximum(bn(conv3x3(t, params[f"res{i}_w2"])) + res, 0.0)
        h = h.reshape(B, NUM_ROWS, NUM_COLS, 128)
    hf = h.reshape(B * HW, 128)

    # value head
    v = _bf16_matmul(hf, params["conv_v_w"][:, :, 0, 0].T) + params["conv_v_b"][None, :]
    v = jnp.maximum(bn(v), 0.0)
    v = v.reshape(B, NUM_ROWS, NUM_COLS, 3).transpose(0, 3, 1, 2).reshape(B, 3 * HW)
    v = jnp.maximum(_bf16_matmul(v, params["fc1_w"].T) + params["fc1_b"][None, :], 0.0)
    v = jnp.tanh(_bf16_matmul(v, params["fc2_w"].T) + params["fc2_b"][None, :])

    # policy head
    p = _bf16_matmul(hf, params["conv_p_w"][:, :, 0, 0].T) + params["conv_p_b"][None, :]
    p = jnp.maximum(bn(p), 0.0)
    p = p.reshape(B, NUM_ROWS, NUM_COLS, 32).transpose(0, 3, 1, 2).reshape(B, 32 * HW)
    logits = _bf16_matmul(p, params["fc_w"].T) + params["fc_b"][None, :]
    return jax.nn.softmax(logits, axis=-1), v


if __name__ == "__main__":
    key = jax.random.PRNGKey(0)
    pkey, xkey = jax.random.split(key)
    params = init_params(pkey)
    kparams = prep_params(params)

    batch = 4                                   # M = 168 rows (8-sublane aligned)
    s = jax.random.normal(xkey, (batch, 3, NUM_ROWS, NUM_COLS), dtype=jnp.float32)

    fwd = jax.jit(connectnet_forward)
    policy, value = fwd(kparams, s)
    jax.block_until_ready((policy, value))

    assert policy.shape == (batch, NUM_COLS) and value.shape == (batch, 1)
    assert bool(jnp.all(jnp.isfinite(policy))) and bool(jnp.all(jnp.isfinite(value)))
    assert bool(jnp.allclose(jnp.sum(policy, axis=1), 1.0, atol=1e-4))

    # Cross-check against a pure-JAX reference (same bf16 matmul precision policy).
    ref_p, ref_v = jax.jit(reference_forward)(params, s)
    assert bool(jnp.allclose(policy, ref_p, atol=1e-2))
    assert bool(jnp.allclose(value, ref_v, atol=1e-2))

    print("KERNEL_OK")
</pallas_src>

<mosaic_0001>
module attributes {stable_mosaic.version = 11 : i64} {
  func.func @connectnet_kernel(%arg0: i32, %arg1: memref<168x27xbf16, #tpu.memory_space<vmem>>, %arg2: memref<27x128xbf16, #tpu.memory_space<vmem>>, %arg3: memref<1x128xf32, #tpu.memory_space<vmem>>, %arg4: memref<9x168x1xf32, #tpu.memory_space<vmem>>, %arg5: memref<1x2304x128xbf16, #tpu.memory_space<vmem>>, %arg6: memref<128x3xbf16, #tpu.memory_space<vmem>>, %arg7: memref<1x3xf32, #tpu.memory_space<vmem>>, %arg8: memref<128x32xbf16, #tpu.memory_space<vmem>>, %arg9: memref<1x32xf32, #tpu.memory_space<vmem>>, %arg10: memref<3x126xbf16, #tpu.memory_space<vmem>>, %arg11: memref<168x126xf32, #tpu.memory_space<vmem>>, %arg12: memref<4x168xf32, #tpu.memory_space<vmem>>, %arg13: memref<126x32xbf16, #tpu.memory_space<vmem>>, %arg14: memref<1x32xf32, #tpu.memory_space<vmem>>, %arg15: memref<32x1xbf16, #tpu.memory_space<vmem>>, %arg16: memref<1x1xf32, #tpu.memory_space<vmem>>, %arg17: memref<32x294xbf16, #tpu.memory_space<vmem>>, %arg18: memref<1x7xf32, #tpu.memory_space<vmem>>, %arg19: memref<168x294xf32, #tpu.memory_space<vmem>>, %arg20: memref<294x7xf32, #tpu.memory_space<vmem>>, %arg21: memref<4x7xf32, #tpu.memory_space<vmem>>, %arg22: memref<4x1xf32, #tpu.memory_space<vmem>>, %arg23: memref<168x128xf32, #tpu.memory_space<vmem>>, %arg24: memref<184x128xf32, #tpu.memory_space<vmem>>) attributes {dimension_semantics = [#tpu.dimension_semantics<arbitrary>], iteration_bounds = array<i64: 5>, scalar_prefetch = 0 : i64, scratch_operands = 2 : i64, tpu.core_type = #tpu.core_type<tc>, window_params = [{pipeline_mode = #tpu.pipeline_mode<synchronous>, transform_indices = @transform_0, window_bounds = array<i64: 168, 27>}, {pipeline_mode = #tpu.pipeline_mode<synchronous>, transform_indices = @transform_1, window_bounds = array<i64: 27, 128>}, {pipeline_mode = #tpu.pipeline_mode<synchronous>, transform_indices = @transform_2, window_bounds = array<i64: 1, 128>}, {pipeline_mode = #tpu.pipeline_mode<synchronous>, transform_indices = @transform_3, window_bounds = array<i64: 9, 168, 1>}, {transform_indices = @transform_4, window_bounds = array<i64: 1, 2304, 128>}, {pipeline_mode = #tpu.pipeline_mode<synchronous>, transform_indices = @transform_5, window_bounds = array<i64: 128, 3>}, {pipeline_mode = #tpu.pipeline_mode<synchronous>, transform_indices = @transform_6, window_bounds = array<i64: 1, 3>}, {pipeline_mode = #tpu.pipeline_mode<synchronous>, transform_indices = @transform_7, window_bounds = array<i64: 128, 32>}, {pipeline_mode = #tpu.pipeline_mode<synchronous>, transform_indices = @transform_8, window_bounds = array<i64: 1, 32>}, {pipeline_mode = #tpu.pipeline_mode<synchronous>, transform_indices = @transform_9, window_bounds = array<i64: 3, 126>}, {pipeline_mode = #tpu.pipeline_mode<synchronous>, transform_indices = @transform_10, window_bounds = array<i64: 168, 126>}, {pipeline_mode = #tpu.pipeline_mode<synchronous>, transform_indices = @transform_11, window_bounds = array<i64: 4, 168>}, {pipeline_mode = #tpu.pipeline_mode<synchronous>, transform_indices = @transform_12, window_bounds = array<i64: 126, 32>}, {pipeline_mode = #tpu.pipeline_mode<synchronous>, transform_indices = @transform_13, window_bounds = array<i64: 1, 32>}, {pipeline_mode = #tpu.pipeline_mode<synchronous>, transform_indices = @transform_14, window_bounds = array<i64: 32, 1>}, {pipeline_mode = #tpu.pipeline_mode<synchronous>, transform_indices = @transform_15, window_bounds = array<i64: 1, 1>}, {pipeline_mode = #tpu.pipeline_mode<synchronous>, transform_indices = @transform_16, window_bounds = array<i64: 32, 294>}, {pipeline_mode = #tpu.pipeline_mode<synchronous>, transform_indices = @transform_17, window_bounds = array<i64: 1, 7>}, {pipeline_mode = #tpu.pipeline_mode<synchronous>, transform_indices = @transform_18, window_bounds = array<i64: 168, 294>}, {pipeline_mode = #tpu.pipeline_mode<synchronous>, transform_indices = @transform_19, window_bounds = array<i64: 294, 7>}, {pipeline_mode = #tpu.pipeline_mode<synchronous>, transform_indices = @transform_20, window_bounds = array<i64: 4, 7>}, {pipeline_mode = #tpu.pipeline_mode<synchronous>, transform_indices = @transform_21, window_bounds = array<i64: 4, 1>}]} {
    %c0_i32 = arith.constant 0 : i32
    %0 = arith.cmpi eq, %arg0, %c0_i32 : i32
    %1 = arith.extui %0 : i1 to i32
    %c0_i32_0 = arith.constant 0 : i32
    %2 = arith.cmpi ne, %1, %c0_i32_0 : i32
    scf.if %2 {
      %cst_152 = arith.constant 0.000000e+00 : f32
      %259 = vector.broadcast %cst_152 : f32 to vector<8x128xf32>
      %c0_153 = arith.constant 0 : index
      %c0_154 = arith.constant 0 : index
      %260 = vector.load %arg24[%c0_153, %c0_154] : memref<184x128xf32, #tpu.memory_space<vmem>>, vector<8x128xf32>
      tpu.vector_store %arg24[%c0_153, %c0_154], %259 {strides = array<i32>} : memref<184x128xf32, #tpu.memory_space<vmem>>, vector<8x128xf32>,
      %cst_155 = arith.constant 0.000000e+00 : f32
      %261 = vector.broadcast %cst_155 : f32 to vector<8x128xf32>
      %c176 = arith.constant 176 : index
      %c0_156 = arith.constant 0 : index
      %262 = vector.load %arg24[%c176, %c0_156] : memref<184x128xf32, #tpu.memory_space<vmem>>, vector<8x128xf32>
      tpu.vector_store %arg24[%c176, %c0_156], %261 {strides = array<i32>} : memref<184x128xf32, #tpu.memory_space<vmem>>, vector<8x128xf32>,
      %c0_157 = arith.constant 0 : index
      %c0_158 = arith.constant 0 : index
      %263 = vector.load %arg1[%c0_157, %c0_158] : memref<168x27xbf16, #tpu.memory_space<vmem>>, vector<168x27xbf16>
      %c0_159 = arith.constant 0 : index
      %c0_160 = arith.constant 0 : index
      %264 = vector.load %arg2[%c0_159, %c0_160] : memref<27x128xbf16, #tpu.memory_space<vmem>>, vector<27x128xbf16>
      %cst_161 = arith.constant dense<0.000000e+00> : vector<168x128xf32>
      %265 = tpu.matmul %263, %264, %cst_161 {dimension_numbers = #tpu.dot_dimension_numbers<[1], [0], [0], [1], [0, 0, 1, 1], [], []>} : vector<168x27xbf16>, vector<27x128xbf16>, vector<168x128xf32> -> vector<168x128xf32>
      %c0_162 = arith.constant 0 : index
      %c0_163 = arith.constant 0 : index
      %266 = vector.load %arg3[%c0_162, %c0_163] : memref<1x128xf32, #tpu.memory_space<vmem>>, vector<1x128xf32>
      %267 = vector.broadcast %266 : vector<1x128xf32> to vector<168x128xf32>
      %268 = arith.addf %265, %267 : vector<168x128xf32>
      %cst_164 = arith.constant dense<0.000000e+00> : vector<128xf32>
      %269 = vector.multi_reduction <add>, %268, %cst_164 [0] : vector<168x128xf32> to vector<128xf32>
      %270 = vector.shape_cast %269 : vector<128xf32> to vector<1x128xf32>
      %cst_165 = arith.constant 1.680000e+02 : f32
      %271 = vector.broadcast %cst_165 : f32 to vector<1x128xf32>
      %272 = arith.divf %270, %271 : vector<1x128xf32>
      %273 = arith.mulf %268, %268 : vector<168x128xf32>
      %cst_166 = arith.constant dense<0.000000e+00> : vector<128xf32>
      %274 = vector.multi_reduction <add>, %273, %cst_166 [0] : vector<168x128xf32> to vector<128xf32>
      %275 = vector.shape_cast %274 : vector<128xf32> to vector<1x128xf32>
      %cst_167 = arith.constant 1.680000e+02 : f32
      %276 = vector.broadcast %cst_167 : f32 to vector<1x128xf32>
      %277 = arith.divf %275, %276 : vector<1x128xf32>
      %278 = arith.mulf %272, %272 : vector<1x128xf32>
      %279 = arith.subf %277, %278 : vector<1x128xf32>
      %280 = vector.broadcast %272 : vector<1x128xf32> to vector<168x128xf32>
      %281 = arith.subf %268, %280 : vector<168x128xf32>
      %cst_168 = arith.constant 9.99999974E-6 : f32
      %282 = vector.broadcast %cst_168 : f32 to vector<1x128xf32>
      %283 = arith.addf %279, %282 : vector<1x128xf32>
      %284 = math.rsqrt %283 : vector<1x128xf32>
      %285 = vector.broadcast %284 : vector<1x128xf32> to vector<168x128xf32>
      %286 = arith.mulf %281, %285 : vector<168x128xf32>
      %cst_169 = arith.constant 0.000000e+00 : f32
      %287 = vector.broadcast %cst_169 : f32 to vector<168x128xf32>
      %288 = arith.maximumf %286, %287 : vector<168x128xf32>
      %c0_170 = arith.constant 0 : index
      %c0_171 = arith.constant 0 : index
      %289 = vector.load %arg23[%c0_170, %c0_171] : memref<168x128xf32, #tpu.memory_space<vmem>>, vector<168x128xf32>
      tpu.vector_store %arg23[%c0_170, %c0_171], %288 {strides = array<i32>} : memref<168x128xf32, #tpu.memory_space<vmem>>, vector<168x128xf32>,
    } else {
    }
    %c0 = arith.constant 0 : index
    %c0_1 = arith.constant 0 : index
    %3 = vector.load %arg23[%c0, %c0_1] : memref<168x128xf32, #tpu.memory_space<vmem>>, vector<168x128xf32>
    %c8 = arith.constant 8 : index
    %c0_2 = arith.constant 0 : index
    %4 = vector.load %arg24[%c8, %c0_2] : memref<184x128xf32, #tpu.memory_space<vmem>>, vector<168x128xf32>
    tpu.vector_store %arg24[%c8, %c0_2], %3 {strides = array<i32>} : memref<184x128xf32, #tpu.memory_space<vmem>>, vector<168x128xf32>,
    %c0_3 = arith.constant 0 : index
    %c0_4 = arith.constant 0 : index
    %5 = vector.load %arg24[%c0_3, %c0_4] : memref<184x128xf32, #tpu.memory_space<vmem>>, vector<168x128xf32>
    %c0_5 = arith.constant 0 : index
    %c0_6 = arith.constant 0 : index
    %c0_7 = arith.constant 0 : index
    %6 = vector.load %arg4[%c0_5, %c0_6, %c0_7] : memref<9x168x1xf32, #tpu.memory_space<vmem>>, vector<1x168x1xf32>
    %7 = vector.shape_cast %6 : vector<1x168x1xf32> to vector<168x1xf32>
    %cst = arith.constant 0.000000e+00 : f32
    %8 = vector.broadcast %cst : f32 to vector<168x1xf32>
    %9 = arith.cmpf one, %7, %8 : vector<168x1xf32>
    %cst_8 = arith.constant 0.000000e+00 : f32
    %10 = vector.shape_cast %9 : vector<168x1xi1> to vector<168x1xi1>
    %11 = vector.broadcast %10 : vector<168x1xi1> to vector<168x128xi1>
    %12 = vector.broadcast %cst_8 : f32 to vector<168x128xf32>
    %13 = arith.select %11, %5, %12 : vector<168x128xi1>, vector<168x128xf32>
    %14 = arith.truncf %13 : vector<168x128xf32> to vector<168x128xbf16>
    %c1 = arith.constant 1 : index
    %c0_9 = arith.constant 0 : index
    %15 = vector.load %arg24[%c1, %c0_9] : memref<184x128xf32, #tpu.memory_space<vmem>>, vector<168x128xf32>
    %c1_10 = arith.constant 1 : index
    %c0_11 = arith.constant 0 : index
    %c0_12 = arith.constant 0 : index
    %16 = vector.load %arg4[%c1_10, %c0_11, %c0_12] : memref<9x168x1xf32, #tpu.memory_space<vmem>>, vector<1x168x1xf32>
    %17 = vector.shape_cast %16 : vector<1x168x1xf32> to vector<168x1xf32>
    %cst_13 = arith.constant 0.000000e+00 : f32
    %18 = vector.broadcast %cst_13 : f32 to vector<168x1xf32>
    %19 = arith.cmpf one, %17, %18 : vector<168x1xf32>
    %cst_14 = arith.constant 0.000000e+00 : f32
    %20 = vector.shape_cast %19 : vector<168x1xi1> to vector<168x1xi1>
    %21 = vector.broadcast %20 : vector<168x1xi1> to vector<168x128xi1>
    %22 = vector.broadcast %cst_14 : f32 to vector<168x128xf32>
    %23 = arith.select %21, %15, %22 : vector<168x128xi1>, vector<168x128xf32>
    %24 = arith.truncf %23 : vector<168x128xf32> to vector<168x128xbf16>
    %25 = tpu.concatenate %14, %24 in 1 : vector<168x128xbf16>, vector<168x128xbf16> -> vector<168x256xbf16>
    %c0_15 = arith.constant 0 : index
    %c0_16 = arith.constant 0 : index
    %c0_17 = arith.constant 0 : index
    %26 = vector.load %arg5[%c0_15, %c0_16, %c0_17] : memref<1x2304x128xbf16, #tpu.memory_space<vmem>>, vector<1x256x128xbf16>
    %27 = vector.shape_cast %26 : vector<1x256x128xbf16> to vector<256x128xbf16>
    %cst_18 = arith.constant dense<0.000000e+00> : vector<168x128xf32>
    %28 = tpu.matmul %25, %27, %cst_18 {dimension_numbers = #tpu.dot_dimension_numbers<[1], [0], [0], [1], [0, 0, 1, 1], [], []>} : vector<168x256xbf16>, vector<256x128xbf16>, vector<168x128xf32> -> vector<168x128xf32>
    %c2 = arith.constant 2 : index
    %c0_19 = arith.constant 0 : index
    %29 = vector.load %arg24[%c2, %c0_19] : memref<184x128xf32, #tpu.memory_space<vmem>>, vector<168x128xf32>
    %c2_20 = arith.constant 2 : index
    %c0_21 = arith.constant 0 : index
    %c0_22 = arith.constant 0 : index
    %30 = vector.load %arg4[%c2_20, %c0_21, %c0_22] : memref<9x168x1xf32, #tpu.memory_space<vmem>>, vector<1x168x1xf32>
    %31 = vector.shape_cast %30 : vector<1x168x1xf32> to vector<168x1xf32>
    %cst_23 = arith.constant 0.000000e+00 : f32
    %32 = vector.broadcast %cst_23 : f32 to vector<168x1xf32>
    %33 = arith.cmpf one, %31, %32 : vector<168x1xf32>
    %cst_24 = arith.constant 0.000000e+00 : f32
    %34 = vector.shape_cast %33 : vector<168x1xi1> to vector<168x1xi1>
    %35 = vector.broadcast %34 : vector<168x1xi1> to vector<168x128xi1>
    %36 = vector.broadcast %cst_24 : f32 to vector<168x128xf32>
    %37 = arith.select %35, %29, %36 : vector<168x128xi1>, vector<168x128xf32>
    %38 = arith.truncf %37 : vector<168x128xf32> to vector<168x128xbf16>
    %c7 = arith.constant 7 : index
    %c0_25 = arith.constant 0 : index
    %39 = vector.load %arg24[%c7, %c0_25] : memref<184x128xf32, #tpu.memory_space<vmem>>, vector<168x128xf32>
    %c3 = arith.constant 3 : index
    %c0_26 = arith.constant 0 : index
    %c0_27 = arith.constant 0 : index
    %40 = vector.load %arg4[%c3, %c0_26, %c0_27] : memref<9x168x1xf32, #tpu.memory_space<vmem>>, vector<1x168x1xf32>
    %41 = vector.shape_cast %40 : vector<1x168x1xf32> to vector<168x1xf32>
    %cst_28 = arith.constant 0.000000e+00 : f32
    %42 = vector.broadcast %cst_28 : f32 to vector<168x1xf32>
    %43 = arith.cmpf one, %41, %42 : vector<168x1xf32>
    %cst_29 = arith.constant 0.000000e+00 : f32
    %44 = vector.shape_cast %43 : vector<168x1xi1> to vector<168x1xi1>
    %45 = vector.broadcast %44 : vector<168x1xi1> to vector<168x128xi1>
    %46 = vector.broadcast %cst_29 : f32 to vector<168x128xf32>
    %47 = arith.select %45, %39, %46 : vector<168x128xi1>, vector<168x128xf32>
    %48 = arith.truncf %47 : vector<168x128xf32> to vector<168x128xbf16>
    %49 = tpu.concatenate %38, %48 in 1 : vector<168x128xbf16>, vector<168x128xbf16> -> vector<168x256xbf16>
    %c0_30 = arith.constant 0 : index
    %c256 = arith.constant 256 : index
    %c0_31 = arith.constant 0 : index
    %50 = vector.load %arg5[%c0_30, %c256, %c0_31] : memref<1x2304x128xbf16, #tpu.memory_space<vmem>>, vector<1x256x128xbf16>
    %51 = vector.shape_cast %50 : vector<1x256x128xbf16> to vector<256x128xbf16>
    %cst_32 = arith.constant dense<0.000000e+00> : vector<168x128xf32>
    %52 = tpu.matmul %49, %51, %cst_32 {dimension_numbers = #tpu.dot_dimension_numbers<[1], [0], [0], [1], [0, 0, 1, 1], [], []>} : vector<168x256xbf16>, vector<256x128xbf16>, vector<168x128xf32> -> vector<168x128xf32>
    %53 = arith.addf %28, %52 : vector<168x128xf32>
    %54 = arith.truncf %3 : vector<168x128xf32> to vector<168x128xbf16>
    %c9 = arith.constant 9 : index
    %c0_33 = arith.constant 0 : index
    %55 = vector.load %arg24[%c9, %c0_33] : memref<184x128xf32, #tpu.memory_space<vmem>>, vector<168x128xf32>
    %c5 = arith.constant 5 : index
    %c0_34 = arith.constant 0 : index
    %c0_35 = arith.constant 0 : index
    %56 = vector.load %arg4[%c5, %c0_34, %c0_35] : memref<9x168x1xf32, #tpu.memory_space<vmem>>, vector<1x168x1xf32>
    %57 = vector.shape_cast %56 : vector<1x168x1xf32> to vector<168x1xf32>
    %cst_36 = arith.constant 0.000000e+00 : f32
    %58 = vector.broadcast %cst_36 : f32 to vector<168x1xf32>
    %59 = arith.cmpf one, %57, %58 : vector<168x1xf32>
    %cst_37 = arith.constant 0.000000e+00 : f32
    %60 = vector.shape_cast %59 : vector<168x1xi1> to vector<168x1xi1>
    %61 = vector.broadcast %60 : vector<168x1xi1> to vector<168x128xi1>
    %62 = vector.broadcast %cst_37 : f32 to vector<168x128xf32>
    %63 = arith.select %61, %55, %62 : vector<168x128xi1>, vector<168x128xf32>
    %64 = arith.truncf %63 : vector<168x128xf32> to vector<168x128xbf16>
    %65 = tpu.concatenate %54, %64 in 1 : vector<168x128xbf16>, vector<168x128xbf16> -> vector<168x256xbf16>
    %c0_38 = arith.constant 0 : index
    %c512 = arith.constant 512 : index
    %c0_39 = arith.constant 0 : index
    %66 = vector.load %arg5[%c0_38, %c512, %c0_39] : memref<1x2304x128xbf16, #tpu.memory_space<vmem>>, vector<1x256x128xbf16>
    %67 = vector.shape_cast %66 : vector<1x256x128xbf16> to vector<256x128xbf16>
    %cst_40 = arith.constant dense<0.000000e+00> : vector<168x128xf32>
    %68 = tpu.matmul %65, %67, %cst_40 {dimension_numbers = #tpu.dot_dimension_numbers<[1], [0], [0], [1], [0, 0, 1, 1], [], []>} : vector<168x256xbf16>, vector<256x128xbf16>, vector<168x128xf32> -> vector<168x128xf32>
    %69 = arith.addf %53, %68 : vector<168x128xf32>
    %c14 = arith.constant 14 : index
    %c0_41 = arith.constant 0 : index
    %70 = vector.load %arg24[%c14, %c0_41] : memref<184x128xf32, #tpu.memory_space<vmem>>, vector<168x128xf32>
    %c6 = arith.constant 6 : index
    %c0_42 = arith.constant 0 : index
    %c0_43 = arith.constant 0 : index
    %71 = vector.load %arg4[%c6, %c0_42, %c0_43] : memref<9x168x1xf32, #tpu.memory_space<vmem>>, vector<1x168x1xf32>
    %72 = vector.shape_cast %71 : vector<1x168x1xf32> to vector<168x1xf32>
    %cst_44 = arith.constant 0.000000e+00 : f32
    %73 = vector.broadcast %cst_44 : f32 to vector<168x1xf32>
    %74 = arith.cmpf one, %72, %73 : vector<168x1xf32>
    %cst_45 = arith.constant 0.000000e+00 : f32
    %75 = vector.shape_cast %74 : vector<168x1xi1> to vector<168x1xi1>
    %76 = vector.broadcast %75 : vector<168x1xi1> to vector<168x128xi1>
    %77 = vector.broadcast %cst_45 : f32 to vector<168x128xf32>
    %78 = arith.select %76, %70, %77 : vector<168x128xi1>, vector<168x128xf32>
    %79 = arith.truncf %78 : vector<168x128xf32> to vector<168x128xbf16>
    %c15 = arith.constant 15 : index
    %c0_46 = arith.constant 0 : index
    %80 = vector.load %arg24[%c15, %c0_46] : memref<184x128xf32, #tpu.memory_space<vmem>>, vector<168x128xf32>
    %c7_47 = arith.constant 7 : index
    %c0_48 = arith.constant 0 : index
    %c0_49 = arith.constant 0 : index
    %81 = vector.load %arg4[%c7_47, %c0_48, %c0_49] : memref<9x168x1xf32, #tpu.memory_space<vmem>>, vector<1x168x1xf32>
    %82 = vector.shape_cast %81 : vector<1x168x1xf32> to vector<168x1xf32>
    %cst_50 = arith.constant 0.000000e+00 : f32
    %83 = vector.broadcast %cst_50 : f32 to vector<168x1xf32>
    %84 = arith.cmpf one, %82, %83 : vector<168x1xf32>
    %cst_51 = arith.constant 0.000000e+00 : f32
    %85 = vector.shape_cast %84 : vector<168x1xi1> to vector<168x1xi1>
    %86 = vector.broadcast %85 : vector<168x1xi1> to vector<168x128xi1>
    %87 = vector.broadcast %cst_51 : f32 to vector<168x128xf32>
    %88 = arith.select %86, %80, %87 : vector<168x128xi1>, vector<168x128xf32>
    %89 = arith.truncf %88 : vector<168x128xf32> to vector<168x128xbf16>
    %90 = tpu.concatenate %79, %89 in 1 : vector<168x128xbf16>, vector<168x128xbf16> -> vector<168x256xbf16>
    %c0_52 = arith.constant 0 : index
    %c768 = arith.constant 768 : index
    %c0_53 = arith.constant 0 : index
    %91 = vector.load %arg5[%c0_52, %c768, %c0_53] : memref<1x2304x128xbf16, #tpu.memory_space<vmem>>, vector<1x256x128xbf16>
    %92 = vector.shape_cast %91 : vector<1x256x128xbf16> to vector<256x128xbf16>
    %cst_54 = arith.constant dense<0.000000e+00> : vector<168x128xf32>
    %93 = tpu.matmul %90, %92, %cst_54 {dimension_numbers = #tpu.dot_dimension_numbers<[1], [0], [0], [1], [0, 0, 1, 1], [], []>} : vector<168x256xbf16>, vector<256x128xbf16>, vector<168x128xf32> -> vector<168x128xf32>
    %94 = arith.addf %69, %93 : vector<168x128xf32>
    %c16 = arith.constant 16 : index
    %c0_55 = arith.constant 0 : index
    %95 = vector.load %arg24[%c16, %c0_55] : memref<184x128xf32, #tpu.memory_space<vmem>>, vector<168x128xf32>
    %c8_56 = arith.constant 8 : index
    %c0_57 = arith.constant 0 : index
    %c0_58 = arith.constant 0 : index
    %96 = vector.load %arg4[%c8_56, %c0_57, %c0_58] : memref<9x168x1xf32, #tpu.memory_space<vmem>>, vector<1x168x1xf32>
    %97 = vector.shape_cast %96 : vector<1x168x1xf32> to vector<168x1xf32>
    %cst_59 = arith.constant 0.000000e+00 : f32
    %98 = vector.broadcast %cst_59 : f32 to vector<168x1xf32>
    %99 = arith.cmpf one, %97, %98 : vector<168x1xf32>
    %cst_60 = arith.constant 0.000000e+00 : f32
    %100 = vector.shape_cast %99 : vector<168x1xi1> to vector<168x1xi1>
    %101 = vector.broadcast %100 : vector<168x1xi1> to vector<168x128xi1>
    %102 = vector.broadcast %cst_60 : f32 to vector<168x128xf32>
    %103 = arith.select %101, %95, %102 : vector<168x128xi1>, vector<168x128xf32>
    %104 = arith.truncf %103 : vector<168x128xf32> to vector<168x128xbf16>
    %c0_61 = arith.constant 0 : index
    %c1024 = arith.constant 1024 : index
    %c0_62 = arith.constant 0 : index
    %105 = vector.load %arg5[%c0_61, %c1024, %c0_62] : memref<1x2304x128xbf16, #tpu.memory_space<vmem>>, vector<1x128x128xbf16>
    %106 = vector.shape_cast %105 : vector<1x128x128xbf16> to vector<128x128xbf16>
    %cst_63 = arith.constant dense<0.000000e+00> : vector<168x128xf32>
    %107 = tpu.matmul %104, %106, %cst_63 {dimension_numbers = #tpu.dot_dimension_numbers<[1], [0], [0], [1], [0, 0, 1, 1], [], []>} : vector<168x128xbf16>, vector<128x128xbf16>, vector<168x128xf32> -> vector<168x128xf32>
    %108 = arith.addf %94, %107 : vector<168x128xf32>
    %cst_64 = arith.constant dense<0.000000e+00> : vector<128xf32>
    %109 = vector.multi_reduction <add>, %108, %cst_64 [0] : vector<168x128xf32> to vector<128xf32>
    %110 = vector.shape_cast %109 : vector<128xf32> to vector<1x128xf32>
    %cst_65 = arith.constant 1.680000e+02 : f32
    %111 = vector.broadcast %cst_65 : f32 to vector<1x128xf32>
    %112 = arith.divf %110, %111 : vector<1x128xf32>
    %113 = arith.mulf %108, %108 : vector<168x128xf32>
    %cst_66 = arith.constant dense<0.000000e+00> : vector<128xf32>
    %114 = vector.multi_reduction <add>, %113, %cst_66 [0] : vector<168x128xf32> to vector<128xf32>
    %115 = vector.shape_cast %114 : vector<128xf32> to vector<1x128xf32>
    %cst_67 = arith.constant 1.680000e+02 : f32
    %116 = vector.broadcast %cst_67 : f32 to vector<1x128xf32>
    %117 = arith.divf %115, %116 : vector<1x128xf32>
    %118 = arith.mulf %112, %112 : vector<1x128xf32>
    %119 = arith.subf %117, %118 : vector<1x128xf32>
    %120 = vector.broadcast %112 : vector<1x128xf32> to vector<168x128xf32>
    %121 = arith.subf %108, %120 : vector<168x128xf32>
    %cst_68 = arith.constant 9.99999974E-6 : f32
    %122 = vector.broadcast %cst_68 : f32 to vector<1x128xf32>
    %123 = arith.addf %119, %122 : vector<1x128xf32>
    %124 = math.rsqrt %123 : vector<1x128xf32>
    %125 = vector.broadcast %124 : vector<1x128xf32> to vector<168x128xf32>
    %126 = arith.mulf %121, %125 : vector<168x128xf32>
    %cst_69 = arith.constant 0.000000e+00 : f32
    %127 = vector.broadcast %cst_69 : f32 to vector<168x128xf32>
    %128 = arith.maximumf %126, %127 : vector<168x128xf32>
    %c8_70 = arith.constant 8 : index
    %c0_71 = arith.constant 0 : index
    %129 = vector.load %arg24[%c8_70, %c0_71] : memref<184x128xf32, #tpu.memory_space<vmem>>, vector<168x128xf32>
    tpu.vector_store %arg24[%c8_70, %c0_71], %128 {strides = array<i32>} : memref<184x128xf32, #tpu.memory_space<vmem>>, vector<168x128xf32>,
    %c0_72 = arith.constant 0 : index
    %c0_73 = arith.constant 0 : index
    %130 = vector.load %arg24[%c0_72, %c0_73] : memref<184x128xf32, #tpu.memory_space<vmem>>, vector<168x128xf32>
    %c0_74 = arith.constant 0 : index
    %c0_75 = arith.constant 0 : index
    %c0_76 = arith.constant 0 : index
    %131 = vector.load %arg4[%c0_74, %c0_75, %c0_76] : memref<9x168x1xf32, #tpu.memory_space<vmem>>, vector<1x168x1xf32>
    %132 = vector.shape_cast %131 : vector<1x168x1xf32> to vector<168x1xf32>
    %cst_77 = arith.constant 0.000000e+00 : f32
    %133 = vector.broadcast %cst_77 : f32 to vector<168x1xf32>
    %134 = arith.cmpf one, %132, %133 : vector<168x1xf32>
    %cst_78 = arith.constant 0.000000e+00 : f32
    %135 = vector.shape_cast %134 : vector<168x1xi1> to vector<168x1xi1>
    %136 = vector.broadcast %135 : vector<168x1xi1> to vector<168x128xi1>
    %137 = vector.broadcast %cst_78 : f32 to vector<168x128xf32>
    %138 = arith.select %136, %130, %137 : vector<168x128xi1>, vector<168x128xf32>
    %139 = arith.truncf %138 : vector<168x128xf32> to vector<168x128xbf16>
    %c1_79 = arith.constant 1 : index
    %c0_80 = arith.constant 0 : index
    %140 = vector.load %arg24[%c1_79, %c0_80] : memref<184x128xf32, #tpu.memory_space<vmem>>, vector<168x128xf32>
    %c1_81 = arith.constant 1 : index
    %c0_82 = arith.constant 0 : index
    %c0_83 = arith.constant 0 : index
    %141 = vector.load %arg4[%c1_81, %c0_82, %c0_83] : memref<9x168x1xf32, #tpu.memory_space<vmem>>, vector<1x168x1xf32>
    %142 = vector.shape_cast %141 : vector<1x168x1xf32> to vector<168x1xf32>
    %cst_84 = arith.constant 0.000000e+00 : f32
    %143 = vector.broadcast %cst_84 : f32 to vector<168x1xf32>
    %144 = arith.cmpf one, %142, %143 : vector<168x1xf32>
    %cst_85 = arith.constant 0.000000e+00 : f32
    %145 = vector.shape_cast %144 : vector<168x1xi1> to vector<168x1xi1>
    %146 = vector.broadcast %145 : vector<168x1xi1> to vector<168x128xi1>
    %147 = vector.broadcast %cst_85 : f32 to vector<168x128xf32>
    %148 = arith.select %146, %140, %147 : vector<168x128xi1>, vector<168x128xf32>
    %149 = arith.truncf %148 : vector<168x128xf32> to vector<168x128xbf16>
    %150 = tpu.concatenate %139, %149 in 1 : vector<168x128xbf16>, vector<168x128xbf16> -> vector<168x256xbf16>
    %c0_86 = arith.constant 0 : index
    %c1152 = arith.constant 1152 : index
    %c0_87 = arith.constant 0 : index
    %151 = vector.load %arg5[%c0_86, %c1152, %c0_87] : memref<1x2304x128xbf16, #tpu.memory_space<vmem>>, vector<1x256x128xbf16>
    %152 = vector.shape_cast %151 : vector<1x256x128xbf16> to vector<256x128xbf16>
    %cst_88 = arith.constant dense<0.000000e+00> : vector<168x128xf32>
    %153 = tpu.matmul %150, %152, %cst_88 {dimension_numbers = #tpu.dot_dimension_numbers<[1], [0], [0], [1], [0, 0, 1, 1], [], []>} : vector<168x256xbf16>, vector<256x128xbf16>, vector<168x128xf32> -> vector<168x128xf32>
    %c2_89 = arith.constant 2 : index
    %c0_90 = arith.constant 0 : index
    %154 = vector.load %arg24[%c2_89, %c0_90] : memref<184x128xf32, #tpu.memory_space<vmem>>, vector<168x128xf32>
    %c2_91 = arith.constant 2 : index
    %c0_92 = arith.constant 0 : index
    %c0_93 = arith.constant 0 : index
    %155 = vector.load %arg4[%c2_91, %c0_92, %c0_93] : memref<9x168x1xf32, #tpu.memory_space<vmem>>, vector<1x168x1xf32>
    %156 = vector.shape_cast %155 : vector<1x168x1xf32> to vector<168x1xf32>
    %cst_94 = arith.constant 0.000000e+00 : f32
    %157 = vector.broadcast %cst_94 : f32 to vector<168x1xf32>
    %158 = arith.cmpf one, %156, %157 : vector<168x1xf32>
    %cst_95 = arith.constant 0.000000e+00 : f32
    %159 = vector.shape_cast %158 : vector<168x1xi1> to vector<168x1xi1>
    %160 = vector.broadcast %159 : vector<168x1xi1> to vector<168x128xi1>
    %161 = vector.broadcast %cst_95 : f32 to vector<168x128xf32>
    %162 = arith.select %160, %154, %161 : vector<168x128xi1>, vector<168x128xf32>
    %163 = arith.truncf %162 : vector<168x128xf32> to vector<168x128xbf16>
    %c7_96 = arith.constant 7 : index
    %c0_97 = arith.constant 0 : index
    %164 = vector.load %arg24[%c7_96, %c0_97] : memref<184x128xf32, #tpu.memory_space<vmem>>, vector<168x128xf32>
    %c3_98 = arith.constant 3 : index
    %c0_99 = arith.constant 0 : index
    %c0_100 = arith.constant 0 : index
    %165 = vector.load %arg4[%c3_98, %c0_99, %c0_100] : memref<9x168x1xf32, #tpu.memory_space<vmem>>, vector<1x168x1xf32>
    %166 = vector.shape_cast %165 : vector<1x168x1xf32> to vector<168x1xf32>
    %cst_101 = arith.constant 0.000000e+00 : f32
    %167 = vector.broadcast %cst_101 : f32 to vector<168x1xf32>
    %168 = arith.cmpf one, %166, %167 : vector<168x1xf32>
    %cst_102 = arith.constant 0.000000e+00 : f32
    %169 = vector.shape_cast %168 : vector<168x1xi1> to vector<168x1xi1>
    %170 = vector.broadcast %169 : vector<168x1xi1> to vector<168x128xi1>
    %171 = vector.broadcast %cst_102 : f32 to vector<168x128xf32>
    %172 = arith.select %170, %164, %171 : vector<168x128xi1>, vector<168x128xf32>
    %173 = arith.truncf %172 : vector<168x128xf32> to vector<168x128xbf16>
    %174 = tpu.concatenate %163, %173 in 1 : vector<168x128xbf16>, vector<168x128xbf16> -> vector<168x256xbf16>
    %c0_103 = arith.constant 0 : index
    %c1408 = arith.constant 1408 : index
    %c0_104 = arith.constant 0 : index
    %175 = vector.load %arg5[%c0_103, %c1408, %c0_104] : memref<1x2304x128xbf16, #tpu.memory_space<vmem>>, vector<1x256x128xbf16>
    %176 = vector.shape_cast %175 : vector<1x256x128xbf16> to vector<256x128xbf16>
    %cst_105 = arith.constant dense<0.000000e+00> : vector<168x128xf32>
    %177 = tpu.matmul %174, %176, %cst_105 {dimension_numbers = #tpu.dot_dimension_numbers<[1], [0], [0], [1], [0, 0, 1, 1], [], []>} : vector<168x256xbf16>, vector<256x128xbf16>, vector<168x128xf32> -> vector<168x128xf32>
    %178 = arith.addf %153, %177 : vector<168x128xf32>
    %179 = arith.truncf %128 : vector<168x128xf32> to vector<168x128xbf16>
    %c9_106 = arith.constant 9 : index
    %c0_107 = arith.constant 0 : index
    %180 = vector.load %arg24[%c9_106, %c0_107] : memref<184x128xf32, #tpu.memory_space<vmem>>, vector<168x128xf32>
    %c5_108 = arith.constant 5 : index
    %c0_109 = arith.constant 0 : index
    %c0_110 = arith.constant 0 : index
    %181 = vector.load %arg4[%c5_108, %c0_109, %c0_110] : memref<9x168x1xf32, #tpu.memory_space<vmem>>, vector<1x168x1xf32>
    %182 = vector.shape_cast %181 : vector<1x168x1xf32> to vector<168x1xf32>
    %cst_111 = arith.constant 0.000000e+00 : f32
    %183 = vector.broadcast %cst_111 : f32 to vector<168x1xf32>
    %184 = arith.cmpf one, %182, %183 : vector<168x1xf32>
    %cst_112 = arith.constant 0.000000e+00 : f32
    %185 = vector.shape_cast %184 : vector<168x1xi1> to vector<168x1xi1>
    %186 = vector.broadcast %185 : vector<168x1xi1> to vector<168x128xi1>
    %187 = vector.broadcast %cst_112 : f32 to vector<168x128xf32>
    %188 = arith.select %186, %180, %187 : vector<168x128xi1>, vector<168x128xf32>
    %189 = arith.truncf %188 : vector<168x128xf32> to vector<168x128xbf16>
    %190 = tpu.concatenate %179, %189 in 1 : vector<168x128xbf16>, vector<168x128xbf16> -> vector<168x256xbf16>
    %c0_113 = arith.constant 0 : index
    %c1664 = arith.constant 1664 : index
    %c0_114 = arith.constant 0 : index
    %191 = vector.load %arg5[%c0_113, %c1664, %c0_114] : memref<1x2304x128xbf16, #tpu.memory_space<vmem>>, vector<1x256x128xbf16>
    %192 = vector.shape_cast %191 : vector<1x256x128xbf16> to vector<256x128xbf16>
    %cst_115 = arith.constant dense<0.000000e+00> : vector<168x128xf32>
    %193 = tpu.matmul %190, %192, %cst_115 {dimension_numbers = #tpu.dot_dimension_numbers<[1], [0], [0], [1], [0, 0, 1, 1], [], []>} : vector<168x256xbf16>, vector<256x128xbf16>, vector<168x128xf32> -> vector<168x128xf32>
    %194 = arith.addf %178, %193 : vector<168x128xf32>
    %c14_116 = arith.constant 14 : index
    %c0_117 = arith.constant 0 : index
    %195 = vector.load %arg24[%c14_116, %c0_117] : memref<184x128xf32, #tpu.memory_space<vmem>>, vector<168x128xf32>
    %c6_118 = arith.constant 6 : index
    %c0_119 = arith.constant 0 : index
    %c0_120 = arith.constant 0 : index
    %196 = vector.load %arg4[%c6_118, %c0_119, %c0_120] : memref<9x168x1xf32, #tpu.memory_space<vmem>>, vector<1x168x1xf32>
    %197 = vector.shape_cast %196 : vector<1x168x1xf32> to vector<168x1xf32>
    %cst_121 = arith.constant 0.000000e+00 : f32
    %198 = vector.broadcast %cst_121 : f32 to vector<168x1xf32>
    %199 = arith.cmpf one, %197, %198 : vector<168x1xf32>
    %cst_122 = arith.constant 0.000000e+00 : f32
    %200 = vector.shape_cast %199 : vector<168x1xi1> to vector<168x1xi1>
    %201 = vector.broadcast %200 : vector<168x1xi1> to vector<168x128xi1>
    %202 = vector.broadcast %cst_122 : f32 to vector<168x128xf32>
    %203 = arith.select %201, %195, %202 : vector<168x128xi1>, vector<168x128xf32>
    %204 = arith.truncf %203 : vector<168x128xf32> to vector<168x128xbf16>
    %c15_123 = arith.constant 15 : index
    %c0_124 = arith.constant 0 : index
    %205 = vector.load %arg24[%c15_123, %c0_124] : memref<184x128xf32, #tpu.memory_space<vmem>>, vector<168x128xf32>
    %c7_125 = arith.constant 7 : index
    %c0_126 = arith.constant 0 : index
    %c0_127 = arith.constant 0 : index
    %206 = vector.load %arg4[%c7_125, %c0_126, %c0_127] : memref<9x168x1xf32, #tpu.memory_space<vmem>>, vector<1x168x1xf32>
    %207 = vector.shape_cast %206 : vector<1x168x1xf32> to vector<168x1xf32>
    %cst_128 = arith.constant 0.000000e+00 : f32
    %208 = vector.broadcast %cst_128 : f32 to vector<168x1xf32>
    %209 = arith.cmpf one, %207, %208 : vector<168x1xf32>
    %cst_129 = arith.constant 0.000000e+00 : f32
    %210 = vector.shape_cast %209 : vector<168x1xi1> to vector<168x1xi1>
    %211 = vector.broadcast %210 : vector<168x1xi1> to vector<168x128xi1>
    %212 = vector.broadcast %cst_129 : f32 to vector<168x128xf32>
    %213 = arith.select %211, %205, %212 : vector<168x128xi1>, vector<168x128xf32>
    %214 = arith.truncf %213 : vector<168x128xf32> to vector<168x128xbf16>
    %215 = tpu.concatenate %204, %214 in 1 : vector<168x128xbf16>, vector<168x128xbf16> -> vector<168x256xbf16>
    %c0_130 = arith.constant 0 : index
    %c1920 = arith.constant 1920 : index
    %c0_131 = arith.constant 0 : index
    %216 = vector.load %arg5[%c0_130, %c1920, %c0_131] : memref<1x2304x128xbf16, #tpu.memory_space<vmem>>, vector<1x256x128xbf16>
    %217 = vector.shape_cast %216 : vector<1x256x128xbf16> to vector<256x128xbf16>
    %cst_132 = arith.constant dense<0.000000e+00> : vector<168x128xf32>
    %218 = tpu.matmul %215, %217, %cst_132 {dimension_numbers = #tpu.dot_dimension_numbers<[1], [0], [0], [1], [0, 0, 1, 1], [], []>} : vector<168x256xbf16>, vector<256x128xbf16>, vector<168x128xf32> -> vector<168x128xf32>
    %219 = arith.addf %194, %218 : vector<168x128xf32>
    %c16_133 = arith.constant 16 : index
    %c0_134 = arith.constant 0 : index
    %220 = vector.load %arg24[%c16_133, %c0_134] : memref<184x128xf32, #tpu.memory_space<vmem>>, vector<168x128xf32>
    %c8_135 = arith.constant 8 : index
    %c0_136 = arith.constant 0 : index
    %c0_137 = arith.constant 0 : index
    %221 = vector.load %arg4[%c8_135, %c0_136, %c0_137] : memref<9x168x1xf32, #tpu.memory_space<vmem>>, vector<1x168x1xf32>
    %222 = vector.shape_cast %221 : vector<1x168x1xf32> to vector<168x1xf32>
    %cst_138 = arith.constant 0.000000e+00 : f32
    %223 = vector.broadcast %cst_138 : f32 to vector<168x1xf32>
    %224 = arith.cmpf one, %222, %223 : vector<168x1xf32>
    %cst_139 = arith.constant 0.000000e+00 : f32
    %225 = vector.shape_cast %224 : vector<168x1xi1> to vector<168x1xi1>
    %226 = vector.broadcast %225 : vector<168x1xi1> to vector<168x128xi1>
    %227 = vector.broadcast %cst_139 : f32 to vector<168x128xf32>
    %228 = arith.select %226, %220, %227 : vector<168x128xi1>, vector<168x128xf32>
    %229 = arith.truncf %228 : vector<168x128xf32> to vector<168x128xbf16>
    %c0_140 = arith.constant 0 : index
    %c2176 = arith.constant 2176 : index
    %c0_141 = arith.constant 0 : index
    %230 = vector.load %arg5[%c0_140, %c2176, %c0_141] : memref<1x2304x128xbf16, #tpu.memory_space<vmem>>, vector<1x128x128xbf16>
    %231 = vector.shape_cast %230 : vector<1x128x128xbf16> to vector<128x128xbf16>
    %cst_142 = arith.constant dense<0.000000e+00> : vector<168x128xf32>
    %232 = tpu.matmul %229, %231, %cst_142 {dimension_numbers = #tpu.dot_dimension_numbers<[1], [0], [0], [1], [0, 0, 1, 1], [], []>} : vector<168x128xbf16>, vector<128x128xbf16>, vector<168x128xf32> -> vector<168x128xf32>
    %233 = arith.addf %219, %232 : vector<168x128xf32>
    %cst_143 = arith.constant dense<0.000000e+00> : vector<128xf32>
    %234 = vector.multi_reduction <add>, %233, %cst_143 [0] : vector<168x128xf32> to vector<128xf32>
    %235 = vector.shape_cast %234 : vector<128xf32> to vector<1x128xf32>
    %cst_144 = arith.constant 1.680000e+02 : f32
    %236 = vector.broadcast %cst_144 : f32 to vector<1x128xf32>
    %237 = arith.divf %235, %236 : vector<1x128xf32>
    %238 = arith.mulf %233, %233 : vector<168x128xf32>
    %cst_145 = arith.constant dense<0.000000e+00> : vector<128xf32>
    %239 = vector.multi_reduction <add>, %238, %cst_145 [0] : vector<168x128xf32> to vector<128xf32>
    %240 = vector.shape_cast %239 : vector<128xf32> to vector<1x128xf32>
    %cst_146 = arith.constant 1.680000e+02 : f32
    %241 = vector.broadcast %cst_146 : f32 to vector<1x128xf32>
    %242 = arith.divf %240, %241 : vector<1x128xf32>
    %243 = arith.mulf %237, %237 : vector<1x128xf32>
    %244 = arith.subf %242, %243 : vector<1x128xf32>
    %245 = vector.broadcast %237 : vector<1x128xf32> to vector<168x128xf32>
    %246 = arith.subf %233, %245 : vector<168x128xf32>
    %cst_147 = arith.constant 9.99999974E-6 : f32
    %247 = vector.broadcast %cst_147 : f32 to vector<1x128xf32>
    %248 = arith.addf %244, %247 : vector<1x128xf32>
    %249 = math.rsqrt %248 : vector<1x128xf32>
    %250 = vector.broadcast %249 : vector<1x128xf32> to vector<168x128xf32>
    %251 = arith.mulf %246, %250 : vector<168x128xf32>
    %252 = arith.addf %251, %3 : vector<168x128xf32>
    %cst_148 = arith.constant 0.000000e+00 : f32
    %253 = vector.broadcast %cst_148 : f32 to vector<168x128xf32>
    %254 = arith.maximumf %252, %253 : vector<168x128xf32>
    %c0_149 = arith.constant 0 : index
    %c0_150 = arith.constant 0 : index
    %255 = vector.load %arg23[%c0_149, %c0_150] : memref<168x128xf32, #tpu.memory_space<vmem>>, vector<168x128xf32>
    tpu.vector_store %arg23[%c0_149, %c0_150], %254 {strides = array<i32>} : memref<168x128xf32, #tpu.memory_space<vmem>>, vector<168x128xf32>,
    %c4_i32 = arith.constant 4 : i32
    %256 = arith.cmpi eq, %arg0, %c4_i32 : i32
    %257 = arith.extui %256 : i1 to i32
    %c0_i32_151 = arith.constant 0 : i32
    %258 = arith.cmpi ne, %257, %c0_i32_151 : i32
    scf.if %258 {
      %259 = arith.truncf %254 : vector<168x128xf32> to vector<168x128xbf16>
      %c0_152 = arith.constant 0 : index
      %c0_153 = arith.constant 0 : index
      %260 = vector.load %arg12[%c0_152, %c0_153] : memref<4x168xf32, #tpu.memory_space<vmem>>, vector<4x168xf32>
      %c0_154 = arith.constant 0 : index
      %c0_155 = arith.constant 0 : index
      %261 = vector.load %arg6[%c0_154, %c0_155] : memref<128x3xbf16, #tpu.memory_space<vmem>>, vector<128x3xbf16>
      %cst_156 = arith.constant dense<0.000000e+00> : vector<168x3xf32>
      %262 = tpu.matmul %259, %261, %cst_156 {dimension_numbers = #tpu.dot_dimension_numbers<[1], [0], [0], [1], [0, 0, 1, 1], [], []>} : vector<168x128xbf16>, vector<128x3xbf16>, vector<168x3xf32> -> vector<168x3xf32>
      %c0_157 = arith.constant 0 : index
      %c0_158 = arith.constant 0 : index
      %263 = vector.load %arg7[%c0_157, %c0_158] : memref<1x3xf32, #tpu.memory_space<vmem>>, vector<1x3xf32>
      %264 = vector.broadcast %263 : vector<1x3xf32> to vector<168x3xf32>
      %265 = arith.addf %262, %264 : vector<168x3xf32>
      %cst_159 = arith.constant dense<0.000000e+00> : vector<3xf32>
      %266 = vector.multi_reduction <add>, %265, %cst_159 [0] : vector<168x3xf32> to vector<3xf32>
      %267 = vector.shape_cast %266 : vector<3xf32> to vector<1x3xf32>
      %cst_160 = arith.constant 1.680000e+02 : f32
      %268 = vector.broadcast %cst_160 : f32 to vector<1x3xf32>
      %269 = arith.divf %267, %268 : vector<1x3xf32>
      %270 = arith.mulf %265, %265 : vector<168x3xf32>
      %cst_161 = arith.constant dense<0.000000e+00> : vector<3xf32>
      %271 = vector.multi_reduction <add>, %270, %cst_161 [0] : vector<168x3xf32> to vector<3xf32>
      %272 = vector.shape_cast %271 : vector<3xf32> to vector<1x3xf32>
      %cst_162 = arith.constant 1.680000e+02 : f32
      %273 = vector.broadcast %cst_162 : f32 to vector<1x3xf32>
      %274 = arith.divf %272, %273 : vector<1x3xf32>
      %275 = arith.mulf %269, %269 : vector<1x3xf32>
      %276 = arith.subf %274, %275 : vector<1x3xf32>
      %277 = vector.broadcast %269 : vector<1x3xf32> to vector<168x3xf32>
      %278 = arith.subf %265, %277 : vector<168x3xf32>
      %cst_163 = arith.constant 9.99999974E-6 : f32
      %279 = vector.broadcast %cst_163 : f32 to vector<1x3xf32>
      %280 = arith.addf %276, %279 : vector<1x3xf32>
      %281 = math.rsqrt %280 : vector<1x3xf32>
      %282 = vector.broadcast %281 : vector<1x3xf32> to vector<168x3xf32>
      %283 = arith.mulf %278, %282 : vector<168x3xf32>
      %cst_164 = arith.constant 0.000000e+00 : f32
      %284 = vector.broadcast %cst_164 : f32 to vector<168x3xf32>
      %285 = arith.maximumf %283, %284 : vector<168x3xf32>
      %286 = arith.truncf %285 : vector<168x3xf32> to vector<168x3xbf16>
      %c0_165 = arith.constant 0 : index
      %c0_166 = arith.constant 0 : index
      %287 = vector.load %arg10[%c0_165, %c0_166] : memref<3x126xbf16, #tpu.memory_space<vmem>>, vector<3x126xbf16>
      %cst_167 = arith.constant dense<0.000000e+00> : vector<168x126xf32>
      %288 = tpu.matmul %286, %287, %cst_167 {dimension_numbers = #tpu.dot_dimension_numbers<[1], [0], [0], [1], [0, 0, 1, 1], [], []>} : vector<168x3xbf16>, vector<3x126xbf16>, vector<168x126xf32> -> vector<168x126xf32>
      %c0_168 = arith.constant 0 : index
      %c0_169 = arith.constant 0 : index
      %289 = vector.load %arg11[%c0_168, %c0_169] : memref<168x126xf32, #tpu.memory_space<vmem>>, vector<168x126xf32>
      %290 = arith.mulf %288, %289 : vector<168x126xf32>
      %cst_170 = arith.constant dense<0.000000e+00> : vector<4x126xf32>
      %291 = tpu.matmul %260, %290, %cst_170 {dimension_numbers = #tpu.dot_dimension_numbers<[1], [0], [0], [1], [0, 0, 1, 1], [], []>} : vector<4x168xf32>, vector<168x126xf32>, vector<4x126xf32> -> vector<4x126xf32>
      %292 = arith.truncf %291 : vector<4x126xf32> to vector<4x126xbf16>
      %c0_171 = arith.constant 0 : index
      %c0_172 = arith.constant 0 : index
      %293 = vector.load %arg13[%c0_171, %c0_172] : memref<126x32xbf16, #tpu.memory_space<vmem>>, vector<126x32xbf16>
      %cst_173 = arith.constant dense<0.000000e+00> : vector<4x32xf32>
      %294 = tpu.matmul %292, %293, %cst_173 {dimension_numbers = #tpu.dot_dimension_numbers<[1], [0], [0], [1], [0, 0, 1, 1], [], []>} : vector<4x126xbf16>, vector<126x32xbf16>, vector<4x32xf32> -> vector<4x32xf32>
      %c0_174 = arith.constant 0 : index
      %c0_175 = arith.constant 0 : index
      %295 = vector.load %arg14[%c0_174, %c0_175] : memref<1x32xf32, #tpu.memory_space<vmem>>, vector<1x32xf32>
      %296 = vector.broadcast %295 : vector<1x32xf32> to vector<4x32xf32>
      %297 = arith.addf %294, %296 : vector<4x32xf32>
      %cst_176 = arith.constant 0.000000e+00 : f32
      %298 = vector.broadcast %cst_176 : f32 to vector<4x32xf32>
      %299 = arith.maximumf %297, %298 : vector<4x32xf32>
      %300 = arith.truncf %299 : vector<4x32xf32> to vector<4x32xbf16>
      %c0_177 = arith.constant 0 : index
      %c0_178 = arith.constant 0 : index
      %301 = vector.load %arg15[%c0_177, %c0_178] : memref<32x1xbf16, #tpu.memory_space<vmem>>, vector<32x1xbf16>
      %cst_179 = arith.constant dense<0.000000e+00> : vector<4x1xf32>
      %302 = tpu.matmul %300, %301, %cst_179 {dimension_numbers = #tpu.dot_dimension_numbers<[1], [0], [0], [1], [0, 0, 1, 1], [], []>} : vector<4x32xbf16>, vector<32x1xbf16>, vector<4x1xf32> -> vector<4x1xf32>
      %c0_180 = arith.constant 0 : index
      %c0_181 = arith.constant 0 : index
      %303 = vector.load %arg16[%c0_180, %c0_181] : memref<1x1xf32, #tpu.memory_space<vmem>>, vector<1x1xf32>
      %304 = vector.broadcast %303 : vector<1x1xf32> to vector<4x1xf32>
      %305 = arith.addf %302, %304 : vector<4x1xf32>
      %306 = math.tanh %305 : vector<4x1xf32>
      %c0_182 = arith.constant 0 : index
      %c0_183 = arith.constant 0 : index
      %307 = vector.load %arg22[%c0_182, %c0_183] : memref<4x1xf32, #tpu.memory_space<vmem>>, vector<4x1xf32>
      tpu.vector_store %arg22[%c0_182, %c0_183], %306 {strides = array<i32>} : memref<4x1xf32, #tpu.memory_space<vmem>>, vector<4x1xf32>,
      %c0_184 = arith.constant 0 : index
      %c0_185 = arith.constant 0 : index
      %308 = vector.load %arg8[%c0_184, %c0_185] : memref<128x32xbf16, #tpu.memory_space<vmem>>, vector<128x32xbf16>
      %cst_186 = arith.constant dense<0.000000e+00> : vector<168x32xf32>
      %309 = tpu.matmul %259, %308, %cst_186 {dimension_numbers = #tpu.dot_dimension_numbers<[1], [0], [0], [1], [0, 0, 1, 1], [], []>} : vector<168x128xbf16>, vector<128x32xbf16>, vector<168x32xf32> -> vector<168x32xf32>
      %c0_187 = arith.constant 0 : index
      %c0_188 = arith.constant 0 : index
      %310 = vector.load %arg9[%c0_187, %c0_188] : memref<1x32xf32, #tpu.memory_space<vmem>>, vector<1x32xf32>
      %311 = vector.broadcast %310 : vector<1x32xf32> to vector<168x32xf32>
      %312 = arith.addf %309, %311 : vector<168x32xf32>
      %cst_189 = arith.constant dense<0.000000e+00> : vector<32xf32>
      %313 = vector.multi_reduction <add>, %312, %cst_189 [0] : vector<168x32xf32> to vector<32xf32>
      %314 = vector.shape_cast %313 : vector<32xf32> to vector<1x32xf32>
      %cst_190 = arith.constant 1.680000e+02 : f32
      %315 = vector.broadcast %cst_190 : f32 to vector<1x32xf32>
      %316 = arith.divf %314, %315 : vector<1x32xf32>
      %317 = arith.mulf %312, %312 : vector<168x32xf32>
      %cst_191 = arith.constant dense<0.000000e+00> : vector<32xf32>
      %318 = vector.multi_reduction <add>, %317, %cst_191 [0] : vector<168x32xf32> to vector<32xf32>
      %319 = vector.shape_cast %318 : vector<32xf32> to vector<1x32xf32>
      %cst_192 = arith.constant 1.680000e+02 : f32
      %320 = vector.broadcast %cst_192 : f32 to vector<1x32xf32>
      %321 = arith.divf %319, %320 : vector<1x32xf32>
      %322 = arith.mulf %316, %316 : vector<1x32xf32>
      %323 = arith.subf %321, %322 : vector<1x32xf32>
      %324 = vector.broadcast %316 : vector<1x32xf32> to vector<168x32xf32>
      %325 = arith.subf %312, %324 : vector<168x32xf32>
      %cst_193 = arith.constant 9.99999974E-6 : f32
      %326 = vector.broadcast %cst_193 : f32 to vector<1x32xf32>
      %327 = arith.addf %323, %326 : vector<1x32xf32>
      %328 = math.rsqrt %327 : vector<1x32xf32>
      %329 = vector.broadcast %328 : vector<1x32xf32> to vector<168x32xf32>
      %330 = arith.mulf %325, %329 : vector<168x32xf32>
      %cst_194 = arith.constant 0.000000e+00 : f32
      %331 = vector.broadcast %cst_194 : f32 to vector<168x32xf32>
      %332 = arith.maximumf %330, %331 : vector<168x32xf32>
      %333 = arith.truncf %332 : vector<168x32xf32> to vector<168x32xbf16>
      %c0_195 = arith.constant 0 : index
      %c0_196 = arith.constant 0 : index
      %334 = vector.load %arg17[%c0_195, %c0_196] : memref<32x294xbf16, #tpu.memory_space<vmem>>, vector<32x294xbf16>
      %cst_197 = arith.constant dense<0.000000e+00> : vector<168x294xf32>
      %335 = tpu.matmul %333, %334, %cst_197 {dimension_numbers = #tpu.dot_dimension_numbers<[1], [0], [0], [1], [0, 0, 1, 1], [], []>} : vector<168x32xbf16>, vector<32x294xbf16>, vector<168x294xf32> -> vector<168x294xf32>
      %c0_198 = arith.constant 0 : index
      %c0_199 = arith.constant 0 : index
      %336 = vector.load %arg19[%c0_198, %c0_199] : memref<168x294xf32, #tpu.memory_space<vmem>>, vector<168x294xf32>
      %337 = arith.mulf %335, %336 : vector<168x294xf32>
      %cst_200 = arith.constant dense<0.000000e+00> : vector<4x294xf32>
      %338 = tpu.matmul %260, %337, %cst_200 {dimension_numbers = #tpu.dot_dimension_numbers<[1], [0], [0], [1], [0, 0, 1, 1], [], []>} : vector<4x168xf32>, vector<168x294xf32>, vector<4x294xf32> -> vector<4x294xf32>
      %c0_201 = arith.constant 0 : index
      %c0_202 = arith.constant 0 : index
      %339 = vector.load %arg20[%c0_201, %c0_202] : memref<294x7xf32, #tpu.memory_space<vmem>>, vector<294x7xf32>
      %cst_203 = arith.constant dense<0.000000e+00> : vector<4x7xf32>
      %340 = tpu.matmul %338, %339, %cst_203 {dimension_numbers = #tpu.dot_dimension_numbers<[1], [0], [0], [1], [0, 0, 1, 1], [], []>} : vector<4x294xf32>, vector<294x7xf32>, vector<4x7xf32> -> vector<4x7xf32>
      %c0_204 = arith.constant 0 : index
      %c0_205 = arith.constant 0 : index
      %341 = vector.load %arg18[%c0_204, %c0_205] : memref<1x7xf32, #tpu.memory_space<vmem>>, vector<1x7xf32>
      %342 = vector.broadcast %341 : vector<1x7xf32> to vector<4x7xf32>
      %343 = arith.addf %340, %342 : vector<4x7xf32>
      %cst_206 = arith.constant dense<0xFF800000> : vector<4xf32>
      %344 = vector.multi_reduction <maximumf>, %343, %cst_206 [1] : vector<4x7xf32> to vector<4xf32>
      %345 = vector.shape_cast %344 : vector<4xf32> to vector<4x1xf32>
      %346 = vector.broadcast %345 : vector<4x1xf32> to vector<4x7xf32>
      %347 = arith.subf %343, %346 : vector<4x7xf32>
      %348 = math.exp %347 : vector<4x7xf32>
      %cst_207 = arith.constant dense<0.000000e+00> : vector<4xf32>
      %349 = vector.multi_reduction <add>, %348, %cst_207 [1] : vector<4x7xf32> to vector<4xf32>
      %350 = vector.shape_cast %349 : vector<4xf32> to vector<4x1xf32>
      %351 = vector.broadcast %350 : vector<4x1xf32> to vector<4x7xf32>
      %352 = arith.divf %348, %351 : vector<4x7xf32>
      %c0_208 = arith.constant 0 : index
      %c0_209 = arith.constant 0 : index
      %353 = vector.load %arg21[%c0_208, %c0_209] : memref<4x7xf32, #tpu.memory_space<vmem>>, vector<4x7xf32>
      tpu.vector_store %arg21[%c0_208, %c0_209], %352 {strides = array<i32>} : memref<4x7xf32, #tpu.memory_space<vmem>>, vector<4x7xf32>,
    } else {
    }
    return
  }
  func.func @transform_0(%arg0: i32) -> (i32, i32) {
    %c0_i32 = arith.constant 0 : i32
    %c0_i32_0 = arith.constant 0 : i32
    %c0_i32_1 = arith.constant 0 : i32
    return %c0_i32, %c0_i32_0 : i32, i32
  }
  func.func @transform_1(%arg0: i32) -> (i32, i32) {
    %c0_i32 = arith.constant 0 : i32
    %c0_i32_0 = arith.constant 0 : i32
    %c0_i32_1 = arith.constant 0 : i32
    return %c0_i32, %c0_i32_0 : i32, i32
  }
  func.func @transform_2(%arg0: i32) -> (i32, i32) {
    %c0_i32 = arith.constant 0 : i32
    %c0_i32_0 = arith.constant 0 : i32
    %c0_i32_1 = arith.constant 0 : i32
    return %c0_i32, %c0_i32_0 : i32, i32
  }
  func.func @transform_3(%arg0: i32) -> (i32, i32, i32) {
    %c0_i32 = arith.constant 0 : i32
    %c0_i32_0 = arith.constant 0 : i32
    %c0_i32_1 = arith.constant 0 : i32
    %c0_i32_2 = arith.constant 0 : i32
    return %c0_i32, %c0_i32_0, %c0_i32_1 : i32, i32, i32
  }
  func.func @transform_4(%arg0: i32) -> (i32, i32, i32) {
    %c0_i32 = arith.constant 0 : i32
    %c0_i32_0 = arith.constant 0 : i32
    %c0_i32_1 = arith.constant 0 : i32
    return %arg0, %c0_i32, %c0_i32_0 : i32, i32, i32
  }
  func.func @transform_5(%arg0: i32) -> (i32, i32) {
    %c0_i32 = arith.constant 0 : i32
    %c0_i32_0 = arith.constant 0 : i32
    %c0_i32_1 = arith.constant 0 : i32
    return %c0_i32, %c0_i32_0 : i32, i32
  }
  func.func @transform_6(%arg0: i32) -> (i32, i32) {
    %c0_i32 = arith.constant 0 : i32
    %c0_i32_0 = arith.constant 0 : i32
    %c0_i32_1 = arith.constant 0 : i32
    return %c0_i32, %c0_i32_0 : i32, i32
  }
  func.func @transform_7(%arg0: i32) -> (i32, i32) {
    %c0_i32 = arith.constant 0 : i32
    %c0_i32_0 = arith.constant 0 : i32
    %c0_i32_1 = arith.constant 0 : i32
    return %c0_i32, %c0_i32_0 : i32, i32
  }
  func.func @transform_8(%arg0: i32) -> (i32, i32) {
    %c0_i32 = arith.constant 0 : i32
    %c0_i32_0 = arith.constant 0 : i32
    %c0_i32_1 = arith.constant 0 : i32
    return %c0_i32, %c0_i32_0 : i32, i32
  }
  func.func @transform_9(%arg0: i32) -> (i32, i32) {
    %c0_i32 = arith.constant 0 : i32
    %c0_i32_0 = arith.constant 0 : i32
    %c0_i32_1 = arith.constant 0 : i32
    return %c0_i32, %c0_i32_0 : i32, i32
  }
  func.func @transform_10(%arg0: i32) -> (i32, i32) {
    %c0_i32 = arith.constant 0 : i32
    %c0_i32_0 = arith.constant 0 : i32
    %c0_i32_1 = arith.constant 0 : i32
    return %c0_i32, %c0_i32_0 : i32, i32
  }
  func.func @transform_11(%arg0: i32) -> (i32, i32) {
    %c0_i32 = arith.constant 0 : i32
    %c0_i32_0 = arith.constant 0 : i32
    %c0_i32_1 = arith.constant 0 : i32
    return %c0_i32, %c0_i32_0 : i32, i32
  }
  func.func @transform_12(%arg0: i32) -> (i32, i32) {
    %c0_i32 = arith.constant 0 : i32
    %c0_i32_0 = arith.constant 0 : i32
    %c0_i32_1 = arith.constant 0 : i32
    return %c0_i32, %c0_i32_0 : i32, i32
  }
  func.func @transform_13(%arg0: i32) -> (i32, i32) {
    %c0_i32 = arith.constant 0 : i32
    %c0_i32_0 = arith.constant 0 : i32
    %c0_i32_1 = arith.constant 0 : i32
    return %c0_i32, %c0_i32_0 : i32, i32
  }
  func.func @transform_14(%arg0: i32) -> (i32, i32) {
    %c0_i32 = arith.constant 0 : i32
    %c0_i32_0 = arith.constant 0 : i32
    %c0_i32_1 = arith.constant 0 : i32
    return %c0_i32, %c0_i32_0 : i32, i32
  }
  func.func @transform_15(%arg0: i32) -> (i32, i32) {
    %c0_i32 = arith.constant 0 : i32
    %c0_i32_0 = arith.constant 0 : i32
    %c0_i32_1 = arith.constant 0 : i32
    return %c0_i32, %c0_i32_0 : i32, i32
  }
  func.func @transform_16(%arg0: i32) -> (i32, i32) {
    %c0_i32 = arith.constant 0 : i32
    %c0_i32_0 = arith.constant 0 : i32
    %c0_i32_1 = arith.constant 0 : i32
    return %c0_i32, %c0_i32_0 : i32, i32
  }
  func.func @transform_17(%arg0: i32) -> (i32, i32) {
    %c0_i32 = arith.constant 0 : i32
    %c0_i32_0 = arith.constant 0 : i32
    %c0_i32_1 = arith.constant 0 : i32
    return %c0_i32, %c0_i32_0 : i32, i32
  }
  func.func @transform_18(%arg0: i32) -> (i32, i32) {
    %c0_i32 = arith.constant 0 : i32
    %c0_i32_0 = arith.constant 0 : i32
    %c0_i32_1 = arith.constant 0 : i32
    return %c0_i32, %c0_i32_0 : i32, i32
  }
  func.func @transform_19(%arg0: i32) -> (i32, i32) {
    %c0_i32 = arith.constant 0 : i32
    %c0_i32_0 = arith.constant 0 : i32
    %c0_i32_1 = arith.constant 0 : i32
    return %c0_i32, %c0_i32_0 : i32, i32
  }
  func.func @transform_20(%arg0: i32) -> (i32, i32) {
    %c0_i32 = arith.constant 0 : i32
    %c0_i32_0 = arith.constant 0 : i32
    %c0_i32_1 = arith.constant 0 : i32
    return %c0_i32, %c0_i32_0 : i32, i32
  }
  func.func @transform_21(%arg0: i32) -> (i32, i32) {
    %c0_i32 = arith.constant 0 : i32
    %c0_i32_0 = arith.constant 0 : i32
    %c0_i32_1 = arith.constant 0 : i32
    return %c0_i32, %c0_i32_0 : i32, i32
  }
}

</mosaic_0001>

<bundles_post_ra>
// kernel: connectnet_forward.1
= control target key start
LH: loop header
LB: loop body
LE: loop exit
PB: predicated region body
PF: predicated region fallthrough
CT: control target
= control target key end

     0   :  { %s17859_s0 = inlined_call_operand.vmem [shape: bf16[168,27], index: 0, kind: input, shape index: {}]   ;;  %s17860_s1 = inlined_call_operand.vmem [shape: bf16[27,128], index: 1, kind: input, shape index: {}]   ;;  %s17861_s2 = inlined_call_operand.vmem [shape: f32[1,128], index: 2, kind: input, shape index: {}]   ;;  %s17862_s3 = inlined_call_operand.vmem [shape: f32[9,168,1], index: 3, kind: input, shape index: {}]   ;;  %s17863_s4 = inlined_call_operand.vmem [shape: bf16[5,2304,128], index: 4, kind: input, shape index: {}]   ;;  %s17864_s5 = inlined_call_operand.vmem [shape: bf16[128,3], index: 5, kind: input, shape index: {}]   ;;  %s17865_s6 = inlined_call_operand.vmem [shape: f32[1,3], index: 6, kind: input, shape index: {}]   ;;  %s17866_s7 = inlined_call_operand.vmem [shape: bf16[128,32], index: 7, kind: input, shape index: {}]   ;;  %s17867_s8 = inlined_call_operand.vmem [shape: f32[1,32], index: 8, kind: input, shape index: {}]   ;;  %s17868_s9 = inlined_call_operand.vmem [shape: bf16[3,126], index: 9, kind: input, shape index: {}]   ;;  %s17869_s10 = inlined_call_operand.vmem [shape: f32[168,126], index: 10, kind: input, shape index: {}]   ;;  %s17870_s11 = inlined_call_operand.vmem [shape: f32[4,168], index: 11, kind: input, shape index: {}]   ;;  %s17871_s12 = inlined_call_operand.vmem [shape: bf16[126,32], index: 12, kind: input, shape index: {}]   ;;  %s17872_s13 = inlined_call_operand.vmem [shape: f32[1,32], index: 13, kind: input, shape index: {}]   ;;  %s17873_s14 = inlined_call_operand.vmem [shape: bf16[32,1], index: 14, kind: input, shape index: {}]   ;;  %s17874_s15 = inlined_call_operand.<no memory space> [shape: f32[1,1], index: 15, kind: input, shape index: {}]   ;;  %s17875_s16 = inlined_call_operand.vmem [shape: bf16[32,294], index: 16, kind: input, shape index: {}]   ;;  %s17876_s17 = inlined_call_operand.vmem [shape: f32[1,7], index: 17, kind: input, shape index: {}]   ;;  %s17877_s18 = inlined_call_operand.vmem [shape: f32[168,294], index: 18, kind: input, shape index: {}]   ;;  %s17878_s19 = inlined_call_operand.vmem [shape: f32[294,7], index: 19, kind: input, shape index: {}]   ;;  %s17879_s20 = inlined_call_operand.hbm [shape: f32[4,7], index: 20, kind: output, shape index: {0}]   ;;  %s17880_s21 = inlined_call_operand.vmem [shape: f32[4,1], index: 21, kind: output, shape index: {1}]  }
   0x1   :  { %17979 = sst [smem:[#allocation160_spill]] %s17859_s0  ;;  %v27_v0 = vstv %s17874_s15 }
   0x2   :  { %17980 = sst [smem:[#allocation161_spill]] %s17860_s1  ;;  %28 = vst [vmem:[#allocation4] sm:$0x1] %v27_v0 }
   0x3   :  { %17981 = sst [smem:[#allocation162_spill]] %s17861_s2 }
   0x4   :  { %17982 = sst [smem:[#allocation163_spill]] %s17862_s3 }
   0x5   :  { %17983 = sst [smem:[#allocation164_spill]] %s17863_s4 }
   0x6   :  { %17984 = sst [smem:[#allocation165_spill]] %s17864_s5 }
   0x7   :  { %29 = vsyncpa [#allocation6], 0  ;;  %s12050_s26 = smov 0  }
   0x8 LB: > { %s12056_s27 = sadd.s32 4294967295, %s11924_s26   ;;  %p9287_p0 = scmp.ge.s32.totalorder %s11924_s26, 1  ;;  %s11924_s26 = sphi %s12050_s26, %s35_s26  }
   0x9   : > { %p583_p1 = scmp.lt.s32.totalorder %s11924_s26, 6 }
   0xb   : > { %p584_p2 = pnand %p9287_p0, %p583_p1 }
   0xd   : > { %587 = sbr.rel (%p584_p2) target bundleno = 4130 (0x1022), region = 100 }
  0x12   : > { %p638_p3 = scmp.lt.s32.totalorder %s12056_s27, 4  ;;  %s17985_s0 = sld [smem:[#allocation164_spill]] }
  0x13   : > { %p9289_p4 = scmp.ne.s32.totalorder %s12056_s27, 0 }
  0x14   : > { %s639_s15 = scalar_select %p638_p3, %s12056_s27, 4 }
  0x15   : > { %647 = sbr.rel (%p9289_p4) target bundleno = 349 (0x15d), region = 104  ;;  %s17986_s22 = sld [smem:[#allocation161_spill]] (!%p9289_p4) }
  0x16   : > { %s11613_s3 = smul.u32 1152, %s639_s15  ;;  %s17987_s25 = sld [smem:[#allocation160_spill]] (!%p9289_p4) }
  0x17   : > { %s17988_s15 = sld [smem:[#allocation162_spill]] (!%p9289_p4) }
  0x18   : > { %s12065_s4 = scalar_lea.vmem %s17985_s0, %s11613_s3 }
  0x1a   : > { %vm780_vm0 = vcmask 1044480   ;;  %v11926_v1 = vmov 0.0   ;;  %vm781_vm1 = vcmask 1045504   ;;  %v11927_v3 = vmov 65535  }
  0x1b   : > { %648 = vst [vmem:[#allocation3] sm:$0xff] %v11926_v1  ;;  %649 = vst [vmem:[#allocation3 + $0xb0] sm:$0xff] %v11926_v1  ;;  %11186 = vmatprep.subr.bf16.mxu0 %v11926_v1  ;;  %v11639_v2 = vld [vmem:[%s17986_s22 + $0x8] sm:$0x3f]   ;;  %11609 = vmatprep.subr.bf16.mxu1 %v11926_v1  ;;  %v782_v4 = vsel %vm780_vm0, 4294967295, %v11927_v3  ;;  %vm11928_vm2 = vmmov 0  }
  0x1c   : > { %v783_v5 = vsel %vm781_vm1, %v782_v4, 0  ;;  %11190 = vmatprep.mubr.msk.bf16.mxu0 %vm11928_vm2, %v11926_v1  ;;  %11214 = vmatprep.mubr.msk.bf16.mxu1 %vm11928_vm2, %v11926_v1  ;;  %v11640_v7 = vld [vmem:[%s17986_s22] sm:$0xff]   ;;  %v11645_v9 = vld [vmem:[%s17987_s25 + $0x30] sm:$0xff]   ;;  %vm746_vm3 = vcmask 220160   ;;  %v11642_v10 = vld [vmem:[%s17987_s25 + $0x8] sm:$0xff]  }
  0x1d   : > { %v785_v6 = vand.u32 %v11639_v2, %v783_v5  ;;  %v11641_v8 = vld [vmem:[%s17987_s25] sm:$0xff]   ;;  %v11647_v11 = vld [vmem:[%s17987_s25 + $0x38] sm:$0xff]   ;;  %v11643_v12 = vld [vmem:[%s17987_s25 + $0x10] sm:$0xff]  }
  0x1e   : > { %v11649_v13 = vld [vmem:[%s17987_s25 + $0x40] sm:$0xff]   ;;  %v11644_v14 = vld [vmem:[%s17987_s25 + $0x18] sm:$0xff]   ;;  %v11650_v15 = vld [vmem:[%s17987_s25 + $0x48] sm:$0xff]  }
  0x1f   : > { %11187 = vmatpush3.bf16.msra.mxu0 %v785_v6  ;;  %11611 = vmatpush3.bf16.msra.mxu1 %v785_v6  ;;  %v11646_v16 = vld [vmem:[%s17987_s25 + $0x20] sm:$0xff]   ;;  %v11651_v17 = vld [vmem:[%s17987_s25 + $0x50] ss:$0 sps:$4 sm:$0xff]   ;;  %v11648_v18 = vld [vmem:[%s17987_s25 + $0x28] sm:$0xff]  }
  0x20   : > { %11188 = vmatprep.subr.bf16.mxu0 %v11926_v1  ;;  %11610 = vmatprep.subr.bf16.mxu1 %v11926_v1  ;;  %v12142_v39 = vld [vmem:[%s17988_s15] ss:$0 sm:$0xff] }
  0x23   : > { %11189 = vmatpush3.bf16.msra.mxu0 %v11640_v7  ;;  %11612 = vmatpush3.bf16.msra.mxu1 %v11640_v7 }
  0x26   : > { %11191 = vmatmul.mubr.msk.bf16.vlgmr.msra.gmra.mxu0 %vm746_vm3, %v11641_v8  ;;  %11215 = vmatmul.mubr.msk.bf16.vlgmr.msra.gmra.mxu1 %vm746_vm3, %v11645_v9 }
  0x27   : > { %11194 = vmatprep.mubr.msk.bf16.mxu0 %vm11928_vm2, %v11926_v1  ;;  %11218 = vmatprep.mubr.msk.bf16.mxu1 %vm11928_vm2, %v11926_v1 }
  0x2e   : > { %11195 = vmatmul.mubr.msk.bf16.gmra.mxu0 %vm746_vm3, %v11642_v10  ;;  %11219 = vmatmul.mubr.msk.bf16.gmra.mxu1 %vm746_vm3, %v11647_v11 }
  0x2f   : > { %11198 = vmatprep.mubr.msk.bf16.mxu0 %vm11928_vm2, %v11926_v1  ;;  %11222 = vmatprep.mubr.msk.bf16.mxu1 %vm11928_vm2, %v11926_v1 }
  0x36   : > { %11199 = vmatmul.mubr.msk.bf16.gmra.mxu0 %vm746_vm3, %v11643_v12  ;;  %11223 = vmatmul.mubr.msk.bf16.gmra.mxu1 %vm746_vm3, %v11649_v13 }
  0x37   : > { %11202 = vmatprep.mubr.msk.bf16.mxu0 %vm11928_vm2, %v11926_v1  ;;  %11226 = vmatprep.mubr.msk.bf16.mxu1 %vm11928_vm2, %v11926_v1 }
  0x3e   : > { %11203 = vmatmul.mubr.msk.bf16.gmra.mxu0 %vm746_vm3, %v11644_v14  ;;  %11227 = vmatmul.mubr.msk.bf16.gmra.mxu1 %vm746_vm3, %v11650_v15 }
  0x3f   : > { %11206 = vmatprep.mubr.msk.bf16.mxu0 %vm11928_vm2, %v11926_v1  ;;  %11230 = vmatprep.mubr.msk.bf16.mxu1 %vm11928_vm2, %v11926_v1 }
  0x46   : > { %11207 = vmatmul.mubr.msk.bf16.gmra.mxu0 %vm746_vm3, %v11646_v16  ;;  %11231 = vmatmul.mubr.msk.bf16.gmra.mxu1 %vm746_vm3, %v11651_v17 }
  0x47   : > { %11210 = vmatprep.mubr.msk.bf16.mxu0 %vm11928_vm2, %v11926_v1 }
  0x4e   : > { %11211 = vmatmul.mubr.msk.bf16.gmra.mxu0 %vm746_vm3, %v11648_v18 }
  0xe6   : > { %v821_v19 = vpop.f32.mrf.mxu0  ;;  %v12129_v20 = vpop.f32.mrf.mxu1 }
  0xe7   : > { %v12150_v45 = vadd.f32 %v12142_v39, %v821_v19 }
  0xe8   : > { %v11192_v21 = vpop.f32.mrf.mxu0  ;;  %v11216_v22 = vpop.f32.mrf.mxu1 }
  0xe9   : > { %v935_v53 = vmul.f32 %v12150_v45, %v12150_v45 }
  0xea   : > { %v824_v23 = vpop.f32.mrf.mxu0  ;;  %v12131_v24 = vpop.f32.mrf.mxu1 }
  0xeb   : > { %v12147_v42 = vadd.f32 %v12142_v39, %v824_v23 }
  0xec   : > { %v11193_v25 = vpop.f32.mrf.mxu0  ;;  %v11217_v26 = vpop.f32.mrf.mxu1 }
  0xed   : > { %v936_v49 = vmul.f32 %v12147_v42, %v12147_v42  ;;  %v907_v54 = vadd.f32 %v12147_v42, %v12150_v45 }
  0xee   : > { %v829_v27 = vpop.f32.mrf.mxu0  ;;  %v12133_v28 = vpop.f32.mrf.mxu1 }
  0xef   : > { %v12153_v46 = vadd.f32 %v12142_v39, %v829_v27  ;;  %v956_v59 = vadd.f32 %v936_v49, %v935_v53  ;;  %v12219_v49 = vadd.f32 %v12142_v39, %v12129_v20 }
  0xf0   : > { %v11196_v29 = vpop.f32.mrf.mxu0  ;;  %v11220_v30 = vpop.f32.mrf.mxu1 }
  0xf1   : > { %v937_v55 = vmul.f32 %v12153_v46, %v12153_v46  ;;  %v908_v60 = vadd.f32 %v907_v54, %v12153_v46  ;;  %v947_v20 = vmul.f32 %v12219_v49, %v12219_v49 }
  0xf2   : > { %v832_v31 = vpop.f32.mrf.mxu0  ;;  %v12135_v32 = vpop.f32.mrf.mxu1 }
  0xf3   : > { %v12160_v50 = vadd.f32 %v12142_v39, %v832_v31  ;;  %v957_v1 = vadd.f32 %v956_v59, %v937_v55  ;;  %v12227_v55 = vadd.f32 %v12142_v39, %v12131_v24 }
  0xf4   : > { %v11197_v33 = vpop.f32.mrf.mxu0  ;;  %v11221_v34 = vpop.f32.mrf.mxu1 }
  0xf5   : > { %v938_v61 = vmul.f32 %v12160_v50, %v12160_v50  ;;  %v909_v2 = vadd.f32 %v908_v60, %v12160_v50  ;;  %v948_v24 = vmul.f32 %v12227_v55, %v12227_v55 }
  0xf6   : > { %v837_v35 = vpop.f32.mrf.mxu0  ;;  %v12137_v36 = vpop.f32.mrf.mxu1 }
  0xf7   : > { %v12169_v56 = vadd.f32 %v12142_v39, %v837_v35  ;;  %v958_v7 = vadd.f32 %v957_v1, %v938_v61  ;;  %v12236_v61 = vadd.f32 %v12142_v39, %v12133_v28  ;;  %v12243_v1 = vadd.f32 %v12142_v39, %v12135_v32 }
  0xf8   : > { %v11200_v37 = vpop.f32.mrf.mxu0  ;;  %v11224_v38 = vpop.f32.mrf.mxu1  ;;  %v12250_v28 = vadd.f32 %v12142_v39, %v12137_v36 }
  0xf9   : > { %v939_v3 = vmul.f32 %v12169_v56, %v12169_v56  ;;  %v910_v8 = vadd.f32 %v909_v2, %v12169_v56  ;;  %v950_v32 = vmul.f32 %v12243_v1, %v12243_v1 }
  0xfa   : > { %v840_v40 = vpop.f32.mrf.mxu0  ;;  %v12144_v41 = vpop.f32.mrf.mxu1 }
  0xfb   : > { %v12177_v62 = vadd.f32 %v12142_v39, %v840_v40  ;;  %v959_v13 = vadd.f32 %v958_v7, %v939_v3 }
  0xfc   : > { %v11201_v43 = vpop.f32.mrf.mxu0  ;;  %v11225_v44 = vpop.f32.mrf.mxu1 }
  0xfd   : > { %v940_v9 = vmul.f32 %v12177_v62, %v12177_v62  ;;  %v911_v14 = vadd.f32 %v910_v8, %v12177_v62 }
  0xfe   : > { %v845_v47 = vpop.f32.mrf.mxu0  ;;  %v12155_v48 = vpop.f32.mrf.mxu1 }
  0xff   : > { %v12183_v4 = vadd.f32 %v12142_v39, %v845_v47  ;;  %v960_v19 = vadd.f32 %v959_v13, %v940_v9  ;;  %v12255_v9 = vadd.f32 %v12142_v39, %v12144_v41  ;;  %v951_v13 = vmul.f32 %v12250_v28, %v12250_v28 }
 0x100   : > { %v11204_v51 = vpop.f32.mrf.mxu0  ;;  %v11228_v52 = vpop.f32.mrf.mxu1 }
 0x101   : > { %v941_v15 = vmul.f32 %v12183_v4, %v12183_v4  ;;  %v912_v21 = vadd.f32 %v911_v14, %v12183_v4  ;;  %v952_v41 = vmul.f32 %v12255_v9, %v12255_v9 }
 0x102   : > { %v848_v57 = vpop.f32.mrf.mxu0  ;;  %v12171_v58 = vpop.f32.mrf.mxu1 }
 0x103   : > { %v12191_v10 = vadd.f32 %v12142_v39, %v848_v57  ;;  %v961_v27 = vadd.f32 %v960_v19, %v941_v15  ;;  %v12265_v15 = vadd.f32 %v12142_v39, %v12155_v48  ;;  %v12272_v19 = vadd.f32 %v12142_v39, %v12171_v58 }
 0x104   : > { %v11205_v63 = vpop.f32.mrf.mxu0  ;;  %v11229_v0 = vpop.f32.mrf.mxu1 }
 0x105   : > { %v942_v22 = vmul.f32 %v12191_v10, %v12191_v10  ;;  %v913_v29 = vadd.f32 %v912_v21, %v12191_v10  ;;  %v953_v48 = vmul.f32 %v12265_v15, %v12265_v15 }
 0x106   : > { %v853_v5 = vpop.f32.mrf.mxu0  ;;  %v12185_v6 = vpop.f32.mrf.mxu1 }
 0x107   : > { %v12197_v16 = vadd.f32 %v12142_v39, %v853_v5  ;;  %v962_v33 = vadd.f32 %v961_v27, %v942_v22  ;;  %v949_v5 = vmul.f32 %v12236_v61, %v12236_v61  ;;  %v12276_v21 = vadd.f32 %v12142_v39, %v12185_v6 }
 0x108   : > { %v11208_v11 = vpop.f32.mrf.mxu0  ;;  %v11232_v12 = vpop.f32.mrf.mxu1 }
 0x109   : > { %v943_v30 = vmul.f32 %v12197_v16, %v12197_v16  ;;  %v914_v34 = vadd.f32 %v913_v29, %v12197_v16  ;;  %v954_v29 = vmul.f32 %v12272_v19, %v12272_v19  ;;  %v955_v58 = vmul.f32 %v12276_v21, %v12276_v21 }
 0x10a   : > { %v856_v17 = vpop.f32.mrf.mxu0  ;;  %v904_v18 = vpop.f32.mrf.mxu1 }
 0x10b   : > { %v12203_v23 = vadd.f32 %v12142_v39, %v856_v17  ;;  %v963_v40 = vadd.f32 %v962_v33, %v943_v30 }
 0x10c   : > { %v11209_v25 = vpop.f32.mrf.mxu0  ;;  %v11233_v26 = vpop.f32.mrf.mxu1 }
 0x10d   : > { %v944_v35 = vmul.f32 %v12203_v23, %v12203_v23  ;;  %v915_v43 = vadd.f32 %v914_v34, %v12203_v23 }
 0x10e   : > { %v861_v31 = vpop.f32.mrf.mxu0 }
 0x10f   : > { %v12212_v37 = vadd.f32 %v12142_v39, %v861_v31  ;;  %v964_v51 = vadd.f32 %v963_v40, %v944_v35 }
 0x110   : > { %v11212_v38 = vpop.f32.mrf.mxu0 }
 0x111   : > { %v945_v44 = vmul.f32 %v12212_v37, %v12212_v37  ;;  %v916_v52 = vadd.f32 %v915_v43, %v12212_v37 }
 0x112   : > { %v864_v47 = vpop.f32.mrf.mxu0 }
 0x113   : > { %v12223_v53 = vadd.f32 %v12142_v39, %v864_v47  ;;  %v965_v57 = vadd.f32 %v964_v51, %v945_v44 }
 0x114   : > { %v11213_v54 = vpop.f32.mrf.mxu0 }
 0x115   : > { %v917_v59 = vadd.f32 %v916_v52, %v12223_v53  ;;  %v946_v60 = vmul.f32 %v12223_v53, %v12223_v53 }
 0x117   : > { %v918_v63 = vadd.f32 %v917_v59, %v12219_v49  ;;  %v966_v0 = vadd.f32 %v965_v57, %v946_v60 }
 0x119   : > { %v919_v2 = vadd.f32 %v918_v63, %v12227_v55  ;;  %v967_v3 = vadd.f32 %v966_v0, %v947_v20 }
 0x11b   : > { %v968_v7 = vadd.f32 %v967_v3, %v948_v24  ;;  %v920_v8 = vadd.f32 %v919_v2, %v12236_v61 }
 0x11d   : > { %v921_v11 = vadd.f32 %v920_v8, %v12243_v1  ;;  %v969_v12 = vadd.f32 %v968_v7, %v949_v5 }
 0x11f   : > { %v922_v14 = vadd.f32 %v921_v11, %v12250_v28  ;;  %v970_v36 = vadd.f32 %v969_v12, %v950_v32 }
 0x121   : > { %v923_v17 = vadd.f32 %v922_v14, %v12255_v9  ;;  %v971_v18 = vadd.f32 %v970_v36, %v951_v13 }
 0x123   : > { %v972_v22 = vadd.f32 %v971_v18, %v952_v41  ;;  %v924_v25 = vadd.f32 %v923_v17, %v12265_v15 }
 0x125   : > { %v973_v26 = vadd.f32 %v972_v22, %v953_v48  ;;  %v925_v27 = vadd.f32 %v924_v25, %v12272_v19 }
 0x127   : > { %v974_v30 = vadd.f32 %v973_v26, %v954_v29  ;;  %v926_v31 = vadd.f32 %v925_v27, %v12276_v21 }
 0x129   : > { %v927_v39 = vrot.slane %v926_v31, 4  ;;  %v975_v6 = vadd.f32 %v974_v30, %v955_v58 }
 0x12b   : > { %v928_v33 = vadd.f32 %v927_v39, %v926_v31  ;;  %v976_v34 = vrot.slane %v975_v6, 4 }
 0x12d   : > { %v929_v35 = vrot.slane %v928_v33, 2  ;;  %v977_v38 = vadd.f32 %v976_v34, %v975_v6 }
 0x12f   : > { %v930_v40 = vadd.f32 %v929_v35, %v928_v33  ;;  %v978_v43 = vrot.slane %v977_v38, 2 }
 0x131   : > { %v931_v44 = vrot.slane %v930_v40, 1  ;;  %v979_v47 = vadd.f32 %v978_v43, %v977_v38 }
 0x133   : > { %v932_v51 = vadd.f32 %v931_v44, %v930_v40  ;;  %v980_v52 = vrot.slane %v979_v47, 1 }
 0x135   : > { %v934_v54 = vmul.f32 0.005952381, %v932_v51  ;;  %v981_v57 = vadd.f32 %v980_v52, %v979_v47 }
 0x137   : > { %v982_v59 = vmul.f32 0.005952381, %v981_v57  ;;  %v983_v60 = vmul.f32 %v934_v54, %v934_v54  ;;  %v985_v0 = vsub.f32 %v12150_v45, %v934_v54  ;;  %v986_v24 = vsub.f32 %v12147_v42, %v934_v54 }
 0x138   : > { %v987_v2 = vsub.f32 %v12153_v46, %v934_v54  ;;  %v988_v3 = vsub.f32 %v12160_v50, %v934_v54  ;;  %v989_v5 = vsub.f32 %v12169_v56, %v934_v54  ;;  %v990_v7 = vsub.f32 %v12177_v62, %v934_v54 }
 0x139   : > { %v984_v20 = vsub.f32 %v982_v59, %v983_v60  ;;  %v991_v8 = vsub.f32 %v12183_v4, %v934_v54  ;;  %v992_v32 = vsub.f32 %v12191_v10, %v934_v54  ;;  %v993_v11 = vsub.f32 %v12197_v16, %v934_v54 }
 0x13a   : > { %v994_v12 = vsub.f32 %v12203_v23, %v934_v54  ;;  %v995_v45 = vsub.f32 %v12212_v37, %v934_v54  ;;  %v996_v42 = vsub.f32 %v12223_v53, %v934_v54  ;;  %v997_v46 = vsub.f32 %v12219_v49, %v934_v54 }
 0x13b   : > { %v1006_v63 = vadd.f32 1e-05, %v984_v20  ;;  %v998_v50 = vsub.f32 %v12227_v55, %v934_v54  ;;  %v999_v56 = vsub.f32 %v12236_v61, %v934_v54  ;;  %v1000_v62 = vsub.f32 %v12243_v1, %v934_v54 }
 0x13c   : > { %v1001_v4 = vsub.f32 %v12250_v28, %v934_v54  ;;  %v1002_v10 = vsub.f32 %v12255_v9, %v934_v54  ;;  %v1003_v16 = vsub.f32 %v12265_v15, %v934_v54  ;;  %v1004_v23 = vsub.f32 %v12272_v19, %v934_v54 }
 0x13d   : > { %11652 = vrsqrt.f32 %v1006_v63  ;;  %v1005_v37 = vsub.f32 %v12276_v21, %v934_v54 }
 0x14a   : > { %v11653_v13 = vpop.eup %11652 }
 0x14b   : > { %v1008_v53 = vmul.f32 %v11653_v13, %v985_v0  ;;  %v1009_v14 = vmul.f32 %v11653_v13, %v986_v24  ;;  %v1010_v49 = vmul.f32 %v11653_v13, %v987_v2  ;;  %v1011_v36 = vmul.f32 %v11653_v13, %v988_v3 }
 0x14c   : > { %v1012_v55 = vmul.f32 %v11653_v13, %v989_v5  ;;  %v1013_v41 = vmul.f32 %v11653_v13, %v990_v7  ;;  %v1014_v61 = vmul.f32 %v11653_v13, %v991_v8  ;;  %v1015_v17 = vmul.f32 %v11653_v13, %v992_v32 }
 0x14d   : > { %v1016_v1 = vmul.f32 %v11653_v13, %v993_v11  ;;  %v1017_v18 = vmul.f32 %v11653_v13, %v994_v12  ;;  %v1018_v28 = vmul.f32 %v11653_v13, %v995_v45  ;;  %v1019_v22 = vmul.f32 %v11653_v13, %v996_v42 }
 0x14e   : > { %v1020_v25 = vmul.f32 %v11653_v13, %v997_v46  ;;  %v1021_v9 = vmul.f32 %v11653_v13, %v998_v50  ;;  %v1022_v48 = vmul.f32 %v11653_v13, %v999_v56  ;;  %v1023_v15 = vmul.f32 %v11653_v13, %v1000_v62 }
 0x14f   : > { %v1024_v26 = vmul.f32 %v11653_v13, %v1001_v4  ;;  %v1025_v19 = vmul.f32 %v11653_v13, %v1002_v10  ;;  %v1026_v27 = vmul.f32 %v11653_v13, %v1003_v16  ;;  %v1027_v21 = vmul.f32 %v11653_v13, %v1004_v23 }
 0x150   : > { %v1028_v29 = vmul.f32 %v11653_v13, %v1005_v37  ;;  %v1029_v58 = vmax.f32 %v1008_v53, 0.0  ;;  %v1030_v30 = vmax.f32 %v1009_v14, 0.0  ;;  %v1031_v31 = vmax.f32 %v1010_v49, 0.0 }
 0x151   : > { %v1032_v39 = vmax.f32 %v1011_v36, 0.0  ;;  %v1033_v6 = vmax.f32 %v1012_v55, 0.0  ;;  %v1034_v33 = vmax.f32 %v1013_v41, 0.0  ;;  %v1035_v34 = vmax.f32 %v1014_v61, 0.0 }
 0x152   : > { %v1036_v35 = vmax.f32 %v1015_v17, 0.0  ;;  %v1037_v38 = vmax.f32 %v1016_v1, 0.0  ;;  %v1038_v40 = vmax.f32 %v1017_v18, 0.0  ;;  %v1039_v43 = vmax.f32 %v1018_v28, 0.0  ;;  %1050 = vst [vmem:[#allocation2] sm:$0xff] %v1029_v58  ;;  %1051 = vst [vmem:[#allocation2 + $0x38] sm:$0xff] %v1030_v30 }
 0x153   : > { %1052 = vst [vmem:[#allocation2 + $0x50] sm:$0xff] %v1031_v31  ;;  %v1040_v44 = vmax.f32 %v1019_v22, 0.0  ;;  %v1041_v47 = vmax.f32 %v1020_v25, 0.0  ;;  %v1042_v51 = vmax.f32 %v1021_v9, 0.0  ;;  %v1043_v52 = vmax.f32 %v1022_v48, 0.0  ;;  %1053 = vst [vmem:[#allocation2 + $0x18] sm:$0xff] %v1032_v39 }
 0x154   : > { %1054 = vst [vmem:[#allocation2 + $0x30] sm:$0xff] %v1033_v6  ;;  %1055 = vst [vmem:[#allocation2 + $0x68] sm:$0xff] %v1034_v33  ;;  %v1044_v54 = vmax.f32 %v1023_v15, 0.0  ;;  %v1045_v57 = vmax.f32 %v1024_v26, 0.0  ;;  %v1046_v59 = vmax.f32 %v1025_v19, 0.0  ;;  %v1047_v60 = vmax.f32 %v1026_v27, 0.0 }
 0x155   : > { %1056 = vst [vmem:[#allocation2 + $0x78] sm:$0xff] %v1035_v34  ;;  %1057 = vst [vmem:[#allocation2 + $0x80] sm:$0xff] %v1036_v35  ;;  %v1048_v20 = vmax.f32 %v1027_v21, 0.0  ;;  %v1049_v63 = vmax.f32 %v1028_v29, 0.0 }
 0x156   : > { %1058 = vst [vmem:[#allocation2 + $0x8] sm:$0xff] %v1037_v38  ;;  %1059 = vst [vmem:[#allocation2 + $0x88] sm:$0xff] %v1038_v40 }
 0x157   : > { %1060 = vst [vmem:[#allocation2 + $0x28] sm:$0xff] %v1039_v43  ;;  %1061 = vst [vmem:[#allocation2 + $0x40] sm:$0xff] %v1040_v44 }
 0x158   : > { %1062 = vst [vmem:[#allocation2 + $0x60] sm:$0xff] %v1041_v47  ;;  %1063 = vst [vmem:[#allocation2 + $0x90] sm:$0xff] %v1042_v51 }
 0x159   : > { %1064 = vst [vmem:[#allocation2 + $0x98] sm:$0xff] %v1043_v52  ;;  %1065 = vst [vmem:[#allocation2 + $0x58] sm:$0xff] %v1044_v54 }
 0x15a   : > { %1066 = vst [vmem:[#allocation2 + $0x20] sm:$0xff] %v1045_v57  ;;  %1067 = vst [vmem:[#allocation2 + $0x48] sm:$0xff] %v1046_v59 }
 0x15b   : > { %1068 = vst [vmem:[#allocation2 + $0x70] sm:$0xff] %v1047_v60  ;;  %1069 = vst [vmem:[#allocation2 + $0x10] sm:$0xff] %v1048_v20 }
 0x15c   : > { %1070 = vst [vmem:[#allocation2 + $0xa0] sm:$0xff] %v1049_v63 }
 0x15d PF: > { %s17989_s29 = sld [smem:[#allocation163_spill]]  ;;  %v17895_v3 = vmov 0   ;;  %v11656_v21 = vld [vmem:[%s12065_s4 + $0x78] sm:$0xff]   ;;  %v11658_v6 = vld [vmem:[%s12065_s4 + $0x70] sm:$0xff]   ;;  %v11660_v43 = vld [vmem:[%s12065_s4 + $0x68] sm:$0xff]   ;;  %p10281_p5 = scmp.ne.s32.totalorder %s12056_s27, 4 }
 0x15e   : > { %11655 = vset.pattern.permute.xlu1 %v17895_v3  ;;  %11654 = vset.pattern.permute.xlu0 %v17895_v3  ;;  %v11657_v31 = vld [vmem:[%s12065_s4 + $0x38] sm:$0xff]   ;;  %v11659_v35 = vld [vmem:[%s12065_s4 + $0x30] sm:$0xff]   ;;  %v11661_v51 = vld [vmem:[%s12065_s4 + $0x28] sm:$0xff]   ;;  %s18501_s30 = sld [smem:[#allocation165_spill]] (!%p10281_p5) }
 0x15f   : > { %10458 = vmatprep.subr.bf16.mxu1 %v11656_v21  ;;  %v11662_v52 = vld [vmem:[%s12065_s4 + $0x60] sm:$0xff]  }
 0x160   : > { %10459 = vmatpush3.bf16.msra.mxu1 %v11657_v31  ;;  %v11663_v20 = vld [vmem:[%s12065_s4 + $0x20] sm:$0xff]  }
 0x161   : > { %10460 = vmatprep.subr.bf16.mxu1 %v11658_v6  ;;  %v1082_v21 = vld [vmem:[#allocation2 + $0x40] sm:$0xff] }
 0x162   : > { %1103 = vst [vmem:[#allocation3 + $0x60] sm:$0xff] %v1082_v21 }
 0x163   : > { %v1136_v0 = vld [vmem:[%s17989_s29 + $0x10] sm:$0xff]  ;;  %v1134_v24 = vld [vmem:[%s17989_s29] sm:$0xff]  ;;  %v1137_v2 = vld [vmem:[%s17989_s29 + $0x18] sm:$0xff] }
 0x164   : > { %vm1157_vm4 = vcmp.ne.f32.partialorder %v1136_v0, 0.0  ;;  %vm1155_vm5 = vcmp.ne.f32.partialorder %v1134_v24, 0.0  ;;  %vm1158_vm6 = vcmp.ne.f32.partialorder %v1137_v2, 0.0  ;;  %v1135_v5 = vld [vmem:[%s17989_s29 + $0x8] sm:$0xff]  ;;  %v1138_v11 = vld [vmem:[%s17989_s29 + $0x20] sm:$0xff]  ;;  %v1141_v42 = vld [vmem:[%s17989_s29 + $0x38] sm:$0xff]  ;;  %10461 = vmatpush3.bf16.msra.mxu1 %v11659_v35 }
 0x165   : > { %v1178_v7 = vsel %vm1157_vm4, 1, %v17895_v3  ;;  %v1176_v8 = vsel %vm1155_vm5, 1, %v17895_v3  ;;  %vm1156_vm7 = vcmp.ne.f32.partialorder %v1135_v5, 0.0  ;;  %v1139_v32 = vld [vmem:[%s17989_s29 + $0x28] sm:$0xff]  ;;  %v1179_v12 = vsel %vm1158_vm6, 1, %v17895_v3  ;;  %v1140_v46 = vld [vmem:[%s17989_s29 + $0x30] sm:$0xff]  ;;  %10462 = vmatprep.subr.bf16.mxu1 %v11660_v43 }
 0x166   : > { %1204 = vperm.xlu1 %11655, %v1178_v7   ;;  %1198 = vperm.xlu0 %11654, %v1176_v8   ;;  %v1177_v45 = vsel %vm1156_vm7, 1, %v17895_v3  ;;  %vm1160_vm8 = vcmp.ne.f32.partialorder %v1139_v32, 0.0  ;;  %vm1159_vm9 = vcmp.ne.f32.partialorder %v1138_v11, 0.0  ;;  %vm1162_vm10 = vcmp.ne.f32.partialorder %v1141_v42, 0.0  ;;  %v1143_v62 = vld [vmem:[%s17989_s29 + $0x48] sm:$0xff]  ;;  %v1142_v4 = vld [vmem:[%s17989_s29 + $0x40] sm:$0xff] }
 0x167   : > { %v1181_v50 = vsel %vm1160_vm8, 1, %v17895_v3  ;;  %v1180_v56 = vsel %vm1159_vm9, 1, %v17895_v3  ;;  %vm1161_vm11 = vcmp.ne.f32.partialorder %v1140_v46, 0.0  ;;  %v1183_v13 = vsel %vm1162_vm10, 1, %v17895_v3  ;;  %v1145_v16 = vld [vmem:[%s17989_s29 + $0x58] sm:$0xff]  ;;  %v1144_v23 = vld [vmem:[%s17989_s29 + $0x50] sm:$0xff] }
 0x168   : > { %v1182_v10 = vsel %vm1161_vm11, 1, %v17895_v3  ;;  %vm1164_vm12 = vcmp.ne.f32.partialorder %v1143_v62, 0.0  ;;  %vm1163_vm13 = vcmp.ne.f32.partialorder %v1142_v4, 0.0  ;;  %vm1166_vm14 = vcmp.ne.f32.partialorder %v1145_v16, 0.0  ;;  %v1147_v14 = vld [vmem:[%s17989_s29 + $0x68] sm:$0xff]  ;;  %v1146_v49 = vld [vmem:[%s17989_s29 + $0x60] sm:$0xff]  ;;  %10463 = vmatpush3.bf16.msra.mxu1 %v11661_v51 }
 0x169   : > { %v1185_v37 = vsel %vm1164_vm12, 1, %v17895_v3  ;;  %v1184_v53 = vsel %vm1163_vm13, 1, %v17895_v3  ;;  %vm1165_vm15 = vcmp.ne.f32.partialorder %v1144_v23, 0.0  ;;  %v1187_v36 = vsel %vm1166_vm14, 1, %v17895_v3  ;;  %v1149_v41 = vld [vmem:[%s17989_s29 + $0x78] sm:$0xff]  ;;  %v1148_v61 = vld [vmem:[%s17989_s29 + $0x70] sm:$0xff]  ;;  %10464 = vmatprep.subr.bf16.mxu1 %v11662_v52 }
 0x16a   : > { %1207 = vperm.xlu1 %11655, %v1179_v12   ;;  %1201 = vperm.xlu0 %11654, %v1177_v45   ;;  %v1186_v55 = vsel %vm1165_vm15, 1, %v17895_v3  ;;  %vm1168_vm0 = vcmp.ne.f32.partialorder %v1147_v14, 0.0  ;;  %vm1167_vm1 = vcmp.ne.f32.partialorder %v1146_v49, 0.0  ;;  %vm1170_vm2 = vcmp.ne.f32.partialorder %v1149_v41, 0.0  ;;  %v1151_v18 = vld [vmem:[%s17989_s29 + $0x88] sm:$0xff]  ;;  %v1150_v28 = vld [vmem:[%s17989_s29 + $0x80] sm:$0xff] }
 0x16b   : > { %v1189_v17 = vsel %vm1168_vm0, 1, %v17895_v3  ;;  %v1188_v1 = vsel %vm1167_vm1, 1, %v17895_v3  ;;  %vm1169_vm3 = vcmp.ne.f32.partialorder %v1148_v61, 0.0  ;;  %v1191_v22 = vsel %vm1170_vm2, 1, %v17895_v3  ;;  %v1153_v9 = vld [vmem:[%s17989_s29 + $0x98] sm:$0xff]  ;;  %v1152_v48 = vld [vmem:[%s17989_s29 + $0x90] sm:$0xff] }
 0x16c   : > { %v1190_v25 = vsel %vm1169_vm3, 1, %v17895_v3  ;;  %vm1172_vm4 = vcmp.ne.f32.partialorder %v1151_v18, 0.0  ;;  %vm1171_vm5 = vcmp.ne.f32.partialorder %v1150_v28, 0.0  ;;  %vm1174_vm6 = vcmp.ne.f32.partialorder %v1153_v9, 0.0  ;;  %v9315_v19 = vld [vmem:[%s17989_s29 + $0xa8] sm:$0xff]  ;;  %v1154_v27 = vld [vmem:[%s17989_s29 + $0xa0] sm:$0xff]  ;;  %10465 = vmatpush3.bf16.msra.mxu1 %v11663_v20 }
 0x16d   : > { %v1193_v15 = vsel %vm1172_vm4, 1, %v17895_v3  ;;  %v1192_v26 = vsel %vm1171_vm5, 1, %v17895_v3  ;;  %vm1173_vm7 = vcmp.ne.f32.partialorder %v1152_v48, 0.0  ;;  %v1195_v29 = vsel %vm1174_vm6, 1, %v17895_v3  ;;  %v9317_v30 = vld [vmem:[%s17989_s29 + $0xb8] sm:$0xff]  ;;  %v9316_v39 = vld [vmem:[%s17989_s29 + $0xb0] sm:$0xff] }
 0x16e   : > { %1213 = vperm.xlu1 %11655, %v1181_v50   ;;  %1210 = vperm.xlu0 %11654, %v1180_v56   ;;  %v1194_v58 = vsel %vm1173_vm7, 1, %v17895_v3  ;;  %vm1356_vm8 = vcmp.ne.f32.partialorder %v9315_v19, 0.0  ;;  %vm1175_vm9 = vcmp.ne.f32.partialorder %v1154_v27, 0.0  ;;  %vm1358_vm10 = vcmp.ne.f32.partialorder %v9317_v30, 0.0  ;;  %v9319_v38 = vld [vmem:[%s17989_s29 + $0xc8] sm:$0xff]  ;;  %v9318_v40 = vld [vmem:[%s17989_s29 + $0xc0] sm:$0xff] }
 0x16f   : > { %v1377_v33 = vsel %vm1356_vm8, 1, %v17895_v3  ;;  %v1196_v34 = vsel %vm1175_vm9, 1, %v17895_v3  ;;  %vm1357_vm11 = vcmp.ne.f32.partialorder %v9316_v39, 0.0  ;;  %v1379_v44 = vsel %vm1358_vm10, 1, %v17895_v3  ;;  %v9321_v54 = vld [vmem:[%s17989_s29 + $0xd8] sm:$0xff]  ;;  %v9320_v57 = vld [vmem:[%s17989_s29 + $0xd0] sm:$0xff] }
 0x170   : > { %v1378_v47 = vsel %vm1357_vm11, 1, %v17895_v3  ;;  %vm1360_vm12 = vcmp.ne.f32.partialorder %v9319_v38, 0.0  ;;  %vm1359_vm13 = vcmp.ne.f32.partialorder %v9318_v40, 0.0  ;;  %vm1362_vm14 = vcmp.ne.f32.partialorder %v9321_v54, 0.0  ;;  %v9323_v63 = vld [vmem:[%s17989_s29 + $0xe8] sm:$0xff]  ;;  %v11664_v0 = vld [vmem:[%s12065_s4 + $0x58] sm:$0xff]  }
 0x171   : > { %v1381_v59 = vsel %vm1360_vm12, 1, %v17895_v3  ;;  %v1380_v60 = vsel %vm1359_vm13, 1, %v17895_v3  ;;  %vm1361_vm15 = vcmp.ne.f32.partialorder %v9320_v57, 0.0  ;;  %v9322_v24 = vld [vmem:[%s17989_s29 + $0xe0] sm:$0xff]  ;;  %v1383_v2 = vsel %vm1362_vm14, 1, %v17895_v3  ;;  %v11665_v7 = vld [vmem:[%s12065_s4 + $0x18] sm:$0xff]   ;;  %10466 = vmatprep.subr.bf16.mxu1 %v11664_v0 }
 0x172   : > { %1219 = vperm.xlu1 %11655, %v1183_v13   ;;  %1216 = vperm.xlu0 %11654, %v1182_v10   ;;  %v1382_v5 = vsel %vm1361_vm15, 1, %v17895_v3  ;;  %vm1364_vm0 = vcmp.ne.f32.partialorder %v9323_v63, 0.0  ;;  %vm1363_vm1 = vcmp.ne.f32.partialorder %v9322_v24, 0.0  ;;  %v11666_v8 = vld [vmem:[%s12065_s4 + $0x50] sm:$0xff]   ;;  %v9325_v32 = vld [vmem:[%s17989_s29 + $0xf8] sm:$0xff]  ;;  %v11668_v46 = vld [vmem:[%s12065_s4 + $0x48] sm:$0xff]  }
 0x173   : > { %v9324_v11 = vld [vmem:[%s17989_s29 + $0xf0] sm:$0xff]  ;;  %v1385_v12 = vsel %vm1364_vm0, 1, %v17895_v3  ;;  %v1384_v45 = vsel %vm1363_vm1, 1, %v17895_v3  ;;  %10467 = vmatpush3.bf16.msra.mxu1 %v11665_v7  ;;  %vm1366_vm2 = vcmp.ne.f32.partialorder %v9325_v32, 0.0  ;;  %v9327_v50 = vld [vmem:[%s17989_s29 + $0x108] sm:$0xff]  ;;  %v9326_v56 = vld [vmem:[%s17989_s29 + $0x100] sm:$0xff] }
 0x174   : > { %v11667_v42 = vld [vmem:[%s12065_s4 + $0x10] sm:$0xff]   ;;  %vm1365_vm3 = vcmp.ne.f32.partialorder %v9324_v11, 0.0  ;;  %10468 = vmatprep.subr.bf16.mxu1 %v11666_v8  ;;  %v12455_v62 = vld [vmem:[#allocation2] sm:$0xff]  ;;  %v12457_v4 = vld [vmem:[#allocation2 + $0x38] sm:$0xff]  ;;  %v1387_v13 = vsel %vm1366_vm2, 1, %v17895_v3  ;;  %vm1368_vm4 = vcmp.ne.f32.partialorder %v9327_v50, 0.0 }
 0x175   : > { %v1386_v10 = vsel %vm1365_vm3, 1, %v17895_v3  ;;  %v11669_v16 = vld [vmem:[%s12065_s4 + $0x8] sm:$0xff]   ;;  %1092 = vst [vmem:[#allocation3 + $0x8] sm:$0xff] %v12455_v62  ;;  %1093 = vst [vmem:[#allocation3 + $0x10] sm:$0xff] %v12457_v4  ;;  %v12464_v23 = vld [vmem:[#allocation2 + $0x50] sm:$0xff]  ;;  %vm1367_vm5 = vcmp.ne.f32.partialorder %v9326_v56, 0.0 }
 0x176   : > { %1225 = vperm.xlu1 %11655, %v1185_v37   ;;  %1222 = vperm.xlu0 %11654, %v1184_v53   ;;  %v9329_v37 = vld [vmem:[%s17989_s29 + $0x118] sm:$0xff]  ;;  %v11670_v53 = vld [vmem:[%s12065_s4 + $0x40] sm:$0xff]   ;;  %1094 = vst [vmem:[#allocation3 + $0x18] sm:$0xff] %v12464_v23  ;;  %v9328_v49 = vld [vmem:[%s17989_s29 + $0x110] sm:$0xff]  ;;  %v1389_v41 = vsel %vm1368_vm4, 1, %v17895_v3  ;;  %v1388_v61 = vsel %vm1367_vm5, 1, %v17895_v3 }
 0x177   : > { %10469 = vmatpush3.bf16.msra.mxu1 %v11667_v42  ;;  %v1074_v14 = vld [vmem:[#allocation2 + $0x18] sm:$0xff]  ;;  %vm1370_vm6 = vcmp.ne.f32.partialorder %v9329_v37, 0.0  ;;  %vm1369_vm7 = vcmp.ne.f32.partialorder %v9328_v49, 0.0  ;;  %v9330_v18 = vld [vmem:[%s17989_s29 + $0x120] sm:$0xff]  ;;  %v1079_v48 = vld [vmem:[#allocation2 + $0x8] sm:$0xff] }
 0x178   : > { %10470 = vmatprep.subr.bf16.mxu1 %v11668_v46  ;;  %1095 = vst [vmem:[#allocation3 + $0x20] sm:$0xff] %v1074_v14  ;;  %v1077_v28 = vld [vmem:[#allocation2 + $0x78] sm:$0xff]  ;;  %vm1371_vm9 = vcmp.ne.f32.partialorder %v9330_v18, 0.0  ;;  %1100 = vst [vmem:[#allocation3 + $0x48] sm:$0xff] %v1079_v48  ;;  %v9332_v19 = vld [vmem:[%s17989_s29 + $0x130] sm:$0xff] }
 0x179   : > { %1098 = vst [vmem:[#allocation3 + $0x38] sm:$0xff] %v1077_v28  ;;  %v9333_v9 = vld [vmem:[%s17989_s29 + $0x138] sm:$0xff]  ;;  %v1081_v27 = vld [vmem:[#allocation2 + $0x28] sm:$0xff]  ;;  %vm1373_vm11 = vcmp.ne.f32.partialorder %v9332_v19, 0.0  ;;  %v9334_v31 = vld [vmem:[%s17989_s29 + $0x140] sm:$0xff] }
 0x17a   : > { %1231 = vperm.xlu1 %11655, %v1187_v36   ;;  %1228 = vperm.xlu0 %11654, %v1186_v55   ;;  %v12474_v36 = vld [vmem:[#allocation2 + $0x30] sm:$0xff]  ;;  %v1076_v55 = vld [vmem:[#allocation2 + $0x68] sm:$0xff]  ;;  %vm1374_vm10 = vcmp.ne.f32.partialorder %v9333_v9, 0.0  ;;  %1102 = vst [vmem:[#allocation3 + $0x58] sm:$0xff] %v1081_v27  ;;  %v9337_v6 = vld [vmem:[%s17989_s29 + $0x158] sm:$0xff]  ;;  %vm1375_vm13 = vcmp.ne.f32.partialorder %v9334_v31, 0.0 }
 0x17b   : > { %10471 = vmatpush3.bf16.msra.mxu1 %v11669_v16  ;;  %1096 = vst [vmem:[#allocation3 + $0x28] sm:$0xff] %v12474_v36  ;;  %1097 = vst [vmem:[#allocation3 + $0x30] sm:$0xff] %v1076_v55  ;;  %v9335_v30 = vld [vmem:[%s17989_s29 + $0x148] sm:$0xff]  ;;  %v1395_v39 = vsel %vm1374_vm10, 1, %v17895_v3  ;;  %v1083_v35 = vld [vmem:[#allocation2 + $0x60] sm:$0xff]  ;;  %vm1590_vm14 = vcmp.ne.f32.partialorder %v9337_v6, 0.0 }
 0x17c   : > { %10472 = vmatprep.subr.bf16.mxu1 %v11670_v53  ;;  %vm1376_vm12 = vcmp.ne.f32.partialorder %v9335_v30, 0.0  ;;  %v9339_v40 = vld [vmem:[%s17989_s29 + $0x168] sm:$0xff]  ;;  %v9338_v43 = vld [vmem:[%s17989_s29 + $0x160] sm:$0xff]  ;;  %1104 = vst [vmem:[#allocation3 + $0x68] sm:$0xff] %v1083_v35  ;;  %v1611_v51 = vsel %vm1590_vm14, 1, %v17895_v3  ;;  %v9341_v52 = vld [vmem:[%s17989_s29 + $0x178] sm:$0xff] }
 0x17d   : > { %v1397_v38 = vsel %vm1376_vm12, 1, %v17895_v3  ;;  %v9340_v57 = vld [vmem:[%s17989_s29 + $0x170] sm:$0xff]  ;;  %vm1592_vm0 = vcmp.ne.f32.partialorder %v9339_v40, 0.0  ;;  %vm1591_vm1 = vcmp.ne.f32.partialorder %v9338_v43, 0.0  ;;  %vm1594_vm2 = vcmp.ne.f32.partialorder %v9341_v52, 0.0  ;;  %v1086_v20 = vld [vmem:[#allocation2 + $0x58] sm:$0xff] }
 0x17e   : > { %1237 = vperm.xlu1 %11655, %v1189_v17   ;;  %1234 = vperm.xlu0 %11654, %v1188_v1   ;;  %v9331_v17 = vld [vmem:[%s17989_s29 + $0x128] sm:$0xff]  ;;  %v11671_v1 = vld [vmem:[%s12065_s4] sm:$0xff]   ;;  %v1612_v63 = vsel %vm1591_vm1, 1, %v17895_v3  ;;  %vm1593_vm3 = vcmp.ne.f32.partialorder %v9340_v57, 0.0  ;;  %1107 = vst [vmem:[#allocation3 + $0x80] sm:$0xff] %v1086_v20  ;;  %v9345_v8 = vld [vmem:[%s17989_s29 + $0x198] sm:$0xff] }
 0x17f   : > { %vm1372_vm8 = vcmp.ne.f32.partialorder %v9331_v17, 0.0  ;;  %10473 = vmatpush3.bf16.msra.mxu1 %v11671_v1  ;;  %v9343_v0 = vld [vmem:[%s17989_s29 + $0x188] sm:$0xff]  ;;  %v9342_v24 = vld [vmem:[%s17989_s29 + $0x180] sm:$0xff]  ;;  %v9344_v32 = vld [vmem:[%s17989_s29 + $0x190] sm:$0xff] }
 0x180   : > { %vm1596_vm4 = vcmp.ne.f32.partialorder %v9343_v0, 0.0  ;;  %vm1595_vm5 = vcmp.ne.f32.partialorder %v9342_v24, 0.0  ;;  %v1087_v7 = vld [vmem:[#allocation2 + $0x20] sm:$0xff]  ;;  %v1088_v11 = vld [vmem:[#allocation2 + $0x48] sm:$0xff]  ;;  %v11672_v42 = vld [vmem:[%s12065_s4 + $0xf8] sm:$0xff]  }
 0x181   : > { %1108 = vst [vmem:[#allocation3 + $0x88] sm:$0xff] %v1087_v7  ;;  %1109 = vst [vmem:[#allocation3 + $0x90] sm:$0xff] %v1088_v11  ;;  %v11673_v46 = vld [vmem:[%s12065_s4 + $0xb8] sm:$0xff]   ;;  %v9347_v50 = vld [vmem:[%s17989_s29 + $0x1a8] sm:$0xff]  ;;  %10376 = vmatprep.subr.bf16.mxu0 %v11672_v42 }
 0x182   : > { %1243 = vperm.xlu1 %11655, %v1191_v22   ;;  %1240 = vperm.xlu0 %11654, %v1190_v25   ;;  %v1078_v22 = vld [vmem:[#allocation2 + $0x80] sm:$0xff]  ;;  %v1391_v25 = vsel %vm1370_vm6, 1, %v17895_v3  ;;  %vm1598_vm6 = vcmp.ne.f32.partialorder %v9345_v8, 0.0  ;;  %v11674_v16 = vld [vmem:[%s12065_s4 + $0xf0] sm:$0xff]   ;;  %v9349_v53 = vld [vmem:[%s17989_s29 + $0x1b8] sm:$0xff] }
 0x183   : > { %1099 = vst [vmem:[#allocation3 + $0x40] sm:$0xff] %v1078_v22  ;;  %v9346_v56 = vld [vmem:[%s17989_s29 + $0x1a0] sm:$0xff]  ;;  %10377 = vmatpush3.bf16.msra.mxu0 %v11673_v46  ;;  %v11675_v37 = vld [vmem:[%s12065_s4 + $0xb0] sm:$0xff]   ;;  %v11676_v17 = vld [vmem:[%s12065_s4 + $0xe8] sm:$0xff]   ;;  %vm1602_vm10 = vcmp.ne.f32.partialorder %v9349_v53, 0.0 }
 0x184   : > { %v9348_v14 = vld [vmem:[%s17989_s29 + $0x1b0] sm:$0xff]  ;;  %10378 = vmatprep.subr.bf16.mxu0 %v11674_v16  ;;  %v11677_v1 = vld [vmem:[%s12065_s4 + $0xa8] sm:$0xff]   ;;  %v9350_v28 = vld [vmem:[%s17989_s29 + $0x1c0] sm:$0xff]  ;;  %v1623_v22 = vsel %vm1602_vm10, 1, %v17895_v3 }
 0x185   : > { %v1089_v49 = vld [vmem:[#allocation2 + $0x70] sm:$0xff]  ;;  %v9351_v18 = vld [vmem:[%s17989_s29 + $0x1c8] sm:$0xff]  ;;  %v11678_v9 = vld [vmem:[%s12065_s4 + $0xe0] sm:$0xff]  }
 0x186   : > { %1249 = vperm.xlu1 %11655, %v1193_v15   ;;  %1246 = vperm.xlu0 %11654, %v1192_v26   ;;  %v1390_v15 = vsel %vm1369_vm7, 1, %v17895_v3  ;;  %v1080_v26 = vld [vmem:[#allocation2 + $0x88] sm:$0xff]  ;;  %vm1597_vm7 = vcmp.ne.f32.partialorder %v9344_v32, 0.0  ;;  %v1090_v55 = vld [vmem:[#allocation2 + $0x10] sm:$0xff]  ;;  %1110 = vst [vmem:[#allocation3 + $0x98] sm:$0xff] %v1089_v49  ;;  %v11679_v48 = vld [vmem:[%s12065_s4 + $0xa0] sm:$0xff]  }
 0x187   : > { %1101 = vst [vmem:[#allocation3 + $0x50] sm:$0xff] %v1080_v26  ;;  %1111 = vst [vmem:[#allocation3 + $0xa0] sm:$0xff] %v1090_v55  ;;  %10379 = vmatpush3.bf16.msra.mxu0 %v11675_v37  ;;  %vm1604_vm12 = vcmp.ne.f32.partialorder %v9351_v18, 0.0  ;;  %v9353_v26 = vld [vmem:[%s17989_s29 + $0x1d8] sm:$0xff]  ;;  %v9352_v19 = vld [vmem:[%s17989_s29 + $0x1d0] sm:$0xff] }
 0x188   : > { %10380 = vmatprep.subr.bf16.mxu0 %v11676_v17  ;;  %v1625_v27 = vsel %vm1604_vm12, 1, %v17895_v3  ;;  %vm1606_vm14 = vcmp.ne.f32.partialorder %v9353_v26, 0.0  ;;  %v9355_v30 = vld [vmem:[%s17989_s29 + $0x1e8] sm:$0xff]  ;;  %v9354_v31 = vld [vmem:[%s17989_s29 + $0x1e0] sm:$0xff]  ;;  %v9357_v35 = vld [vmem:[%s17989_s29 + $0x1f8] sm:$0xff] }
 0x189   : > { %vm1607_vm1 = vcmp.ne.f32.partialorder %v9354_v31, 0.0  ;;  %v9358_v52 = vld [vmem:[%s17989_s29 + $0x200] sm:$0xff]  ;;  %v9361_v20 = vld [vmem:[%s17989_s29 + $0x218] sm:$0xff]  ;;  %v9360_v24 = vld [vmem:[%s17989_s29 + $0x210] sm:$0xff] }
 0x18a   : > { %1255 = vperm.xlu1 %11655, %v1195_v29   ;;  %1252 = vperm.xlu0 %11654, %v1194_v58   ;;  %v1393_v29 = vsel %vm1372_vm8, 1, %v17895_v3  ;;  %v1392_v58 = vsel %vm1371_vm9, 1, %v17895_v3  ;;  %vm1600_vm8 = vcmp.ne.f32.partialorder %v9347_v50, 0.0  ;;  %vm1599_vm9 = vcmp.ne.f32.partialorder %v9346_v56, 0.0  ;;  %v9363_v7 = vld [vmem:[%s17989_s29 + $0x228] sm:$0xff]  ;;  %v11688_v8 = vld [vmem:[%s12065_s4 + $0x178] sm:$0xff]  }
 0x18b   : > { %10381 = vmatpush3.bf16.msra.mxu0 %v11677_v1  ;;  %v1628_v43 = vsel %vm1607_vm1, 1, %v17895_v3  ;;  %v9365_v46 = vld [vmem:[%s17989_s29 + $0x238] sm:$0xff]  ;;  %v9366_v49 = vld [vmem:[%s17989_s29 + $0x240] sm:$0xff]  ;;  %v9368_v18 = vld [vmem:[%s17989_s29 + $0x250] sm:$0xff] }
 0x18c   : > { %10382 = vmatprep.subr.bf16.mxu0 %v11678_v9  ;;  %vm1798_vm10 = vcmp.ne.f32.partialorder %v9365_v46, 0.0 }
 0x18d   : > { %v1819_v55 = vsel %vm1798_vm10, 1, %v17895_v3 }
 0x18e   : > { %1399 = vperm.xlu1 %11655, %v1377_v33   ;;  %1258 = vperm.xlu0 %11654, %v1196_v34   ;;  %v9336_v33 = vld [vmem:[%s17989_s29 + $0x150] sm:$0xff]  ;;  %v1394_v34 = vsel %vm1373_vm11, 1, %v17895_v3  ;;  %vm1601_vm11 = vcmp.ne.f32.partialorder %v9348_v14, 0.0  ;;  %v9367_v14 = vld [vmem:[%s17989_s29 + $0x248] sm:$0xff] }
 0x18f   : > { %vm1589_vm15 = vcmp.ne.f32.partialorder %v9336_v33, 0.0  ;;  %10383 = vmatpush3.bf16.msra.mxu0 %v11679_v48  ;;  %v11682_v33 = vld [vmem:[%s12065_s4 + $0xd0] sm:$0xff]   ;;  %vm1800_vm12 = vcmp.ne.f32.partialorder %v9367_v14, 0.0  ;;  %v9371_v48 = vld [vmem:[%s17989_s29 + $0x268] sm:$0xff] }
 0x190   : > { %v1610_v54 = vsel %vm1589_vm15, 1, %v17895_v3  ;;  %vm1605_vm15 = vcmp.ne.f32.partialorder %v9352_v19, 0.0  ;;  %v9546_v14 = vld [vmem:[%s17989_s29 + $0x368] sm:$0xff] }
 0x191   : > { %v1626_v6 = vsel %vm1605_vm15, 1, %v17895_v3  ;;  %vm1801_vm15 = vcmp.ne.f32.partialorder %v9368_v18, 0.0  ;;  %v1316_v18 = vld [vmem:[#allocation3 + $0x19] sm:$0xff] }
 0x192   : > { %1405 = vperm.xlu1 %11655, %v1379_v44   ;;  %1402 = vperm.xlu0 %11654, %v1378_v47   ;;  %v1084_v44 = vld [vmem:[#allocation2 + $0x90] sm:$0xff]  ;;  %v1396_v47 = vsel %vm1375_vm13, 1, %v17895_v3  ;;  %vm1603_vm13 = vcmp.ne.f32.partialorder %v9350_v28, 0.0  ;;  %v1821_v28 = vsel %vm1800_vm12, 1, %v17895_v3  ;;  %v1822_v19 = vsel %vm1801_vm15, 1, %v17895_v3 }
 0x193   : > { %1105 = vst [vmem:[#allocation3 + $0x70] sm:$0xff] %v1084_v44  ;;  %v1624_v21 = vsel %vm1603_vm13, 1, %v17895_v3  ;;  %v11684_v44 = vld [vmem:[%s12065_s4 + $0xc8] sm:$0xff]   ;;  %vm1799_vm13 = vcmp.ne.f32.partialorder %v9366_v49, 0.0 }
 0x196   : > { %1411 = vperm.xlu1 %11655, %v1381_v59   ;;  %1408 = vperm.xlu0 %11654, %v1380_v60   ;;  %v1613_v59 = vsel %vm1592_vm0, 1, %v17895_v3  ;;  %v1085_v60 = vld [vmem:[#allocation2 + $0x98] sm:$0xff]  ;;  %vm1608_vm0 = vcmp.ne.f32.partialorder %v9355_v30, 0.0 }
 0x197   : > { %1106 = vst [vmem:[#allocation3 + $0x78] sm:$0xff] %v1085_v60  ;;  %v1629_v40 = vsel %vm1608_vm0, 1, %v17895_v3  ;;  %v11687_v60 = vld [vmem:[%s12065_s4 + $0x80] sm:$0xff]   ;;  %vm1804_vm0 = vcmp.ne.f32.partialorder %v9371_v48, 0.0 }
 0x198   : > { %v1825_v30 = vsel %vm1804_vm0, 1, %v17895_v3 }
 0x19a   : > { %1417 = vperm.xlu1 %11655, %v1383_v2   ;;  %1414 = vperm.xlu0 %11654, %v1382_v5   ;;  %v1615_v2 = vsel %vm1594_vm2, 1, %v17895_v3  ;;  %v1614_v5 = vsel %vm1593_vm3, 1, %v17895_v3  ;;  %vm1790_vm2 = vcmp.ne.f32.partialorder %v9357_v35, 0.0 }
 0x19e   : > { %1423 = vperm.xlu1 %11655, %v1385_v12   ;;  %1420 = vperm.xlu0 %11654, %v1384_v45   ;;  %v1617_v12 = vsel %vm1596_vm4, 1, %v17895_v3  ;;  %v1616_v45 = vsel %vm1595_vm5, 1, %v17895_v3  ;;  %vm1791_vm5 = vcmp.ne.f32.partialorder %v9358_v52, 0.0 }
 0x1a2   : > { %1429 = vperm.xlu1 %11655, %v1387_v13   ;;  %1426 = vperm.xlu0 %11654, %v1386_v10   ;;  %v1619_v13 = vsel %vm1598_vm6, 1, %v17895_v3  ;;  %v1618_v10 = vsel %vm1597_vm7, 1, %v17895_v3  ;;  %vm1794_vm6 = vcmp.ne.f32.partialorder %v9361_v20, 0.0  ;;  %vm1793_vm7 = vcmp.ne.f32.partialorder %v9360_v24, 0.0 }
 0x1a3   : > { %v1814_v42 = vsel %vm1793_vm7, 1, %v17895_v3 }
 0x1a6   : > { %1435 = vperm.xlu1 %11655, %v1389_v41   ;;  %1432 = vperm.xlu0 %11654, %v1388_v61   ;;  %v1621_v41 = vsel %vm1600_vm8, 1, %v17895_v3  ;;  %v1620_v61 = vsel %vm1599_vm9, 1, %v17895_v3  ;;  %vm1796_vm8 = vcmp.ne.f32.partialorder %v9363_v7, 0.0  ;;  %v9544_v7 = vld [vmem:[%s17989_s29 + $0x358] sm:$0xff] }
 0x1aa   : > { %1441 = vperm.xlu1 %11655, %v1391_v25   ;;  %1438 = vperm.xlu0 %11654, %v1390_v15   ;;  %v1622_v25 = vsel %vm1601_vm11, 1, %v17895_v3  ;;  %v1091_v15 = vld [vmem:[#allocation2 + $0xa0] sm:$0xff] }
 0x1ab   : > { %1112 = vst [vmem:[#allocation3 + $0xa8] sm:$0xff] %v1091_v15  ;;  %v9370_v15 = vld [vmem:[%s17989_s29 + $0x260] sm:$0xff] }
 0x1ac   : > { %vm1803_vm1 = vcmp.ne.f32.partialorder %v9370_v15, 0.0 }
 0x1ad   : > { %v1824_v31 = vsel %vm1803_vm1, 1, %v17895_v3 }
 0x1ae   : > { %1447 = vperm.xlu1 %11655, %v1393_v29   ;;  %1444 = vperm.xlu0 %11654, %v1392_v58   ;;  %v11680_v29 = vld [vmem:[%s12065_s4 + $0xd8] sm:$0xff]  }
 0x1af   : > { %v11681_v58 = vld [vmem:[%s12065_s4 + $0x98] sm:$0xff]   ;;  %10384 = vmatprep.subr.bf16.mxu0 %v11680_v29 }
 0x1b0   : > { %10385 = vmatpush3.bf16.msra.mxu0 %v11681_v58  ;;  %v9372_v58 = vld [vmem:[%s17989_s29 + $0x270] sm:$0xff] }
 0x1b1   : > { %10386 = vmatprep.subr.bf16.mxu0 %v11682_v33  ;;  %v9375_v33 = vld [vmem:[%s17989_s29 + $0x288] sm:$0xff] }
 0x1b2   : > { %1453 = vperm.xlu1 %11655, %v1395_v39   ;;  %1450 = vperm.xlu0 %11654, %v1394_v34   ;;  %v1627_v39 = vsel %vm1606_vm14, 1, %v17895_v3  ;;  %v11683_v34 = vld [vmem:[%s12065_s4 + $0x90] sm:$0xff]  }
 0x1b4   : > { %10387 = vmatpush3.bf16.msra.mxu0 %v11683_v34  ;;  %v9374_v34 = vld [vmem:[%s17989_s29 + $0x280] sm:$0xff] }
 0x1b5   : > { %10388 = vmatprep.subr.bf16.mxu0 %v11684_v44 }
 0x1b6   : > { %1459 = vperm.xlu1 %11655, %v1397_v38   ;;  %1456 = vperm.xlu0 %11654, %v1396_v47   ;;  %v9356_v38 = vld [vmem:[%s17989_s29 + $0x1f0] sm:$0xff]  ;;  %v11685_v47 = vld [vmem:[%s12065_s4 + $0x88] sm:$0xff]  }
 0x1b7   : > { %vm1609_vm3 = vcmp.ne.f32.partialorder %v9356_v38, 0.0 }
 0x1b8   : > { %v1630_v57 = vsel %vm1609_vm3, 1, %v17895_v3  ;;  %10389 = vmatpush3.bf16.msra.mxu0 %v11685_v47  ;;  %vm1805_vm3 = vcmp.ne.f32.partialorder %v9372_v58, 0.0  ;;  %v9376_v47 = vld [vmem:[%s17989_s29 + $0x290] sm:$0xff] }
 0x1b9   : > { %v1826_v38 = vsel %vm1805_vm3, 1, %v17895_v3  ;;  %vm1809_vm7 = vcmp.ne.f32.partialorder %v9376_v47, 0.0  ;;  %vm2470_vm3 = vcmp.ne.f32.partialorder %v9546_v14, 0.0  ;;  %v1318_v58 = vld [vmem:[#allocation3 + $0x29] sm:$0xff]  ;;  %v1321_v14 = vld [vmem:[#allocation3 + $0x41] sm:$0xff] }
 0x1ba   : > { %1635 = vperm.xlu1 %11655, %v1611_v51   ;;  %1632 = vperm.xlu0 %11654, %v1610_v54   ;;  %v9359_v51 = vld [vmem:[%s17989_s29 + $0x208] sm:$0xff]  ;;  %v1811_v54 = vsel %vm1790_vm2, 1, %v17895_v3  ;;  %v1830_v24 = vsel %vm1809_vm7, 1, %v17895_v3  ;;  %v9552_v47 = vld [vmem:[%s17989_s29 + $0x398] sm:$0xff] }
 0x1bb   : > { %vm1792_vm4 = vcmp.ne.f32.partialorder %v9359_v51, 0.0 }
 0x1be   : > { %1641 = vperm.xlu1 %11655, %v1613_v59   ;;  %1638 = vperm.xlu0 %11654, %v1612_v63   ;;  %v11686_v59 = vld [vmem:[%s12065_s4 + $0xc0] sm:$0xff]  }
 0x1bf   : > { %10390 = vmatprep.subr.bf16.mxu0 %v11686_v59  ;;  %v9543_v59 = vld [vmem:[%s17989_s29 + $0x350] sm:$0xff] }
 0x1c0   : > { %10391 = vmatpush3.bf16.msra.mxu0 %v11687_v60  ;;  %v9542_v60 = vld [vmem:[%s17989_s29 + $0x348] sm:$0xff] }
 0x1c1   : > { %10540 = vmatprep.subr.bf16.mxu0 %v11688_v8 }
 0x1c2   : > { %1647 = vperm.xlu1 %11655, %v1615_v2   ;;  %1644 = vperm.xlu0 %11654, %v1614_v5   ;;  %v1813_v2 = vsel %vm1792_vm4, 1, %v17895_v3  ;;  %v1812_v5 = vsel %vm1791_vm5, 1, %v17895_v3  ;;  %vm1808_vm4 = vcmp.ne.f32.partialorder %v9375_v33, 0.0  ;;  %vm1807_vm5 = vcmp.ne.f32.partialorder %v9374_v34, 0.0  ;;  %v9551_v34 = vld [vmem:[%s17989_s29 + $0x390] sm:$0xff] }
 0x1c3   : > { %v1829_v51 = vsel %vm1808_vm4, 1, %v17895_v3  ;;  %v1828_v52 = vsel %vm1807_vm5, 1, %v17895_v3  ;;  %v9486_v33 = vpack.c.bf16 %v12464_v23, %v12457_v4  ;;  %v9553_v4 = vld [vmem:[%s17989_s29 + $0x3a0] sm:$0xff] }
 0x1c6   : > { %1653 = vperm.xlu1 %11655, %v1617_v12   ;;  %1650 = vperm.xlu0 %11654, %v1616_v45   ;;  %v9362_v12 = vld [vmem:[%s17989_s29 + $0x220] sm:$0xff]  ;;  %v1815_v45 = vsel %vm1794_vm6, 1, %v17895_v3 }
 0x1c7   : > { %vm1795_vm9 = vcmp.ne.f32.partialorder %v9362_v12, 0.0 }
 0x1c8   : > { %v1816_v16 = vsel %vm1795_vm9, 1, %v17895_v3  ;;  %vm2466_vm9 = vcmp.ne.f32.partialorder %v9542_v60, 0.0  ;;  %v1320_v60 = vld [vmem:[#allocation3 + $0x39] sm:$0xff] }
 0x1ca   : > { %1659 = vperm.xlu1 %11655, %v1619_v13   ;;  %1656 = vperm.xlu0 %11654, %v1618_v10   ;;  %v9364_v13 = vld [vmem:[%s17989_s29 + $0x230] sm:$0xff]  ;;  %v1817_v10 = vsel %vm1796_vm8, 1, %v17895_v3  ;;  %vm2467_vm8 = vcmp.ne.f32.partialorder %v9543_v59, 0.0  ;;  %v1319_v59 = vld [vmem:[#allocation3 + $0x31] sm:$0xff] }
 0x1cb   : > { %vm1797_vm11 = vcmp.ne.f32.partialorder %v9364_v13, 0.0  ;;  %v2488_v46 = vsel %vm2467_vm8, 1, %v17895_v3  ;;  %v2487_v13 = vsel %vm2466_vm9, 1, %v17895_v3 }
 0x1ce   : > { %1665 = vperm.xlu1 %11655, %v1621_v41   ;;  %1662 = vperm.xlu0 %11654, %v1620_v61   ;;  %v1818_v41 = vsel %vm1797_vm11, 1, %v17895_v3  ;;  %v9369_v61 = vld [vmem:[%s17989_s29 + $0x258] sm:$0xff]  ;;  %vm2468_vm11 = vcmp.ne.f32.partialorder %v9544_v7, 0.0  ;;  %v9555_v7 = vld [vmem:[%s17989_s29 + $0x3b0] sm:$0xff] }
 0x1cf   : > { %vm1802_vm14 = vcmp.ne.f32.partialorder %v9369_v61, 0.0  ;;  %v1315_v61 = vld [vmem:[#allocation3 + $0x11] sm:$0xff] }
 0x1d0   : > { %v1823_v26 = vsel %vm1802_vm14, 1, %v17895_v3 }
 0x1d2   : > { %1671 = vperm.xlu1 %11655, %v1623_v22   ;;  %1668 = vperm.xlu0 %11654, %v1622_v25   ;;  %v1820_v22 = vsel %vm1799_vm13, 1, %v17895_v3 }
 0x1d6   : > { %1677 = vperm.xlu1 %11655, %v1625_v27   ;;  %1674 = vperm.xlu0 %11654, %v1624_v21   ;;  %v9373_v27 = vld [vmem:[%s17989_s29 + $0x278] sm:$0xff] }
 0x1d7   : > { %vm1806_vm2 = vcmp.ne.f32.partialorder %v9373_v27, 0.0  ;;  %v1317_v27 = vld [vmem:[#allocation3 + $0x21] sm:$0xff] }
 0x1d8   : > { %v1827_v35 = vsel %vm1806_vm2, 1, %v17895_v3 }
 0x1da   : > { %1683 = vperm.xlu1 %11655, %v1627_v39   ;;  %1680 = vperm.xlu0 %11654, %v1626_v6  }
 0x1de   : > { %1689 = vperm.xlu1 %11655, %v1629_v40   ;;  %1686 = vperm.xlu0 %11654, %v1628_v43   ;;  %v9377_v40 = vld [vmem:[%s17989_s29 + $0x298] sm:$0xff] }
 0x1df   : > { %vm1810_vm6 = vcmp.ne.f32.partialorder %v9377_v40, 0.0 }
 0x1e0   : > { %v1831_v20 = vsel %vm1810_vm6, 1, %v17895_v3 }
 0x1e1   : > { %v12619_v63 = vpop.permute.xlu1 %1204  ;;  %v12621_v0 = vpop.permute.xlu0 %1198 }
 0x1e2   : > { %1833 = vperm.xlu1 %11655, %v1811_v54   ;;  %1692 = vperm.xlu0 %11654, %v1630_v57   ;;  %vm1260_vm15 = vcmp.eq.s32.totalorder %v12621_v0, 1  ;;  %v9548_v0 = vld [vmem:[%s17989_s29 + $0x378] sm:$0xff]  ;;  %vm1262_vm9 = vcmp.eq.s32.totalorder %v12619_v63, 1 }
 0x1e3   : > { %vm2472_vm8 = vcmp.ne.f32.partialorder %v9548_v0, 0.0  ;;  %v11702_v0 = vld [vmem:[%s12065_s4 + $0x1f8] sm:$0xff]  }
 0x1e4   : > { %v2493_v63 = vsel %vm2472_vm8, 1, %v17895_v3  ;;  %10622 = vmatprep.subr.bf16.mxu1 %v11702_v0  ;;  %v1328_v0 = vld [vmem:[#allocation3 + $0x79] sm:$0xff] }
 0x1e5   : > { %v12632_v32 = vpop.permute.xlu1 %1207  ;;  %v12634_v11 = vpop.permute.xlu0 %1201 }
 0x1e6   : > { %1839 = vperm.xlu1 %11655, %v1813_v2   ;;  %1836 = vperm.xlu0 %11654, %v1812_v5   ;;  %v1313_v2 = vld [vmem:[#allocation3 + $0x1] sm:$0xff]  ;;  %v9545_v5 = vld [vmem:[%s17989_s29 + $0x360] sm:$0xff]  ;;  %vm1261_vm12 = vcmp.eq.s32.totalorder %v12634_v11, 1  ;;  %v9483_v11 = vpack.c.bf16 %v1316_v18, %v1315_v61  ;;  %v11805_v61 = vld [vmem:[#allocation3 + $0x30] sm:$0xff] }
 0x1e7   : > { %vm2469_vm10 = vcmp.ne.f32.partialorder %v9545_v5, 0.0  ;;  %vm9479_vm1 = vmpackc.low %vm1261_vm12, %vm1260_vm15  ;;  %v11806_v18 = vld [vmem:[#allocation3 + $0x38] sm:$0xff] }
 0x1e9   : > { %v12644_v50 = vpop.permute.xlu1 %1213  ;;  %v12646_v56 = vpop.permute.xlu0 %1210 }
 0x1ea   : > { %1845 = vperm.xlu1 %11655, %v1815_v45   ;;  %1842 = vperm.xlu0 %11654, %v1814_v42   ;;  %v1314_v45 = vld [vmem:[#allocation3 + $0x9] sm:$0xff]  ;;  %v1113_v42 = vld [vmem:[#allocation3] sm:$0xff] }
 0x1ed   : > { %v12653_v37 = vpop.permute.xlu1 %1219  ;;  %v12655_v53 = vpop.permute.xlu0 %1216 }
 0x1ee   : > { %1851 = vperm.xlu1 %11655, %v1817_v10   ;;  %1848 = vperm.xlu0 %11654, %v1816_v16   ;;  %v9477_v10 = vpack.c.bf16 %v1314_v45, %v1313_v2  ;;  %v9547_v16 = vld [vmem:[%s17989_s29 + $0x370] sm:$0xff]  ;;  %v11804_v2 = vld [vmem:[#allocation3 + $0x20] sm:$0xff]  ;;  %v9495_v45 = vpack.c.bf16 %v1320_v60, %v1319_v59  ;;  %v9614_v60 = vld [vmem:[%s17989_s29 + $0x400] sm:$0xff] }
 0x1ef   : > { %vm2471_vm2 = vcmp.ne.f32.partialorder %v9547_v16, 0.0  ;;  %v9492_v5 = vpack.c.bf16 %v12474_v36, %v11804_v2  ;;  %v9557_v36 = vld [vmem:[%s17989_s29 + $0x3c0] sm:$0xff] }
 0x1f1   : > { %v12668_v17 = vpop.permute.xlu1 %1225  ;;  %v12670_v1 = vpop.permute.xlu0 %1222 }
 0x1f2   : > { %1857 = vperm.xlu1 %11655, %v1819_v55   ;;  %1854 = vperm.xlu0 %11654, %v1818_v41   ;;  %v9480_v41 = vpack.c.bf16 %v12455_v62, %v1113_v42  ;;  %v9549_v62 = vld [vmem:[%s17989_s29 + $0x380] sm:$0xff] }
 0x1f3   : > { %vm2473_vm7 = vcmp.ne.f32.partialorder %v9549_v62, 0.0 }
 0x1f5   : > { %v12677_v25 = vpop.permute.xlu1 %1231  ;;  %v12679_v9 = vpop.permute.xlu0 %1228 }
 0x1f6   : > { %1863 = vperm.xlu1 %11655, %v1821_v28   ;;  %1860 = vperm.xlu0 %11654, %v1820_v22   ;;  %v2490_v28 = vsel %vm2469_vm10, 1, %v17895_v3  ;;  %v2489_v22 = vsel %vm2468_vm11, 1, %v17895_v3  ;;  %vm1263_vm10 = vcmp.eq.s32.totalorder %v12632_v32, 1  ;;  %v9489_v32 = vpack.c.bf16 %v1318_v58, %v1317_v27  ;;  %v11703_v27 = vld [vmem:[%s12065_s4 + $0x1b8] sm:$0xff]  }
 0x1f7   : > { %vm9485_vm12 = vmpackc.low %vm1263_vm10, %vm1262_vm9 }
 0x1f9   : > { %v12692_v21 = vpop.permute.xlu1 %1237  ;;  %v12694_v29 = vpop.permute.xlu0 %1234 }
 0x1fa   : > { %1869 = vperm.xlu1 %11655, %v1823_v26   ;;  %1866 = vperm.xlu0 %11654, %v1822_v19   ;;  %v2492_v26 = vsel %vm2471_vm2, 1, %v17895_v3  ;;  %v2491_v19 = vsel %vm2470_vm3, 1, %v17895_v3  ;;  %vm2476_vm2 = vcmp.ne.f32.partialorder %v9552_v47, 0.0  ;;  %vm1265_vm3 = vcmp.eq.s32.totalorder %v12644_v50, 1  ;;  %v11705_v47 = vld [vmem:[%s12065_s4 + $0x1b0] sm:$0xff]  }
 0x1fd   : > { %v12701_v39 = vpop.permute.xlu1 %1243  ;;  %v12703_v6 = vpop.permute.xlu0 %1240 }
 0x1fe   : > { %1875 = vperm.xlu1 %11655, %v1825_v30   ;;  %1872 = vperm.xlu0 %11654, %v1824_v31  }
 0x201   : > { %v12716_v43 = vpop.permute.xlu1 %1249  ;;  %v12718_v44 = vpop.permute.xlu0 %1246 }
 0x202   : > { %1881 = vperm.xlu1 %11655, %v1827_v35   ;;  %1878 = vperm.xlu0 %11654, %v1826_v38   ;;  %v9550_v35 = vld [vmem:[%s17989_s29 + $0x388] sm:$0xff]  ;;  %v2494_v38 = vsel %vm2473_vm7, 1, %v17895_v3  ;;  %vm2479_vm7 = vcmp.ne.f32.partialorder %v9555_v7, 0.0 }
 0x205   : > { %v12725_v54 = vpop.permute.xlu1 %1255  ;;  %v12727_v57 = vpop.permute.xlu0 %1252 }
 0x206   : > { %1887 = vperm.xlu1 %11655, %v1829_v51   ;;  %1884 = vperm.xlu0 %11654, %v1828_v52  }
 0x209   : > { %v1400_v8 = vpop.permute.xlu1 %1399  ;;  %v12743_v12 = vpop.permute.xlu0 %1258 }
 0x20a   : > { %1893 = vperm.xlu1 %11655, %v1831_v20   ;;  %1890 = vperm.xlu0 %11654, %v1830_v24   ;;  %vm1461_vm13 = vcmp.eq.s32.totalorder %v1400_v8, 1  ;;  %v9554_v8 = vld [vmem:[%s17989_s29 + $0x3a8] sm:$0xff] }
 0x20b   : > { %vm2478_vm8 = vcmp.ne.f32.partialorder %v9554_v8, 0.0  ;;  %v1325_v8 = vld [vmem:[#allocation3 + $0x61] sm:$0xff] }
 0x20c   : > { %v2499_v16 = vsel %vm2478_vm8, 1, %v17895_v3  ;;  %vm1268_vm8 = vcmp.eq.s32.totalorder %v12670_v1, 1  ;;  %v11709_v1 = vld [vmem:[%s12065_s4 + $0x1a8] sm:$0xff]  }
 0x20d   : > { %v1406_v49 = vpop.permute.xlu1 %1405  ;;  %v1403_v55 = vpop.permute.xlu0 %1402 }
 0x20e   : > { %2512 = vperm.xlu1 %11655, %v2488_v46   ;;  %2509 = vperm.xlu0 %11654, %v2487_v13   ;;  %vm1462_vm14 = vcmp.eq.s32.totalorder %v1403_v55, 1  ;;  %vm1463_vm4 = vcmp.eq.s32.totalorder %v1406_v49, 1  ;;  %v9556_v13 = vld [vmem:[%s17989_s29 + $0x3b8] sm:$0xff] }
 0x20f   : > { %vm9476_vm0 = vmpackc.low %vm1462_vm14, %vm1461_vm13  ;;  %vm2475_vm13 = vcmp.ne.f32.partialorder %v9551_v34, 0.0  ;;  %vm2474_vm14 = vcmp.ne.f32.partialorder %v9550_v35, 0.0  ;;  %v1322_v49 = vld [vmem:[#allocation3 + $0x49] sm:$0xff] }
 0x210   : > { %9478 = vmatprep.mubr.msk.bf16.mxu1 %vm9476_vm0, %v9477_v10  ;;  %v2496_v51 = vsel %vm2475_vm13, 1, %v17895_v3  ;;  %v2495_v52 = vsel %vm2474_vm14, 1, %v17895_v3  ;;  %v2500_v10 = vsel %vm2479_vm7, 1, %v17895_v3  ;;  %vm1267_vm13 = vcmp.eq.s32.totalorder %v12653_v37, 1  ;;  %v9560_v37 = vld [vmem:[%s17989_s29 + $0x3d8] sm:$0xff]  ;;  %v9612_v34 = vld [vmem:[%s17989_s29 + $0x3f0] sm:$0xff] }
 0x211   : > { %v1412_v48 = vpop.permute.xlu1 %1411  ;;  %v1409_v15 = vpop.permute.xlu0 %1408  ;;  %9481 = vmatmul.mubr.msk.bf16.vlgmr.msra.gmra.mxu1 %vm9479_vm1, %v9480_v41  ;;  %vm2477_vm1 = vcmp.ne.f32.partialorder %v9553_v4, 0.0  ;;  %vm1266_vm14 = vcmp.eq.s32.totalorder %v12655_v53, 1  ;;  %v11704_v35 = vld [vmem:[%s12065_s4 + $0x1f0] sm:$0xff]   ;;  %vm1269_vm7 = vcmp.eq.s32.totalorder %v12668_v17, 1  ;;  %v9613_v17 = vld [vmem:[%s17989_s29 + $0x3f8] sm:$0xff] }
 0x212   : > { %vm1464_vm5 = vcmp.eq.s32.totalorder %v1409_v15, 1  ;;  %2518 = vperm.xlu1 %11655, %v2490_v28   ;;  %2515 = vperm.xlu0 %11654, %v2489_v22   ;;  %vm1465_vm15 = vcmp.eq.s32.totalorder %v1412_v48, 1  ;;  %v2498_v50 = vsel %vm2477_vm1, 1, %v17895_v3  ;;  %v9498_v28 = vpack.c.bf16 %v11806_v18, %v11805_v61  ;;  %v9559_v22 = vld [vmem:[%s17989_s29 + $0x3d0] sm:$0xff]  ;;  %v9561_v15 = vld [vmem:[%s17989_s29 + $0x3e0] sm:$0xff] }
 0x213   : > { %vm9482_vm6 = vmpackc.low %vm1464_vm5, %vm1463_vm4  ;;  %vm1264_vm4 = vcmp.eq.s32.totalorder %v12646_v56, 1  ;;  %v2497_v56 = vsel %vm2476_vm2, 1, %v17895_v3  ;;  %v9501_v48 = vpack.c.bf16 %v1322_v49, %v1321_v14  ;;  %vm2483_vm1 = vcmp.ne.f32.partialorder %v9559_v22, 0.0  ;;  %10623 = vmatpush3.bf16.msra.mxu1 %v11703_v27  ;;  %v11808_v4 = vld [vmem:[#allocation3 + $0x48] sm:$0xff]  ;;  %v9615_v14 = vld [vmem:[%s17989_s29 + $0x408] sm:$0xff] }
 0x214   : > { %9484 = vmatprep.mubr.msk.bf16.mxu1 %vm9482_vm6, %v9483_v11  ;;  %vm9491_vm6 = vmpackc.low %vm1265_vm3, %vm1264_vm4  ;;  %v9558_v11 = vld [vmem:[%s17989_s29 + $0x3c8] sm:$0xff]  ;;  %v2504_v58 = vsel %vm2483_vm1, 1, %v17895_v3  ;;  %10624 = vmatprep.subr.bf16.mxu1 %v11704_v35  ;;  %vm1271_vm1 = vcmp.eq.s32.totalorder %v12677_v25, 1  ;;  %v11711_v61 = vld [vmem:[%s12065_s4 + $0x1a0] sm:$0xff]  }
 0x215   : > { %v1418_v30 = vpop.permute.xlu1 %1417  ;;  %v1415_v31 = vpop.permute.xlu0 %1414  ;;  %vm2482_vm2 = vcmp.ne.f32.partialorder %v9558_v11, 0.0  ;;  %v9618_v22 = vld [vmem:[%s17989_s29 + $0x420] sm:$0xff]  ;;  %v11712_v11 = vld [vmem:[%s12065_s4 + $0x1d8] sm:$0xff]   ;;  %v11716_v35 = vld [vmem:[%s12065_s4 + $0x190] sm:$0xff]  }
 0x216   : > { %2524 = vperm.xlu1 %11655, %v2492_v26   ;;  %2521 = vperm.xlu0 %11654, %v2491_v19   ;;  %vm1466_vm11 = vcmp.eq.s32.totalorder %v1415_v31, 1  ;;  %vm1467_vm9 = vcmp.eq.s32.totalorder %v1418_v30, 1  ;;  %v2503_v30 = vsel %vm2482_vm2, 1, %v17895_v3  ;;  %v1323_v31 = vld [vmem:[#allocation3 + $0x51] sm:$0xff]  ;;  %vm1270_vm2 = vcmp.eq.s32.totalorder %v12679_v9, 1 }
 0x217   : > { %vm9488_vm0 = vmpackc.low %vm1466_vm11, %vm1465_vm15  ;;  %vm2481_vm11 = vcmp.ne.f32.partialorder %v9557_v36, 0.0  ;;  %10625 = vmatpush3.bf16.msra.mxu1 %v11705_v47  ;;  %v9617_v25 = vld [vmem:[%s17989_s29 + $0x418] sm:$0xff]  ;;  %v11717_v47 = vld [vmem:[%s12065_s4 + $0x1c8] sm:$0xff]  }
 0x218   : > { %v2502_v53 = vsel %vm2481_vm11, 1, %v17895_v3  ;;  %vm2936_vm11 = vcmp.ne.f32.partialorder %v9612_v34, 0.0  ;;  %v11713_v9 = vld [vmem:[%s12065_s4 + $0x198] sm:$0xff]   ;;  %v9619_v34 = vld [vmem:[%s17989_s29 + $0x428] sm:$0xff] }
 0x219   : > { %v12783_v23 = vpop.permute.xlu1 %1423  ;;  %v1421_v40 = vpop.permute.xlu0 %1420  ;;  %9487 = vmatmul.mubr.msk.bf16.gmra.mxu1 %vm9485_vm12, %v9486_v33  ;;  %vm2480_vm12 = vcmp.ne.f32.partialorder %v9556_v13, 0.0  ;;  %v1324_v33 = vld [vmem:[#allocation3 + $0x59] sm:$0xff]  ;;  %v2957_v7 = vsel %vm2936_vm11, 1, %v17895_v3  ;;  %vm1273_vm11 = vcmp.eq.s32.totalorder %v12692_v21, 1  ;;  %v9633_v21 = vld [vmem:[%s17989_s29 + $0x498] sm:$0xff] }
 0x21a   : > { %2530 = vperm.xlu1 %11655, %v2494_v38   ;;  %2527 = vperm.xlu0 %11654, %v2493_v63   ;;  %vm1468_vm5 = vcmp.eq.s32.totalorder %v1421_v40, 1  ;;  %v2501_v62 = vsel %vm2480_vm12, 1, %v17895_v3  ;;  %vm1469_vm3 = vcmp.eq.s32.totalorder %v12783_v23, 1  ;;  %v9562_v40 = vld [vmem:[%s17989_s29 + $0x3e8] sm:$0xff]  ;;  %v9507_v59 = vpack.c.bf16 %v1324_v33, %v1323_v31  ;;  %v11810_v13 = vld [vmem:[#allocation3 + $0x58] sm:$0xff]  ;;  %v9620_v33 = vld [vmem:[%s17989_s29 + $0x430] sm:$0xff] }
 0x21b   : > { %9490 = vmatprep.mubr.msk.bf16.mxu1 %vm9488_vm0, %v9489_v32  ;;  %vm9494_vm10 = vmpackc.low %vm1468_vm5, %vm1467_vm9  ;;  %vm2485_vm5 = vcmp.ne.f32.partialorder %v9561_v15, 0.0  ;;  %v11807_v32 = vld [vmem:[#allocation3 + $0x40] sm:$0xff]  ;;  %vm2486_vm12 = vcmp.ne.f32.partialorder %v9562_v40, 0.0  ;;  %v1327_v15 = vld [vmem:[#allocation3 + $0x71] sm:$0xff] }
 0x21c   : > { %vm9497_vm0 = vmpackc.low %vm1267_vm13, %vm1266_vm14  ;;  %v9504_v23 = vpack.c.bf16 %v11808_v4, %v11807_v32  ;;  %v9634_v40 = vld [vmem:[%s17989_s29 + $0x4a0] sm:$0xff] }
 0x21d   : > { %v12792_v20 = vpop.permute.xlu1 %1429  ;;  %v1427_v24 = vpop.permute.xlu0 %1426 }
 0x21e   : > { %2536 = vperm.xlu1 %11655, %v2496_v51   ;;  %2533 = vperm.xlu0 %11654, %v2495_v52   ;;  %vm1470_vm15 = vcmp.eq.s32.totalorder %v1427_v24, 1  ;;  %v2506_v51 = vsel %vm2485_vm5, 1, %v17895_v3  ;;  %v11707_v24 = vld [vmem:[%s12065_s4 + $0x1e8] sm:$0xff]   ;;  %vm1471_vm13 = vcmp.eq.s32.totalorder %v12792_v20, 1  ;;  %v2507_v20 = vsel %vm2486_vm12, 1, %v17895_v3 }
 0x21f   : > { %vm9500_vm4 = vmpackc.low %vm1470_vm15, %vm1469_vm3  ;;  %vm2938_vm15 = vcmp.ne.f32.partialorder %v9614_v60, 0.0  ;;  %10626 = vmatprep.subr.bf16.mxu1 %v11707_v24  ;;  %vm1272_vm12 = vcmp.eq.s32.totalorder %v12694_v29, 1  ;;  %v11718_v29 = vld [vmem:[%s12065_s4 + $0x188] sm:$0xff]   ;;  %v1330_v24 = vld [vmem:[#allocation3 + $0x89] sm:$0xff] }
 0x220   : > { %10627 = vmatpush3.bf16.msra.mxu1 %v11709_v1  ;;  %v2959_v49 = vsel %vm2938_vm15, 1, %v17895_v3  ;;  %vm2944_vm15 = vcmp.ne.f32.partialorder %v9620_v33, 0.0  ;;  %v1329_v60 = vld [vmem:[#allocation3 + $0x81] sm:$0xff] }
 0x221   : > { %v12806_v42 = vpop.permute.xlu1 %1435  ;;  %v12808_v46 = vpop.permute.xlu0 %1432  ;;  %9493 = vmatmul.mubr.msk.bf16.gmra.mxu1 %vm9491_vm6, %v9492_v5  ;;  %vm2484_vm6 = vcmp.ne.f32.partialorder %v9560_v37, 0.0  ;;  %v11714_v37 = vld [vmem:[%s12065_s4 + $0x1d0] sm:$0xff]  }
 0x222   : > { %2542 = vperm.xlu1 %11655, %v2498_v50   ;;  %2539 = vperm.xlu0 %11654, %v2497_v56   ;;  %vm1472_vm9 = vcmp.eq.s32.totalorder %v12808_v46, 1  ;;  %v2505_v52 = vsel %vm2484_vm6, 1, %v17895_v3  ;;  %v1326_v50 = vld [vmem:[#allocation3 + $0x69] sm:$0xff]  ;;  %v11710_v56 = vld [vmem:[%s12065_s4 + $0x1e0] sm:$0xff]   ;;  %vm2939_vm6 = vcmp.ne.f32.partialorder %v9615_v14, 0.0 }
 0x223   : > { %9496 = vmatprep.mubr.msk.bf16.mxu1 %vm9494_vm10, %v9495_v45  ;;  %vm9503_vm10 = vmpackc.low %vm1269_vm7, %vm1268_vm8  ;;  %v11809_v46 = vld [vmem:[#allocation3 + $0x50] sm:$0xff]  ;;  %10628 = vmatprep.subr.bf16.mxu1 %v11710_v56  ;;  %vm1473_vm7 = vcmp.eq.s32.totalorder %v12806_v42, 1  ;;  %v2960_v42 = vsel %vm2939_vm6, 1, %v17895_v3  ;;  %vm1274_vm6 = vcmp.eq.s32.totalorder %v12703_v6, 1  ;;  %v9736_v56 = vld [vmem:[%s17989_s29 + $0x540] sm:$0xff] }
 0x224   : > { %vm9506_vm14 = vmpackc.low %vm1472_vm9, %vm1471_vm13  ;;  %10629 = vmatpush3.bf16.msra.mxu1 %v11711_v61  ;;  %vm2942_vm9 = vcmp.ne.f32.partialorder %v9618_v22, 0.0  ;;  %v9636_v14 = vld [vmem:[%s17989_s29 + $0x4b0] sm:$0xff]  ;;  %v9635_v6 = vld [vmem:[%s17989_s29 + $0x4a8] sm:$0xff] }
 0x225   : > { %v12817_v55 = vpop.permute.xlu1 %1441  ;;  %v12819_v41 = vpop.permute.xlu0 %1438  ;;  %10630 = vmatprep.subr.bf16.mxu1 %v11712_v11  ;;  %v2963_v32 = vsel %vm2942_vm9, 1, %v17895_v3 }
 0x226   : > { %2548 = vperm.xlu1 %11655, %v2500_v10   ;;  %2545 = vperm.xlu0 %11654, %v2499_v16   ;;  %v9510_v10 = vpack.c.bf16 %v11810_v13, %v11809_v46  ;;  %v9616_v16 = vld [vmem:[%s17989_s29 + $0x410] sm:$0xff]  ;;  %vm1474_vm3 = vcmp.eq.s32.totalorder %v12819_v41, 1  ;;  %v11720_v46 = vld [vmem:[%s12065_s4 + $0x180] sm:$0xff]  }
 0x227   : > { %vm2940_vm5 = vcmp.ne.f32.partialorder %v9616_v16, 0.0  ;;  %vm9512_vm8 = vmpackc.low %vm1474_vm3, %vm1473_vm7  ;;  %vm3138_vm3 = vcmp.ne.f32.partialorder %v9634_v40, 0.0  ;;  %v9525_v16 = vpack.c.bf16 %v1330_v24, %v1329_v60  ;;  %v9740_v40 = vld [vmem:[%s17989_s29 + $0x560] sm:$0xff]  ;;  %v1747_v24 = vld [vmem:[#allocation3 + $0x7] sm:$0xff] }
 0x228   : > { %10631 = vmatpush3.bf16.msra.mxu1 %v11713_v9  ;;  %v3159_v13 = vsel %vm3138_vm3, 1, %v17895_v3 }
 0x229   : > { %v12838_v26 = vpop.permute.xlu1 %1447  ;;  %v12840_v19 = vpop.permute.xlu0 %1444  ;;  %9499 = vmatmul.mubr.msk.bf16.gmra.mxu1 %vm9497_vm0, %v9498_v28  ;;  %vm2937_vm0 = vcmp.ne.f32.partialorder %v9613_v17, 0.0  ;;  %v9513_v28 = vpack.c.bf16 %v1326_v50, %v1325_v8  ;;  %10632 = vmatprep.subr.bf16.mxu1 %v11714_v37  ;;  %v11719_v17 = vld [vmem:[%s12065_s4 + $0x1c0] sm:$0xff]   ;;  %v9737_v50 = vld [vmem:[%s17989_s29 + $0x548] sm:$0xff] }
 0x22a   : > { %2554 = vperm.xlu1 %11655, %v2502_v53   ;;  %2551 = vperm.xlu0 %11654, %v2501_v62   ;;  %v2958_v18 = vsel %vm2937_vm0, 1, %v17895_v3  ;;  %vm1476_vm13 = vcmp.eq.s32.totalorder %v12840_v19, 1  ;;  %vm2943_vm0 = vcmp.ne.f32.partialorder %v9619_v34, 0.0  ;;  %vm3608_vm9 = vcmp.ne.f32.partialorder %v9737_v50, 0.0  ;;  %v9638_v37 = vld [vmem:[%s17989_s29 + $0x4c0] sm:$0xff] }
 0x22b   : > { %9502 = vmatprep.mubr.msk.bf16.mxu1 %vm9500_vm4, %v9501_v48  ;;  %vm9509_vm4 = vmpackc.low %vm1271_vm1, %vm1270_vm2  ;;  %v2961_v48 = vsel %vm2940_vm5, 1, %v17895_v3  ;;  %vm1475_vm1 = vcmp.eq.s32.totalorder %v12817_v55, 1  ;;  %v2964_v55 = vsel %vm2943_vm0, 1, %v17895_v3  ;;  %vm1275_vm5 = vcmp.eq.s32.totalorder %v12701_v39, 1 }
 0x22c   : > { %10633 = vmatpush3.bf16.msra.mxu1 %v11716_v35  ;;  %vm9518_vm2 = vmpackc.low %vm1476_vm13, %vm1475_vm1  ;;  %v3629_v39 = vsel %vm3608_vm9, 1, %v17895_v3  ;;  %vm3140_vm13 = vcmp.ne.f32.partialorder %v9636_v14, 0.0  ;;  %vm1276_vm0 = vcmp.eq.s32.totalorder %v12718_v44, 1  ;;  %vm1279_vm9 = vcmp.eq.s32.totalorder %v12725_v54, 1  ;;  %v11817_v35 = vld [vmem:[#allocation3 + $0x90] sm:$0xff] }
 0x22d   : > { %v12855_v38 = vpop.permute.xlu1 %1453  ;;  %v12857_v63 = vpop.permute.xlu0 %1450  ;;  %10634 = vmatprep.subr.bf16.mxu1 %v11717_v47  ;;  %v3161_v44 = vsel %vm3140_vm13, 1, %v17895_v3  ;;  %v1749_v14 = vld [vmem:[#allocation3 + $0x17] sm:$0xff] }
 0x22e   : > { %2560 = vperm.xlu1 %11655, %v2504_v58   ;;  %2557 = vperm.xlu0 %11654, %v2503_v30   ;;  %v11811_v58 = vld [vmem:[#allocation3 + $0x60] sm:$0xff]  ;;  %v11812_v30 = vld [vmem:[#allocation3 + $0x68] sm:$0xff]  ;;  %vm1478_vm7 = vcmp.eq.s32.totalorder %v12857_v63, 1 }
 0x22f   : > { %v9516_v31 = vpack.c.bf16 %v11812_v30, %v11811_v58  ;;  %v11815_v63 = vld [vmem:[#allocation3 + $0x80] sm:$0xff]  ;;  %v9637_v30 = vld [vmem:[%s17989_s29 + $0x4b8] sm:$0xff] }
 0x230   : > { %10635 = vmatpush3.bf16.msra.mxu1 %v11718_v29  ;;  %v9640_v29 = vld [vmem:[%s17989_s29 + $0x4d0] sm:$0xff] }
 0x231   : > { %v12877_v2 = vpop.permute.xlu1 %1459  ;;  %v12879_v5 = vpop.permute.xlu0 %1456  ;;  %9505 = vmatmul.mubr.msk.bf16.gmra.mxu1 %vm9503_vm10, %v9504_v23  ;;  %vm2941_vm10 = vcmp.ne.f32.partialorder %v9617_v25, 0.0  ;;  %v9519_v23 = vpack.c.bf16 %v1328_v0, %v1327_v15  ;;  %10636 = vmatprep.subr.bf16.mxu1 %v11719_v17  ;;  %v11816_v25 = vld [vmem:[#allocation3 + $0x88] sm:$0xff] }
 0x232   : > { %2566 = vperm.xlu1 %11655, %v2506_v51   ;;  %2563 = vperm.xlu0 %11654, %v2505_v52   ;;  %v2962_v4 = vsel %vm2941_vm10, 1, %v17895_v3  ;;  %vm3607_vm10 = vcmp.ne.f32.partialorder %v9736_v56, 0.0  ;;  %v9528_v9 = vpack.c.bf16 %v11816_v25, %v11815_v63  ;;  %vm1480_vm1 = vcmp.eq.s32.totalorder %v12879_v5, 1  ;;  %v1748_v17 = vld [vmem:[#allocation3 + $0xf] sm:$0xff] }
 0x233   : > { %9508 = vmatprep.mubr.msk.bf16.mxu1 %vm9506_vm14, %v9507_v59  ;;  %vm9515_vm14 = vmpackc.low %vm1273_vm11, %vm1272_vm12  ;;  %v2965_v59 = vsel %vm2944_vm15, 1, %v17895_v3  ;;  %vm1477_vm11 = vcmp.eq.s32.totalorder %v12838_v26, 1  ;;  %v1331_v26 = vld [vmem:[#allocation3 + $0x91] sm:$0xff]  ;;  %vm1277_vm15 = vcmp.eq.s32.totalorder %v12716_v43, 1 }
 0x234   : > { %10637 = vmatpush3.bf16.msra.mxu1 %v11720_v46  ;;  %vm9524_vm12 = vmpackc.low %vm1478_vm7, %vm1477_vm11  ;;  %vm3142_vm7 = vcmp.ne.f32.partialorder %v9638_v37, 0.0  ;;  %vm1481_vm11 = vcmp.eq.s32.totalorder %v12877_v2, 1  ;;  %v9639_v2 = vld [vmem:[%s17989_s29 + $0x4c8] sm:$0xff]  ;;  %v9743_v56 = vld [vmem:[%s17989_s29 + $0x578] sm:$0xff] }
 0x235   : > { %v12892_v45 = vpop.permute.xlu1 %1635  ;;  %v12894_v36 = vpop.permute.xlu0 %1632  ;;  %v9742_v46 = vld [vmem:[%s17989_s29 + $0x570] sm:$0xff] }
 0x236   : > { %2979 = vperm.xlu1 %11655, %v2957_v7   ;;  %2569 = vperm.xlu0 %11654, %v2507_v20   ;;  %v11813_v7 = vld [vmem:[#allocation3 + $0x70] sm:$0xff]  ;;  %v11814_v20 = vld [vmem:[#allocation3 + $0x78] sm:$0xff] }
 0x237   : > { %v9522_v8 = vpack.c.bf16 %v11814_v20, %v11813_v7 }
 0x239   : > { %v12917_v53 = vpop.permute.xlu1 %1641  ;;  %v12919_v62 = vpop.permute.xlu0 %1638  ;;  %9511 = vmatmul.mubr.msk.bf16.gmra.mxu1 %vm9509_vm4, %v9510_v10  ;;  %vm3137_vm4 = vcmp.ne.f32.partialorder %v9633_v21, 0.0 }
 0x23a   : > { %2985 = vperm.xlu1 %11655, %v2959_v49   ;;  %2982 = vperm.xlu0 %11654, %v2958_v18   ;;  %v3158_v10 = vsel %vm3137_vm4, 1, %v17895_v3  ;;  %v3628_v18 = vsel %vm3607_vm10, 1, %v17895_v3  ;;  %vm1278_vm10 = vcmp.eq.s32.totalorder %v12727_v57, 1  ;;  %v3163_v57 = vsel %vm3142_vm7, 1, %v17895_v3 }
 0x23b   : > { %9514 = vmatprep.mubr.msk.bf16.mxu1 %vm9512_vm8, %v9513_v28  ;;  %vm9521_vm8 = vmpackc.low %vm1275_vm5, %vm1274_vm6  ;;  %v1332_v28 = vld [vmem:[#allocation3 + $0x99] sm:$0xff]  ;;  %vm1479_vm5 = vcmp.eq.s32.totalorder %v12855_v38, 1  ;;  %v1333_v38 = vld [vmem:[#allocation3 + $0xa1] sm:$0xff]  ;;  %vm1694_vm7 = vcmp.eq.s32.totalorder %v12894_v36, 1 }
 0x23c   : > { %v9531_v0 = vpack.c.bf16 %v1332_v28, %v1331_v26  ;;  %vm9530_vm6 = vmpackc.low %vm1480_vm1, %vm1479_vm5  ;;  %v9537_v21 = vpack.c.bf16 %v1333_v38, %v1333_v38  ;;  %vm3143_vm1 = vcmp.ne.f32.partialorder %v9639_v2, 0.0  ;;  %vm3613_vm5 = vcmp.ne.f32.partialorder %v9742_v46, 0.0  ;;  %v9642_v26 = vld [vmem:[%s17989_s29 + $0x4e0] sm:$0xff]  ;;  %v1752_v38 = vld [vmem:[#allocation3 + $0x2f] sm:$0xff] }
 0x23d   : > { %v12932_v41 = vpop.permute.xlu1 %1647  ;;  %v12934_v27 = vpop.permute.xlu0 %1644 }
 0x23e   : > { %2991 = vperm.xlu1 %11655, %v2961_v48   ;;  %2988 = vperm.xlu0 %11654, %v2960_v42   ;;  %v9739_v48 = vld [vmem:[%s17989_s29 + $0x558] sm:$0xff]  ;;  %v9738_v42 = vld [vmem:[%s17989_s29 + $0x550] sm:$0xff] }
 0x23f   : > { %vm3610_vm3 = vcmp.ne.f32.partialorder %v9739_v48, 0.0  ;;  %vm3609_vm4 = vcmp.ne.f32.partialorder %v9738_v42, 0.0  ;;  %v11690_v48 = vld [vmem:[%s12065_s4 + $0x170] sm:$0xff]  }
 0x240   : > { %v3631_v43 = vsel %vm3610_vm3, 1, %v17895_v3 }
 0x241   : > { %v12957_v51 = vpop.permute.xlu1 %1653  ;;  %v12959_v52 = vpop.permute.xlu0 %1650  ;;  %9517 = vmatmul.mubr.msk.bf16.gmra.mxu1 %vm9515_vm14, %v9516_v31  ;;  %vm3139_vm14 = vcmp.ne.f32.partialorder %v9635_v6, 0.0  ;;  %v3630_v31 = vsel %vm3609_vm4, 1, %v17895_v3  ;;  %v1750_v6 = vld [vmem:[#allocation3 + $0x1f] sm:$0xff]  ;;  %vm3614_vm4 = vcmp.ne.f32.partialorder %v9743_v56, 0.0 }
 0x242   : > { %2997 = vperm.xlu1 %11655, %v2963_v32   ;;  %2994 = vperm.xlu0 %11654, %v2962_v4   ;;  %v3160_v15 = vsel %vm3139_vm14, 1, %v17895_v3  ;;  %v11818_v32 = vld [vmem:[#allocation3 + $0x98] sm:$0xff]  ;;  %vm3611_vm14 = vcmp.ne.f32.partialorder %v9740_v40, 0.0  ;;  %v3635_v42 = vsel %vm3614_vm4, 1, %v17895_v3  ;;  %v9401_v36 = vpack.c.bf16 %v1750_v6, %v1749_v14  ;;  %v9643_v40 = vld [vmem:[%s17989_s29 + $0x4e8] sm:$0xff] }
 0x243   : > { %9520 = vmatprep.mubr.msk.bf16.mxu1 %vm9518_vm2, %v9519_v23  ;;  %vm9527_vm2 = vmpackc.low %vm1277_vm15, %vm1276_vm0  ;;  %v9534_v4 = vpack.c.bf16 %v11818_v32, %v11817_v35  ;;  %v9741_v23 = vld [vmem:[%s17989_s29 + $0x568] sm:$0xff]  ;;  %v3632_v60 = vsel %vm3611_vm14, 1, %v17895_v3  ;;  %vm3144_vm0 = vcmp.ne.f32.partialorder %v9640_v29, 0.0  ;;  %v11691_v35 = vld [vmem:[%s12065_s4 + $0x130] sm:$0xff]   ;;  %vm1696_vm4 = vcmp.eq.s32.totalorder %v12919_v62, 1 }
 0x244   : > { %vm3612_vm13 = vcmp.ne.f32.partialorder %v9741_v23, 0.0  ;;  %vm9536_vm15 = vmpackc.low %vm1481_vm11, %vm1481_vm11  ;;  %v11692_v32 = vld [vmem:[%s12065_s4 + $0x168] sm:$0xff]   ;;  %v11694_v56 = vld [vmem:[%s12065_s4 + $0x160] sm:$0xff]  }
 0x245   : > { %v12972_v19 = vpop.permute.xlu1 %1659  ;;  %v12974_v1 = vpop.permute.xlu0 %1656  ;;  %v3633_v54 = vsel %vm3612_vm13, 1, %v17895_v3  ;;  %v9623_v6 = vld [vmem:[%s17989_s29 + $0x448] sm:$0xff] }
 0x246   : > { %3003 = vperm.xlu1 %11655, %v2965_v59   ;;  %3000 = vperm.xlu0 %11654, %v2964_v55  }
 0x249   : > { %v12996_v49 = vpop.permute.xlu1 %1665  ;;  %v12998_v61 = vpop.permute.xlu0 %1662  ;;  %9523 = vmatmul.mubr.msk.bf16.gmra.mxu1 %vm9521_vm8, %v9522_v8  ;;  %vm3141_vm8 = vcmp.ne.f32.partialorder %v9637_v30, 0.0  ;;  %v11819_v8 = vld [vmem:[#allocation3 + $0xa0] sm:$0xff] }
 0x24a   : > { %3183 = vperm.xlu1 %11655, %v3159_v13   ;;  %3180 = vperm.xlu0 %11654, %v3158_v10   ;;  %v3162_v47 = vsel %vm3141_vm8, 1, %v17895_v3  ;;  %v9540_v50 = vpack.c.bf16 %v11819_v8, %v11819_v8  ;;  %v1546_v13 = vld [vmem:[#allocation3 + $0x2] sm:$0xff]  ;;  %v1547_v10 = vld [vmem:[#allocation3 + $0xa] sm:$0xff] }
 0x24b   : > { %9526 = vmatprep.mubr.msk.bf16.mxu1 %vm9524_vm12, %v9525_v16  ;;  %vm9533_vm12 = vmpackc.low %vm1279_vm9, %vm1278_vm10  ;;  %v3164_v16 = vsel %vm3143_vm1, 1, %v17895_v3  ;;  %v9398_v25 = vpack.c.bf16 %v1547_v10, %v1546_v13  ;;  %v1551_v8 = vld [vmem:[#allocation3 + $0x2a] sm:$0xff]  ;;  %v1754_v10 = vld [vmem:[#allocation3 + $0x3f] sm:$0xff] }
 0x24d   : > { %v13009_v22 = vpop.permute.xlu1 %1671  ;;  %v13011_v11 = vpop.permute.xlu0 %1668 }
 0x24e   : > { %3653 = vperm.xlu1 %11655, %v3629_v39   ;;  %3650 = vperm.xlu0 %11654, %v3628_v18   ;;  %v9395_v39 = vpack.c.bf16 %v1748_v17, %v1747_v24  ;;  %v11689_v18 = vld [vmem:[%s12065_s4 + $0x138] sm:$0xff]   ;;  %v11693_v24 = vld [vmem:[%s12065_s4 + $0x128] sm:$0xff]  }
 0x251   : > { %v13030_v58 = vpop.permute.xlu1 %1677  ;;  %v13032_v5 = vpop.permute.xlu0 %1674  ;;  %9529 = vmatmul.mubr.msk.bf16.gmra.mxu1 %vm9527_vm2, %v9528_v9  ;;  %vm1280_vm2 = vcmp.eq.s32.totalorder %v12743_v12, 1  ;;  %v3165_v12 = vsel %vm3144_vm0, 1, %v17895_v3  ;;  %v9641_v9 = vld [vmem:[%s17989_s29 + $0x4d8] sm:$0xff] }
 0x252   : > { %3189 = vperm.xlu1 %11655, %v3161_v44   ;;  %3186 = vperm.xlu0 %11654, %v3160_v15   ;;  %vm9539_vm3 = vmpackc.low %vm1280_vm2, %vm1280_vm2  ;;  %v1548_v44 = vld [vmem:[#allocation3 + $0x12] sm:$0xff]  ;;  %v1549_v15 = vld [vmem:[#allocation3 + $0x1a] sm:$0xff]  ;;  %vm3145_vm13 = vcmp.ne.f32.partialorder %v9641_v9, 0.0 }
 0x253   : > { %9532 = vmatprep.mubr.msk.bf16.mxu1 %vm9530_vm6, %v9531_v0  ;;  %vm1695_vm6 = vcmp.eq.s32.totalorder %v12892_v45, 1  ;;  %v3634_v45 = vsel %vm3613_vm5, 1, %v17895_v3  ;;  %v9744_v0 = vld [vmem:[%s17989_s29 + $0x580] sm:$0xff]  ;;  %v3166_v23 = vsel %vm3145_vm13, 1, %v17895_v3  ;;  %vm1699_vm13 = vcmp.eq.s32.totalorder %v12932_v41, 1  ;;  %v11697_v9 = vld [vmem:[%s12065_s4 + $0x118] sm:$0xff]  }
 0x254   : > { %vm9397_vm11 = vmpackc.low %vm1695_vm6, %vm1694_vm7  ;;  %vm3615_vm1 = vcmp.ne.f32.partialorder %v9744_v0, 0.0  ;;  %vm3147_vm6 = vcmp.ne.f32.partialorder %v9643_v40, 0.0  ;;  %v1553_v0 = vld [vmem:[#allocation3 + $0x3a] sm:$0xff] }
 0x255   : > { %v13041_v33 = vpop.permute.xlu1 %1683  ;;  %v13043_v34 = vpop.permute.xlu0 %1680  ;;  %v3636_v29 = vsel %vm3615_vm1, 1, %v17895_v3  ;;  %v3168_v13 = vsel %vm3147_vm6, 1, %v17895_v3 }
 0x256   : > { %3659 = vperm.xlu1 %11655, %v3631_v43   ;;  %3656 = vperm.xlu0 %11654, %v3630_v31   ;;  %v9621_v43 = vld [vmem:[%s17989_s29 + $0x438] sm:$0xff]  ;;  %v1751_v31 = vld [vmem:[#allocation3 + $0x27] sm:$0xff] }
 0x257   : > { %vm2945_vm2 = vcmp.ne.f32.partialorder %v9621_v43, 0.0  ;;  %v9407_v2 = vpack.c.bf16 %v1752_v38, %v1751_v31  ;;  %v11699_v31 = vld [vmem:[%s12065_s4 + $0x110] sm:$0xff]  }
 0x258   : > { %v2966_v17 = vsel %vm2945_vm2, 1, %v17895_v3  ;;  %v9624_v38 = vld [vmem:[%s17989_s29 + $0x450] sm:$0xff] }
 0x259   : > { %v13059_v59 = vpop.permute.xlu1 %1689  ;;  %v13061_v55 = vpop.permute.xlu0 %1686  ;;  %9535 = vmatmul.mubr.msk.bf16.gmra.mxu1 %vm9533_vm12, %v9534_v4  ;;  %vm3146_vm12 = vcmp.ne.f32.partialorder %v9642_v26, 0.0 }
 0x25a   : > { %3195 = vperm.xlu1 %11655, %v3163_v57   ;;  %3192 = vperm.xlu0 %11654, %v3162_v47   ;;  %v3167_v4 = vsel %vm3146_vm12, 1, %v17895_v3 }
 0x25b   : > { %9538 = vmatprep.mubr.msk.bf16.mxu1 %vm9536_vm15, %v9537_v21  ;;  %v9404_v21 = vpack.c.bf16 %v1549_v15, %v1548_v44  ;;  %v9747_v44 = vld [vmem:[%s17989_s29 + $0x598] sm:$0xff] }
 0x25c   : > { %vm3618_vm6 = vcmp.ne.f32.partialorder %v9747_v44, 0.0 }
 0x25d   : > { %v1834_v7 = vpop.permute.xlu1 %1833  ;;  %v13069_v20 = vpop.permute.xlu0 %1692 }
 0x25e   : > { %3665 = vperm.xlu1 %11655, %v3633_v54   ;;  %3662 = vperm.xlu0 %11654, %v3632_v60   ;;  %vm1895_vm8 = vcmp.eq.s32.totalorder %v1834_v7, 1  ;;  %v9745_v54 = vld [vmem:[%s17989_s29 + $0x588] sm:$0xff]  ;;  %v9622_v60 = vld [vmem:[%s17989_s29 + $0x440] sm:$0xff] }
 0x25f   : > { %v1550_v7 = vld [vmem:[#allocation3 + $0x22] sm:$0xff] }
 0x261   : > { %v1840_v28 = vpop.permute.xlu1 %1839  ;;  %v1837_v63 = vpop.permute.xlu0 %1836  ;;  %9541 = vmatmul.mubr.msk.bf16.gmra.mxu1 %vm9539_vm3, %v9540_v50  ;;  %vm1697_vm3 = vcmp.eq.s32.totalorder %v12917_v53, 1  ;;  %v9644_v50 = vld [vmem:[%s17989_s29 + $0x4f0] sm:$0xff]  ;;  %v1753_v53 = vld [vmem:[#allocation3 + $0x37] sm:$0xff] }
 0x262   : > { %3201 = vperm.xlu1 %11655, %v3165_v12   ;;  %3198 = vperm.xlu0 %11654, %v3164_v16   ;;  %vm1896_vm9 = vcmp.eq.s32.totalorder %v1837_v63, 1  ;;  %vm1897_vm14 = vcmp.eq.s32.totalorder %v1840_v28, 1  ;;  %vm9403_vm7 = vmpackc.low %vm1697_vm3, %vm1696_vm4  ;;  %v9746_v12 = vld [vmem:[%s17989_s29 + $0x590] sm:$0xff]  ;;  %v11695_v16 = vld [vmem:[%s12065_s4 + $0x120] sm:$0xff]   ;;  %vm3148_vm12 = vcmp.ne.f32.partialorder %v9644_v50, 0.0  ;;  %v9410_v28 = vpack.c.bf16 %v1551_v8, %v1550_v7 }
 0x263   : > { %vm9394_vm10 = vmpackc.low %vm1896_vm9, %vm1895_vm8  ;;  %v3169_v41 = vsel %vm3148_vm12, 1, %v17895_v3  ;;  %vm2947_vm3 = vcmp.ne.f32.partialorder %v9623_v6, 0.0  ;;  %vm2948_vm12 = vcmp.ne.f32.partialorder %v9624_v38, 0.0  ;;  %v1757_v7 = vld [vmem:[#allocation3 + $0x57] sm:$0xff]  ;;  %v1758_v8 = vld [vmem:[#allocation3 + $0x5f] sm:$0xff] }
 0x264   : > { %9396 = vmatprep.mubr.msk.bf16.mxu0 %vm9394_vm10, %v9395_v39  ;;  %vm3616_vm10 = vcmp.ne.f32.partialorder %v9745_v54, 0.0  ;;  %v11696_v39 = vld [vmem:[%s12065_s4 + $0x158] sm:$0xff]   ;;  %v2968_v43 = vsel %vm2947_vm3, 1, %v17895_v3  ;;  %v2969_v50 = vsel %vm2948_vm12, 1, %v17895_v3  ;;  %v9626_v6 = vld [vmem:[%s17989_s29 + $0x460] sm:$0xff]  ;;  %vm1704_vm12 = vcmp.eq.s32.totalorder %v12998_v61, 1 }
 0x265   : > { %v1846_v37 = vpop.permute.xlu1 %1845  ;;  %v1843_v30 = vpop.permute.xlu0 %1842  ;;  %9399 = vmatmul.mubr.msk.bf16.vlgmr.msra.gmra.mxu0 %vm9397_vm11, %v9398_v25  ;;  %vm2946_vm11 = vcmp.ne.f32.partialorder %v9622_v60, 0.0  ;;  %v3637_v14 = vsel %vm3616_vm10, 1, %v17895_v3  ;;  %v9413_v25 = vpack.c.bf16 %v1754_v10, %v1753_v53  ;;  %v9647_v10 = vld [vmem:[%s17989_s29 + $0x508] sm:$0xff]  ;;  %v9649_v61 = vld [vmem:[%s17989_s29 + $0x518] sm:$0xff] }
 0x266   : > { %vm1898_vm15 = vcmp.eq.s32.totalorder %v1843_v30, 1  ;;  %10541 = vmatpush3.bf16.msra.mxu0 %v11689_v18  ;;  %3671 = vperm.xlu1 %11655, %v3635_v42   ;;  %vm1899_vm8 = vcmp.eq.s32.totalorder %v1846_v37, 1  ;;  %v2967_v63 = vsel %vm2946_vm11, 1, %v17895_v3  ;;  %v11698_v42 = vld [vmem:[%s12065_s4 + $0x150] sm:$0xff]  }
 0x267   : > { %vm9400_vm0 = vmpackc.low %vm1898_vm15, %vm1897_vm14  ;;  %3668 = vperm.xlu0 %11654, %v3634_v45   ;;  %10542 = vmatprep.subr.bf16.mxu0 %v11690_v48  ;;  %vm1698_vm14 = vcmp.eq.s32.totalorder %v12934_v27, 1  ;;  %v1552_v27 = vld [vmem:[#allocation3 + $0x32] sm:$0xff]  ;;  %v1755_v37 = vld [vmem:[#allocation3 + $0x47] sm:$0xff] }
 0x268   : > { %9402 = vmatprep.mubr.msk.bf16.mxu0 %vm9400_vm0, %v9401_v36  ;;  %vm3617_vm0 = vcmp.ne.f32.partialorder %v9746_v12, 0.0  ;;  %vm9409_vm1 = vmpackc.low %vm1699_vm13, %vm1698_vm14  ;;  %v9645_v48 = vld [vmem:[%s17989_s29 + $0x4f8] sm:$0xff]  ;;  %v9425_v12 = vpack.c.bf16 %v1758_v8, %v1757_v7  ;;  %v1561_v8 = vld [vmem:[#allocation3 + $0x7a] sm:$0xff] }
 0x269   : > { %v1852_v57 = vpop.permute.xlu1 %1851  ;;  %v1849_v47 = vpop.permute.xlu0 %1848  ;;  %v3638_v15 = vsel %vm3617_vm0, 1, %v17895_v3  ;;  %v1756_v30 = vld [vmem:[#allocation3 + $0x4f] sm:$0xff] }
 0x26a   : > { %vm1900_vm5 = vcmp.eq.s32.totalorder %v1849_v47, 1  ;;  %3207 = vperm.xlu1 %11655, %v3167_v4   ;;  %10543 = vmatpush3.bf16.msra.mxu0 %v11691_v35  ;;  %vm1901_vm2 = vcmp.eq.s32.totalorder %v1852_v57, 1  ;;  %v11700_v35 = vld [vmem:[%s12065_s4 + $0x148] sm:$0xff]   ;;  %v9419_v40 = vpack.c.bf16 %v1756_v30, %v1755_v37  ;;  %v9646_v57 = vld [vmem:[%s17989_s29 + $0x500] sm:$0xff]  ;;  %v9751_v30 = vld [vmem:[%s17989_s29 + $0x5b8] sm:$0xff] }
 0x26b   : > { %3204 = vperm.xlu0 %11654, %v3166_v23   ;;  %10544 = vmatprep.subr.bf16.mxu0 %v11692_v32  ;;  %vm9406_vm9 = vmpackc.low %vm1900_vm5, %vm1899_vm8  ;;  %vm3149_vm5 = vcmp.ne.f32.partialorder %v9645_v48, 0.0  ;;  %vm1700_vm8 = vcmp.eq.s32.totalorder %v12959_v52, 1  ;;  %v9416_v23 = vpack.c.bf16 %v1553_v0, %v1552_v27  ;;  %v3639_v52 = vsel %vm3618_vm6, 1, %v17895_v3  ;;  %v9750_v48 = vld [vmem:[%s17989_s29 + $0x5b0] sm:$0xff]  ;;  %v9627_v0 = vld [vmem:[%s17989_s29 + $0x468] sm:$0xff] }
 0x26c   : > { %v3170_v47 = vsel %vm3149_vm5, 1, %v17895_v3  ;;  %vm3150_vm14 = vcmp.ne.f32.partialorder %v9646_v57, 0.0  ;;  %vm3151_vm6 = vcmp.ne.f32.partialorder %v9647_v10, 0.0  ;;  %v1559_v38 = vld [vmem:[#allocation3 + $0x6a] sm:$0xff]  ;;  %v1560_v7 = vld [vmem:[#allocation3 + $0x72] sm:$0xff] }
 0x26d   : > { %v13129_v46 = vpop.permute.xlu1 %1857  ;;  %v1855_v62 = vpop.permute.xlu0 %1854  ;;  %9405 = vmatmul.mubr.msk.bf16.gmra.mxu0 %vm9403_vm7, %v9404_v21  ;;  %vm1701_vm7 = vcmp.eq.s32.totalorder %v12957_v51, 1  ;;  %v11701_v51 = vld [vmem:[%s12065_s4 + $0x108] sm:$0xff]   ;;  %v9628_v57 = vld [vmem:[%s17989_s29 + $0x470] sm:$0xff] }
 0x26e   : > { %3674 = vperm.xlu1 %11655, %v3636_v29   ;;  %9408 = vmatprep.mubr.msk.bf16.mxu0 %vm9406_vm9, %v9407_v2  ;;  %vm1902_vm15 = vcmp.eq.s32.totalorder %v1855_v62, 1  ;;  %vm9415_vm10 = vmpackc.low %vm1701_vm7, %vm1700_vm8  ;;  %vm1903_vm11 = vcmp.eq.s32.totalorder %v13129_v46, 1  ;;  %v1554_v21 = vld [vmem:[#allocation3 + $0x42] sm:$0xff]  ;;  %v9748_v29 = vld [vmem:[%s17989_s29 + $0x5a0] sm:$0xff]  ;;  %v3171_v46 = vsel %vm3150_vm14, 1, %v17895_v3 }
 0x26f   : > { %3006 = vperm.xlu0 %11654, %v2966_v17   ;;  %10545 = vmatpush3.bf16.msra.mxu0 %v11693_v24  ;;  %vm9412_vm4 = vmpackc.low %vm1902_vm15, %vm1901_vm2  ;;  %v11706_v2 = vld [vmem:[%s12065_s4 + $0x140] sm:$0xff]   ;;  %v9625_v24 = vld [vmem:[%s17989_s29 + $0x458] sm:$0xff]  ;;  %vm3619_vm15 = vcmp.ne.f32.partialorder %v9748_v29, 0.0  ;;  %vm1702_vm2 = vcmp.eq.s32.totalorder %v12974_v1, 1 }
 0x270   : > { %10546 = vmatprep.subr.bf16.mxu0 %v11694_v56  ;;  %v1555_v17 = vld [vmem:[#allocation3 + $0x4a] sm:$0xff]  ;;  %v11708_v56 = vld [vmem:[%s12065_s4 + $0x100] sm:$0xff]   ;;  %vm2949_vm0 = vcmp.ne.f32.partialorder %v9625_v24, 0.0 }
 0x271   : > { %v13144_v18 = vpop.permute.xlu1 %1863  ;;  %v1861_v26 = vpop.permute.xlu0 %1860  ;;  %v2970_v1 = vsel %vm2949_vm0, 1, %v17895_v3  ;;  %vm3621_vm0 = vcmp.ne.f32.partialorder %v9750_v48, 0.0  ;;  %v9650_v29 = vld [vmem:[%s17989_s29 + $0x520] sm:$0xff]  ;;  %v9754_v48 = vld [vmem:[%s17989_s29 + $0x5d0] sm:$0xff] }
 0x272   : > { %3210 = vperm.xlu1 %11655, %v3168_v13   ;;  %vm1904_vm9 = vcmp.eq.s32.totalorder %v1861_v26, 1  ;;  %v9422_v13 = vpack.c.bf16 %v1555_v17, %v1554_v21  ;;  %vm1905_vm5 = vcmp.eq.s32.totalorder %v13144_v18, 1  ;;  %v17885_v26 = vmov 0.0  }
 0x273   : > { %3677 = vperm.xlu0 %11654, %v3637_v14   ;;  %10547 = vmatpush3.bf16.msra.mxu0 %v11695_v16  ;;  %vm9418_vm13 = vmpackc.low %vm1904_vm9, %vm1903_vm11  ;;  %v9749_v16 = vld [vmem:[%s17989_s29 + $0x5a8] sm:$0xff]  ;;  %v1556_v14 = vld [vmem:[#allocation3 + $0x52] sm:$0xff]  ;;  %vm2950_vm9 = vcmp.ne.f32.partialorder %v9626_v6, 0.0  ;;  %vm1705_vm11 = vcmp.eq.s32.totalorder %v12996_v49, 1 }
 0x274   : > { %10548 = vmatprep.subr.bf16.mxu0 %v11696_v39  ;;  %v9648_v39 = vld [vmem:[%s17989_s29 + $0x510] sm:$0xff]  ;;  %vm3620_vm8 = vcmp.ne.f32.partialorder %v9749_v16, 0.0  ;;  %v2971_v37 = vsel %vm2950_vm9, 1, %v17895_v3  ;;  %vm9427_vm14 = vmpackc.low %vm1705_vm11, %vm1704_vm12  ;;  %vm3154_vm12 = vcmp.ne.f32.partialorder %v9650_v29, 0.0  ;;  %v9440_v16 = vpack.c.bf16 %v1561_v8, %v1560_v7  ;;  %v4155_v7 = vld [vmem:[%s17989_s29] sm:$0xff] }
 0x275   : > { %v13155_v45 = vpop.permute.xlu1 %1869  ;;  %v13157_v36 = vpop.permute.xlu0 %1866  ;;  %9411 = vmatmul.mubr.msk.bf16.gmra.mxu0 %vm9409_vm1, %v9410_v28  ;;  %vm1703_vm1 = vcmp.eq.s32.totalorder %v12972_v19, 1  ;;  %v3640_v19 = vsel %vm3619_vm15, 1, %v17895_v3  ;;  %v3641_v27 = vsel %vm3620_vm8, 1, %v17895_v3  ;;  %v9652_v6 = vld [vmem:[%s17989_s29 + $0x530] sm:$0xff] }
 0x276   : > { %3009 = vperm.xlu1 %11655, %v2967_v63   ;;  %9414 = vmatprep.mubr.msk.bf16.mxu0 %vm9412_vm4, %v9413_v25  ;;  %vm1906_vm3 = vcmp.eq.s32.totalorder %v13157_v36, 1  ;;  %vm9421_vm4 = vmpackc.low %vm1703_vm1, %vm1702_vm2  ;;  %v1557_v63 = vld [vmem:[#allocation3 + $0x5a] sm:$0xff]  ;;  %v1759_v25 = vld [vmem:[#allocation3 + $0x67] sm:$0xff]  ;;  %vm1907_vm15 = vcmp.eq.s32.totalorder %v13155_v45, 1  ;;  %vm2951_vm2 = vcmp.ne.f32.partialorder %v9627_v0, 0.0 }
 0x277   : > { %3213 = vperm.xlu0 %11654, %v3169_v41   ;;  %10549 = vmatpush3.bf16.msra.mxu0 %v11697_v9  ;;  %vm9424_vm7 = vmpackc.low %vm1906_vm3, %vm1905_vm5  ;;  %v3172_v9 = vsel %vm3151_vm6, 1, %v17895_v3  ;;  %v1760_v41 = vld [vmem:[#allocation3 + $0x6f] sm:$0xff]  ;;  %v9428_v44 = vpack.c.bf16 %v1557_v63, %v1556_v14  ;;  %v1558_v45 = vld [vmem:[#allocation3 + $0x62] sm:$0xff]  ;;  %vm3153_vm3 = vcmp.ne.f32.partialorder %v9649_v61, 0.0  ;;  %vm1707_vm5 = vcmp.eq.s32.totalorder %v13009_v22, 1 }
 0x278   : > { %10550 = vmatprep.subr.bf16.mxu0 %v11698_v42  ;;  %vm1706_vm6 = vcmp.eq.s32.totalorder %v13011_v11, 1  ;;  %v9752_v22 = vld [vmem:[%s17989_s29 + $0x5c0] sm:$0xff] }
 0x279   : > { %v13173_v32 = vpop.permute.xlu1 %1875  ;;  %v13175_v4 = vpop.permute.xlu0 %1872  ;;  %vm9433_vm8 = vmpackc.low %vm1707_vm5, %vm1706_vm6 }
 0x27a   : > { %3680 = vperm.xlu1 %11655, %v3638_v15   ;;  %v9431_v15 = vpack.c.bf16 %v1760_v41, %v1759_v25  ;;  %vm1909_vm9 = vcmp.eq.s32.totalorder %v13173_v32, 1  ;;  %v1763_v32 = vld [vmem:[#allocation3 + $0x87] sm:$0xff]  ;;  %v1766_v41 = vld [vmem:[#allocation3 + $0x9f] sm:$0xff] }
 0x27b   : > { %3012 = vperm.xlu0 %11654, %v2968_v43   ;;  %10551 = vmatpush3.bf16.msra.mxu0 %v11699_v31  ;;  %v1563_v25 = vld [vmem:[#allocation3 + $0x8a] sm:$0xff] }
 0x27c   : > { %10552 = vmatprep.subr.bf16.mxu0 %v11700_v35  ;;  %v1761_v35 = vld [vmem:[#allocation3 + $0x77] sm:$0xff] }
 0x27d   : > { %v13190_v54 = vpop.permute.xlu1 %1881  ;;  %v13192_v60 = vpop.permute.xlu0 %1878  ;;  %9417 = vmatmul.mubr.msk.bf16.gmra.mxu0 %vm9415_vm10, %v9416_v23  ;;  %vm3152_vm10 = vcmp.ne.f32.partialorder %v9648_v39, 0.0  ;;  %v1762_v23 = vld [vmem:[#allocation3 + $0x7f] sm:$0xff] }
 0x27e   : > { %3216 = vperm.xlu1 %11655, %v3170_v47   ;;  %9420 = vmatprep.mubr.msk.bf16.mxu0 %vm9418_vm13, %v9419_v40  ;;  %vm1908_vm13 = vcmp.eq.s32.totalorder %v13175_v4, 1  ;;  %v3173_v49 = vsel %vm3152_vm10, 1, %v17895_v3  ;;  %v3642_v4 = vsel %vm3621_vm0, 1, %v17895_v3  ;;  %v2972_v40 = vsel %vm2951_vm2, 1, %v17895_v3 }
 0x27f   : > { %3683 = vperm.xlu0 %11654, %v3639_v52   ;;  %10553 = vmatpush3.bf16.msra.mxu0 %v11701_v51  ;;  %vm9430_vm1 = vmpackc.low %vm1908_vm13, %vm1907_vm15  ;;  %v9434_v52 = vpack.c.bf16 %v1559_v38, %v1558_v45  ;;  %v9437_v21 = vpack.c.bf16 %v1762_v23, %v1761_v35  ;;  %vm2952_vm10 = vcmp.ne.f32.partialorder %v9628_v57, 0.0  ;;  %vm3623_vm13 = vcmp.ne.f32.partialorder %v9752_v22, 0.0  ;;  %v1564_v45 = vld [vmem:[#allocation3 + $0x92] sm:$0xff]  ;;  %v1565_v38 = vld [vmem:[#allocation3 + $0x9a] sm:$0xff] }
 0x280   : > { %10554 = vmatprep.subr.bf16.mxu0 %v11706_v2  ;;  %v3174_v2 = vsel %vm3153_vm3, 1, %v17895_v3  ;;  %vm1709_vm15 = vcmp.eq.s32.totalorder %v13030_v58, 1  ;;  %vm1708_vm0 = vcmp.eq.s32.totalorder %v13032_v5, 1  ;;  %v3644_v14 = vsel %vm3623_vm13, 1, %v17895_v3  ;;  %v9630_v58 = vld [vmem:[%s17989_s29 + $0x480] sm:$0xff] }
 0x281   : > { %v13203_v62 = vpop.permute.xlu1 %1887  ;;  %v13205_v53 = vpop.permute.xlu0 %1884  ;;  %vm9439_vm2 = vmpackc.low %vm1709_vm15, %vm1708_vm0  ;;  %vm1911_vm3 = vcmp.eq.s32.totalorder %v13190_v54, 1  ;;  %v1765_v54 = vld [vmem:[#allocation3 + $0x97] sm:$0xff] }
 0x282   : > { %3015 = vperm.xlu1 %11655, %v2969_v50   ;;  %v2973_v50 = vsel %vm2952_vm10, 1, %v17895_v3  ;;  %vm1710_vm10 = vcmp.eq.s32.totalorder %v13043_v34, 1  ;;  %vm1913_vm13 = vcmp.eq.s32.totalorder %v13203_v62, 1  ;;  %v9653_v34 = vld [vmem:[%s17989_s29 + $0x538] sm:$0xff] }
 0x283   : > { %3219 = vperm.xlu0 %11654, %v3171_v46   ;;  %10555 = vmatpush3.bf16.msra.mxu0 %v11708_v56  ;;  %v1764_v56 = vld [vmem:[#allocation3 + $0x8f] sm:$0xff]  ;;  %v3175_v46 = vsel %vm3154_vm12, 1, %v17895_v3 }
 0x284   : > { %11234 = vmatprep.subr.bf16.mxu0 %v17885_v26  ;;  %v9755_v62 = vld [vmem:[%s17989_s29 + $0x5d8] sm:$0xff] }
 0x285   : > { %v13227_v18 = vpop.permute.xlu1 %1893  ;;  %v13229_v28 = vpop.permute.xlu0 %1890  ;;  %9423 = vmatmul.mubr.msk.bf16.gmra.mxu0 %vm9421_vm4, %v9422_v13  ;;  %vm3622_vm4 = vcmp.ne.f32.partialorder %v9751_v30, 0.0  ;;  %v9651_v13 = vld [vmem:[%s17989_s29 + $0x528] sm:$0xff] }
 0x286   : > { %3686 = vperm.xlu1 %11655, %v3640_v19   ;;  %9426 = vmatprep.mubr.msk.bf16.mxu0 %vm9424_vm7, %v9425_v12  ;;  %vm1910_vm7 = vcmp.eq.s32.totalorder %v13192_v60, 1  ;;  %v3643_v11 = vsel %vm3622_vm4, 1, %v17895_v3  ;;  %v9629_v60 = vld [vmem:[%s17989_s29 + $0x478] sm:$0xff]  ;;  %v9443_v19 = vpack.c.bf16 %v1764_v56, %v1763_v32  ;;  %vm3155_vm4 = vcmp.ne.f32.partialorder %v9651_v13, 0.0 }
 0x287   : > { %3018 = vperm.xlu0 %11654, %v2970_v1   ;;  %vm9436_vm11 = vmpackc.low %vm1910_vm7, %vm1909_vm9  ;;  %v9753_v1 = vld [vmem:[%s17989_s29 + $0x5c8] sm:$0xff]  ;;  %vm2954_vm7 = vcmp.ne.f32.partialorder %v9630_v58, 0.0  ;;  %vm1711_vm9 = vcmp.eq.s32.totalorder %v13041_v33, 1  ;;  %v2423_v32 = vld [vmem:[#allocation3 + $0x9] sm:$0xff] }
 0x288   : > { %vm3624_vm6 = vcmp.ne.f32.partialorder %v9753_v1, 0.0  ;;  %v2975_v61 = vsel %vm2954_vm7, 1, %v17895_v3  ;;  %vm9445_vm12 = vmpackc.low %vm1711_vm9, %vm1710_vm10 }
 0x289   : > { %v13239_v42 = vpop.permute.xlu1 %2512  ;;  %v13241_v36 = vpop.permute.xlu0 %2509 }
 0x28a   : > { %3222 = vperm.xlu1 %11655, %v3172_v9   ;;  %v3176_v9 = vsel %vm3155_vm4, 1, %v17895_v3  ;;  %vm3626_vm4 = vcmp.ne.f32.partialorder %v9755_v62, 0.0 }
 0x28b   : > { %3689 = vperm.xlu0 %11654, %v3641_v27   ;;  %v3645_v27 = vsel %vm3624_vm6, 1, %v17895_v3 }
 0x28d   : > { %v13256_v43 = vpop.permute.xlu1 %2518  ;;  %v13258_v31 = vpop.permute.xlu0 %2515  ;;  %9429 = vmatmul.mubr.msk.bf16.gmra.mxu0 %vm9427_vm14, %v9428_v44  ;;  %vm2953_vm14 = vcmp.ne.f32.partialorder %v9629_v60, 0.0  ;;  %v1566_v60 = vld [vmem:[#allocation3 + $0xa2] sm:$0xff] }
 0x28e   : > { %3021 = vperm.xlu1 %11655, %v2971_v37   ;;  %9432 = vmatprep.mubr.msk.bf16.mxu0 %vm9430_vm1, %v9431_v15  ;;  %vm1912_vm1 = vcmp.eq.s32.totalorder %v13205_v53, 1  ;;  %v2974_v5 = vsel %vm2953_vm14, 1, %v17895_v3  ;;  %v1562_v53 = vld [vmem:[#allocation3 + $0x82] sm:$0xff]  ;;  %v9449_v37 = vpack.c.bf16 %v1766_v41, %v1765_v54  ;;  %vm3625_vm14 = vcmp.ne.f32.partialorder %v9754_v48, 0.0  ;;  %v2425_v54 = vld [vmem:[#allocation3 + $0x19] sm:$0xff] }
 0x28f   : > { %3225 = vperm.xlu0 %11654, %v3173_v49   ;;  %vm9442_vm5 = vmpackc.low %vm1912_vm1, %vm1911_vm3  ;;  %v9446_v0 = vpack.c.bf16 %v1563_v25, %v1562_v53  ;;  %v9631_v49 = vld [vmem:[%s17989_s29 + $0x488] sm:$0xff]  ;;  %v3646_v35 = vsel %vm3625_vm14, 1, %v17895_v3  ;;  %vm3157_vm1 = vcmp.ne.f32.partialorder %v9653_v34, 0.0  ;;  %vm1712_vm3 = vcmp.eq.s32.totalorder %v13061_v55, 1  ;;  %v13406_v48 = vld [vmem:[#allocation3 + $0x8] sm:$0xff] }
 0x290   : > { %vm2955_vm0 = vcmp.ne.f32.partialorder %v9631_v49, 0.0  ;;  %v3178_v55 = vsel %vm3157_vm1, 1, %v17895_v3  ;;  %vm2571_vm14 = vcmp.eq.s32.totalorder %v13241_v36, 1  ;;  %v4159_v36 = vld [vmem:[%s17989_s29 + $0x20] sm:$0xff]  ;;  %17990 = vst [vmem:[#allocation8_spill] sm:$0xff] %v13406_v48  ;;  %v4162_v49 = vld [vmem:[%s17989_s29 + $0x38] sm:$0xff] }
 0x291   : > { %v13267_v47 = vpop.permute.xlu1 %2524  ;;  %v13269_v51 = vpop.permute.xlu0 %2521  ;;  %v2976_v23 = vsel %vm2955_vm0, 1, %v17895_v3 }
 0x292   : > { %3692 = vperm.xlu1 %11655, %v3642_v4   ;;  %v1767_v4 = vld [vmem:[#allocation3 + $0xa7] sm:$0xff] }
 0x293   : > { %3024 = vperm.xlu0 %11654, %v2972_v40   ;;  %v9455_v29 = vpack.c.bf16 %v1767_v4, %v1767_v4  ;;  %v11721_v4 = vld [vmem:[%s12065_s4 + $0x230] sm:$0xff]  }
 0x295   : > { %v13285_v24 = vpop.permute.xlu1 %2530  ;;  %v13287_v17 = vpop.permute.xlu0 %2527  ;;  %9435 = vmatmul.mubr.msk.bf16.gmra.mxu0 %vm9433_vm8, %v9434_v52  ;;  %vm3156_vm8 = vcmp.ne.f32.partialorder %v9652_v6, 0.0  ;;  %v9452_v52 = vpack.c.bf16 %v1565_v38, %v1564_v45 }
 0x296   : > { %3228 = vperm.xlu1 %11655, %v3174_v2   ;;  %9438 = vmatprep.mubr.msk.bf16.mxu0 %vm9436_vm11, %v9437_v21  ;;  %vm1914_vm11 = vcmp.eq.s32.totalorder %v13229_v28, 1  ;;  %v3177_v33 = vsel %vm3156_vm8, 1, %v17895_v3  ;;  %v9756_v21 = vld [vmem:[%s17989_s29 + $0x5e0] sm:$0xff]  ;;  %v3647_v2 = vsel %vm3626_vm4, 1, %v17895_v3  ;;  %vm4180_vm4 = vcmp.ne.f32.partialorder %v4159_v36, 0.0 }
 0x297   : > { %3695 = vperm.xlu0 %11654, %v3643_v11   ;;  %vm9448_vm15 = vmpackc.low %vm1914_vm11, %vm1913_vm13  ;;  %vm3627_vm7 = vcmp.ne.f32.partialorder %v9756_v21, 0.0  ;;  %vm1714_vm11 = vcmp.eq.s32.totalorder %v13069_v20, 1  ;;  %vm2572_vm13 = vcmp.eq.s32.totalorder %v13239_v42, 1  ;;  %v4157_v20 = vld [vmem:[%s17989_s29 + $0x10] sm:$0xff]  ;;  %v4160_v42 = vld [vmem:[%s17989_s29 + $0x28] sm:$0xff]  ;;  %v4201_v38 = vsel %vm4180_vm4, 1, %v17895_v3 }
 0x298   : > { %v3648_v8 = vsel %vm3627_vm7, 1, %v17895_v3  ;;  %vm9579_vm1 = vmpackc.low %vm2572_vm13, %vm2571_vm14  ;;  %vm4183_vm7 = vcmp.ne.f32.partialorder %v4162_v49, 0.0  ;;  %v2428_v21 = vld [vmem:[#allocation3 + $0x31] sm:$0xff]  ;;  %vm2575_vm13 = vcmp.eq.s32.totalorder %v13269_v51, 1 }
 0x299   : > { %v13296_v10 = vpop.permute.xlu1 %2536  ;;  %v13298_v12 = vpop.permute.xlu0 %2533 }
 0x29a   : > { %3027 = vperm.xlu1 %11655, %v2973_v50   ;;  %v2424_v50 = vld [vmem:[#allocation3 + $0x11] sm:$0xff] }
 0x29b   : > { %3231 = vperm.xlu0 %11654, %v3175_v46   ;;  %v9580_v1 = vpack.c.bf16 %v2424_v50, %v2423_v32  ;;  %v4166_v32 = vld [vmem:[%s17989_s29 + $0x58] sm:$0xff] }
 0x29c   : > { %vm4187_vm14 = vcmp.ne.f32.partialorder %v4166_v32, 0.0 }
 0x29d   : > { %v13314_v39 = vpop.permute.xlu1 %2542  ;;  %v13316_v63 = vpop.permute.xlu0 %2539  ;;  %9441 = vmatmul.mubr.msk.bf16.gmra.mxu0 %vm9439_vm2, %v9440_v16  ;;  %vm1713_vm2 = vcmp.eq.s32.totalorder %v13059_v59, 1  ;;  %v9632_v59 = vld [vmem:[%s17989_s29 + $0x490] sm:$0xff]  ;;  %v9458_v16 = vpack.c.bf16 %v1566_v60, %v1566_v60 }
 0x29e   : > { %3698 = vperm.xlu1 %11655, %v3644_v14   ;;  %9444 = vmatprep.mubr.msk.bf16.mxu0 %vm9442_vm5, %v9443_v19  ;;  %vm1915_vm5 = vcmp.eq.s32.totalorder %v13227_v18, 1  ;;  %vm9451_vm6 = vmpackc.low %vm1713_vm2, %vm1712_vm3  ;;  %vm2956_vm9 = vcmp.ne.f32.partialorder %v9632_v59, 0.0  ;;  %v4156_v18 = vld [vmem:[%s17989_s29 + $0x8] sm:$0xff]  ;;  %v4158_v19 = vld [vmem:[%s17989_s29 + $0x18] sm:$0xff]  ;;  %vm4178_vm2 = vcmp.ne.f32.partialorder %v4157_v20, 0.0  ;;  %vm4181_vm3 = vcmp.ne.f32.partialorder %v4160_v42, 0.0 }
 0x29f   : > { %3030 = vperm.xlu0 %11654, %v2974_v5   ;;  %vm9454_vm8 = vmpackc.low %vm1915_vm5, %vm1915_vm5  ;;  %v2977_v56 = vsel %vm2956_vm9, 1, %v17895_v3  ;;  %vm4177_vm10 = vcmp.ne.f32.partialorder %v4156_v18, 0.0  ;;  %vm4179_vm0 = vcmp.ne.f32.partialorder %v4158_v19, 0.0  ;;  %v4199_v25 = vsel %vm4178_vm2, 1, %v17895_v3  ;;  %v13444_v18 = vld [vmem:[#allocation3 + $0x20] sm:$0xff]  ;;  %v4165_v19 = vld [vmem:[%s17989_s29 + $0x50] sm:$0xff] }
 0x2a0   : > { %v4198_v14 = vsel %vm4177_vm10, 1, %v17895_v3  ;;  %v4200_v6 = vsel %vm4179_vm0, 1, %v17895_v3  ;;  %vm2574_vm5 = vcmp.eq.s32.totalorder %v13256_v43, 1  ;;  %v4202_v34 = vsel %vm4181_vm3, 1, %v17895_v3  ;;  %v4164_v43 = vld [vmem:[%s17989_s29 + $0x48] sm:$0xff]  ;;  %17993 = vst [vmem:[#allocation11_spill] sm:$0xff] %v13444_v18 }
 0x2a1   : > { %v13325_v44 = vpop.permute.xlu1 %2548  ;;  %v13327_v15 = vpop.permute.xlu0 %2545  ;;  %vm4185_vm10 = vcmp.ne.f32.partialorder %v4164_v43, 0.0  ;;  %v11722_v20 = vld [vmem:[%s12065_s4 + $0x228] sm:$0xff]   ;;  %v4170_v43 = vld [vmem:[%s17989_s29 + $0x78] sm:$0xff] }
 0x2a2   : > { %3234 = vperm.xlu1 %11655, %v3176_v9   ;;  %v2426_v9 = vld [vmem:[#allocation3 + $0x21] sm:$0xff] }
 0x2a3   : > { %3701 = vperm.xlu0 %11654, %v3645_v27   ;;  %v9583_v45 = vpack.c.bf16 %v2426_v9, %v2425_v54  ;;  %v4208_v54 = vsel %vm4187_vm14, 1, %v17895_v3  ;;  %v2430_v9 = vld [vmem:[#allocation3 + $0x41] sm:$0xff] }
 0x2a5   : > { %v13339_v28 = vpop.permute.xlu1 %2554  ;;  %v13341_v30 = vpop.permute.xlu0 %2551  ;;  %9447 = vmatmul.mubr.msk.bf16.gmra.mxu0 %vm9445_vm12, %v9446_v0  ;;  %vm4176_vm12 = vcmp.ne.f32.partialorder %v4155_v7, 0.0  ;;  %v13408_v0 = vld [vmem:[#allocation3 + $0x10] sm:$0xff] }
 0x2a6   : > { %3033 = vperm.xlu1 %11655, %v2975_v61   ;;  %9450 = vmatprep.mubr.msk.bf16.mxu0 %vm9448_vm15, %v9449_v37  ;;  %vm9457_vm15 = vmpackc.low %vm1714_vm11, %vm1714_vm11  ;;  %v4197_v58 = vsel %vm4176_vm12, 1, %v17895_v3  ;;  %17991 = vst [vmem:[#allocation9_spill] sm:$0xff] %v13408_v0  ;;  %v2412_v37 = vpack.c.bf16 %v13408_v0, %v13406_v48  ;;  %v11715_v61 = vld [vmem:[%s12065_s4 + $0x238] sm:$0xff]   ;;  %vm2576_vm12 = vcmp.eq.s32.totalorder %v13267_v47, 1  ;;  %v4167_v47 = vld [vmem:[%s17989_s29 + $0x60] sm:$0xff] }
 0x2a7   : > { %3237 = vperm.xlu0 %11654, %v3177_v33   ;;  %v4161_v33 = vld [vmem:[%s17989_s29 + $0x30] sm:$0xff]  ;;  %v2911_v0 = vld [vmem:[#allocation3 + $0x9e] sm:$0xff] }
 0x2a8   : > { %v3094_v7 = vld [vmem:[#allocation3 + $0xf] sm:$0xff]  ;;  %v2912_v48 = vld [vmem:[#allocation3 + $0xa6] sm:$0xff] }
 0x2a9   : > { %v13350_v40 = vpop.permute.xlu1 %2560  ;;  %v13352_v57 = vpop.permute.xlu0 %2557 }
 0x2aa   : > { %3704 = vperm.xlu1 %11655, %v3646_v35  }
 0x2ab   : > { %3036 = vperm.xlu0 %11654, %v2976_v23   ;;  %v4204_v23 = vsel %vm4183_vm7, 1, %v17895_v3 }
 0x2ad   : > { %v13363_v22 = vpop.permute.xlu1 %2566  ;;  %v13365_v11 = vpop.permute.xlu0 %2563  ;;  %9453 = vmatmul.mubr.msk.bf16.gmra.mxu0 %vm9451_vm6, %v9452_v52  ;;  %vm2573_vm6 = vcmp.eq.s32.totalorder %v13258_v31, 1  ;;  %v4163_v31 = vld [vmem:[%s17989_s29 + $0x40] sm:$0xff]  ;;  %v2427_v52 = vld [vmem:[#allocation3 + $0x29] sm:$0xff] }
 0x2ae   : > { %3240 = vperm.xlu1 %11655, %v3178_v55   ;;  %9456 = vmatprep.mubr.msk.bf16.mxu0 %vm9454_vm8, %v9455_v29  ;;  %vm4182_vm8 = vcmp.ne.f32.partialorder %v4161_v33, 0.0  ;;  %vm9582_vm9 = vmpackc.low %vm2574_vm5, %vm2573_vm6  ;;  %vm4184_vm11 = vcmp.ne.f32.partialorder %v4163_v31, 0.0  ;;  %v9586_v50 = vpack.c.bf16 %v2428_v21, %v2427_v52  ;;  %v13484_v33 = vld [vmem:[#allocation3 + $0x28] sm:$0xff] }
 0x2af   : > { %3707 = vperm.xlu0 %11654, %v3647_v2   ;;  %v4203_v29 = vsel %vm4182_vm8, 1, %v17895_v3  ;;  %v13442_v2 = vld [vmem:[#allocation3 + $0x18] sm:$0xff]  ;;  %17994 = vst [vmem:[#allocation12_spill] sm:$0xff] %v13484_v33  ;;  %vm4188_vm8 = vcmp.ne.f32.partialorder %v4167_v47, 0.0  ;;  %v4169_v52 = vld [vmem:[%s17989_s29 + $0x70] sm:$0xff] }
 0x2b0   : > { %17992 = vst [vmem:[#allocation10_spill] sm:$0xff] %v13442_v2  ;;  %v2413_v60 = vpack.c.bf16 %v13444_v18, %v13442_v2  ;;  %vm4190_vm14 = vcmp.ne.f32.partialorder %v4169_v52, 0.0  ;;  %v9853_v18 = vld [vmem:[%s17989_s29 + $0x260] sm:$0xff] }
 0x2b1   : > { %v13376_v46 = vpop.permute.xlu1 %2979  ;;  %v13378_v13 = vpop.permute.xlu0 %2569 }
 0x2b2   : > { %3710 = vperm.xlu1 %11655, %v3648_v8   ;;  %v3095_v8 = vld [vmem:[#allocation3 + $0x17] sm:$0xff]  ;;  %vm3041_vm4 = vcmp.eq.s32.totalorder %v13376_v46, 1 }
 0x2b3   : > { %3039 = vperm.xlu0 %11654, %v2977_v56   ;;  %v2893_v56 = vld [vmem:[#allocation3 + $0xe] sm:$0xff]  ;;  %v9671_v51 = vpack.c.bf16 %v3095_v8, %v3094_v7 }
 0x2b5   : > { %v13390_v5 = vpop.permute.xlu1 %2985  ;;  %v13392_v53 = vpop.permute.xlu0 %2982  ;;  %9459 = vmatmul.mubr.msk.bf16.gmra.mxu0 %vm9457_vm15, %v9458_v16  ;;  %v2894_v16 = vld [vmem:[#allocation3 + $0x16] sm:$0xff]  ;;  %vm9585_vm15 = vmpackc.low %vm2576_vm12, %vm2575_vm13 }
 0x2b6   : > { %4222 = vperm.xlu1 %11655, %v4198_v14   ;;  %9581 = vmatprep.mubr.msk.bf16.mxu0 %vm9579_vm1, %v9580_v1  ;;  %v4206_v1 = vsel %vm4185_vm10, 1, %v17895_v3  ;;  %v4205_v14 = vsel %vm4184_vm11, 1, %v17895_v3  ;;  %vm3042_vm0 = vcmp.eq.s32.totalorder %v13392_v53, 1  ;;  %v9674_v36 = vpack.c.bf16 %v2894_v16, %v2893_v56  ;;  %v2431_v56 = vld [vmem:[#allocation3 + $0x49] sm:$0xff] }
 0x2b7   : > { %4219 = vperm.xlu0 %11654, %v4197_v58   ;;  %vm4186_vm1 = vcmp.ne.f32.partialorder %v4165_v19, 0.0  ;;  %vm9673_vm6 = vmpackc.low %vm3042_vm0, %vm3041_vm4  ;;  %vm2577_vm10 = vcmp.eq.s32.totalorder %v13287_v17, 1  ;;  %vm4191_vm11 = vcmp.ne.f32.partialorder %v4170_v43, 0.0  ;;  %v2432_v19 = vld [vmem:[#allocation3 + $0x51] sm:$0xff] }
 0x2b8   : > { %v4207_v49 = vsel %vm4186_vm1, 1, %v17895_v3  ;;  %vm3043_vm1 = vcmp.eq.s32.totalorder %v13390_v5, 1  ;;  %v4212_v16 = vsel %vm4191_vm11, 1, %v17895_v3 }
 0x2b9   : > { %v13402_v41 = vpop.permute.xlu1 %2991  ;;  %v13404_v27 = vpop.permute.xlu0 %2988 }
 0x2ba   : > { %4228 = vperm.xlu1 %11655, %v4200_v6   ;;  %v4168_v6 = vld [vmem:[%s17989_s29 + $0x68] sm:$0xff]  ;;  %vm3044_vm13 = vcmp.eq.s32.totalorder %v13404_v27, 1 }
 0x2bb   : > { %4225 = vperm.xlu0 %11654, %v4199_v25   ;;  %v2429_v25 = vld [vmem:[#allocation3 + $0x39] sm:$0xff]  ;;  %vm4189_vm7 = vcmp.ne.f32.partialorder %v4168_v6, 0.0  ;;  %v4174_v6 = vld [vmem:[%s17989_s29 + $0x98] sm:$0xff] }
 0x2bc   : > { %v9589_v31 = vpack.c.bf16 %v2430_v9, %v2429_v25  ;;  %v4210_v21 = vsel %vm4189_vm7, 1, %v17895_v3  ;;  %vm2579_vm7 = vcmp.eq.s32.totalorder %v13298_v12, 1  ;;  %v9592_v25 = vpack.c.bf16 %v2432_v19, %v2431_v56  ;;  %v2898_v9 = vld [vmem:[#allocation3 + $0x36] sm:$0xff]  ;;  %v3101_v19 = vld [vmem:[#allocation3 + $0x47] sm:$0xff] }
 0x2bd   : > { %v13424_v62 = vpop.permute.xlu1 %2997  ;;  %v13426_v35 = vpop.permute.xlu0 %2994  ;;  %2785 = vmatmul.mubr.bf16.vlgmr.msra.gmra.mxu0 %v2412_v37  ;;  %v11723_v37 = vld [vmem:[%s12065_s4 + $0x220] sm:$0xff]   ;;  %v13577_v56 = vld [vmem:[#allocation3 + $0x50] sm:$0xff] }
 0x2be   : > { %11235 = vmatpush3.bf16.msra.mxu0 %v11715_v61  ;;  %4234 = vperm.xlu1 %11655, %v4202_v34   ;;  %v13486_v34 = vld [vmem:[#allocation3 + $0x30] sm:$0xff]  ;;  %17999 = vst [vmem:[#allocation17_spill] sm:$0xff] %v13577_v56 }
 0x2bf   : > { %4231 = vperm.xlu0 %11654, %v4201_v38   ;;  %9584 = vmatprep.mubr.msk.bf16.mxu0 %vm9582_vm9, %v9583_v45  ;;  %17995 = vst [vmem:[#allocation13_spill] sm:$0xff] %v13486_v34  ;;  %v2414_v53 = vpack.c.bf16 %v13486_v34, %v13484_v33  ;;  %v3096_v45 = vld [vmem:[#allocation3 + $0x1f] sm:$0xff]  ;;  %v3097_v38 = vld [vmem:[#allocation3 + $0x27] sm:$0xff]  ;;  %vm2578_vm9 = vcmp.eq.s32.totalorder %v13285_v24, 1 }
 0x2c0   : > { %11236 = vmatprep.subr.bf16.mxu0 %v17885_v26  ;;  %v9677_v7 = vpack.c.bf16 %v3097_v38, %v3096_v45  ;;  %vm9588_vm12 = vmpackc.low %vm2578_vm9, %vm2577_vm10  ;;  %v4171_v24 = vld [vmem:[%s17989_s29 + $0x80] sm:$0xff]  ;;  %vm3046_vm10 = vcmp.eq.s32.totalorder %v13426_v35, 1 }
 0x2c1   : > { %v13438_v59 = vpop.permute.xlu1 %3003  ;;  %v13440_v55 = vpop.permute.xlu0 %3000 }
 0x2c2   : > { %4240 = vperm.xlu1 %11655, %v4204_v23   ;;  %11237 = vmatpush3.bf16.msra.mxu0 %v11721_v4  ;;  %v2895_v4 = vld [vmem:[#allocation3 + $0x1e] sm:$0xff]  ;;  %v2896_v23 = vld [vmem:[#allocation3 + $0x26] sm:$0xff] }
 0x2c3   : > { %4237 = vperm.xlu0 %11654, %v4203_v29   ;;  %11238 = vmatprep.subr.bf16.mxu0 %v17885_v26  ;;  %v11724_v29 = vld [vmem:[%s12065_s4 + $0x218] sm:$0xff]   ;;  %v9680_v32 = vpack.c.bf16 %v2896_v23, %v2895_v4 }
 0x2c5   : > { %v3184_v58 = vpop.permute.xlu1 %3183  ;;  %v3181_v42 = vpop.permute.xlu0 %3180  ;;  %2793 = vmatmul.mubr.bf16.gmra.mxu0 %v2413_v60  ;;  %v4209_v60 = vsel %vm4188_vm8, 1, %v17895_v3  ;;  %vm4195_vm8 = vcmp.ne.f32.partialorder %v4174_v6, 0.0  ;;  %v9799_v6 = vld [vmem:[%s17989_s29 + $0xb0] sm:$0xff] }
 0x2c6   : > { %vm3243_vm2 = vcmp.eq.s32.totalorder %v3184_v58, 1  ;;  %vm3242_vm3 = vcmp.eq.s32.totalorder %v3181_v42, 1  ;;  %4246 = vperm.xlu1 %11655, %v4206_v1   ;;  %9587 = vmatprep.mubr.msk.bf16.mxu0 %vm9585_vm15, %v9586_v50  ;;  %v4172_v50 = vld [vmem:[%s17989_s29 + $0x88] sm:$0xff]  ;;  %v11725_v1 = vld [vmem:[%s12065_s4 + $0x210] sm:$0xff]  }
 0x2c7   : > { %vm9670_vm5 = vmpackc.low %vm3243_vm2, %vm3242_vm3  ;;  %4243 = vperm.xlu0 %11654, %v4205_v14   ;;  %11239 = vmatpush3.bf16.msra.mxu0 %v11722_v20  ;;  %v4211_v20 = vsel %vm4190_vm14, 1, %v17895_v3  ;;  %vm4193_vm4 = vcmp.ne.f32.partialorder %v4172_v50, 0.0  ;;  %v13527_v58 = vld [vmem:[#allocation3 + $0x40] sm:$0xff]  ;;  %v3098_v42 = vld [vmem:[#allocation3 + $0x2f] sm:$0xff]  ;;  %vm3045_vm14 = vcmp.eq.s32.totalorder %v13402_v41, 1 }
 0x2c8   : > { %9672 = vmatprep.mubr.msk.bf16.mxu1 %vm9670_vm5, %v9671_v51  ;;  %11240 = vmatprep.subr.bf16.mxu0 %v17885_v26  ;;  %vm9679_vm3 = vmpackc.low %vm3044_vm13, %vm3043_vm1  ;;  %v13525_v51 = vld [vmem:[#allocation3 + $0x38] sm:$0xff]  ;;  %17997 = vst [vmem:[#allocation15_spill] sm:$0xff] %v13527_v58  ;;  %vm4192_vm5 = vcmp.ne.f32.partialorder %v4171_v24, 0.0  ;;  %v13575_v24 = vld [vmem:[#allocation3 + $0x48] sm:$0xff] }
 0x2c9   : > { %v13480_v61 = vpop.permute.xlu1 %3653  ;;  %v13482_v46 = vpop.permute.xlu0 %3650  ;;  %9675 = vmatmul.mubr.msk.bf16.vlgmr.msra.gmra.mxu1 %vm9673_vm6, %v9674_v36  ;;  %17996 = vst [vmem:[#allocation14_spill] sm:$0xff] %v13525_v51  ;;  %v2415_v27 = vpack.c.bf16 %v13527_v58, %v13525_v51  ;;  %v3099_v36 = vld [vmem:[#allocation3 + $0x37] sm:$0xff]  ;;  %vm2580_vm6 = vcmp.eq.s32.totalorder %v13296_v10, 1  ;;  %v4213_v38 = vsel %vm4192_vm5, 1, %v17895_v3  ;;  %17998 = vst [vmem:[#allocation16_spill] sm:$0xff] %v13575_v24  ;;  %v2416_v35 = vpack.c.bf16 %v13577_v56, %v13575_v24  ;;  %v2909_v24 = vld [vmem:[#allocation3 + $0x8e] sm:$0xff] }
 0x2ca   : > { %4252 = vperm.xlu1 %11655, %v4208_v54   ;;  %v2897_v54 = vld [vmem:[#allocation3 + $0x2e] sm:$0xff]  ;;  %v9683_v43 = vpack.c.bf16 %v3099_v36, %v3098_v42  ;;  %vm9591_vm9 = vmpackc.low %vm2580_vm6, %vm2579_vm7  ;;  %v4175_v10 = vld [vmem:[%s17989_s29 + $0xa0] sm:$0xff]  ;;  %vm3048_vm7 = vcmp.eq.s32.totalorder %v13440_v55, 1 }
 0x2cb   : > { %4249 = vperm.xlu0 %11654, %v4207_v49   ;;  %11241 = vmatpush3.bf16.msra.mxu0 %v11723_v37  ;;  %v4173_v37 = vld [vmem:[%s17989_s29 + $0x90] sm:$0xff]  ;;  %v4214_v49 = vsel %vm4193_vm4, 1, %v17895_v3  ;;  %v9686_v52 = vpack.c.bf16 %v2898_v9, %v2897_v54  ;;  %vm2581_vm4 = vcmp.eq.s32.totalorder %v13316_v63, 1  ;;  %v2899_v42 = vld [vmem:[#allocation3 + $0x3e] sm:$0xff]  ;;  %v9804_v55 = vld [vmem:[%s17989_s29 + $0xd8] sm:$0xff] }
 0x2cc   : > { %11242 = vmatprep.subr.bf16.mxu0 %v17885_v26  ;;  %vm4194_vm11 = vcmp.ne.f32.partialorder %v4173_v37, 0.0  ;;  %v2900_v36 = vld [vmem:[#allocation3 + $0x46] sm:$0xff]  ;;  %v2910_v58 = vld [vmem:[#allocation3 + $0x96] sm:$0xff] }
 0x2cd   : > { %v3190_v17 = vpop.permute.xlu1 %3189  ;;  %v3187_v8 = vpop.permute.xlu0 %3186  ;;  %2801 = vmatmul.mubr.bf16.gmra.mxu0 %v2414_v53  ;;  %v11726_v53 = vld [vmem:[%s12065_s4 + $0x208] sm:$0xff]  }
 0x2ce   : > { %vm3245_vm15 = vcmp.eq.s32.totalorder %v3190_v17, 1  ;;  %vm3244_vm0 = vcmp.eq.s32.totalorder %v3187_v8, 1  ;;  %4258 = vperm.xlu1 %11655, %v4210_v21   ;;  %9590 = vmatprep.mubr.msk.bf16.mxu0 %vm9588_vm12, %v9589_v31  ;;  %v9798_v21 = vld [vmem:[%s17989_s29 + $0xa8] sm:$0xff]  ;;  %v11727_v17 = vld [vmem:[%s12065_s4 + $0x200] sm:$0xff]  }
 0x2cf   : > { %vm9676_vm2 = vmpackc.low %vm3245_vm15, %vm3244_vm0  ;;  %4255 = vperm.xlu0 %11654, %v4209_v60   ;;  %11243 = vmatpush3.bf16.msra.mxu0 %v11724_v29  ;;  %v2433_v29 = vld [vmem:[#allocation3 + $0x59] sm:$0xff]  ;;  %v4216_v60 = vsel %vm4195_vm8, 1, %v17895_v3  ;;  %vm4376_vm1 = vcmp.ne.f32.partialorder %v9798_v21, 0.0  ;;  %vm4377_vm8 = vcmp.ne.f32.partialorder %v9799_v6, 0.0 }
 0x2d0   : > { %9678 = vmatprep.mubr.msk.bf16.mxu1 %vm9676_vm2, %v9677_v7  ;;  %11244 = vmatprep.subr.bf16.mxu0 %v17885_v26  ;;  %v2434_v7 = vld [vmem:[#allocation3 + $0x61] sm:$0xff]  ;;  %vm9685_vm0 = vmpackc.low %vm3046_vm10, %vm3045_vm14  ;;  %vm4196_vm2 = vcmp.ne.f32.partialorder %v4175_v10, 0.0  ;;  %v4398_v21 = vsel %vm4377_vm8, 1, %v17895_v3 }
 0x2d1   : > { %v13521_v14 = vpop.permute.xlu1 %3659  ;;  %v13523_v5 = vpop.permute.xlu0 %3656  ;;  %9681 = vmatmul.mubr.msk.bf16.gmra.mxu1 %vm9679_vm3, %v9680_v32  ;;  %v4215_v32 = vsel %vm4194_vm11, 1, %v17895_v3  ;;  %vm2582_vm3 = vcmp.eq.s32.totalorder %v13314_v39, 1  ;;  %v4217_v54 = vsel %vm4196_vm2, 1, %v17895_v3  ;;  %v9801_v39 = vld [vmem:[%s17989_s29 + $0xc0] sm:$0xff]  ;;  %vm3047_vm11 = vcmp.eq.s32.totalorder %v13424_v62, 1 }
 0x2d2   : > { %v10474_v47 = vpop.f32.mrf.mxu1  ;;  %4264 = vperm.xlu1 %11655, %v4212_v16   ;;  %v3100_v16 = vld [vmem:[#allocation3 + $0x3f] sm:$0xff]  ;;  %vm9594_vm6 = vmpackc.low %vm2582_vm3, %vm2581_vm4  ;;  %vm4382_vm2 = vcmp.ne.f32.partialorder %v9804_v55, 0.0  ;;  %v9819_v55 = vld [vmem:[%s17989_s29 + $0x150] sm:$0xff] }
 0x2d3   : > { %4261 = vperm.xlu0 %11654, %v4211_v20   ;;  %11245 = vmatpush3.bf16.msra.mxu0 %v11725_v1  ;;  %v9800_v1 = vld [vmem:[%s17989_s29 + $0xb8] sm:$0xff]  ;;  %v9689_v9 = vpack.c.bf16 %v3101_v19, %v3100_v16  ;;  %v13617_v62 = vld [vmem:[#allocation3 + $0x58] sm:$0xff]  ;;  %v9803_v19 = vld [vmem:[%s17989_s29 + $0xd0] sm:$0xff] }
 0x2d4   : > { %v10475_v45 = vpop.f32.mrf.mxu1  ;;  %11246 = vmatprep.subr.bf16.mxu0 %v17885_v26  ;;  %vm4378_vm5 = vcmp.ne.f32.partialorder %v9800_v1, 0.0  ;;  %18000 = vst [vmem:[#allocation18_spill] sm:$0xff] %v13617_v62  ;;  %v3103_v16 = vld [vmem:[#allocation3 + $0x57] sm:$0xff]  ;;  %vm4381_vm4 = vcmp.ne.f32.partialorder %v9803_v19, 0.0 }
 0x2d5   : > { %v13550_v31 = vadd.f32 %v10475_v45, %v10474_v47  ;;  %v3196_v4 = vpop.permute.xlu1 %3195  ;;  %v3193_v23 = vpop.permute.xlu0 %3192  ;;  %2809 = vmatmul.mubr.bf16.gmra.mxu0 %v2415_v27  ;;  %v9595_v27 = vpack.c.bf16 %v2434_v7, %v2433_v29  ;;  %v4397_v47 = vsel %vm4376_vm1, 1, %v17895_v3  ;;  %v9802_v45 = vld [vmem:[%s17989_s29 + $0xc8] sm:$0xff]  ;;  %vm2583_vm1 = vcmp.eq.s32.totalorder %v13327_v15, 1 }
 0x2d6   : > { %vm3247_vm12 = vcmp.eq.s32.totalorder %v3196_v4, 1  ;;  %vm3246_vm13 = vcmp.eq.s32.totalorder %v3193_v23, 1  ;;  %v13555_v12 = vpop.f32.mrf.mxu1  ;;  %4270 = vperm.xlu1 %11655, %v4214_v49   ;;  %9593 = vmatprep.mubr.msk.bf16.mxu0 %vm9591_vm9, %v9592_v25  ;;  %v2435_v4 = vld [vmem:[#allocation3 + $0x69] sm:$0xff]  ;;  %v2436_v23 = vld [vmem:[#allocation3 + $0x71] sm:$0xff]  ;;  %vm4380_vm14 = vcmp.ne.f32.partialorder %v9802_v45, 0.0  ;;  %v13619_v29 = vld [vmem:[#allocation3 + $0x60] sm:$0xff] }
 0x2d7   : > { %vm9682_vm15 = vmpackc.low %vm3247_vm12, %vm3246_vm13  ;;  %4267 = vperm.xlu0 %11654, %v4213_v38   ;;  %11247 = vmatpush3.bf16.msra.mxu0 %v11726_v53  ;;  %v9692_v53 = vpack.c.bf16 %v2900_v36, %v2899_v42  ;;  %18001 = vst [vmem:[#allocation19_spill] sm:$0xff] %v13619_v29  ;;  %v4401_v1 = vsel %vm4380_vm14, 1, %v17895_v3  ;;  %v9840_v36 = vld [vmem:[%s17989_s29 + $0x1f8] sm:$0xff] }
 0x2d8   : > { %v13566_v8 = vpop.f32.mrf.mxu1  ;;  %9684 = vmatprep.mubr.msk.bf16.mxu1 %vm9682_vm15, %v9683_v43  ;;  %11248 = vmatprep.subr.bf16.mxu0 %v17885_v26  ;;  %v4399_v43 = vsel %vm4378_vm5, 1, %v17895_v3  ;;  %vm9691_vm13 = vmpackc.low %vm3048_vm7, %vm3047_vm11  ;;  %vm4379_vm15 = vcmp.ne.f32.partialorder %v9801_v39, 0.0  ;;  %v4402_v39 = vsel %vm4381_vm4, 1, %v17895_v3  ;;  %vm4808_vm8 = vcmp.ne.f32.partialorder %v9840_v36, 0.0  ;;  %v3104_v36 = vld [vmem:[#allocation3 + $0x5f] sm:$0xff] }
 0x2d9   : > { %v13571_v41 = vpop.permute.xlu1 %3665  ;;  %v13573_v50 = vpop.permute.xlu0 %3662  ;;  %9687 = vmatmul.mubr.msk.bf16.gmra.mxu1 %vm9685_vm0, %v9686_v52  ;;  %vm2584_vm0 = vcmp.eq.s32.totalorder %v13325_v44, 1  ;;  %v4400_v44 = vsel %vm4379_vm15, 1, %v17895_v3  ;;  %vm2585_vm11 = vcmp.eq.s32.totalorder %v13341_v30, 1  ;;  %v4829_v19 = vsel %vm4808_vm8, 1, %v17895_v3 }
 0x2da   : > { %v10480_v20 = vpop.f32.mrf.mxu1  ;;  %4276 = vperm.xlu1 %11655, %v4216_v60   ;;  %v2417_v60 = vpack.c.bf16 %v13619_v29, %v13617_v62  ;;  %vm9597_vm3 = vmpackc.low %vm2584_vm0, %vm2583_vm1  ;;  %vm4608_vm15 = vcmp.ne.f32.partialorder %v9819_v55, 0.0  ;;  %v9821_v55 = vld [vmem:[%s17989_s29 + $0x160] sm:$0xff]  ;;  %vm2588_vm4 = vcmp.eq.s32.totalorder %v13350_v40, 1  ;;  %v9822_v40 = vld [vmem:[%s17989_s29 + $0x168] sm:$0xff] }
 0x2db   : > { %4273 = vperm.xlu0 %11654, %v4215_v32   ;;  %11249 = vmatpush3.bf16.msra.mxu0 %v11727_v17  ;;  %v9598_v32 = vpack.c.bf16 %v2436_v23, %v2435_v4  ;;  %v13654_v23 = vld [vmem:[#allocation3 + $0x68] sm:$0xff] }
 0x2dc   : > { %v10481_v25 = vpop.f32.mrf.mxu1  ;;  %18002 = vst [vmem:[#allocation20_spill] sm:$0xff] %v13654_v23 }
 0x2dd   : > { %v13596_v63 = vadd.f32 %v10481_v25, %v10480_v20  ;;  %v3202_v37 = vpop.permute.xlu1 %3201  ;;  %v3199_v49 = vpop.permute.xlu0 %3198  ;;  %2817 = vmatmul.mubr.bf16.gmra.mxu0 %v2416_v35  ;;  %v3102_v35 = vld [vmem:[#allocation3 + $0x4f] sm:$0xff] }
 0x2de   : > { %vm3249_vm9 = vcmp.eq.s32.totalorder %v3202_v37, 1  ;;  %vm3248_vm10 = vcmp.eq.s32.totalorder %v3199_v49, 1  ;;  %v13601_v38 = vpop.f32.mrf.mxu1  ;;  %4419 = vperm.xlu1 %11655, %v4397_v47   ;;  %9596 = vmatprep.mubr.msk.bf16.mxu0 %vm9594_vm6, %v9595_v27  ;;  %v9695_v42 = vpack.c.bf16 %v3103_v16, %v3102_v35  ;;  %v2901_v25 = vld [vmem:[#allocation3 + $0x4e] sm:$0xff]  ;;  %v4403_v37 = vsel %vm4382_vm2, 1, %v17895_v3  ;;  %v2437_v49 = vld [vmem:[#allocation3 + $0x79] sm:$0xff] }
 0x2df   : > { %vm9688_vm12 = vmpackc.low %vm3249_vm9, %vm3248_vm10  ;;  %4279 = vperm.xlu0 %11654, %v4217_v54   ;;  %v2902_v54 = vld [vmem:[#allocation3 + $0x56] sm:$0xff]  ;;  %vm2586_vm10 = vcmp.eq.s32.totalorder %v13339_v28, 1 }
 0x2e0   : > { %v13611_v52 = vpop.f32.mrf.mxu1  ;;  %9690 = vmatprep.mubr.msk.bf16.mxu1 %vm9688_vm12, %v9689_v9  ;;  %v9805_v9 = vld [vmem:[%s17989_s29 + $0xe0] sm:$0xff]  ;;  %v9698_v4 = vpack.c.bf16 %v2902_v54, %v2901_v25  ;;  %vm3049_vm12 = vcmp.eq.s32.totalorder %v13438_v59, 1  ;;  %vm9600_vm0 = vmpackc.low %vm2586_vm10, %vm2585_vm11  ;;  %v9842_v59 = vld [vmem:[%s17989_s29 + $0x208] sm:$0xff]  ;;  %v4629_v25 = vsel %vm4608_vm15, 1, %v17895_v3 }
 0x2e1   : > { %v13615_v10 = vpop.permute.xlu1 %3671  ;;  %9693 = vmatmul.mubr.msk.bf16.gmra.mxu1 %vm9691_vm13, %v9692_v53  ;;  %v2438_v53 = vld [vmem:[#allocation3 + $0x81] sm:$0xff]  ;;  %vm4383_vm9 = vcmp.ne.f32.partialorder %v9805_v9, 0.0  ;;  %v9841_v16 = vld [vmem:[%s17989_s29 + $0x200] sm:$0xff]  ;;  %v9820_v28 = vld [vmem:[%s17989_s29 + $0x158] sm:$0xff]  ;;  %vm4810_vm2 = vcmp.ne.f32.partialorder %v9842_v59, 0.0 }
 0x2e2   : > { %v13628_v7 = vpop.permute.xlu0 %3668  ;;  %v10486_v17 = vpop.f32.mrf.mxu1  ;;  %4425 = vperm.xlu1 %11655, %v4399_v43   ;;  %v9601_v35 = vpack.c.bf16 %v2438_v53, %v2437_v49  ;;  %vm4809_vm1 = vcmp.ne.f32.partialorder %v9841_v16, 0.0  ;;  %v2439_v54 = vld [vmem:[#allocation3 + $0x89] sm:$0xff]  ;;  %v2440_v9 = vld [vmem:[#allocation3 + $0x91] sm:$0xff] }
 0x2e3   : > { %4422 = vperm.xlu0 %11654, %v4398_v21   ;;  %v13656_v21 = vld [vmem:[#allocation3 + $0x70] sm:$0xff]  ;;  %v4830_v49 = vsel %vm4809_vm1, 1, %v17895_v3  ;;  %v9604_v16 = vpack.c.bf16 %v2440_v9, %v2439_v54  ;;  %vm2590_vm1 = vcmp.eq.s32.totalorder %v13363_v22, 1 }
 0x2e4   : > { %v10487_v20 = vpop.f32.mrf.mxu1  ;;  %18003 = vst [vmem:[#allocation21_spill] sm:$0xff] %v13656_v21  ;;  %v9844_v59 = vld [vmem:[%s17989_s29 + $0x218] sm:$0xff] }
 0x2e5   : > { %v13636_v15 = vadd.f32 %v10487_v20, %v10486_v17  ;;  %v3208_v27 = vpop.permute.xlu1 %3207  ;;  %2825 = vmatmul.mubr.bf16.gmra.mxu0 %v2417_v60  ;;  %v2418_v60 = vpack.c.bf16 %v13656_v21, %v13654_v23  ;;  %v4404_v20 = vsel %vm4383_vm9, 1, %v17895_v3  ;;  %vm4610_vm9 = vcmp.ne.f32.partialorder %v9821_v55, 0.0  ;;  %v2907_v21 = vld [vmem:[#allocation3 + $0x7e] sm:$0xff]  ;;  %v2908_v23 = vld [vmem:[#allocation3 + $0x86] sm:$0xff] }
 0x2e6   : > { %vm3251_vm5 = vcmp.eq.s32.totalorder %v3208_v27, 1  ;;  %v3205_v6 = vpop.permute.xlu0 %3204  ;;  %v13641_v47 = vpop.f32.mrf.mxu1  ;;  %4431 = vperm.xlu1 %11655, %v4401_v1   ;;  %9599 = vmatprep.mubr.msk.bf16.mxu0 %vm9597_vm3, %v9598_v32  ;;  %vm4609_vm3 = vcmp.ne.f32.partialorder %v9820_v28, 0.0  ;;  %vm4812_vm15 = vcmp.ne.f32.partialorder %v9844_v59, 0.0  ;;  %v2905_v59 = vld [vmem:[#allocation3 + $0x6e] sm:$0xff]  ;;  %v9716_v62 = vpack.c.bf16 %v2908_v23, %v2907_v21 }
 0x2e7   : > { %vm3250_vm6 = vcmp.eq.s32.totalorder %v3205_v6, 1  ;;  %4428 = vperm.xlu0 %11654, %v4400_v44   ;;  %v3105_v6 = vld [vmem:[#allocation3 + $0x67] sm:$0xff]  ;;  %v4630_v26 = vsel %vm4609_vm3, 1, %v17895_v3 }
 0x2e8   : > { %vm9694_vm7 = vmpackc.low %vm3251_vm5, %vm3250_vm6  ;;  %v13648_v45 = vpop.f32.mrf.mxu1  ;;  %vm2587_vm5 = vcmp.eq.s32.totalorder %v13352_v57, 1  ;;  %v4631_v57 = vsel %vm4610_vm9, 1, %v17895_v3 }
 0x2e9   : > { %9696 = vmatprep.mubr.msk.bf16.mxu1 %vm9694_vm7, %v9695_v42  ;;  %v13652_v43 = vpop.permute.xlu1 %3674  ;;  %vm9603_vm10 = vmpackc.low %vm2588_vm4, %vm2587_vm5 }
 0x2ea   : > { %v3007_v17 = vpop.permute.xlu0 %3006  ;;  %v10492_v32 = vpop.f32.mrf.mxu1  ;;  %4437 = vperm.xlu1 %11655, %v4403_v37  }
 0x2eb   : > { %vm3050_vm13 = vcmp.eq.s32.totalorder %v3007_v17, 1  ;;  %4434 = vperm.xlu0 %11654, %v4402_v39   ;;  %v9701_v39 = vpack.c.bf16 %v3105_v6, %v3104_v36  ;;  %v4831_v36 = vsel %vm4810_vm2, 1, %v17895_v3  ;;  %vm2589_vm2 = vcmp.eq.s32.totalorder %v13365_v11, 1 }
 0x2ec   : > { %vm9697_vm14 = vmpackc.low %vm3050_vm13, %vm3049_vm12  ;;  %v10493_v1 = vpop.f32.mrf.mxu1 }
 0x2ed   : > { %v13674_v30 = vadd.f32 %v10493_v1, %v10492_v32  ;;  %9699 = vmatmul.mubr.msk.bf16.gmra.mxu1 %vm9697_vm14, %v9698_v4  ;;  %v3211_v44 = vpop.permute.xlu1 %3210  ;;  %2833 = vmatmul.mubr.bf16.gmra.mxu0 %v2418_v60  ;;  %v13691_v4 = vld [vmem:[#allocation3 + $0x78] sm:$0xff]  ;;  %v13693_v60 = vld [vmem:[#allocation3 + $0x80] sm:$0xff]  ;;  %vm9606_vm4 = vmpackc.low %vm2590_vm1, %vm2589_vm2 }
 0x2ee   : > { %v13679_v27 = vpop.permute.xlu0 %3677  ;;  %v13681_v42 = vpop.f32.mrf.mxu1  ;;  %4851 = vperm.xlu1 %11655, %v4829_v19   ;;  %9602 = vmatprep.mubr.msk.bf16.mxu0 %vm9600_vm0, %v9601_v35  ;;  %18004 = vst [vmem:[#allocation22_spill] sm:$0xff] %v13691_v4  ;;  %18005 = vst [vmem:[#allocation23_spill] sm:$0xff] %v13693_v60  ;;  %v2419_v17 = vpack.c.bf16 %v13693_v60, %v13691_v4  ;;  %v2903_v19 = vld [vmem:[#allocation3 + $0x5e] sm:$0xff]  ;;  %v2904_v1 = vld [vmem:[#allocation3 + $0x66] sm:$0xff]  ;;  %vm3252_vm6 = vcmp.eq.s32.totalorder %v3211_v44, 1  ;;  %vm4611_vm0 = vcmp.ne.f32.partialorder %v9822_v40, 0.0 }
 0x2ef   : > { %4440 = vperm.xlu0 %11654, %v4404_v20   ;;  %v9843_v20 = vld [vmem:[%s17989_s29 + $0x210] sm:$0xff]  ;;  %v9704_v54 = vpack.c.bf16 %v2904_v1, %v2903_v19  ;;  %v13732_v19 = vld [vmem:[#allocation3 + $0x90] sm:$0xff]  ;;  %v4632_v22 = vsel %vm4611_vm0, 1, %v17895_v3  ;;  %v13767_v60 = vld [vmem:[#allocation3 + $0x98] sm:$0xff] }
 0x2f0   : > { %v13688_v37 = vpop.f32.mrf.mxu1  ;;  %vm4811_vm11 = vcmp.ne.f32.partialorder %v9843_v20, 0.0  ;;  %18007 = vst [vmem:[#allocation25_spill] sm:$0xff] %v13732_v19  ;;  %18008 = vst [vmem:[#allocation26_spill] sm:$0xff] %v13767_v60  ;;  %v13800_v4 = vld [vmem:[#allocation3 + $0xa8] sm:$0xff] }
 0x2f1   : > { %v3010_v53 = vpop.permute.xlu1 %3009  ;;  %18010 = vst [vmem:[#allocation28_spill] sm:$0xff] %v13800_v4 }
 0x2f2   : > { %v3214_v32 = vpop.permute.xlu0 %3213  ;;  %v10498_v35 = vpop.f32.mrf.mxu1  ;;  %4651 = vperm.xlu1 %11655, %v4629_v25   ;;  %vm3051_vm12 = vcmp.eq.s32.totalorder %v3010_v53, 1  ;;  %v9823_v53 = vld [vmem:[%s17989_s29 + $0x170] sm:$0xff] }
 0x2f3   : > { %vm3253_vm7 = vcmp.eq.s32.totalorder %v3214_v32, 1  ;;  %4854 = vperm.xlu0 %11654, %v4830_v49   ;;  %v2441_v49 = vld [vmem:[#allocation3 + $0x99] sm:$0xff]  ;;  %v4832_v32 = vsel %vm4811_vm11, 1, %v17895_v3  ;;  %vm4612_vm3 = vcmp.ne.f32.partialorder %v9823_v53, 0.0  ;;  %vm2591_vm11 = vcmp.eq.s32.totalorder %v13378_v13, 1 }
 0x2f4   : > { %vm9700_vm8 = vmpackc.low %vm3253_vm7, %vm3252_vm6  ;;  %v10499_v6 = vpop.f32.mrf.mxu1 }
 0x2f5   : > { %v13713_v25 = vadd.f32 %v10499_v6, %v10498_v35  ;;  %9702 = vmatprep.mubr.msk.bf16.mxu1 %vm9700_vm8, %v9701_v39  ;;  %v13715_v44 = vpop.permute.xlu1 %3680  ;;  %2841 = vmatmul.mubr.bf16.gmra.mxu0 %v2419_v17  ;;  %v2442_v39 = vld [vmem:[#allocation3 + $0xa1] sm:$0xff]  ;;  %v3107_v6 = vld [vmem:[#allocation3 + $0x77] sm:$0xff]  ;;  %vm9609_vm0 = vmpackc.low %vm2591_vm11, %vm2591_vm11 }
 0x2f6   : > { %v3013_v28 = vpop.permute.xlu0 %3012  ;;  %v13720_v9 = vpop.f32.mrf.mxu1  ;;  %4857 = vperm.xlu1 %11655, %v4831_v36   ;;  %9605 = vmatprep.mubr.msk.bf16.mxu0 %vm9603_vm10, %v9604_v16  ;;  %v13730_v16 = vld [vmem:[#allocation3 + $0x88] sm:$0xff]  ;;  %v9607_v20 = vpack.c.bf16 %v2442_v39, %v2441_v49  ;;  %v9846_v49 = vld [vmem:[%s17989_s29 + $0x228] sm:$0xff] }
 0x2f7   : > { %vm3052_vm13 = vcmp.eq.s32.totalorder %v3013_v28, 1  ;;  %4654 = vperm.xlu0 %11654, %v4630_v26   ;;  %18006 = vst [vmem:[#allocation24_spill] sm:$0xff] %v13730_v16  ;;  %v2420_v26 = vpack.c.bf16 %v13732_v19, %v13730_v16  ;;  %v3106_v36 = vld [vmem:[#allocation3 + $0x6f] sm:$0xff]  ;;  %v4833_v28 = vsel %vm4812_vm15, 1, %v17895_v3  ;;  %vm4814_vm9 = vcmp.ne.f32.partialorder %v9846_v49, 0.0 }
 0x2f8   : > { %vm9703_vm14 = vmpackc.low %vm3052_vm13, %vm3051_vm12  ;;  %v13727_v17 = vpop.f32.mrf.mxu1  ;;  %v2906_v16 = vld [vmem:[#allocation3 + $0x76] sm:$0xff] }
 0x2f9   : > { %9705 = vmatmul.mubr.msk.bf16.gmra.mxu1 %vm9703_vm14, %v9704_v54  ;;  %v3217_v35 = vpop.permute.xlu1 %3216  ;;  %v9845_v54 = vld [vmem:[%s17989_s29 + $0x220] sm:$0xff] }
 0x2fa   : > { %v13741_v55 = vpop.permute.xlu0 %3683  ;;  %v10504_v1 = vpop.f32.mrf.mxu1  ;;  %4657 = vperm.xlu1 %11655, %v4631_v57   ;;  %v9707_v57 = vpack.c.bf16 %v3107_v6, %v3106_v36  ;;  %vm4813_vm5 = vcmp.ne.f32.partialorder %v9845_v54, 0.0  ;;  %vm3254_vm6 = vcmp.eq.s32.totalorder %v3217_v35, 1  ;;  %v2443_v36 = vld [vmem:[#allocation3 + $0xa9] sm:$0xff]  ;;  %v13769_v35 = vld [vmem:[#allocation3 + $0xa0] sm:$0xff] }
 0x2fb   : > { %4860 = vperm.xlu0 %11654, %v4832_v32   ;;  %18009 = vst [vmem:[#allocation27_spill] sm:$0xff] %v13769_v35  ;;  %v2421_v53 = vpack.c.bf16 %v13769_v35, %v13767_v60 }
 0x2fc   : > { %v10505_v40 = vpop.f32.mrf.mxu1 }
 0x2fd   : > { %v13749_v11 = vadd.f32 %v10505_v40, %v10504_v1  ;;  %v3016_v19 = vpop.permute.xlu1 %3015  ;;  %2849 = vmatmul.mubr.bf16.gmra.mxu0 %v2420_v26  ;;  %v9824_v1 = vld [vmem:[%s17989_s29 + $0x178] sm:$0xff]  ;;  %v4633_v26 = vsel %vm4612_vm3, 1, %v17895_v3  ;;  %v9710_v40 = vpack.c.bf16 %v2906_v16, %v2905_v59  ;;  %v9847_v16 = vld [vmem:[%s17989_s29 + $0x230] sm:$0xff]  ;;  %v4835_v59 = vsel %vm4814_vm9, 1, %v17895_v3 }
 0x2fe   : > { %v3220_v39 = vpop.permute.xlu0 %3219  ;;  %v13754_v32 = vpop.f32.mrf.mxu1  ;;  %4863 = vperm.xlu1 %11655, %v4833_v28   ;;  %9608 = vmatprep.mubr.msk.bf16.mxu0 %vm9606_vm4, %v9607_v20  ;;  %v4834_v28 = vsel %vm4813_vm5, 1, %v17895_v3  ;;  %vm4613_vm10 = vcmp.ne.f32.partialorder %v9824_v1, 0.0  ;;  %vm3053_vm12 = vcmp.eq.s32.totalorder %v3016_v19, 1  ;;  %vm4815_vm1 = vcmp.ne.f32.partialorder %v9847_v16, 0.0  ;;  %v9848_v19 = vld [vmem:[%s17989_s29 + $0x238] sm:$0xff] }
 0x2ff   : > { %vm3255_vm7 = vcmp.eq.s32.totalorder %v3220_v39, 1  ;;  %4660 = vperm.xlu0 %11654, %v4632_v22   ;;  %v9825_v22 = vld [vmem:[%s17989_s29 + $0x180] sm:$0xff]  ;;  %v4634_v35 = vsel %vm4613_vm10, 1, %v17895_v3  ;;  %v4836_v16 = vsel %vm4815_vm1, 1, %v17895_v3  ;;  %vm4816_vm2 = vcmp.ne.f32.partialorder %v9848_v19, 0.0 }
 0x300   : > { %vm9706_vm8 = vmpackc.low %vm3255_vm7, %vm3254_vm6  ;;  %v13761_v6 = vpop.f32.mrf.mxu1  ;;  %vm4614_vm15 = vcmp.ne.f32.partialorder %v9825_v22, 0.0  ;;  %vm17949_vm9 = vmmov 0  }
 0x301   : > { %9708 = vmatprep.mubr.msk.bf16.mxu1 %vm9706_vm8, %v9707_v57  ;;  %v13765_v20 = vpop.permute.xlu1 %3686  ;;  %v9610_v57 = vpack.c.bf16 %v2443_v36, %v2443_v36 }
 0x302   : > { %v3019_v54 = vpop.permute.xlu0 %3018  ;;  %v10510_v39 = vpop.f32.mrf.mxu1  ;;  %4663 = vperm.xlu1 %11655, %v4633_v26  }
 0x303   : > { %vm3054_vm13 = vcmp.eq.s32.totalorder %v3019_v54, 1  ;;  %4866 = vperm.xlu0 %11654, %v4834_v28   ;;  %v3108_v28 = vld [vmem:[#allocation3 + $0x7f] sm:$0xff]  ;;  %v3109_v54 = vld [vmem:[#allocation3 + $0x87] sm:$0xff] }
 0x304   : > { %vm9709_vm14 = vmpackc.low %vm3054_vm13, %vm3053_vm12  ;;  %v10511_v1 = vpop.f32.mrf.mxu1  ;;  %v9713_v60 = vpack.c.bf16 %v3109_v54, %v3108_v28  ;;  %v18011_v28 = vmov 0  }
 0x305   : > { %v13783_v13 = vadd.f32 %v10511_v1, %v10510_v39  ;;  %9711 = vmatmul.mubr.msk.bf16.gmra.mxu1 %vm9709_vm14, %v9710_v40  ;;  %v3223_v26 = vpop.permute.xlu1 %3222  ;;  %2857 = vmatmul.mubr.bf16.gmra.mxu0 %v2421_v53  ;;  %v9826_v39 = vld [vmem:[%s17989_s29 + $0x188] sm:$0xff]  ;;  %v4635_v40 = vsel %vm4614_vm15, 1, %v17895_v3  ;;  %v9849_v3 = vld [vmem:[%s17989_s29 + $0x240] sm:$0xff]  ;;  %v4837_v54 = vsel %vm4816_vm2, 1, %v18011_v28  ;;  %vm3713_vm14 = vcmp.eq.s32.totalorder %v13480_v61, 1 }
 0x306   : > { %v13788_v36 = vpop.permute.xlu0 %3689  ;;  %v13790_v49 = vpop.f32.mrf.mxu1  ;;  %4869 = vperm.xlu1 %11655, %v4835_v59   ;;  %9611 = vmatprep.mubr.msk.bf16.mxu0 %vm9609_vm0, %v9610_v57  ;;  %v2422_v57 = vpack.c.bf16 %v13800_v4, %v13800_v4  ;;  %vm4615_vm3 = vcmp.ne.f32.partialorder %v9826_v39, 0.0  ;;  %vm3256_vm4 = vcmp.eq.s32.totalorder %v3223_v26, 1  ;;  %vm4817_vm8 = vcmp.ne.f32.partialorder %v9849_v3, 0.0  ;;  %v9850_v26 = vld [vmem:[%s17989_s29 + $0x248] sm:$0xff]  ;;  %v3111_v3 = vld [vmem:[#allocation3 + $0x97] sm:$0xff] }
 0x307   : > { %4666 = vperm.xlu0 %11654, %v4634_v35   ;;  %v9827_v35 = vld [vmem:[%s17989_s29 + $0x190] sm:$0xff]  ;;  %v4636_v4 = vsel %vm4615_vm3, 1, %v18011_v28  ;;  %vm4818_vm13 = vcmp.ne.f32.partialorder %v9850_v26, 0.0  ;;  %vm3712_vm15 = vcmp.eq.s32.totalorder %v13482_v46, 1  ;;  %v3566_v61 = vld [vmem:[#allocation3 + $0x20] sm:$0xff] }
 0x308   : > { %v13797_v53 = vpop.f32.mrf.mxu1  ;;  %vm4616_vm7 = vcmp.ne.f32.partialorder %v9827_v35, 0.0  ;;  %v9851_v26 = vld [vmem:[%s17989_s29 + $0x250] sm:$0xff]  ;;  %v4839_v46 = vsel %vm4818_vm13, 1, %v18011_v28  ;;  %vm9765_vm1 = vmpackc.low %vm3713_vm14, %vm3712_vm15 }
 0x309   : > { %v3022_v1 = vpop.permute.xlu1 %3021  ;;  %v4637_v23 = vsel %vm4616_vm7, 1, %v18011_v28  ;;  %vm4819_vm3 = vcmp.ne.f32.partialorder %v9851_v26, 0.0  ;;  %vm3714_vm7 = vcmp.eq.s32.totalorder %v13523_v5, 1  ;;  %v3112_v5 = vld [vmem:[#allocation3 + $0x9f] sm:$0xff] }
 0x30a   : > { %v3226_v59 = vpop.permute.xlu0 %3225  ;;  %v10516_v22 = vpop.f32.mrf.mxu1  ;;  %4669 = vperm.xlu1 %11655, %v4635_v40   ;;  %vm3055_vm10 = vcmp.eq.s32.totalorder %v3022_v1, 1 }
 0x30b   : > { %vm3257_vm5 = vcmp.eq.s32.totalorder %v3226_v59, 1  ;;  %4872 = vperm.xlu0 %11654, %v4836_v16   ;;  %v18012_v59 = vmov 0.0  }
 0x30c   : > { %vm9712_vm6 = vmpackc.low %vm3257_vm5, %vm3256_vm4  ;;  %v10517_v39 = vpop.f32.mrf.mxu1 }
 0x30d   : > { %v13813_v29 = vadd.f32 %v10517_v39, %v10516_v22  ;;  %9714 = vmatprep.mubr.msk.bf16.mxu1 %vm9712_vm6, %v9713_v60  ;;  %v13815_v40 = vpop.permute.xlu1 %3692  ;;  %2865 = vmatmul.mubr.bf16.gmra.mxu0 %v2422_v57  ;;  %v3564_v22 = vld [vmem:[#allocation3 + $0x10] sm:$0xff]  ;;  %v3565_v39 = vld [vmem:[#allocation3 + $0x18] sm:$0xff]  ;;  %v4838_v57 = vsel %vm4817_vm8, 1, %v18011_v28  ;;  %vm3715_vm6 = vcmp.eq.s32.totalorder %v13521_v14, 1  ;;  %v9854_v14 = vld [vmem:[%s17989_s29 + $0x268] sm:$0xff] }
 0x30e   : > { %v3025_v16 = vpop.permute.xlu0 %3024  ;;  %v13820_v19 = vpop.f32.mrf.mxu1  ;;  %4875 = vperm.xlu1 %11655, %v4837_v54   ;;  %11250 = vmatprep.mubr.msk.bf16.mxu0 %vm17949_vm9, %v18012_v59  ;;  %v9828_v60 = vld [vmem:[%s17989_s29 + $0x198] sm:$0xff]  ;;  %v9766_v56 = vpack.c.bf16 %v3565_v39, %v3564_v22 }
 0x30f   : > { %vm3056_vm11 = vcmp.eq.s32.totalorder %v3025_v16, 1  ;;  %4672 = vperm.xlu0 %11654, %v4636_v4   ;;  %vm4617_vm0 = vcmp.ne.f32.partialorder %v9828_v60, 0.0  ;;  %v9829_v4 = vld [vmem:[%s17989_s29 + $0x1a0] sm:$0xff]  ;;  %v3110_v16 = vld [vmem:[#allocation3 + $0x8f] sm:$0xff] }
 0x310   : > { %vm9715_vm12 = vmpackc.low %vm3056_vm11, %vm3055_vm10  ;;  %v13829_v21 = vpop.f32.mrf.mxu1  ;;  %v4638_v22 = vsel %vm4617_vm0, 1, %v18011_v28  ;;  %vm4618_vm2 = vcmp.ne.f32.partialorder %v9829_v4, 0.0  ;;  %v9831_v4 = vld [vmem:[%s17989_s29 + $0x1b0] sm:$0xff] }
 0x311   : > { %9717 = vmatmul.mubr.msk.bf16.gmra.mxu1 %vm9715_vm12, %v9716_v62  ;;  %v3229_v54 = vpop.permute.xlu1 %3228  ;;  %vm9768_vm12 = vmpackc.low %vm3715_vm6, %vm3714_vm7  ;;  %vm4620_vm0 = vcmp.ne.f32.partialorder %v9831_v4, 0.0 }
 0x312   : > { %v13838_v1 = vpop.permute.xlu0 %3695  ;;  %v10522_v35 = vpop.f32.mrf.mxu1  ;;  %4675 = vperm.xlu1 %11655, %v4637_v23   ;;  %v9719_v23 = vpack.c.bf16 %v3111_v3, %v3110_v16  ;;  %vm3258_vm4 = vcmp.eq.s32.totalorder %v3229_v54, 1  ;;  %v4639_v16 = vsel %vm4618_vm2, 1, %v18011_v28  ;;  %v9722_v54 = vpack.c.bf16 %v2910_v58, %v2909_v24 }
 0x313   : > { %4878 = vperm.xlu0 %11654, %v4838_v57   ;;  %v9852_v57 = vld [vmem:[%s17989_s29 + $0x258] sm:$0xff]  ;;  %vm3717_vm2 = vcmp.eq.s32.totalorder %v13571_v41, 1  ;;  %v9728_v41 = vpack.c.bf16 %v2912_v48, %v2911_v0 }
 0x314   : > { %v10523_v62 = vpop.f32.mrf.mxu1  ;;  %vm4820_vm10 = vcmp.ne.f32.partialorder %v9852_v57, 0.0 }
 0x315   : > { %v13847_v39 = vadd.f32 %v10523_v62, %v10522_v35  ;;  %v3028_v60 = vpop.permute.xlu1 %3027  ;;  %11251 = vmatmul.mubr.msk.bf16.vlgmr.msra.gmra.mxu0 %vm9765_vm1, %v9766_v56  ;;  %v3567_v35 = vld [vmem:[#allocation3 + $0x28] sm:$0xff]  ;;  %v9830_v56 = vld [vmem:[%s17989_s29 + $0x1a8] sm:$0xff]  ;;  %v4841_v58 = vsel %vm4820_vm10, 1, %v18011_v28  ;;  %vm4821_vm1 = vcmp.ne.f32.partialorder %v9853_v18, 0.0 }
 0x316   : > { %v3232_v51 = vpop.permute.xlu0 %3231  ;;  %v13852_v34 = vpop.f32.mrf.mxu1  ;;  %4881 = vperm.xlu1 %11655, %v4839_v46   ;;  %11254 = vmatprep.mubr.msk.bf16.mxu0 %vm17949_vm9, %v18012_v59  ;;  %v4840_v46 = vsel %vm4819_vm3, 1, %v18011_v28  ;;  %vm4619_vm11 = vcmp.ne.f32.partialorder %v9830_v56, 0.0  ;;  %vm3057_vm13 = vcmp.eq.s32.totalorder %v3028_v60, 1  ;;  %v3569_v56 = vld [vmem:[#allocation3 + $0x38] sm:$0xff]  ;;  %vm3716_vm3 = vcmp.eq.s32.totalorder %v13573_v50, 1 }
 0x317   : > { %vm3259_vm5 = vcmp.eq.s32.totalorder %v3232_v51, 1  ;;  %4678 = vperm.xlu0 %11654, %v4638_v22   ;;  %v9769_v51 = vpack.c.bf16 %v3567_v35, %v3566_v61  ;;  %v4640_v26 = vsel %vm4619_vm11, 1, %v18011_v28  ;;  %v3113_v61 = vld [vmem:[#allocation3 + $0xa7] sm:$0xff]  ;;  %vm9771_vm6 = vmpackc.low %vm3717_vm2, %vm3716_vm3  ;;  %vm3718_vm2 = vcmp.eq.s32.totalorder %v13628_v7, 1  ;;  %v3572_v7 = vld [vmem:[#allocation3 + $0x50] sm:$0xff] }
 0x318   : > { %vm9718_vm8 = vmpackc.low %vm3259_vm5, %vm3258_vm4  ;;  %v13863_v3 = vpop.f32.mrf.mxu1  ;;  %vm4822_vm4 = vcmp.ne.f32.partialorder %v9854_v14, 0.0  ;;  %v9856_v14 = vld [vmem:[%s17989_s29 + $0x278] sm:$0xff] }
 0x319   : > { %9720 = vmatprep.mubr.msk.bf16.mxu1 %vm9718_vm8, %v9719_v23  ;;  %v13867_v62 = vpop.permute.xlu1 %3698  ;;  %v4843_v18 = vsel %vm4822_vm4, 1, %v18011_v28 }
 0x31a   : > { %v3031_v22 = vpop.permute.xlu0 %3030  ;;  %v10528_v33 = vpop.f32.mrf.mxu1  ;;  %4681 = vperm.xlu1 %11655, %v4639_v16   ;;  %v9832_v16 = vld [vmem:[%s17989_s29 + $0x1b8] sm:$0xff] }
 0x31b   : > { %vm3058_vm14 = vcmp.eq.s32.totalorder %v3031_v22, 1  ;;  %4884 = vperm.xlu0 %11654, %v4840_v46   ;;  %v4641_v46 = vsel %vm4620_vm0, 1, %v18011_v28  ;;  %vm4621_vm5 = vcmp.ne.f32.partialorder %v9832_v16, 0.0  ;;  %vm4824_vm0 = vcmp.ne.f32.partialorder %v9856_v14, 0.0 }
 0x31c   : > { %vm9721_vm15 = vmpackc.low %vm3058_vm14, %vm3057_vm13  ;;  %v10529_v24 = vpop.f32.mrf.mxu1 }
 0x31d   : > { %v13881_v23 = vadd.f32 %v10529_v24, %v10528_v33  ;;  %9723 = vmatmul.mubr.msk.bf16.gmra.mxu1 %vm9721_vm15, %v9722_v54  ;;  %v3235_v57 = vpop.permute.xlu1 %3234  ;;  %11255 = vmatmul.mubr.msk.bf16.gmra.mxu0 %vm9768_vm12, %v9769_v51  ;;  %v3568_v33 = vld [vmem:[#allocation3 + $0x30] sm:$0xff]  ;;  %v4842_v51 = vsel %vm4821_vm1, 1, %v18011_v28  ;;  %vm3719_vm1 = vcmp.eq.s32.totalorder %v13615_v10, 1 }
 0x31e   : > { %v13886_v60 = vpop.permute.xlu0 %3701  ;;  %v13888_v35 = vpop.f32.mrf.mxu1  ;;  %4887 = vperm.xlu1 %11655, %v4841_v58   ;;  %11258 = vmatprep.mubr.msk.bf16.mxu0 %vm17949_vm9, %v18012_v59  ;;  %v9725_v58 = vpack.c.bf16 %v3113_v61, %v3112_v5  ;;  %v9772_v24 = vpack.c.bf16 %v3569_v56, %v3568_v33  ;;  %vm3260_vm7 = vcmp.eq.s32.totalorder %v3235_v57, 1  ;;  %v4642_v61 = vsel %vm4621_vm5, 1, %v18011_v28  ;;  %v3114_v57 = vld [vmem:[#allocation3 + $0xaf] sm:$0xff] }
 0x31f   : > { %4684 = vperm.xlu0 %11654, %v4640_v26   ;;  %v9833_v26 = vld [vmem:[%s17989_s29 + $0x1c0] sm:$0xff] }
 0x320   : > { %v13899_v54 = vpop.f32.mrf.mxu1  ;;  %vm4622_vm11 = vcmp.ne.f32.partialorder %v9833_v26, 0.0  ;;  %v9835_v26 = vld [vmem:[%s17989_s29 + $0x1d0] sm:$0xff] }
 0x321   : > { %18013 = vst [vmem:[#allocation29_spill] sm:$0xff] %v13899_v54  ;;  %v3034_v22 = vpop.permute.xlu1 %3033  ;;  %v9855_v54 = vld [vmem:[%s17989_s29 + $0x270] sm:$0xff]  ;;  %v4643_v0 = vsel %vm4622_vm11, 1, %v18011_v28 }
 0x322   : > { %v3238_v4 = vpop.permute.xlu0 %3237  ;;  %v10534_v2 = vpop.f32.mrf.mxu1  ;;  %4687 = vperm.xlu1 %11655, %v4641_v46   ;;  %vm4823_vm12 = vcmp.ne.f32.partialorder %v9855_v54, 0.0  ;;  %vm3059_vm13 = vcmp.eq.s32.totalorder %v3034_v22, 1 }
 0x323   : > { %vm3261_vm8 = vcmp.eq.s32.totalorder %v3238_v4, 1  ;;  %4890 = vperm.xlu0 %11654, %v4842_v51   ;;  %v3571_v51 = vld [vmem:[#allocation3 + $0x48] sm:$0xff] }
 0x324   : > { %vm9724_vm10 = vmpackc.low %vm3261_vm8, %vm3260_vm7  ;;  %v10535_v5 = vpop.f32.mrf.mxu1  ;;  %vm4624_vm7 = vcmp.ne.f32.partialorder %v9835_v26, 0.0 }
 0x325   : > { %v13916_v33 = vadd.f32 %v10535_v5, %v10534_v2  ;;  %9726 = vmatprep.mubr.msk.bf16.mxu1 %vm9724_vm10, %v9725_v58  ;;  %v13918_v56 = vpop.permute.xlu1 %3704  ;;  %v10392_v50 = vpop.f32.mrf.mxu0  ;;  %11259 = vmatmul.mubr.msk.bf16.gmra.mxu0 %vm9771_vm6, %v9772_v24  ;;  %v3570_v2 = vld [vmem:[#allocation3 + $0x40] sm:$0xff]  ;;  %v9731_v5 = vpack.c.bf16 %v3114_v57, %v3114_v57  ;;  %v2913_v57 = vld [vmem:[#allocation3 + $0xae] sm:$0xff]  ;;  %vm9774_vm6 = vmpackc.low %vm3719_vm1, %vm3718_vm2 }
 0x326   : > { %v3037_v16 = vpop.permute.xlu0 %3036  ;;  %v10537_v46 = vpop.f32.mrf.mxu1  ;;  %4893 = vperm.xlu1 %11655, %v4843_v18   ;;  %11262 = vmatprep.mubr.msk.bf16.mxu0 %vm17949_vm9, %v18012_v59  ;;  %v9834_v58 = vld [vmem:[%s17989_s29 + $0x1c8] sm:$0xff]  ;;  %v4844_v18 = vsel %vm4823_vm12, 1, %v18011_v28  ;;  %v9734_v14 = vpack.c.bf16 %v2913_v57, %v2913_v57 }
 0x327   : > { %vm3060_vm14 = vcmp.eq.s32.totalorder %v3037_v16, 1  ;;  %4690 = vperm.xlu0 %11654, %v4642_v61   ;;  %v10393_v48 = vpop.f32.mrf.mxu0  ;;  %v9775_v61 = vpack.c.bf16 %v3571_v51, %v3570_v2  ;;  %vm4623_vm3 = vcmp.ne.f32.partialorder %v9834_v58, 0.0  ;;  %v4845_v2 = vsel %vm4824_vm0, 1, %v18011_v28  ;;  %v3573_v58 = vld [vmem:[#allocation3 + $0x58] sm:$0xff] }
 0x328   : > { %vm9727_vm15 = vmpackc.low %vm3060_vm14, %vm3059_vm13  ;;  %v10394_v24 = vadd.f32 %v10393_v48, %v10392_v50  ;;  %v10538_v4 = vpop.f32.mrf.mxu1  ;;  %v10479_v51 = vadd.f32 %v13566_v8, %v13555_v12  ;;  %v4644_v48 = vsel %vm4623_vm3, 1, %v18011_v28  ;;  %v9858_v12 = vld [vmem:[%s17989_s29 + $0x288] sm:$0xff]  ;;  %vm3721_vm13 = vcmp.eq.s32.totalorder %v13679_v27, 1 }
 0x329   : > { %9729 = vmatmul.mubr.msk.bf16.gmra.mxu1 %vm9727_vm15, %v9728_v41  ;;  %v3241_v22 = vpop.permute.xlu1 %3240  ;;  %v10395_v16 = vpop.f32.mrf.mxu0  ;;  %v9857_v41 = vld [vmem:[%s17989_s29 + $0x280] sm:$0xff]  ;;  %v9836_v4 = vld [vmem:[%s17989_s29 + $0x1d8] sm:$0xff]  ;;  %vm4826_vm12 = vcmp.ne.f32.partialorder %v9858_v12, 0.0  ;;  %vm3720_vm15 = vcmp.eq.s32.totalorder %v13652_v43, 1  ;;  %v9838_v27 = vld [vmem:[%s17989_s29 + $0x1e8] sm:$0xff] }
 0x32a   : > { %v13938_v50 = vadd.f32 %v13550_v31, %v10394_v24  ;;  %vm3262_vm4 = vcmp.eq.s32.totalorder %v3241_v22, 1  ;;  %v13940_v54 = vpop.permute.xlu0 %3707  ;;  %4693 = vperm.xlu1 %11655, %v4643_v0   ;;  %vm4825_vm8 = vcmp.ne.f32.partialorder %v9857_v41, 0.0  ;;  %v9778_v41 = vpack.c.bf16 %v3573_v58, %v3572_v7  ;;  %vm9777_vm0 = vmpackc.low %vm3721_vm13, %vm3720_vm15  ;;  %v9860_v43 = vld [vmem:[%s17989_s29 + $0x298] sm:$0xff] }
 0x32b   : > { %vm9730_vm5 = vmpackc.low %vm3262_vm4, %vm3262_vm4  ;;  %4896 = vperm.xlu0 %11654, %v4844_v18   ;;  %v10396_v46 = vpop.f32.mrf.mxu0  ;;  %vm4625_vm14 = vcmp.ne.f32.partialorder %v9836_v4, 0.0  ;;  %vm4828_vm3 = vcmp.ne.f32.partialorder %v9860_v43, 0.0  ;;  %vm3723_vm4 = vcmp.eq.s32.totalorder %v13741_v55, 1  ;;  %v10026_v55 = vld [vmem:[%s17989_s29 + $0x350] sm:$0xff] }
 0x32c   : > { %v10397_v31 = vadd.f32 %v10396_v46, %v10395_v16  ;;  %9732 = vmatprep.mubr.msk.bf16.mxu1 %vm9730_vm5, %v9731_v5  ;;  %v4645_v5 = vsel %vm4624_vm7, 1, %v18011_v28  ;;  %v4846_v16 = vsel %vm4825_vm8, 1, %v18011_v28  ;;  %v9837_v46 = vld [vmem:[%s17989_s29 + $0x1e0] sm:$0xff]  ;;  %vm4627_vm5 = vcmp.ne.f32.partialorder %v9838_v27, 0.0 }
 0x32d   : > { %v13955_v0 = vpop.permute.xlu1 %3710  ;;  %v10398_v24 = vpop.f32.mrf.mxu0  ;;  %11263 = vmatmul.mubr.msk.bf16.gmra.mxu0 %vm9774_vm6, %v9775_v61  ;;  %vm4626_vm1 = vcmp.ne.f32.partialorder %v9837_v46, 0.0  ;;  %v10025_v46 = vld [vmem:[%s17989_s29 + $0x348] sm:$0xff]  ;;  %vm3722_vm6 = vcmp.eq.s32.totalorder %v13715_v44, 1  ;;  %v10027_v44 = vld [vmem:[%s17989_s29 + $0x358] sm:$0xff]  ;;  %vm5484_vm13 = vcmp.ne.f32.partialorder %v10026_v55, 0.0 }
 0x32e   : > { %v13960_v8 = vadd.f32 %v10479_v51, %v10397_v31  ;;  %v3040_v10 = vpop.permute.xlu0 %3039  ;;  %4899 = vperm.xlu1 %11655, %v4845_v2   ;;  %11266 = vmatprep.mubr.msk.bf16.mxu0 %vm17949_vm9, %v18012_v59  ;;  %v9859_v51 = vld [vmem:[%s17989_s29 + $0x290] sm:$0xff]  ;;  %vm9780_vm7 = vmpackc.low %vm3723_vm4, %vm3722_vm6  ;;  %vm5483_vm8 = vcmp.ne.f32.partialorder %v10025_v46, 0.0 }
 0x32f   : > { %vm3061_vm10 = vcmp.eq.s32.totalorder %v3040_v10, 1  ;;  %4696 = vperm.xlu0 %11654, %v4644_v48   ;;  %v10399_v18 = vpop.f32.mrf.mxu0  ;;  %v4847_v48 = vsel %vm4826_vm12, 1, %v18011_v28  ;;  %vm4827_vm2 = vcmp.ne.f32.partialorder %v9859_v51, 0.0  ;;  %vm3725_vm12 = vcmp.eq.s32.totalorder %v13788_v36, 1  ;;  %v10030_v36 = vld [vmem:[%s17989_s29 + $0x370] sm:$0xff] }
 0x330   : > { %vm9733_vm11 = vmpackc.low %vm3061_vm10, %vm3061_vm10  ;;  %v10400_v22 = vadd.f32 %v10399_v18, %v10398_v24  ;;  %v10485_v24 = vadd.f32 %v13611_v52, %v13601_v38  ;;  %v3574_v38 = vld [vmem:[#allocation3 + $0x60] sm:$0xff]  ;;  %v3575_v52 = vld [vmem:[#allocation3 + $0x68] sm:$0xff]  ;;  %v4647_v18 = vsel %vm4626_vm1, 1, %v18011_v28  ;;  %vm5488_vm4 = vcmp.ne.f32.partialorder %v10030_v36, 0.0 }
 0x331   : > { %9735 = vmatmul.mubr.msk.bf16.gmra.mxu1 %vm9733_vm11, %v9734_v14  ;;  %v13971_v61 = vpop.permute.xlu1 %4222  ;;  %v10401_v57 = vpop.f32.mrf.mxu0  ;;  %v4646_v14 = vsel %vm4625_vm14, 1, %v18011_v28  ;;  %vm5485_vm11 = vcmp.ne.f32.partialorder %v10027_v44, 0.0  ;;  %vm3724_vm14 = vcmp.eq.s32.totalorder %v13765_v20, 1  ;;  %v5505_v44 = vsel %vm5484_vm13, 1, %v18011_v28  ;;  %v10031_v20 = vld [vmem:[%s17989_s29 + $0x378] sm:$0xff] }
 0x332   : > { %v13977_v26 = vadd.f32 %v13596_v63, %v10400_v22  ;;  %v13979_v2 = vpop.permute.xlu0 %4219  ;;  %4699 = vperm.xlu1 %11655, %v4645_v5   ;;  %v4848_v22 = vsel %vm4827_vm2, 1, %v18011_v28  ;;  %vm9783_vm15 = vmpackc.low %vm3725_vm12, %vm3724_vm14  ;;  %vm5489_vm2 = vcmp.ne.f32.partialorder %v10031_v20, 0.0  ;;  %v10503_v20 = vadd.f32 %v13727_v17, %v13720_v9  ;;  %v3580_v9 = vld [vmem:[#allocation3 + $0x90] sm:$0xff]  ;;  %v3581_v17 = vld [vmem:[#allocation3 + $0x98] sm:$0xff] }
 0x333   : > { %4902 = vperm.xlu0 %11654, %v4846_v16   ;;  %v10402_v31 = vpop.f32.mrf.mxu0  ;;  %vm3728_vm13 = vcmp.eq.s32.totalorder %v13867_v62, 1  ;;  %v10035_v62 = vld [vmem:[%s17989_s29 + $0x398] sm:$0xff] }
 0x334   : > { %v10403_v63 = vadd.f32 %v10402_v31, %v10401_v57 }
 0x335   : > { %v13991_v12 = vpop.permute.xlu1 %4228  ;;  %v10404_v10 = vpop.f32.mrf.mxu0  ;;  %11267 = vmatmul.mubr.msk.bf16.gmra.mxu0 %vm9777_vm0, %v9778_v41  ;;  %v9781_v41 = vpack.c.bf16 %v3575_v52, %v3574_v38 }
 0x336   : > { %18014 = vst [vmem:[#allocation30_spill] sm:$0xff] %v13991_v12  ;;  %v13996_v7 = vadd.f32 %v10485_v24, %v10403_v63  ;;  %v13998_v58 = vpop.permute.xlu0 %4225  ;;  %4905 = vperm.xlu1 %11655, %v4847_v48   ;;  %11270 = vmatprep.mubr.msk.bf16.mxu0 %vm17949_vm9, %v18012_v59  ;;  %v9839_v48 = vld [vmem:[%s17989_s29 + $0x1f0] sm:$0xff]  ;;  %v4849_v63 = vsel %vm4828_vm3, 1, %v18011_v28  ;;  %vm3727_vm3 = vcmp.eq.s32.totalorder %v13838_v1, 1 }
 0x337   : > { %18015 = vst [vmem:[#allocation31_spill] sm:$0xff] %v13998_v58  ;;  %4702 = vperm.xlu0 %11654, %v4646_v14   ;;  %v10405_v4 = vpop.f32.mrf.mxu0  ;;  %v10491_v14 = vadd.f32 %v13648_v45, %v13641_v47  ;;  %vm4628_vm10 = vcmp.ne.f32.partialorder %v9839_v48, 0.0  ;;  %v3576_v47 = vld [vmem:[#allocation3 + $0x70] sm:$0xff]  ;;  %v3577_v45 = vld [vmem:[#allocation3 + $0x78] sm:$0xff]  ;;  %v10029_v48 = vld [vmem:[%s17989_s29 + $0x368] sm:$0xff] }
 0x338   : > { %v10406_v5 = vadd.f32 %v10405_v4, %v10404_v10  ;;  %v4648_v10 = vsel %vm4627_vm5, 1, %v18011_v28  ;;  %v9784_v46 = vpack.c.bf16 %v3577_v45, %v3576_v47  ;;  %vm5487_vm0 = vcmp.ne.f32.partialorder %v10029_v48, 0.0  ;;  %v9807_v1 = vld [vmem:[%s17989_s29 + $0xf0] sm:$0xff] }
 0x339   : > { %v14008_v16 = vpop.permute.xlu1 %4234  ;;  %v10407_v57 = vpop.f32.mrf.mxu0  ;;  %vm3726_vm5 = vcmp.eq.s32.totalorder %v13815_v40, 1  ;;  %v10033_v40 = vld [vmem:[%s17989_s29 + $0x388] sm:$0xff]  ;;  %vm4385_vm12 = vcmp.ne.f32.partialorder %v9807_v1, 0.0 }
 0x33a   : > { %18016 = vst [vmem:[#allocation32_spill] sm:$0xff] %v14008_v16  ;;  %v14014_v51 = vadd.f32 %v13636_v15, %v10406_v5  ;;  %v14016_v31 = vpop.permute.xlu0 %4231  ;;  %4705 = vperm.xlu1 %11655, %v4647_v18   ;;  %v5504_v18 = vsel %vm5483_vm8, 1, %v18011_v28  ;;  %vm9786_vm6 = vmpackc.low %vm3727_vm3, %vm3726_vm5 }
 0x33b   : > { %18017 = vst [vmem:[#allocation33_spill] sm:$0xff] %v14016_v31  ;;  %4908 = vperm.xlu0 %11654, %v4848_v22   ;;  %v10408_v24 = vpop.f32.mrf.mxu0  ;;  %v4649_v22 = vsel %vm4628_vm10, 1, %v18011_v28  ;;  %vm5491_vm10 = vcmp.ne.f32.partialorder %v10033_v40, 0.0 }
 0x33c   : > { %v10409_v15 = vadd.f32 %v10408_v24, %v10407_v57  ;;  %v5512_v40 = vsel %vm5491_vm10, 1, %v18011_v28  ;;  %vm3732_vm10 = vcmp.eq.s32.totalorder %v13955_v0, 1 }
 0x33d   : > { %v14028_v43 = vpop.permute.xlu1 %4240  ;;  %v10410_v38 = vpop.f32.mrf.mxu0  ;;  %11271 = vmatmul.mubr.msk.bf16.gmra.mxu0 %vm9780_vm7, %v9781_v41 }
 0x33e   : > { %18018 = vst [vmem:[#allocation34_spill] sm:$0xff] %v14028_v43  ;;  %v14033_v52 = vadd.f32 %v10491_v14, %v10409_v15  ;;  %v14035_v27 = vpop.permute.xlu0 %4237  ;;  %4911 = vperm.xlu1 %11655, %v4849_v63   ;;  %11274 = vmatprep.mubr.msk.bf16.mxu0 %vm17949_vm9, %v18012_v59  ;;  %v10028_v14 = vld [vmem:[%s17989_s29 + $0x360] sm:$0xff] }
 0x33f   : > { %18019 = vst [vmem:[#allocation35_spill] sm:$0xff] %v14035_v27  ;;  %4708 = vperm.xlu0 %11654, %v4648_v10   ;;  %v10411_v4 = vpop.f32.mrf.mxu0  ;;  %v5506_v10 = vsel %vm5485_vm11, 1, %v18011_v28  ;;  %vm5486_vm1 = vcmp.ne.f32.partialorder %v10028_v14, 0.0  ;;  %vm3729_vm11 = vcmp.eq.s32.totalorder %v13886_v60, 1  ;;  %v9809_v60 = vld [vmem:[%s17989_s29 + $0x100] sm:$0xff] }
 0x340   : > { %v10412_v5 = vadd.f32 %v10411_v4, %v10410_v38  ;;  %v10497_v38 = vadd.f32 %v13688_v37, %v13681_v42  ;;  %v3578_v42 = vld [vmem:[#allocation3 + $0x80] sm:$0xff]  ;;  %v3579_v37 = vld [vmem:[#allocation3 + $0x88] sm:$0xff]  ;;  %vm9789_vm14 = vmpackc.low %vm3729_vm11, %vm3728_vm13  ;;  %vm4387_vm3 = vcmp.ne.f32.partialorder %v9809_v60, 0.0 }
 0x341   : > { %v14045_v57 = vpop.permute.xlu1 %4246  ;;  %v10413_v41 = vpop.f32.mrf.mxu0  ;;  %v9787_v14 = vpack.c.bf16 %v3579_v37, %v3578_v42  ;;  %v5509_v42 = vsel %vm5488_vm4, 1, %v18011_v28  ;;  %vm3730_vm4 = vcmp.eq.s32.totalorder %v13918_v56, 1  ;;  %v4408_v60 = vsel %vm4387_vm3, 1, %v18011_v28  ;;  %v10037_v56 = vld [vmem:[%s17989_s29 + $0x3a8] sm:$0xff] }
 0x342   : > { %18020 = vst [vmem:[#allocation36_spill] sm:$0xff] %v14045_v57  ;;  %v14051_v24 = vadd.f32 %v13674_v30, %v10412_v5  ;;  %v14053_v63 = vpop.permute.xlu0 %4243  ;;  %5526 = vperm.xlu1 %11655, %v5504_v18   ;;  %v5508_v5 = vsel %vm5487_vm0, 1, %v18011_v28  ;;  %v11728_v57 = vld [vmem:[%s12065_s4 + $0x338] sm:$0xff]  }
 0x343   : > { %18021 = vst [vmem:[#allocation37_spill] sm:$0xff] %v14053_v63  ;;  %4711 = vperm.xlu0 %11654, %v4649_v22   ;;  %v10414_v15 = vpop.f32.mrf.mxu0  ;;  %10723 = vmatprep.subr.bf16.mxu1 %v11728_v57 }
 0x344   : > { %v10415_v30 = vadd.f32 %v10414_v15, %v10413_v41  ;;  %v5507_v41 = vsel %vm5486_vm1, 1, %v18011_v28  ;;  %v9806_v15 = vld [vmem:[%s17989_s29 + $0xe8] sm:$0xff]  ;;  %vm5493_vm1 = vcmp.ne.f32.partialorder %v10035_v62, 0.0 }
 0x345   : > { %v14065_v47 = vpop.permute.xlu1 %4252  ;;  %v10416_v45 = vpop.f32.mrf.mxu0  ;;  %11275 = vmatmul.mubr.msk.bf16.gmra.mxu0 %vm9783_vm15, %v9784_v46  ;;  %vm4384_vm7 = vcmp.ne.f32.partialorder %v9806_v15, 0.0 }
 0x346   : > { %18022 = vst [vmem:[#allocation38_spill] sm:$0xff] %v14065_v47  ;;  %v14070_v55 = vadd.f32 %v10497_v38, %v10415_v30  ;;  %v14072_v4 = vpop.permute.xlu0 %4249  ;;  %5532 = vperm.xlu1 %11655, %v5506_v10   ;;  %11278 = vmatprep.mubr.msk.bf16.mxu0 %vm17949_vm9, %v18012_v59  ;;  %v10032_v30 = vld [vmem:[%s17989_s29 + $0x380] sm:$0xff] }
 0x347   : > { %18023 = vst [vmem:[#allocation39_spill] sm:$0xff] %v14072_v4  ;;  %5529 = vperm.xlu0 %11654, %v5505_v44   ;;  %v10417_v18 = vpop.f32.mrf.mxu0  ;;  %vm5490_vm8 = vcmp.ne.f32.partialorder %v10032_v30, 0.0 }
 0x348   : > { %v10418_v22 = vadd.f32 %v10417_v18, %v10416_v45  ;;  %v5510_v45 = vsel %vm5489_vm2, 1, %v18011_v28  ;;  %vm3731_vm2 = vcmp.eq.s32.totalorder %v13940_v54, 1 }
 0x349   : > { %v14082_v46 = vpop.permute.xlu1 %4258  ;;  %v10419_v48 = vpop.f32.mrf.mxu0  ;;  %vm9792_vm5 = vmpackc.low %vm3731_vm2, %vm3730_vm4 }
 0x34a   : > { %18024 = vst [vmem:[#allocation40_spill] sm:$0xff] %v14082_v46  ;;  %v14088_v10 = vadd.f32 %v13713_v25, %v10418_v22  ;;  %v14090_v38 = vpop.permute.xlu0 %4255  ;;  %5538 = vperm.xlu1 %11655, %v5508_v5  }
 0x34b   : > { %18025 = vst [vmem:[#allocation41_spill] sm:$0xff] %v14090_v38  ;;  %5535 = vperm.xlu0 %11654, %v5507_v41   ;;  %v10420_v44 = vpop.f32.mrf.mxu0  ;;  %v4405_v41 = vsel %vm4384_vm7, 1, %v18011_v28 }
 0x34c   : > { %v10421_v25 = vadd.f32 %v10420_v44, %v10419_v48  ;;  %v9790_v44 = vpack.c.bf16 %v3581_v17, %v3580_v9  ;;  %v10509_v9 = vadd.f32 %v13761_v6, %v13754_v32  ;;  %v4406_v17 = vsel %vm4385_vm12, 1, %v18011_v28  ;;  %v3582_v32 = vld [vmem:[#allocation3 + $0xa0] sm:$0xff]  ;;  %v3583_v6 = vld [vmem:[#allocation3 + $0xa8] sm:$0xff]  ;;  %vm9795_vm12 = vmpackc.low %vm3732_vm10, %vm3732_vm10 }
 0x34d   : > { %v14102_v37 = vpop.permute.xlu1 %4264  ;;  %v10422_v36 = vpop.f32.mrf.mxu0  ;;  %11279 = vmatmul.mubr.msk.bf16.gmra.mxu0 %vm9786_vm6, %v9787_v14  ;;  %v5511_v14 = vsel %vm5490_vm8, 1, %v18011_v28  ;;  %vm5495_vm8 = vcmp.ne.f32.partialorder %v10037_v56, 0.0 }
 0x34e   : > { %18026 = vst [vmem:[#allocation42_spill] sm:$0xff] %v14102_v37  ;;  %v14107_v18 = vadd.f32 %v10503_v20, %v10421_v25  ;;  %v14109_v5 = vpop.permute.xlu0 %4261  ;;  %5544 = vperm.xlu1 %11655, %v5510_v45   ;;  %11282 = vmatprep.mubr.msk.bf16.mxu0 %vm17949_vm9, %v18012_v59  ;;  %v9808_v45 = vld [vmem:[%s17989_s29 + $0xf8] sm:$0xff]  ;;  %v5516_v56 = vsel %vm5495_vm8, 1, %v18011_v28 }
 0x34f   : > { %18027 = vst [vmem:[#allocation43_spill] sm:$0xff] %v14109_v5  ;;  %5541 = vperm.xlu0 %11654, %v5509_v42   ;;  %v10423_v22 = vpop.f32.mrf.mxu0  ;;  %v10034_v42 = vld [vmem:[%s17989_s29 + $0x390] sm:$0xff]  ;;  %vm4386_vm15 = vcmp.ne.f32.partialorder %v9808_v45, 0.0 }
 0x350   : > { %v10424_v48 = vadd.f32 %v10423_v22, %v10422_v36  ;;  %vm5492_vm0 = vcmp.ne.f32.partialorder %v10034_v42, 0.0 }
 0x351   : > { %v14119_v15 = vpop.permute.xlu1 %4270  ;;  %v10425_v30 = vpop.f32.mrf.mxu0  ;;  %v5513_v45 = vsel %vm5492_vm0, 1, %v18011_v28 }
 0x352   : > { %18028 = vst [vmem:[#allocation44_spill] sm:$0xff] %v14119_v15  ;;  %v14125_v20 = vadd.f32 %v13749_v11, %v10424_v48  ;;  %v14127_v25 = vpop.permute.xlu0 %4267  ;;  %4443 = vperm.xlu1 %11655, %v4405_v41  }
 0x353   : > { %18029 = vst [vmem:[#allocation45_spill] sm:$0xff] %v14127_v25  ;;  %5547 = vperm.xlu0 %11654, %v5511_v14   ;;  %v10426_v36 = vpop.f32.mrf.mxu0 }
 0x354   : > { %v10427_v11 = vadd.f32 %v10426_v36, %v10425_v30  ;;  %v4407_v30 = vsel %vm4386_vm15, 1, %v18011_v28 }
 0x355   : > { %v14139_v1 = vpop.permute.xlu1 %4276  ;;  %v10428_v22 = vpop.f32.mrf.mxu0  ;;  %11283 = vmatmul.mubr.msk.bf16.gmra.mxu0 %vm9789_vm14, %v9790_v44 }
 0x356   : > { %18030 = vst [vmem:[#allocation46_spill] sm:$0xff] %v14139_v1  ;;  %v14144_v41 = vadd.f32 %v10509_v9, %v10427_v11  ;;  %v14146_v48 = vpop.permute.xlu0 %4273  ;;  %5550 = vperm.xlu1 %11655, %v5512_v40   ;;  %11286 = vmatprep.mubr.msk.bf16.mxu0 %vm17949_vm9, %v18012_v59  ;;  %v9793_v40 = vpack.c.bf16 %v3583_v6, %v3582_v32  ;;  %v9810_v9 = vld [vmem:[%s17989_s29 + $0x108] sm:$0xff]  ;;  %v5514_v32 = vsel %vm5493_vm1, 1, %v18011_v28 }
 0x357   : > { %18031 = vst [vmem:[#allocation47_spill] sm:$0xff] %v14146_v48  ;;  %4446 = vperm.xlu0 %11654, %v4406_v17   ;;  %v10429_v14 = vpop.f32.mrf.mxu0  ;;  %v10515_v6 = vadd.f32 %v13797_v53, %v13790_v49  ;;  %vm4388_vm6 = vcmp.ne.f32.partialorder %v9810_v9, 0.0  ;;  %v3584_v49 = vld [vmem:[#allocation3 + $0xb0] sm:$0xff]  ;;  %v9811_v53 = vld [vmem:[%s17989_s29 + $0x110] sm:$0xff] }
 0x358   : > { %v10430_v44 = vadd.f32 %v10429_v14, %v10428_v22  ;;  %v10036_v22 = vld [vmem:[%s17989_s29 + $0x3a0] sm:$0xff]  ;;  %vm4389_vm11 = vcmp.ne.f32.partialorder %v9811_v53, 0.0 }
 0x359   : > { %v14156_v42 = vpop.permute.xlu1 %4419  ;;  %v10431_v36 = vpop.f32.mrf.mxu0  ;;  %vm5494_vm7 = vcmp.ne.f32.partialorder %v10036_v22, 0.0 }
 0x35a   : > { %v14162_v11 = vadd.f32 %v13783_v13, %v10430_v44  ;;  %v14164_v17 = vpop.permute.xlu0 %4279  ;;  %4449 = vperm.xlu1 %11655, %v4407_v30   ;;  %v5515_v9 = vsel %vm5494_vm7, 1, %v18011_v28 }
 0x35b   : > { %18032 = vst [vmem:[#allocation48_spill] sm:$0xff] %v14164_v17  ;;  %5553 = vperm.xlu0 %11654, %v5513_v45   ;;  %v10432_v62 = vpop.f32.mrf.mxu0 }
 0x35c   : > { %v10433_v13 = vadd.f32 %v10432_v62, %v10431_v36  ;;  %v4409_v36 = vsel %vm4388_vm6, 1, %v18011_v28 }
 0x35d   : > { %v14176_v14 = vpop.permute.xlu1 %4425  ;;  %v10434_v30 = vpop.f32.mrf.mxu0  ;;  %11287 = vmatmul.mubr.msk.bf16.gmra.mxu0 %vm9792_vm5, %v9793_v40 }
 0x35e   : > { %v14181_v44 = vadd.f32 %v10515_v6, %v10433_v13  ;;  %v14183_v45 = vpop.permute.xlu0 %4422  ;;  %5556 = vperm.xlu1 %11655, %v5514_v32   ;;  %11290 = vmatprep.mubr.msk.bf16.mxu0 %vm17949_vm9, %v18012_v59  ;;  %v9796_v32 = vpack.c.bf16 %v3584_v49, %v3584_v49  ;;  %v9812_v6 = vld [vmem:[%s17989_s29 + $0x118] sm:$0xff]  ;;  %v10521_v49 = vadd.f32 %v13829_v21, %v13820_v19  ;;  %v9813_v19 = vld [vmem:[%s17989_s29 + $0x120] sm:$0xff] }
 0x35f   : > { %4452 = vperm.xlu0 %11654, %v4408_v60   ;;  %v10435_v54 = vpop.f32.mrf.mxu0  ;;  %vm4390_vm13 = vcmp.ne.f32.partialorder %v9812_v6, 0.0  ;;  %vm4391_vm0 = vcmp.ne.f32.partialorder %v9813_v19, 0.0  ;;  %v10527_v19 = vadd.f32 %v13863_v3, %v13852_v34  ;;  %v9815_v34 = vld [vmem:[%s17989_s29 + $0x130] sm:$0xff] }
 0x360   : > { %v10436_v40 = vadd.f32 %v10435_v54, %v10434_v30  ;;  %v10038_v30 = vld [vmem:[%s17989_s29 + $0x3b0] sm:$0xff]  ;;  %v4410_v54 = vsel %vm4389_vm11, 1, %v18011_v28  ;;  %v4412_v48 = vsel %vm4391_vm0, 1, %v18011_v28  ;;  %vm4393_vm4 = vcmp.ne.f32.partialorder %v9815_v34, 0.0 }
 0x361   : > { %v14193_v22 = vpop.permute.xlu1 %4431  ;;  %v10437_v62 = vpop.f32.mrf.mxu0  ;;  %vm5496_vm14 = vcmp.ne.f32.partialorder %v10038_v30, 0.0  ;;  %v18040_v34 = vld [vmem:[#allocation29_spill] sm:$0xff]  ;;  %v4414_v5 = vsel %vm4393_vm4, 1, %v18011_v28 }
 0x362   : > { %18033 = vst [vmem:[#allocation49_spill] sm:$0xff] %v14193_v22  ;;  %v14199_v13 = vadd.f32 %v13813_v29, %v10436_v40  ;;  %v14201_v60 = vpop.permute.xlu0 %4428  ;;  %4455 = vperm.xlu1 %11655, %v4409_v36   ;;  %v10039_v36 = vld [vmem:[%s17989_s29 + $0x3b8] sm:$0xff] }
 0x363   : > { %5559 = vperm.xlu0 %11654, %v5515_v9   ;;  %v10438_v0 = vpop.f32.mrf.mxu0  ;;  %vm5497_vm15 = vcmp.ne.f32.partialorder %v10039_v36, 0.0 }
 0x364   : > { %v10439_v53 = vadd.f32 %v10438_v0, %v10437_v62  ;;  %v4411_v62 = vsel %vm4390_vm13, 1, %v18011_v28  ;;  %v5518_v36 = vsel %vm5497_vm15, 1, %v18011_v28 }
 0x365   : > { %v14210_v29 = vpop.permute.xlu1 %4437  ;;  %v10440_v40 = vpop.f32.mrf.mxu0  ;;  %11291 = vmatmul.mubr.msk.bf16.gmra.mxu0 %vm9795_vm12, %v9796_v32  ;;  %v5517_v32 = vsel %vm5496_vm14, 1, %v18011_v28 }
 0x366   : > { %18034 = vst [vmem:[#allocation50_spill] sm:$0xff] %v14210_v29  ;;  %v14215_v9 = vadd.f32 %v10521_v49, %v10439_v53  ;;  %v14217_v17 = vpop.permute.xlu0 %4434  ;;  %5562 = vperm.xlu1 %11655, %v5516_v56   ;;  %v9814_v56 = vld [vmem:[%s17989_s29 + $0x128] sm:$0xff]  ;;  %v18084_v29 = vmov 0 }
 0x367   : > { %18035 = vst [vmem:[#allocation51_spill] sm:$0xff] %v14217_v17  ;;  %4458 = vperm.xlu0 %11654, %v4410_v54   ;;  %v10441_v21 = vpop.f32.mrf.mxu0  ;;  %v10040_v54 = vld [vmem:[%s17989_s29 + $0x3c0] sm:$0xff]  ;;  %vm4392_vm1 = vcmp.ne.f32.partialorder %v9814_v56, 0.0 }
 0x368   : > { %v10442_v6 = vadd.f32 %v10441_v21, %v10440_v40  ;;  %vm5498_vm2 = vcmp.ne.f32.partialorder %v10040_v54, 0.0 }
 0x369   : > { %v14224_v30 = vpop.permute.xlu1 %4851  ;;  %v10443_v0 = vpop.f32.mrf.mxu0  ;;  %v5519_v54 = vsel %vm5498_vm2, 1, %v18011_v28 }
 0x36a   : > { %v14230_v49 = vadd.f32 %v13847_v39, %v10442_v6  ;;  %v14232_v53 = vpop.permute.xlu0 %4440  ;;  %4461 = vperm.xlu1 %11655, %v4411_v62   ;;  %v10041_v62 = vld [vmem:[%s17989_s29 + $0x3c8] sm:$0xff] }
 0x36b   : > { %18036 = vst [vmem:[#allocation52_spill] sm:$0xff] %v14232_v53  ;;  %5565 = vperm.xlu0 %11654, %v5517_v32   ;;  %v10444_v40 = vpop.f32.mrf.mxu0  ;;  %vm5499_vm3 = vcmp.ne.f32.partialorder %v10041_v62, 0.0 }
 0x36c   : > { %v10445_v21 = vadd.f32 %v10444_v40, %v10443_v0  ;;  %v4413_v0 = vsel %vm4392_vm1, 1, %v18011_v28  ;;  %v5520_v62 = vsel %vm5499_vm3, 1, %v18011_v28 }
 0x36d   : > { %v14241_v39 = vpop.permute.xlu1 %4651  ;;  %v10446_v6 = vpop.f32.mrf.mxu0 }
 0x36e   : > { %18037 = vst [vmem:[#allocation53_spill] sm:$0xff] %v14241_v39  ;;  %v14246_v1 = vadd.f32 %v10527_v19, %v10445_v21  ;;  %v14248_v32 = vpop.permute.xlu0 %4854  ;;  %5568 = vperm.xlu1 %11655, %v5518_v36   ;;  %v9816_v36 = vld [vmem:[%s17989_s29 + $0x138] sm:$0xff] }
 0x36f   : > { %4464 = vperm.xlu0 %11654, %v4412_v48   ;;  %v10447_v3 = vpop.f32.mrf.mxu0  ;;  %v10042_v48 = vld [vmem:[%s17989_s29 + $0x3d0] sm:$0xff]  ;;  %vm4394_vm5 = vcmp.ne.f32.partialorder %v9816_v36, 0.0 }
 0x370   : > { %v10448_v56 = vadd.f32 %v10447_v3, %v10446_v6  ;;  %v10533_v3 = vadd.f32 %v18040_v34, %v13888_v35  ;;  %vm5500_vm6 = vcmp.ne.f32.partialorder %v10042_v48, 0.0  ;;  %v9817_v35 = vld [vmem:[%s17989_s29 + $0x140] sm:$0xff]  ;;  %v4415_v36 = vsel %vm4394_vm5, 1, %v18011_v28 }
 0x371   : > { %v14255_v40 = vpop.permute.xlu1 %4857  ;;  %v10449_v25 = vpop.f32.mrf.mxu0  ;;  %v5521_v48 = vsel %vm5500_vm6, 1, %v18011_v28  ;;  %vm4395_vm8 = vcmp.ne.f32.partialorder %v9817_v35, 0.0 }
 0x372   : > { %18038 = vst [vmem:[#allocation54_spill] sm:$0xff] %v14255_v40  ;;  %v14261_v19 = vadd.f32 %v13881_v23, %v10448_v56  ;;  %v14263_v21 = vpop.permute.xlu0 %4654  ;;  %4467 = vperm.xlu1 %11655, %v4413_v0   ;;  %v10043_v0 = vld [vmem:[%s17989_s29 + $0x3d8] sm:$0xff] }
 0x373   : > { %18039 = vst [vmem:[#allocation55_spill] sm:$0xff] %v14263_v21  ;;  %5571 = vperm.xlu0 %11654, %v5519_v54   ;;  %v10450_v6 = vpop.f32.mrf.mxu0  ;;  %vm5501_vm7 = vcmp.ne.f32.partialorder %v10043_v0, 0.0 }
 0x374   : > { %v10451_v15 = vadd.f32 %v10450_v6, %v10449_v25  ;;  %v5522_v0 = vsel %vm5501_vm7, 1, %v18011_v28 }
 0x375   : > { %v14272_v23 = vpop.permute.xlu1 %4657  ;;  %v10452_v56 = vpop.f32.mrf.mxu0 }
 0x376   : > { %18041 = vst [vmem:[#allocation29_spill] sm:$0xff] %v14272_v23  ;;  %v14277_v37 = vadd.f32 %v10533_v3, %v10451_v15  ;;  %v14279_v54 = vpop.permute.xlu0 %4860  ;;  %5574 = vperm.xlu1 %11655, %v5520_v62   ;;  %v9818_v15 = vld [vmem:[%s17989_s29 + $0x148] sm:$0xff] }
 0x377   : > { %18042 = vst [vmem:[#allocation56_spill] sm:$0xff] %v14279_v54  ;;  %4470 = vperm.xlu0 %11654, %v4414_v5   ;;  %v10453_v25 = vpop.f32.mrf.mxu0  ;;  %v10044_v5 = vld [vmem:[%s17989_s29 + $0x3e0] sm:$0xff]  ;;  %vm4396_vm10 = vcmp.ne.f32.partialorder %v9818_v15, 0.0 }
 0x378   : > { %v10454_v6 = vadd.f32 %v10453_v25, %v10452_v56  ;;  %vm5502_vm11 = vcmp.ne.f32.partialorder %v10044_v5, 0.0 }
 0x379   : > { %v14286_v34 = vpop.permute.xlu1 %4863  ;;  %v10455_v38 = vpop.f32.mrf.mxu0  ;;  %v5523_v46 = vsel %vm5502_vm11, 1, %v18011_v28 }
 0x37a   : > { %18043 = vst [vmem:[#allocation57_spill] sm:$0xff] %v14286_v34  ;;  %v14292_v62 = vadd.f32 %v13916_v33, %v10454_v6  ;;  %v14294_v3 = vpop.permute.xlu0 %4660  ;;  %4473 = vperm.xlu1 %11655, %v4415_v36   ;;  %v4416_v38 = vsel %vm4395_vm8, 1, %v18011_v28  ;;  %v10116_v33 = vld [vmem:[%s17989_s29 + $0x498] sm:$0xff]  ;;  %v10045_v6 = vld [vmem:[%s17989_s29 + $0x3e8] sm:$0xff] }
 0x37b   : > { %18044 = vst [vmem:[#allocation58_spill] sm:$0xff] %v14294_v3  ;;  %5577 = vperm.xlu0 %11654, %v5521_v48   ;;  %v10456_v56 = vpop.f32.mrf.mxu0  ;;  %vm6152_vm12 = vcmp.ne.f32.partialorder %v10116_v33, 0.0  ;;  %vm5503_vm13 = vcmp.ne.f32.partialorder %v10045_v6, 0.0 }
 0x37c   : > { %v4417_v56 = vsel %vm4396_vm10, 1, %v18011_v28  ;;  %v6173_v33 = vsel %vm6152_vm12, 1, %v18011_v28 }
 0x37d   : > { %v14301_v35 = vpop.permute.xlu1 %4663  ;;  %v10556_v25 = vpop.f32.mrf.mxu0 }
 0x37e   : > { %18045 = vst [vmem:[#allocation59_spill] sm:$0xff] %v14301_v35  ;;  %v14306_v36 = vpop.permute.xlu0 %4866  ;;  %5580 = vperm.xlu1 %11655, %v5522_v0   ;;  %v10095_v0 = vld [vmem:[%s17989_s29 + $0x3f0] sm:$0xff] }
 0x37f   : > { %18046 = vst [vmem:[#allocation60_spill] sm:$0xff] %v14306_v36  ;;  %4476 = vperm.xlu0 %11654, %v4416_v38   ;;  %v10557_v48 = vpop.f32.mrf.mxu0  ;;  %v10117_v38 = vld [vmem:[%s17989_s29 + $0x4a0] sm:$0xff]  ;;  %vm5952_vm14 = vcmp.ne.f32.partialorder %v10095_v0, 0.0 }
 0x380   : > { %v10558_v15 = vadd.f32 %v10557_v48, %v10556_v25  ;;  %v5524_v48 = vsel %vm5503_vm13, 1, %v18011_v28  ;;  %vm6153_vm15 = vcmp.ne.f32.partialorder %v10117_v38, 0.0  ;;  %v5973_v0 = vsel %vm5952_vm14, 1, %v18011_v28 }
 0x381   : > { %v14313_v5 = vpop.permute.xlu1 %4869  ;;  %v10559_v4 = vpop.f32.mrf.mxu0  ;;  %v6174_v27 = vsel %vm6153_vm15, 1, %v18011_v28 }
 0x382   : > { %18047 = vst [vmem:[#allocation61_spill] sm:$0xff] %v14313_v5  ;;  %v2872_v47 = vadd.f32 %v10558_v15, %v13938_v50  ;;  %v14319_v59 = vpop.permute.xlu0 %4666  ;;  %4479 = vperm.xlu1 %11655, %v4417_v56   ;;  %v10219_v56 = vld [vmem:[%s17989_s29 + $0x540] sm:$0xff] }
 0x383   : > { %18048 = vst [vmem:[#allocation62_spill] sm:$0xff] %v14319_v59  ;;  %5583 = vperm.xlu0 %11654, %v5523_v46   ;;  %v10560_v25 = vpop.f32.mrf.mxu0  ;;  %vm6621_vm0 = vcmp.ne.f32.partialorder %v10219_v56, 0.0  ;;  %v11743_v59 = vld [vmem:[%s12065_s4 + $0x270] sm:$0xff]  }
 0x384   : > { %v10561_v6 = vadd.f32 %v10560_v25, %v10559_v4  ;;  %v10096_v4 = vld [vmem:[%s17989_s29 + $0x3f8] sm:$0xff] }
 0x385   : > { %v14326_v63 = vpop.permute.xlu1 %4669  ;;  %v10562_v50 = vpop.f32.mrf.mxu0  ;;  %vm5953_vm1 = vcmp.ne.f32.partialorder %v10096_v4, 0.0  ;;  %v6642_v4 = vsel %vm6621_vm0, 1, %v18011_v28 }
 0x386   : > { %18049 = vst [vmem:[#allocation63_spill] sm:$0xff] %v14326_v63  ;;  %v2873_v15 = vadd.f32 %v10561_v6, %v13960_v8  ;;  %v14332_v46 = vpop.permute.xlu0 %4872  ;;  %6195 = vperm.xlu1 %11655, %v6173_v33   ;;  %v11729_v63 = vld [vmem:[%s12065_s4 + $0x2f8] sm:$0xff]   ;;  %v10118_v33 = vld [vmem:[%s17989_s29 + $0x4a8] sm:$0xff]  ;;  %v5974_v57 = vsel %vm5953_vm1, 1, %v18011_v28 }
 0x387   : > { %18050 = vst [vmem:[#allocation64_spill] sm:$0xff] %v14332_v46  ;;  %5586 = vperm.xlu0 %11654, %v5524_v48   ;;  %v10563_v25 = vpop.f32.mrf.mxu0  ;;  %10724 = vmatpush3.bf16.msra.mxu1 %v11729_v63  ;;  %vm6154_vm2 = vcmp.ne.f32.partialorder %v10118_v33, 0.0 }
 0x388   : > { %v10564_v38 = vadd.f32 %v10563_v25, %v10562_v50  ;;  %v10220_v50 = vld [vmem:[%s17989_s29 + $0x548] sm:$0xff] }
 0x389   : > { %v14341_v43 = vpop.permute.xlu1 %4875  ;;  %v10565_v8 = vpop.f32.mrf.mxu0  ;;  %vm6622_vm3 = vcmp.ne.f32.partialorder %v10220_v50, 0.0 }
 0x38a   : > { %18051 = vst [vmem:[#allocation65_spill] sm:$0xff] %v14341_v43  ;;  %v14347_v6 = vadd.f32 %v10564_v38, %v13977_v26  ;;  %v14349_v48 = vpop.permute.xlu0 %4672  ;;  %v10638_v5 = vpop.f32.mrf.mxu1  ;;  %5995 = vperm.xlu1 %11655, %v5973_v0   ;;  %v10097_v0 = vld [vmem:[%s17989_s29 + $0x400] sm:$0xff] }
 0x38b   : > { %18052 = vst [vmem:[#allocation66_spill] sm:$0xff] %v14349_v48  ;;  %6198 = vperm.xlu0 %11654, %v6174_v27   ;;  %v10566_v56 = vpop.f32.mrf.mxu0  ;;  %vm5954_vm4 = vcmp.ne.f32.partialorder %v10097_v0, 0.0 }
 0x38c   : > { %v10567_v25 = vadd.f32 %v10566_v56, %v10565_v8  ;;  %v10639_v43 = vpop.f32.mrf.mxu1  ;;  %v10119_v8 = vld [vmem:[%s17989_s29 + $0x4b0] sm:$0xff]  ;;  %v5975_v0 = vsel %vm5954_vm4, 1, %v18011_v28 }
 0x38d   : > { %v10640_v26 = vadd.f32 %v10639_v43, %v10638_v5  ;;  %v14356_v38 = vpop.permute.xlu1 %4675  ;;  %v10568_v48 = vpop.f32.mrf.mxu0  ;;  %v6175_v5 = vsel %vm6154_vm2, 1, %v18011_v28  ;;  %vm6155_vm5 = vcmp.ne.f32.partialorder %v10119_v8, 0.0 }
 0x38e   : > { %18053 = vst [vmem:[#allocation67_spill] sm:$0xff] %v14356_v38  ;;  %v14362_v63 = vadd.f32 %v10567_v25, %v13996_v7  ;;  %v14364_v27 = vpop.permute.xlu0 %4878  ;;  %v10641_v46 = vpop.f32.mrf.mxu1  ;;  %6664 = vperm.xlu1 %11655, %v6642_v4   ;;  %v6643_v38 = vsel %vm6622_vm3, 1, %v18011_v28 }
 0x38f   : > { %18054 = vst [vmem:[#allocation68_spill] sm:$0xff] %v14364_v27  ;;  %5998 = vperm.xlu0 %11654, %v5974_v57   ;;  %v10569_v43 = vpop.f32.mrf.mxu0  ;;  %v14370_v33 = vadd.f32 %v10640_v26, %v2872_v47  ;;  %v10221_v57 = vld [vmem:[%s17989_s29 + $0x550] sm:$0xff]  ;;  %v10098_v26 = vld [vmem:[%s17989_s29 + $0x408] sm:$0xff] }
 0x390   : > { %v10570_v50 = vadd.f32 %v10569_v43, %v10568_v48  ;;  %v10642_v56 = vpop.f32.mrf.mxu1  ;;  %v11730_v43 = vld [vmem:[%s12065_s4 + $0x330] sm:$0xff]   ;;  %vm6623_vm6 = vcmp.ne.f32.partialorder %v10221_v57, 0.0  ;;  %vm5955_vm7 = vcmp.ne.f32.partialorder %v10098_v26, 0.0 }
 0x391   : > { %v10643_v7 = vadd.f32 %v10642_v56, %v10641_v46  ;;  %v14373_v25 = vpop.permute.xlu1 %4881  ;;  %v10571_v4 = vpop.f32.mrf.mxu0  ;;  %v11731_v56 = vld [vmem:[%s12065_s4 + $0x2f0] sm:$0xff]   ;;  %10725 = vmatprep.subr.bf16.mxu1 %v11730_v43 }
 0x392   : > { %18055 = vst [vmem:[#allocation69_spill] sm:$0xff] %v14373_v25  ;;  %v14379_v27 = vadd.f32 %v10570_v50, %v14014_v51  ;;  %v14381_v47 = vpop.permute.xlu0 %4678  ;;  %v10644_v48 = vpop.f32.mrf.mxu1  ;;  %6201 = vperm.xlu1 %11655, %v6175_v5   ;;  %v6176_v51 = vsel %vm6155_vm5, 1, %v18011_v28  ;;  %10726 = vmatpush3.bf16.msra.mxu1 %v11731_v56  ;;  %v10099_v56 = vld [vmem:[%s17989_s29 + $0x410] sm:$0xff] }
 0x393   : > { %18056 = vst [vmem:[#allocation70_spill] sm:$0xff] %v14381_v47  ;;  %6667 = vperm.xlu0 %11654, %v6643_v38   ;;  %v10572_v46 = vpop.f32.mrf.mxu0  ;;  %v14387_v8 = vadd.f32 %v10643_v7, %v2873_v15  ;;  %v10120_v38 = vld [vmem:[%s17989_s29 + $0x4b8] sm:$0xff]  ;;  %vm5956_vm11 = vcmp.ne.f32.partialorder %v10099_v56, 0.0 }
 0x394   : > { %v10573_v25 = vadd.f32 %v10572_v46, %v10571_v4  ;;  %v10645_v35 = vpop.f32.mrf.mxu1  ;;  %vm6156_vm8 = vcmp.ne.f32.partialorder %v10120_v38, 0.0 }
 0x395   : > { %v10646_v50 = vadd.f32 %v10645_v35, %v10644_v48  ;;  %v14392_v47 = vpop.permute.xlu1 %4681  ;;  %v10574_v5 = vpop.f32.mrf.mxu0  ;;  %v10222_v35 = vld [vmem:[%s17989_s29 + $0x558] sm:$0xff]  ;;  %v6644_v48 = vsel %vm6623_vm6, 1, %v18011_v28 }
 0x396   : > { %18057 = vst [vmem:[#allocation71_spill] sm:$0xff] %v14392_v47  ;;  %v14398_v15 = vadd.f32 %v10573_v25, %v14033_v52  ;;  %v14400_v7 = vpop.permute.xlu0 %4884  ;;  %v10647_v4 = vpop.f32.mrf.mxu1  ;;  %6001 = vperm.xlu1 %11655, %v5975_v0   ;;  %v5976_v52 = vsel %vm5955_vm7, 1, %v18011_v28  ;;  %vm6624_vm10 = vcmp.ne.f32.partialorder %v10222_v35, 0.0 }
 0x397   : > { %18058 = vst [vmem:[#allocation72_spill] sm:$0xff] %v14400_v7  ;;  %6204 = vperm.xlu0 %11654, %v6176_v51   ;;  %v10575_v57 = vpop.f32.mrf.mxu0  ;;  %v14407_v26 = vadd.f32 %v10646_v50, %v14347_v6 }
 0x398   : > { %v10576_v46 = vadd.f32 %v10575_v57, %v10574_v5  ;;  %v10648_v43 = vpop.f32.mrf.mxu1  ;;  %v10121_v5 = vld [vmem:[%s17989_s29 + $0x4c0] sm:$0xff]  ;;  %v11732_v57 = vld [vmem:[%s12065_s4 + $0x328] sm:$0xff]  }
 0x399   : > { %v10649_v25 = vadd.f32 %v10648_v43, %v10647_v4  ;;  %v14410_v0 = vpop.permute.xlu1 %4887  ;;  %v10577_v47 = vpop.f32.mrf.mxu0  ;;  %v6177_v4 = vsel %vm6156_vm8, 1, %v18011_v28  ;;  %vm6157_vm12 = vcmp.ne.f32.partialorder %v10121_v5, 0.0  ;;  %10727 = vmatprep.subr.bf16.mxu1 %v11732_v57 }
 0x39a   : > { %18059 = vst [vmem:[#allocation73_spill] sm:$0xff] %v14410_v0  ;;  %v14416_v51 = vadd.f32 %v10576_v46, %v14051_v24  ;;  %v14418_v6 = vpop.permute.xlu0 %4684  ;;  %v10650_v50 = vpop.f32.mrf.mxu1  ;;  %6670 = vperm.xlu1 %11655, %v6644_v48   ;;  %v6645_v24 = vsel %vm6624_vm10, 1, %v18011_v28 }
 0x39b   : > { %18060 = vst [vmem:[#allocation74_spill] sm:$0xff] %v14418_v6  ;;  %6004 = vperm.xlu0 %11654, %v5976_v52   ;;  %v10578_v38 = vpop.f32.mrf.mxu0  ;;  %v14425_v35 = vadd.f32 %v10649_v25, %v14362_v63  ;;  %v10223_v52 = vld [vmem:[%s17989_s29 + $0x560] sm:$0xff] }
 0x39c   : > { %v10579_v43 = vadd.f32 %v10578_v38, %v10577_v47  ;;  %v10651_v0 = vpop.f32.mrf.mxu1  ;;  %v11733_v38 = vld [vmem:[%s12065_s4 + $0x2e8] sm:$0xff]   ;;  %vm6625_vm13 = vcmp.ne.f32.partialorder %v10223_v52, 0.0 }
 0x39d   : > { %v10652_v46 = vadd.f32 %v10651_v0, %v10650_v50  ;;  %v14429_v48 = vpop.permute.xlu1 %4687  ;;  %v10580_v6 = vpop.f32.mrf.mxu0  ;;  %v10100_v0 = vld [vmem:[%s17989_s29 + $0x418] sm:$0xff]  ;;  %v5977_v50 = vsel %vm5956_vm11, 1, %v18011_v28  ;;  %10728 = vmatpush3.bf16.msra.mxu1 %v11733_v38  ;;  %v6646_v52 = vsel %vm6625_vm13, 1, %v18011_v28 }
 0x39e   : > { %18061 = vst [vmem:[#allocation75_spill] sm:$0xff] %v14429_v48  ;;  %v14435_v63 = vadd.f32 %v10579_v43, %v14070_v55  ;;  %v14437_v25 = vpop.permute.xlu0 %4890  ;;  %v10653_v47 = vpop.f32.mrf.mxu1  ;;  %6207 = vperm.xlu1 %11655, %v6177_v4   ;;  %v6178_v55 = vsel %vm6157_vm12, 1, %v18011_v28  ;;  %vm5957_vm14 = vcmp.ne.f32.partialorder %v10100_v0, 0.0 }
 0x39f   : > { %18062 = vst [vmem:[#allocation76_spill] sm:$0xff] %v14437_v25  ;;  %6673 = vperm.xlu0 %11654, %v6645_v24   ;;  %v10581_v56 = vpop.f32.mrf.mxu0  ;;  %v14444_v5 = vadd.f32 %v10652_v46, %v14379_v27  ;;  %v10122_v24 = vld [vmem:[%s17989_s29 + $0x4c8] sm:$0xff] }
 0x3a0   : > { %v10582_v57 = vadd.f32 %v10581_v56, %v10580_v6  ;;  %v10654_v48 = vpop.f32.mrf.mxu1  ;;  %v10224_v46 = vld [vmem:[%s17989_s29 + $0x568] sm:$0xff]  ;;  %vm6158_vm15 = vcmp.ne.f32.partialorder %v10122_v24, 0.0 }
 0x3a1   : > { %v10655_v43 = vadd.f32 %v10654_v48, %v10653_v47  ;;  %v14448_v25 = vpop.permute.xlu1 %4893  ;;  %v10583_v4 = vpop.f32.mrf.mxu0  ;;  %vm6626_vm0 = vcmp.ne.f32.partialorder %v10224_v46, 0.0 }
 0x3a2   : > { %18063 = vst [vmem:[#allocation77_spill] sm:$0xff] %v14448_v25  ;;  %v14454_v7 = vadd.f32 %v10582_v57, %v14088_v10  ;;  %v14456_v27 = vpop.permute.xlu0 %4690  ;;  %v10656_v6 = vpop.f32.mrf.mxu1  ;;  %6007 = vperm.xlu1 %11655, %v5977_v50   ;;  %v5978_v10 = vsel %vm5957_vm14, 1, %v18011_v28 }
 0x3a3   : > { %18064 = vst [vmem:[#allocation78_spill] sm:$0xff] %v14456_v27  ;;  %6210 = vperm.xlu0 %11654, %v6178_v55   ;;  %v10584_v48 = vpop.f32.mrf.mxu0  ;;  %v14463_v47 = vadd.f32 %v10655_v43, %v14398_v15  ;;  %v10101_v55 = vld [vmem:[%s17989_s29 + $0x420] sm:$0xff] }
 0x3a4   : > { %v10585_v0 = vadd.f32 %v10584_v48, %v10583_v4  ;;  %v10657_v56 = vpop.f32.mrf.mxu1  ;;  %v10123_v4 = vld [vmem:[%s17989_s29 + $0x4d0] sm:$0xff]  ;;  %v11734_v48 = vld [vmem:[%s12065_s4 + $0x320] sm:$0xff]   ;;  %vm5958_vm1 = vcmp.ne.f32.partialorder %v10101_v55, 0.0 }
 0x3a5   : > { %v10658_v38 = vadd.f32 %v10657_v56, %v10656_v6  ;;  %v14466_v50 = vpop.permute.xlu1 %4693  ;;  %v10586_v57 = vpop.f32.mrf.mxu0  ;;  %v6179_v6 = vsel %vm6158_vm15, 1, %v18011_v28  ;;  %v11735_v56 = vld [vmem:[%s12065_s4 + $0x2e0] sm:$0xff]   ;;  %vm6159_vm2 = vcmp.ne.f32.partialorder %v10123_v4, 0.0  ;;  %10729 = vmatprep.subr.bf16.mxu1 %v11734_v48 }
 0x3a6   : > { %18065 = vst [vmem:[#allocation79_spill] sm:$0xff] %v14466_v50  ;;  %v14472_v25 = vadd.f32 %v10585_v0, %v14107_v18  ;;  %v14474_v15 = vpop.permute.xlu0 %4896  ;;  %v10659_v43 = vpop.f32.mrf.mxu1  ;;  %6676 = vperm.xlu1 %11655, %v6646_v52   ;;  %v6647_v0 = vsel %vm6626_vm0, 1, %v18011_v28  ;;  %10730 = vmatpush3.bf16.msra.mxu1 %v11735_v56  ;;  %v6180_v48 = vsel %vm6159_vm2, 1, %v18011_v28 }
 0x3a7   : > { %18066 = vst [vmem:[#allocation80_spill] sm:$0xff] %v14474_v15  ;;  %6010 = vperm.xlu0 %11654, %v5978_v10   ;;  %v10587_v24 = vpop.f32.mrf.mxu0  ;;  %v14481_v46 = vadd.f32 %v10658_v38, %v14416_v51  ;;  %v10225_v10 = vld [vmem:[%s17989_s29 + $0x570] sm:$0xff] }
 0x3a8   : > { %v10588_v50 = vadd.f32 %v10587_v24, %v10586_v57  ;;  %v10660_v18 = vpop.f32.mrf.mxu1  ;;  %v10102_v57 = vld [vmem:[%s17989_s29 + $0x428] sm:$0xff]  ;;  %vm6627_vm3 = vcmp.ne.f32.partialorder %v10225_v10, 0.0 }
 0x3a9   : > { %v10661_v15 = vadd.f32 %v10660_v18, %v10659_v43  ;;  %v14486_v52 = vpop.permute.xlu1 %4899  ;;  %v10589_v27 = vpop.f32.mrf.mxu0  ;;  %v5979_v43 = vsel %vm5958_vm1, 1, %v18011_v28  ;;  %vm5959_vm4 = vcmp.ne.f32.partialorder %v10102_v57, 0.0 }
 0x3aa   : > { %18067 = vst [vmem:[#allocation81_spill] sm:$0xff] %v14486_v52  ;;  %v14492_v51 = vadd.f32 %v10588_v50, %v14125_v20  ;;  %v14494_v38 = vpop.permute.xlu0 %4696  ;;  %6213 = vperm.xlu1 %11655, %v6179_v6   ;;  %v10124_v6 = vld [vmem:[%s17989_s29 + $0x4d8] sm:$0xff] }
 0x3ab   : > { %18068 = vst [vmem:[#allocation82_spill] sm:$0xff] %v14494_v38  ;;  %6679 = vperm.xlu0 %11654, %v6647_v0   ;;  %v10590_v55 = vpop.f32.mrf.mxu0  ;;  %v14501_v4 = vadd.f32 %v10661_v15, %v14435_v63  ;;  %v10226_v63 = vld [vmem:[%s17989_s29 + $0x578] sm:$0xff]  ;;  %v6648_v15 = vsel %vm6627_vm3, 1, %v18011_v28  ;;  %vm6160_vm5 = vcmp.ne.f32.partialorder %v10124_v6, 0.0 }
 0x3ac   : > { %v10591_v24 = vadd.f32 %v10590_v55, %v10589_v27  ;;  %v5980_v55 = vsel %vm5959_vm4, 1, %v18011_v28  ;;  %vm6628_vm6 = vcmp.ne.f32.partialorder %v10226_v63, 0.0  ;;  %v6181_v63 = vsel %vm6160_vm5, 1, %v18011_v28 }
 0x3ad   : > { %v10662_v20 = vpop.f32.mrf.mxu1  ;;  %v14504_v50 = vpop.permute.xlu1 %4699 }
 0x3ae   : > { %18069 = vst [vmem:[#allocation83_spill] sm:$0xff] %v14504_v50  ;;  %v14510_v56 = vadd.f32 %v10591_v24, %v14144_v41  ;;  %v14512_v18 = vpop.permute.xlu0 %4902  ;;  %v10592_v0 = vpop.f32.mrf.mxu0  ;;  %6013 = vperm.xlu1 %11655, %v5979_v43   ;;  %v10103_v43 = vld [vmem:[%s17989_s29 + $0x430] sm:$0xff] }
 0x3af   : > { %18070 = vst [vmem:[#allocation84_spill] sm:$0xff] %v14512_v18  ;;  %6216 = vperm.xlu0 %11654, %v6180_v48   ;;  %v10663_v27 = vpop.f32.mrf.mxu1  ;;  %vm5960_vm7 = vcmp.ne.f32.partialorder %v10103_v43, 0.0 }
 0x3b0   : > { %v10664_v10 = vadd.f32 %v10663_v27, %v10662_v20  ;;  %v10593_v57 = vpop.f32.mrf.mxu0  ;;  %v10125_v20 = vld [vmem:[%s17989_s29 + $0x4e0] sm:$0xff] }
 0x3b1   : > { %v10594_v50 = vadd.f32 %v10593_v57, %v10592_v0  ;;  %v10665_v41 = vpop.f32.mrf.mxu1  ;;  %v14519_v24 = vpop.permute.xlu1 %4905  ;;  %vm6161_vm8 = vcmp.ne.f32.partialorder %v10125_v20, 0.0 }
 0x3b2   : > { %18071 = vst [vmem:[#allocation85_spill] sm:$0xff] %v14519_v24  ;;  %v14524_v52 = vpop.permute.xlu0 %4702  ;;  %v10595_v48 = vpop.f32.mrf.mxu0  ;;  %6682 = vperm.xlu1 %11655, %v6648_v15   ;;  %v14530_v27 = vadd.f32 %v10664_v10, %v14454_v7  ;;  %v10227_v7 = vld [vmem:[%s17989_s29 + $0x580] sm:$0xff] }
 0x3b3   : > { %18072 = vst [vmem:[#allocation86_spill] sm:$0xff] %v14524_v52  ;;  %v14533_v6 = vadd.f32 %v10594_v50, %v14162_v11  ;;  %6016 = vperm.xlu0 %11654, %v5980_v55   ;;  %v10666_v0 = vpop.f32.mrf.mxu1  ;;  %v6649_v52 = vsel %vm6628_vm6, 1, %v18011_v28  ;;  %v10104_v50 = vld [vmem:[%s17989_s29 + $0x438] sm:$0xff]  ;;  %vm6629_vm10 = vcmp.ne.f32.partialorder %v10227_v7, 0.0 }
 0x3b4   : > { %v10667_v57 = vadd.f32 %v10666_v0, %v10665_v41  ;;  %v10596_v24 = vpop.f32.mrf.mxu0  ;;  %vm5961_vm11 = vcmp.ne.f32.partialorder %v10104_v50, 0.0  ;;  %v6650_v50 = vsel %vm6629_vm10, 1, %v18011_v28 }
 0x3b5   : > { %v10597_v15 = vadd.f32 %v10596_v24, %v10595_v48  ;;  %v14537_v18 = vpop.permute.xlu1 %4705  ;;  %v5981_v24 = vsel %vm5960_vm7, 1, %v18011_v28  ;;  %v6182_v48 = vsel %vm6161_vm8, 1, %v18011_v28 }
 0x3b6   : > { %18073 = vst [vmem:[#allocation87_spill] sm:$0xff] %v14537_v18  ;;  %v14542_v10 = vpop.permute.xlu0 %4908  ;;  %v10598_v11 = vpop.f32.mrf.mxu0  ;;  %6219 = vperm.xlu1 %11655, %v6181_v63   ;;  %v14548_v55 = vadd.f32 %v10667_v57, %v14472_v25  ;;  %v10126_v25 = vld [vmem:[%s17989_s29 + $0x4e8] sm:$0xff] }
 0x3b7   : > { %18074 = vst [vmem:[#allocation88_spill] sm:$0xff] %v14542_v10  ;;  %v14551_v41 = vadd.f32 %v10597_v15, %v14181_v44  ;;  %6685 = vperm.xlu0 %11654, %v6649_v52   ;;  %v10228_v52 = vld [vmem:[%s17989_s29 + $0x588] sm:$0xff]  ;;  %v11740_v15 = vld [vmem:[%s12065_s4 + $0x2b8] sm:$0xff]   ;;  %vm6162_vm12 = vcmp.ne.f32.partialorder %v10126_v25, 0.0 }
 0x3b8   : > { %v10599_v43 = vpop.f32.mrf.mxu0  ;;  %10805 = vmatprep.subr.bf16.mxu0 %v11740_v15  ;;  %vm6630_vm13 = vcmp.ne.f32.partialorder %v10228_v52, 0.0 }
 0x3b9   : > { %v10600_v20 = vadd.f32 %v10599_v43, %v10598_v11  ;;  %v10668_v0 = vpop.f32.mrf.mxu1  ;;  %v14555_v63 = vpop.permute.xlu1 %4911  ;;  %v11741_v43 = vld [vmem:[%s12065_s4 + $0x278] sm:$0xff]   ;;  %v6651_v53 = vsel %vm6630_vm13, 1, %v18011_v28 }
 0x3ba   : > { %18075 = vst [vmem:[#allocation89_spill] sm:$0xff] %v14555_v63  ;;  %v14560_v57 = vpop.permute.xlu0 %4708  ;;  %v10601_v44 = vpop.f32.mrf.mxu0  ;;  %6019 = vperm.xlu1 %11655, %v5981_v24   ;;  %10806 = vmatpush3.bf16.msra.mxu0 %v11741_v43  ;;  %v6183_v43 = vsel %vm6162_vm12, 1, %v18011_v28 }
 0x3bb   : > { %18076 = vst [vmem:[#allocation90_spill] sm:$0xff] %v14560_v57  ;;  %v14567_v7 = vadd.f32 %v10600_v20, %v14199_v13  ;;  %6222 = vperm.xlu0 %11654, %v6182_v48   ;;  %v10669_v11 = vpop.f32.mrf.mxu1  ;;  %v5982_v57 = vsel %vm5961_vm11, 1, %v18011_v28  ;;  %v10105_v13 = vld [vmem:[%s17989_s29 + $0x440] sm:$0xff] }
 0x3bc   : > { %v10670_v18 = vadd.f32 %v10669_v11, %v10668_v0  ;;  %v10602_v63 = vpop.f32.mrf.mxu0  ;;  %v10127_v0 = vld [vmem:[%s17989_s29 + $0x4f0] sm:$0xff]  ;;  %vm5962_vm14 = vcmp.ne.f32.partialorder %v10105_v13, 0.0 }
 0x3bd   : > { %v10603_v24 = vadd.f32 %v10602_v63, %v10601_v44  ;;  %v10671_v10 = vpop.f32.mrf.mxu1  ;;  %v5527_v38 = vpop.permute.xlu1 %5526  ;;  %v11742_v63 = vld [vmem:[%s12065_s4 + $0x2b0] sm:$0xff]   ;;  %vm6163_vm15 = vcmp.ne.f32.partialorder %v10127_v0, 0.0  ;;  %v10230_v0 = vld [vmem:[%s17989_s29 + $0x598] sm:$0xff] }
 0x3be   : > { %v14575_v48 = vpop.permute.xlu0 %4711  ;;  %v10604_v20 = vpop.f32.mrf.mxu0  ;;  %6688 = vperm.xlu1 %11655, %v6650_v50   ;;  %v14581_v15 = vadd.f32 %v10670_v18, %v14492_v51  ;;  %10807 = vmatprep.subr.bf16.mxu0 %v11742_v63  ;;  %vm5588_vm0 = vcmp.eq.s32.totalorder %v5527_v38, 1  ;;  %v11746_v63 = vld [vmem:[%s12065_s4 + $0x268] sm:$0xff]   ;;  %vm6632_vm10 = vcmp.ne.f32.partialorder %v10230_v0, 0.0  ;;  %v10108_v0 = vld [vmem:[%s17989_s29 + $0x458] sm:$0xff] }
 0x3bf   : > { %18077 = vst [vmem:[#allocation91_spill] sm:$0xff] %v14575_v48  ;;  %v14585_v44 = vadd.f32 %v10603_v24, %v14215_v9  ;;  %6022 = vperm.xlu0 %11654, %v5982_v57   ;;  %v10672_v11 = vpop.f32.mrf.mxu1  ;;  %v10229_v9 = vld [vmem:[%s17989_s29 + $0x590] sm:$0xff]  ;;  %10808 = vmatpush3.bf16.msra.mxu0 %v11743_v59  ;;  %v11744_v24 = vld [vmem:[%s12065_s4 + $0x2a8] sm:$0xff]   ;;  %v5983_v59 = vsel %vm5962_vm14, 1, %v18011_v28 }
 0x3c0   : > { %v10673_v48 = vadd.f32 %v10672_v11, %v10671_v10  ;;  %v10605_v50 = vpop.f32.mrf.mxu0  ;;  %v10106_v10 = vld [vmem:[%s17989_s29 + $0x448] sm:$0xff]  ;;  %v18078_v11 = vmov 0  ;;  %vm6631_vm3 = vcmp.ne.f32.partialorder %v10229_v9, 0.0  ;;  %10809 = vmatprep.subr.bf16.mxu0 %v11744_v24  ;;  %v10107_v9 = vld [vmem:[%s17989_s29 + $0x450] sm:$0xff] }
 0x3c1   : > { %v10606_v51 = vadd.f32 %v10605_v50, %v10604_v20  ;;  %v5533_v18 = vpop.permute.xlu1 %5532  ;;  %vm5963_vm4 = vcmp.ne.f32.partialorder %v10106_v10, 0.0  ;;  %v6652_v24 = vsel %vm6631_vm3, 1, %v18011_v28  ;;  %v10129_v10 = vld [vmem:[%s17989_s29 + $0x500] sm:$0xff]  ;;  %vm5964_vm14 = vcmp.ne.f32.partialorder %v10107_v9, 0.0 }
 0x3c2   : > { %v5530_v25 = vpop.permute.xlu0 %5529  ;;  %v10607_v57 = vpop.f32.mrf.mxu0  ;;  %6225 = vperm.xlu1 %11655, %v6183_v43   ;;  %v14599_v52 = vadd.f32 %v10673_v48, %v14510_v56  ;;  %v6184_v56 = vsel %vm6163_vm15, 1, %v18011_v28  ;;  %vm5590_vm5 = vcmp.eq.s32.totalorder %v5533_v18, 1  ;;  %v5984_v18 = vsel %vm5963_vm4, 1, %v18011_v28 }
 0x3c3   : > { %v14603_v20 = vadd.f32 %v10606_v51, %v14230_v49  ;;  %vm5589_vm1 = vcmp.eq.s32.totalorder %v5530_v25, 1  ;;  %6691 = vperm.xlu0 %11654, %v6651_v53   ;;  %v10128_v53 = vld [vmem:[%s17989_s29 + $0x4f8] sm:$0xff]  ;;  %10810 = vmatpush3.bf16.msra.mxu0 %v11746_v63  ;;  %v11748_v51 = vld [vmem:[%s12065_s4 + $0x2a0] sm:$0xff]   ;;  %v18081_v63 = vmov 0  ;;  %vm6165_vm15 = vcmp.ne.f32.partialorder %v10129_v10, 0.0 }
 0x3c4   : > { %vm14608_vm2 = vmpackc.low %vm5589_vm1, %vm5588_vm0  ;;  %v10608_v43 = vpop.f32.mrf.mxu0  ;;  %vm6164_vm8 = vcmp.ne.f32.partialorder %v10128_v53, 0.0  ;;  %10811 = vmatprep.subr.bf16.mxu0 %v11748_v51  ;;  %v10231_v53 = vld [vmem:[%s17989_s29 + $0x5a0] sm:$0xff] }
 0x3c5   : > { %v18079_v11 = vsel %vm14608_vm2, 4294967295, %v18078_v11  ;;  %v10609_v38 = vadd.f32 %v10608_v43, %v10607_v57  ;;  %v10674_v49 = vpop.f32.mrf.mxu1  ;;  %v5539_v48 = vpop.permute.xlu1 %5538  ;;  %v11749_v43 = vld [vmem:[%s12065_s4 + $0x260] sm:$0xff]   ;;  %vm6633_vm4 = vcmp.ne.f32.partialorder %v10231_v53, 0.0 }
 0x3c6   : > { %18080 = vst [vmem:[#allocation92_spill] sm:$0xff] %v18079_v11  ;;  %v5536_v13 = vpop.permute.xlu0 %5535  ;;  %v10610_v50 = vpop.f32.mrf.mxu0  ;;  %6025 = vperm.xlu1 %11655, %v5983_v59   ;;  %vm5592_vm11 = vcmp.eq.s32.totalorder %v5539_v48, 1  ;;  %v11754_v53 = vld [vmem:[%s12065_s4 + $0x2c0] sm:$0xff]  }
 0x3c7   : > { %v14622_v25 = vadd.f32 %v10609_v38, %v14246_v1  ;;  %vm5591_vm6 = vcmp.eq.s32.totalorder %v5536_v13, 1  ;;  %6228 = vperm.xlu0 %11654, %v6184_v56   ;;  %v10675_v57 = vpop.f32.mrf.mxu1  ;;  %10812 = vmatpush3.bf16.msra.mxu0 %v11749_v43  ;;  %v11737_v43 = vld [vmem:[%s12065_s4 + $0x2d8] sm:$0xff]  }
 0x3c8   : > { %vm14627_vm7 = vmpackc.low %vm5591_vm6, %vm5590_vm5  ;;  %v10676_v59 = vadd.f32 %v10675_v57, %v10674_v49  ;;  %v10611_v11 = vpop.f32.mrf.mxu0  ;;  %vm5965_vm5 = vcmp.ne.f32.partialorder %v10108_v0, 0.0  ;;  %v10131_v0 = vld [vmem:[%s17989_s29 + $0x510] sm:$0xff] }
 0x3c9   : > { %v18082_v63 = vsel %vm14627_vm7, 4294967295, %v18081_v63  ;;  %v10612_v1 = vadd.f32 %v10611_v11, %v10610_v50  ;;  %v5545_v56 = vpop.permute.xlu1 %5544  ;;  %v11736_v11 = vld [vmem:[%s12065_s4 + $0x318] sm:$0xff]   ;;  %v14647_v57 = vpop.f32.mrf.mxu1 }
 0x3ca   : > { %18083 = vst [vmem:[#allocation93_spill] sm:$0xff] %v18082_v63  ;;  %v5542_v38 = vpop.permute.xlu0 %5541  ;;  %v10613_v13 = vpop.f32.mrf.mxu0  ;;  %6694 = vperm.xlu1 %11655, %v6652_v24   ;;  %v14640_v49 = vadd.f32 %v10676_v59, %v14533_v6  ;;  %v11750_v50 = vld [vmem:[%s12065_s4 + $0x298] sm:$0xff]   ;;  %v6185_v24 = vsel %vm6164_vm8, 1, %v18011_v28  ;;  %10731 = vmatprep.subr.bf16.mxu1 %v11736_v11  ;;  %vm5594_vm0 = vcmp.eq.s32.totalorder %v5545_v56, 1  ;;  %v6186_v56 = vsel %vm6165_vm15, 1, %v18011_v28 }
 0x3cb   : > { %v14645_v51 = vadd.f32 %v10612_v1, %v14261_v19  ;;  %vm5593_vm12 = vcmp.eq.s32.totalorder %v5542_v38, 1  ;;  %6028 = vperm.xlu0 %11654, %v5984_v18   ;;  %v11751_v63 = vld [vmem:[%s12065_s4 + $0x258] sm:$0xff]   ;;  %v6653_v19 = vsel %vm6632_vm10, 1, %v18011_v28  ;;  %10813 = vmatprep.subr.bf16.mxu0 %v11750_v50  ;;  %v11738_v38 = vld [vmem:[%s12065_s4 + $0x310] sm:$0xff]   ;;  %v14669_v11 = vpop.f32.mrf.mxu1  ;;  %vm6167_vm15 = vcmp.ne.f32.partialorder %v10131_v0, 0.0 }
 0x3cc   : > { %vm14653_vm13 = vmpackc.low %vm5593_vm12, %vm5592_vm11  ;;  %v10614_v6 = vpop.f32.mrf.mxu0  ;;  %10732 = vmatpush3.bf16.msra.mxu1 %v11737_v43  ;;  %10814 = vmatpush3.bf16.msra.mxu0 %v11751_v63  ;;  %v5985_v63 = vsel %vm5964_vm14, 1, %v18011_v28  ;;  %v11755_v43 = vld [vmem:[%s12065_s4 + $0x250] sm:$0xff]  }
 0x3cd   : > { %v18085_v29 = vsel %vm14653_vm13, 4294967295, %v18084_v29  ;;  %v10615_v48 = vadd.f32 %v10614_v6, %v10613_v13  ;;  %v14659_v59 = vpop.permute.xlu1 %4443  ;;  %v11753_v13 = vld [vmem:[%s12065_s4 + $0x290] sm:$0xff]   ;;  %v18088_v6 = vmov 0  ;;  %10733 = vmatprep.subr.bf16.mxu1 %v11738_v38  ;;  %v11756_v38 = vld [vmem:[%s12065_s4 + $0x288] sm:$0xff]  }
 0x3ce   : > { %18086 = vst [vmem:[#allocation94_spill] sm:$0xff] %v18085_v29  ;;  %18087 = vst [vmem:[#allocation95_spill] sm:$0xff] %v14659_v59  ;;  %v5548_v18 = vpop.permute.xlu0 %5547  ;;  %v10616_v1 = vpop.f32.mrf.mxu0  ;;  %6231 = vperm.xlu1 %11655, %v6185_v24   ;;  %v11739_v24 = vld [vmem:[%s12065_s4 + $0x2d0] sm:$0xff]   ;;  %10815 = vmatprep.subr.bf16.mxu0 %v11753_v13 }
 0x3cf   : > { %v14672_v50 = vadd.f32 %v10615_v48, %v14277_v37  ;;  %vm5595_vm1 = vcmp.eq.s32.totalorder %v5548_v18, 1  ;;  %6697 = vperm.xlu0 %11654, %v6653_v19   ;;  %v10130_v48 = vld [vmem:[%s17989_s29 + $0x508] sm:$0xff] }
 0x3d0   : > { %vm14678_vm3 = vmpackc.low %vm5595_vm1, %vm5594_vm0  ;;  %v10617_v29 = vpop.f32.mrf.mxu0  ;;  %10734 = vmatpush3.bf16.msra.mxu1 %v11739_v24  ;;  %v11745_v18 = vld [vmem:[%s12065_s4 + $0x308] sm:$0xff]   ;;  %10816 = vmatpush3.bf16.msra.mxu0 %v11755_v43  ;;  %v6654_v24 = vsel %vm6633_vm4, 1, %v18011_v28  ;;  %vm6166_vm6 = vcmp.ne.f32.partialorder %v10130_v48, 0.0 }
 0x3d1   : > { %v18089_v6 = vsel %vm14678_vm3, 4294967295, %v18088_v6  ;;  %v10618_v37 = vadd.f32 %v10617_v29, %v10616_v1  ;;  %v14684_v9 = vpop.f32.mrf.mxu1  ;;  %v5551_v19 = vpop.permute.xlu1 %5550  ;;  %v10232_v29 = vld [vmem:[%s17989_s29 + $0x5a8] sm:$0xff]  ;;  %v11752_v1 = vld [vmem:[%s12065_s4 + $0x300] sm:$0xff]   ;;  %10735 = vmatprep.subr.bf16.mxu1 %v11745_v18  ;;  %10817 = vmatprep.subr.bf16.mxu0 %v11756_v38 }
 0x3d2   : > { %18090 = vst [vmem:[#allocation96_spill] sm:$0xff] %v18089_v6  ;;  %v11747_v6 = vld [vmem:[%s12065_s4 + $0x2c8] sm:$0xff]   ;;  %v14691_v10 = vpop.permute.xlu0 %4446  ;;  %v10619_v59 = vpop.f32.mrf.mxu0  ;;  %6031 = vperm.xlu1 %11655, %v5985_v63   ;;  %v5986_v63 = vsel %vm5965_vm5, 1, %v18011_v28  ;;  %vm6634_vm8 = vcmp.ne.f32.partialorder %v10232_v29, 0.0  ;;  %v11758_v18 = vld [vmem:[%s12065_s4 + $0x280] sm:$0xff]   ;;  %vm5596_vm10 = vcmp.eq.s32.totalorder %v5551_v19, 1 }
 0x3d3   : > { %18091 = vst [vmem:[#allocation97_spill] sm:$0xff] %v14691_v10  ;;  %v14699_v13 = vadd.f32 %v10618_v37, %v14292_v62  ;;  %6234 = vperm.xlu0 %11654, %v6186_v56   ;;  %v14701_v34 = vpop.f32.mrf.mxu1  ;;  %v11757_v43 = vld [vmem:[%s12065_s4 + $0x248] sm:$0xff]   ;;  %v10109_v62 = vld [vmem:[%s17989_s29 + $0x460] sm:$0xff] }
 0x3d4   : > { %v10620_v59 = vpop.f32.mrf.mxu0  ;;  %10736 = vmatpush3.bf16.msra.mxu1 %v11747_v6  ;;  %10818 = vmatpush3.bf16.msra.mxu0 %v11757_v43  ;;  %v6187_v6 = vsel %vm6166_vm6, 1, %v18011_v28  ;;  %v18093_v43 = vmov 0  ;;  %vm5966_vm14 = vcmp.ne.f32.partialorder %v10109_v62, 0.0  ;;  %v10110_v29 = vld [vmem:[%s17989_s29 + $0x468] sm:$0xff] }
 0x3d5   : > { %v14708_v10 = vpop.permute.xlu1 %4449  ;;  %10737 = vmatprep.subr.bf16.mxu1 %v11752_v1  ;;  %v14720_v38 = vpop.f32.mrf.mxu1  ;;  %v11759_v59 = vld [vmem:[%s12065_s4 + $0x240] sm:$0xff]   ;;  %10819 = vmatprep.subr.bf16.mxu0 %v11758_v18  ;;  %v10233_v1 = vld [vmem:[%s17989_s29 + $0x5b0] sm:$0xff]  ;;  %v5987_v62 = vsel %vm5966_vm14, 1, %v18011_v28  ;;  %v6188_v18 = vsel %vm6167_vm15, 1, %v18011_v28  ;;  %vm5967_vm1 = vcmp.ne.f32.partialorder %v10110_v29, 0.0  ;;  %v18098_v29 = vmov 0 }
 0x3d6   : > { %18092 = vst [vmem:[#allocation98_spill] sm:$0xff] %v14708_v10  ;;  %v5554_v56 = vpop.permute.xlu0 %5553  ;;  %v14714_v37 = vpop.f32.mrf.mxu0  ;;  %6700 = vperm.xlu1 %11655, %v6654_v24   ;;  %v6655_v10 = vsel %vm6634_vm8, 1, %v18011_v28  ;;  %vm6635_vm0 = vcmp.ne.f32.partialorder %v10233_v1, 0.0  ;;  %v5988_v31 = vsel %vm5967_vm1, 1, %v18011_v28 }
 0x3d7   : > { %vm5597_vm11 = vcmp.eq.s32.totalorder %v5554_v56, 1  ;;  %6034 = vperm.xlu0 %11654, %v5986_v63   ;;  %v14739_v56 = vpop.f32.mrf.mxu1 }
 0x3d8   : > { %vm14725_vm12 = vmpackc.low %vm5597_vm11, %vm5596_vm10  ;;  %v11252_v24 = vpop.f32.mrf.mxu0  ;;  %10738 = vmatpush3.bf16.msra.mxu1 %v11754_v53  ;;  %10820 = vmatpush3.bf16.msra.mxu0 %v11759_v59 }
 0x3d9   : > { %v18094_v43 = vsel %vm14725_vm12, 4294967295, %v18093_v43  ;;  %v5557_v19 = vpop.permute.xlu1 %5556  ;;  %v11760_v24 = vld [vmem:[%s12065_s4 + $0x3b8] sm:$0xff]  }
 0x3da   : > { %18095 = vst [vmem:[#allocation99_spill] sm:$0xff] %v18094_v43  ;;  %v14734_v48 = vpop.permute.xlu0 %4452  ;;  %v3866_v63 = vpop.f32.mrf.mxu0  ;;  %6237 = vperm.xlu1 %11655, %v6187_v6   ;;  %v10132_v6 = vld [vmem:[%s17989_s29 + $0x518] sm:$0xff]  ;;  %10887 = vmatprep.subr.bf16.mxu1 %v11760_v24  ;;  %vm5598_vm4 = vcmp.eq.s32.totalorder %v5557_v19, 1  ;;  %v10111_v19 = vld [vmem:[%s17989_s29 + $0x470] sm:$0xff]  ;;  %v10133_v24 = vld [vmem:[%s17989_s29 + $0x520] sm:$0xff] }
 0x3db   : > { %18096 = vst [vmem:[#allocation100_spill] sm:$0xff] %v14734_v48  ;;  %6703 = vperm.xlu0 %11654, %v6655_v10   ;;  %v10234_v10 = vld [vmem:[%s17989_s29 + $0x5b8] sm:$0xff]  ;;  %vm6168_vm8 = vcmp.ne.f32.partialorder %v10132_v6, 0.0  ;;  %v14774_v6 = vadd.f32 %v3866_v63, %v14387_v8  ;;  %vm5968_vm11 = vcmp.ne.f32.partialorder %v10111_v19, 0.0  ;;  %vm6169_vm14 = vcmp.ne.f32.partialorder %v10133_v24, 0.0 }
 0x3dc   : > { %v11253_v0 = vpop.f32.mrf.mxu0  ;;  %vm6636_vm10 = vcmp.ne.f32.partialorder %v10234_v10, 0.0  ;;  %v10112_v19 = vld [vmem:[%s17989_s29 + $0x478] sm:$0xff] }
 0x3dd   : > { %v14744_v53 = vpop.f32.mrf.mxu1  ;;  %v14746_v59 = vpop.permute.xlu1 %4455  ;;  %v6656_v0 = vsel %vm6635_vm0, 1, %v18011_v28 }
 0x3de   : > { %18097 = vst [vmem:[#allocation101_spill] sm:$0xff] %v14746_v59  ;;  %v5560_v43 = vpop.permute.xlu0 %5559  ;;  %v3871_v48 = vpop.f32.mrf.mxu0  ;;  %6037 = vperm.xlu1 %11655, %v5987_v62  }
 0x3df   : > { %vm5599_vm5 = vcmp.eq.s32.totalorder %v5560_v43, 1  ;;  %6240 = vperm.xlu0 %11654, %v6188_v18   ;;  %v14754_v1 = vpop.f32.mrf.mxu1 }
 0x3e0   : > { %vm14757_vm6 = vmpackc.low %vm5599_vm5, %vm5598_vm4  ;;  %v11256_v59 = vpop.f32.mrf.mxu0  ;;  %vm5969_vm5 = vcmp.ne.f32.partialorder %v10112_v19, 0.0 }
 0x3e1   : > { %v18099_v29 = vsel %vm14757_vm6, 4294967295, %v18098_v29  ;;  %v5563_v62 = vpop.permute.xlu1 %5562  ;;  %v14770_v16 = vpop.f32.mrf.mxu1  ;;  %v6189_v59 = vsel %vm6168_vm8, 1, %v18011_v28  ;;  %v5990_v58 = vsel %vm5969_vm5, 1, %v18011_v28 }
 0x3e2   : > { %18100 = vst [vmem:[#allocation102_spill] sm:$0xff] %v18099_v29  ;;  %v14765_v43 = vpop.permute.xlu0 %4458  ;;  %v3874_v18 = vpop.f32.mrf.mxu0  ;;  %6706 = vperm.xlu1 %11655, %v6656_v0   ;;  %v6657_v29 = vsel %vm6636_vm10, 1, %v18011_v28  ;;  %v10235_v0 = vld [vmem:[%s17989_s29 + $0x5c0] sm:$0xff]  ;;  %vm5600_vm15 = vcmp.eq.s32.totalorder %v5563_v62, 1  ;;  %v10134_v62 = vld [vmem:[%s17989_s29 + $0x528] sm:$0xff] }
 0x3e3   : > { %18101 = vst [vmem:[#allocation103_spill] sm:$0xff] %v14765_v43  ;;  %6040 = vperm.xlu0 %11654, %v5988_v31   ;;  %v14784_v43 = vadd.f32 %v14714_v37, %v14370_v33  ;;  %v14787_v31 = vadd.f32 %v3871_v48, %v14407_v26  ;;  %v3999_v33 = vmul.f32 %v14774_v6, %v14774_v6  ;;  %v18103_v26 = vmov 0 }
 0x3e4   : > { %v11257_v10 = vpop.f32.mrf.mxu0  ;;  %v6190_v48 = vsel %vm6169_vm14, 1, %v18011_v28  ;;  %vm6637_vm4 = vcmp.ne.f32.partialorder %v10235_v0, 0.0  ;;  %vm6170_vm8 = vcmp.ne.f32.partialorder %v10134_v62, 0.0  ;;  %v18108_v62 = vmov 0 }
 0x3e5   : > { %v14777_v36 = vpop.permute.xlu1 %4461  ;;  %v14792_v10 = vpop.f32.mrf.mxu1  ;;  %v3998_v23 = vmul.f32 %v14784_v43, %v14784_v43  ;;  %v4000_v24 = vmul.f32 %v14787_v31, %v14787_v31  ;;  %v6658_v54 = vsel %vm6637_vm4, 1, %v18011_v28 }
 0x3e6   : > { %18102 = vst [vmem:[#allocation104_spill] sm:$0xff] %v14777_v36  ;;  %v5566_v8 = vpop.permute.xlu0 %5565  ;;  %v3879_v63 = vpop.f32.mrf.mxu0  ;;  %6243 = vperm.xlu1 %11655, %v6189_v59   ;;  %v5989_v36 = vsel %vm5968_vm11, 1, %v18011_v28 }
 0x3e7   : > { %vm5601_vm0 = vcmp.eq.s32.totalorder %v5566_v8, 1  ;;  %6709 = vperm.xlu0 %11654, %v6657_v29   ;;  %v14807_v29 = vadd.f32 %v3874_v18, %v14425_v35  ;;  %v10236_v35 = vld [vmem:[%s17989_s29 + $0x5c8] sm:$0xff]  ;;  %v14823_v18 = vadd.f32 %v3879_v63, %v14444_v5  ;;  %v4019_v17 = vadd.f32 %v3999_v33, %v3998_v23 }
 0x3e8   : > { %vm14797_vm1 = vmpackc.low %vm5601_vm0, %vm5600_vm15  ;;  %v11260_v37 = vpop.f32.mrf.mxu0  ;;  %vm6638_vm10 = vcmp.ne.f32.partialorder %v10236_v35, 0.0 }
 0x3e9   : > { %v18104_v26 = vsel %vm14797_vm1, 4294967295, %v18103_v26  ;;  %v14809_v59 = vpop.f32.mrf.mxu1  ;;  %v5569_v8 = vpop.permute.xlu1 %5568  ;;  %v3970_v37 = vadd.f32 %v14774_v6, %v14784_v43  ;;  %v4001_v5 = vmul.f32 %v14807_v29, %v14807_v29  ;;  %v4020_v12 = vadd.f32 %v4019_v17, %v4000_v24 }
 0x3ea   : > { %18105 = vst [vmem:[#allocation105_spill] sm:$0xff] %v18104_v26  ;;  %v14817_v26 = vpop.permute.xlu0 %4464  ;;  %v3882_v22 = vpop.f32.mrf.mxu0  ;;  %6043 = vperm.xlu1 %11655, %v5989_v36   ;;  %vm5602_vm14 = vcmp.eq.s32.totalorder %v5569_v8, 1 }
 0x3eb   : > { %18106 = vst [vmem:[#allocation106_spill] sm:$0xff] %v14817_v26  ;;  %6246 = vperm.xlu0 %11654, %v6190_v48   ;;  %v14825_v3 = vpop.f32.mrf.mxu1  ;;  %v10113_v26 = vld [vmem:[%s17989_s29 + $0x480] sm:$0xff]  ;;  %v3971_v36 = vadd.f32 %v3970_v37, %v14787_v31  ;;  %v14838_v63 = vadd.f32 %v3882_v22, %v14463_v47  ;;  %v10135_v22 = vld [vmem:[%s17989_s29 + $0x530] sm:$0xff]  ;;  %v4002_v47 = vmul.f32 %v14823_v18, %v14823_v18 }
 0x3ec   : > { %v11261_v21 = vpop.f32.mrf.mxu0  ;;  %vm5970_vm11 = vcmp.ne.f32.partialorder %v10113_v26, 0.0  ;;  %v4021_v8 = vadd.f32 %v4020_v12, %v4001_v5  ;;  %vm6171_vm4 = vcmp.ne.f32.partialorder %v10135_v22, 0.0  ;;  %v10114_v12 = vld [vmem:[%s17989_s29 + $0x488] sm:$0xff] }
 0x3ed   : > { %v14840_v0 = vpop.f32.mrf.mxu1  ;;  %v14842_v48 = vpop.permute.xlu1 %4467  ;;  %v3972_v23 = vadd.f32 %v3971_v36, %v14807_v29  ;;  %v6191_v21 = vsel %vm6170_vm8, 1, %v18011_v28  ;;  %v6659_v36 = vsel %vm6638_vm10, 1, %v18011_v28  ;;  %v6192_v26 = vsel %vm6171_vm4, 1, %v18011_v28 }
 0x3ee   : > { %18107 = vst [vmem:[#allocation107_spill] sm:$0xff] %v14842_v48  ;;  %v5572_v33 = vpop.permute.xlu0 %5571  ;;  %v3887_v37 = vpop.f32.mrf.mxu0  ;;  %6712 = vperm.xlu1 %11655, %v6658_v54   ;;  %v10237_v54 = vld [vmem:[%s17989_s29 + $0x5d0] sm:$0xff]  ;;  %v4022_v35 = vadd.f32 %v4021_v8, %v4002_v47  ;;  %vm5971_vm8 = vcmp.ne.f32.partialorder %v10114_v12, 0.0 }
 0x3ef   : > { %vm5603_vm15 = vcmp.eq.s32.totalorder %v5572_v33, 1  ;;  %v14853_v17 = vadd.f32 %v3887_v37, %v14481_v46  ;;  %6046 = vperm.xlu0 %11654, %v5990_v58   ;;  %v14855_v19 = vpop.f32.mrf.mxu1  ;;  %v3973_v33 = vadd.f32 %v3972_v23, %v14823_v18  ;;  %v4003_v58 = vmul.f32 %v14838_v63, %v14838_v63  ;;  %v10115_v12 = vld [vmem:[%s17989_s29 + $0x490] sm:$0xff] }
 0x3f0   : > { %vm14860_vm0 = vmpackc.low %vm5603_vm15, %vm5602_vm14  ;;  %v11264_v24 = vpop.f32.mrf.mxu0  ;;  %vm6639_vm5 = vcmp.ne.f32.partialorder %v10237_v54, 0.0  ;;  %v5992_v54 = vsel %vm5971_vm8, 1, %v18011_v28  ;;  %vm5972_vm8 = vcmp.ne.f32.partialorder %v10115_v12, 0.0 }
 0x3f1   : > { %v18109_v62 = vsel %vm14860_vm0, 4294967295, %v18108_v62  ;;  %v14869_v46 = vpop.f32.mrf.mxu1  ;;  %v5575_v37 = vpop.permute.xlu1 %5574  ;;  %v5991_v24 = vsel %vm5970_vm11, 1, %v18011_v28  ;;  %v3974_v5 = vadd.f32 %v3973_v33, %v14838_v63  ;;  %v4004_v23 = vmul.f32 %v14853_v17, %v14853_v17 }
 0x3f2   : > { %18110 = vst [vmem:[#allocation108_spill] sm:$0xff] %v18109_v62  ;;  %v14871_v48 = vpop.permute.xlu0 %4470  ;;  %v3890_v40 = vpop.f32.mrf.mxu0  ;;  %6249 = vperm.xlu1 %11655, %v6191_v21   ;;  %vm5604_vm10 = vcmp.eq.s32.totalorder %v5575_v37, 1  ;;  %v18113_v37 = vmov 0 }
 0x3f3   : > { %18111 = vst [vmem:[#allocation109_spill] sm:$0xff] %v14871_v48  ;;  %v14882_v22 = vadd.f32 %v3890_v40, %v14501_v4  ;;  %6715 = vperm.xlu0 %11654, %v6659_v36   ;;  %v14884_v62 = vpop.f32.mrf.mxu1  ;;  %v4023_v48 = vadd.f32 %v4022_v35, %v4003_v58  ;;  %v3975_v39 = vadd.f32 %v3974_v5, %v14853_v17  ;;  %v10136_v40 = vld [vmem:[%s17989_s29 + $0x538] sm:$0xff]  ;;  %v6660_v58 = vsel %vm6639_vm5, 1, %v18011_v28 }
 0x3f4   : > { %v11265_v21 = vpop.f32.mrf.mxu0  ;;  %v10238_v35 = vld [vmem:[%s17989_s29 + $0x5d8] sm:$0xff]  ;;  %vm6172_vm15 = vcmp.ne.f32.partialorder %v10136_v40, 0.0 }
 0x3f5   : > { %v4005_v47 = vmul.f32 %v14882_v22, %v14882_v22  ;;  %v10701_v8 = vpop.f32.mrf.mxu1  ;;  %v14890_v33 = vpop.permute.xlu1 %4473  ;;  %v4024_v5 = vadd.f32 %v4023_v48, %v4004_v23  ;;  %v3976_v21 = vadd.f32 %v3975_v39, %v14882_v22  ;;  %v10239_v48 = vld [vmem:[%s17989_s29 + $0x5e0] sm:$0xff]  ;;  %vm6640_vm4 = vcmp.ne.f32.partialorder %v10238_v35, 0.0 }
 0x3f6   : > { %18112 = vst [vmem:[#allocation110_spill] sm:$0xff] %v14890_v33  ;;  %v5578_v4 = vpop.permute.xlu0 %5577  ;;  %v3895_v36 = vpop.f32.mrf.mxu0  ;;  %6049 = vperm.xlu1 %11655, %v5991_v24   ;;  %vm6641_vm5 = vcmp.ne.f32.partialorder %v10239_v48, 0.0 }
 0x3f7   : > { %vm5605_vm11 = vcmp.eq.s32.totalorder %v5578_v4, 1  ;;  %v14902_v8 = vadd.f32 %v3895_v36, %v14530_v27  ;;  %6252 = vperm.xlu0 %11654, %v6192_v26   ;;  %v10702_v33 = vpop.f32.mrf.mxu1  ;;  %v4025_v39 = vadd.f32 %v4024_v5, %v4005_v47  ;;  %v6193_v47 = vsel %vm6172_vm15, 1, %v18011_v28 }
 0x3f8   : > { %vm14904_vm14 = vmpackc.low %vm5605_vm11, %vm5604_vm10  ;;  %v11268_v24 = vpop.f32.mrf.mxu0 }
 0x3f9   : > { %v18114_v37 = vsel %vm14904_vm14, 4294967295, %v18113_v37  ;;  %v3977_v23 = vadd.f32 %v3976_v21, %v14902_v8  ;;  %v4006_v27 = vmul.f32 %v14902_v8, %v14902_v8  ;;  %v5581_v26 = vpop.permute.xlu1 %5580  ;;  %v6661_v21 = vsel %vm6640_vm4, 1, %v18011_v28 }
 0x3fa   : > { %18115 = vst [vmem:[#allocation111_spill] sm:$0xff] %v18114_v37  ;;  %v14916_v33 = vpop.permute.xlu0 %4476  ;;  %v3898_v4 = vpop.f32.mrf.mxu0  ;;  %6718 = vperm.xlu1 %11655, %v6660_v58   ;;  %vm5606_vm10 = vcmp.eq.s32.totalorder %v5581_v26, 1 }
 0x3fb   : > { %v4026_v40 = vadd.f32 %v4025_v39, %v4006_v27  ;;  %v14922_v36 = vadd.f32 %v3898_v4, %v14548_v55  ;;  %6052 = vperm.xlu0 %11654, %v5992_v54   ;;  %v6662_v55 = vsel %vm6641_vm5, 1, %v18011_v28  ;;  %v5993_v4 = vsel %vm5972_vm8, 1, %v18011_v28 }
 0x3fc   : > { %v11269_v5 = vpop.f32.mrf.mxu0  ;;  %v10679_v28 = vadd.f32 %v14669_v11, %v14647_v57 }
 0x3fd   : > { %v3978_v35 = vadd.f32 %v3977_v23, %v14922_v36  ;;  %v4007_v58 = vmul.f32 %v14922_v36, %v14922_v36  ;;  %v14929_v24 = vpop.permute.xlu1 %4479  ;;  %v18116_v23 = vmov 0 }
 0x3fe   : > { %v5584_v37 = vpop.permute.xlu0 %5583  ;;  %v3903_v39 = vpop.f32.mrf.mxu0  ;;  %6255 = vperm.xlu1 %11655, %v6193_v47  }
 0x3ff   : > { %v4027_v54 = vadd.f32 %v4026_v40, %v4007_v58  ;;  %vm5607_vm11 = vcmp.eq.s32.totalorder %v5584_v37, 1  ;;  %v14933_v48 = vadd.f32 %v3903_v39, %v14581_v15  ;;  %6721 = vperm.xlu0 %11654, %v6661_v21  }
 0x400   : > { %vm14935_vm15 = vmpackc.low %vm5607_vm11, %vm5606_vm10  ;;  %v11272_v27 = vpop.f32.mrf.mxu0 }
 0x401   : > { %v18117_v23 = vsel %vm14935_vm15, 4294967295, %v18116_v23  ;;  %v3979_v12 = vadd.f32 %v3978_v35, %v14933_v48  ;;  %v4008_v47 = vmul.f32 %v14933_v48, %v14933_v48  ;;  %v14943_v5 = vpop.permute.xlu1 %6195 }
 0x402   : > { %18118 = vst [vmem:[#allocation112_spill] sm:$0xff] %v18117_v23  ;;  %v14945_v26 = vpop.permute.xlu0 %5586  ;;  %v3906_v37 = vpop.f32.mrf.mxu0  ;;  %6724 = vperm.xlu1 %11655, %v6662_v55  }
 0x403   : > { %18119 = vst [vmem:[#allocation113_spill] sm:$0xff] %v14945_v26  ;;  %v4028_v15 = vadd.f32 %v4027_v54, %v4008_v47  ;;  %v14948_v40 = vadd.f32 %v3906_v37, %v14599_v52  ;;  %6055 = vperm.xlu0 %11654, %v5993_v4   ;;  %v10682_v4 = vadd.f32 %v14701_v34, %v14684_v9 }
 0x404   : > { %v11273_v21 = vpop.f32.mrf.mxu0  ;;  %v3556_v47 = vadd.f32 %v10679_v28, %v14551_v41 }
 0x405   : > { %v3980_v35 = vadd.f32 %v3979_v12, %v14948_v40  ;;  %v4009_v58 = vmul.f32 %v14948_v40, %v14948_v40  ;;  %v14955_v39 = vpop.permute.xlu1 %5995 }
 0x406   : > { %18120 = vst [vmem:[#allocation114_spill] sm:$0xff] %v14955_v39  ;;  %v14957_v27 = vpop.permute.xlu0 %6198  ;;  %v3911_v26 = vpop.f32.mrf.mxu0  ;;  %v18260_v39 = vld [vmem:[#allocation62_spill] sm:$0xff] }
 0x407   : > { %v4029_v55 = vadd.f32 %v4028_v15, %v4009_v58  ;;  %v14960_v54 = vadd.f32 %v3911_v26, %v14640_v49  ;;  %v10685_v26 = vadd.f32 %v14739_v56, %v14720_v38  ;;  %v3557_v58 = vadd.f32 %v10682_v4, %v14567_v7 }
 0x408   : > { %v11276_v52 = vpop.f32.mrf.mxu0  ;;  %v10688_v56 = vadd.f32 %v14754_v1, %v14744_v53 }
 0x409   : > { %v3981_v57 = vadd.f32 %v3980_v35, %v14960_v54  ;;  %v4010_v11 = vmul.f32 %v14960_v54, %v14960_v54  ;;  %v6665_v12 = vpop.permute.xlu1 %6664 }
 0x40a   : > { %v14968_v37 = vpop.permute.xlu0 %5998  ;;  %v3914_v21 = vpop.f32.mrf.mxu0  ;;  %vm6726_vm4 = vcmp.eq.s32.totalorder %v6665_v12, 1 }
 0x40b   : > { %18121 = vst [vmem:[#allocation115_spill] sm:$0xff] %v14968_v37  ;;  %v4030_v23 = vadd.f32 %v4029_v55, %v4010_v11  ;;  %v14970_v15 = vadd.f32 %v3914_v21, %v3556_v47  ;;  %v18123_v11 = vmov 0 }
 0x40c   : > { %v11277_v49 = vpop.f32.mrf.mxu0 }
 0x40d   : > { %v3982_v34 = vadd.f32 %v3981_v57, %v14970_v15  ;;  %v4011_v9 = vmul.f32 %v14970_v15, %v14970_v15  ;;  %v14977_v35 = vpop.permute.xlu1 %6201 }
 0x40e   : > { %18122 = vst [vmem:[#allocation116_spill] sm:$0xff] %v14977_v35  ;;  %v6668_v41 = vpop.permute.xlu0 %6667  ;;  %v3919_v28 = vpop.f32.mrf.mxu0  ;;  %v18255_v35 = vld [vmem:[#allocation50_spill] sm:$0xff] }
 0x40f   : > { %v4031_v52 = vadd.f32 %v4030_v23, %v4011_v9  ;;  %vm6727_vm5 = vcmp.eq.s32.totalorder %v6668_v41, 1  ;;  %v14980_v55 = vadd.f32 %v3919_v28, %v3557_v58  ;;  %v3558_v23 = vadd.f32 %v10685_v26, %v14585_v44  ;;  %v11772_v28 = vld [vmem:[%s12065_s4 + $0x438] sm:$0xff]  }
 0x410   : > { %vm14982_vm8 = vmpackc.low %vm6727_vm5, %vm6726_vm4  ;;  %v11280_v38 = vpop.f32.mrf.mxu0  ;;  %v10691_v58 = vadd.f32 %v14792_v10, %v14770_v16  ;;  %v3559_v41 = vadd.f32 %v10688_v56, %v14603_v20  ;;  %10969 = vmatprep.subr.bf16.mxu0 %v11772_v28  ;;  %v10694_v16 = vadd.f32 %v14825_v3, %v14809_v59  ;;  %v10697_v59 = vadd.f32 %v14855_v19, %v14840_v0 }
 0x411   : > { %v18124_v11 = vsel %vm14982_vm8, 4294967295, %v18123_v11  ;;  %v3983_v57 = vadd.f32 %v3982_v34, %v14980_v55  ;;  %v4012_v7 = vmul.f32 %v14980_v55, %v14980_v55  ;;  %v14991_v4 = vpop.permute.xlu1 %6001 }
 0x412   : > { %18125 = vst [vmem:[#allocation117_spill] sm:$0xff] %v18124_v11  ;;  %18126 = vst [vmem:[#allocation118_spill] sm:$0xff] %v14991_v4  ;;  %v14994_v12 = vpop.permute.xlu0 %6204  ;;  %v3922_v47 = vpop.f32.mrf.mxu0  ;;  %v3560_v20 = vadd.f32 %v10691_v58, %v14622_v25 }
 0x413   : > { %18127 = vst [vmem:[#allocation119_spill] sm:$0xff] %v14994_v12  ;;  %v4032_v21 = vadd.f32 %v4031_v52, %v4012_v7  ;;  %v14996_v49 = vadd.f32 %v3922_v47, %v3558_v23  ;;  %v18256_v12 = vld [vmem:[#allocation52_spill] sm:$0xff] }
 0x414   : > { %v11281_v9 = vpop.f32.mrf.mxu0 }
 0x415   : > { %v3984_v53 = vadd.f32 %v3983_v57, %v14996_v49  ;;  %v4013_v1 = vmul.f32 %v14996_v49, %v14996_v49  ;;  %v6671_v34 = vpop.permute.xlu1 %6670 }
 0x416   : > { %v15005_v44 = vpop.permute.xlu0 %6004  ;;  %v3927_v26 = vpop.f32.mrf.mxu0  ;;  %vm6728_vm10 = vcmp.eq.s32.totalorder %v6671_v34, 1  ;;  %v3561_v34 = vadd.f32 %v10694_v16, %v14645_v51 }
 0x417   : > { %18128 = vst [vmem:[#allocation120_spill] sm:$0xff] %v15005_v44  ;;  %v4033_v38 = vadd.f32 %v4032_v21, %v4013_v1  ;;  %v15007_v52 = vadd.f32 %v3927_v26, %v3559_v41  ;;  %v18130_v1 = vmov 0 }
 0x418   : > { %v11284_v7 = vpop.f32.mrf.mxu0 }
 0x419   : > { %v3985_v10 = vadd.f32 %v3984_v53, %v15007_v52  ;;  %v4014_v57 = vmul.f32 %v15007_v52, %v15007_v52  ;;  %v15014_v23 = vpop.permute.xlu1 %6207 }
 0x41a   : > { %18129 = vst [vmem:[#allocation121_spill] sm:$0xff] %v15014_v23  ;;  %v6674_v56 = vpop.permute.xlu0 %6673  ;;  %v3930_v47 = vpop.f32.mrf.mxu0 }
 0x41b   : > { %v4034_v21 = vadd.f32 %v4033_v38, %v4014_v57  ;;  %vm6729_vm11 = vcmp.eq.s32.totalorder %v6674_v56, 1  ;;  %v15017_v9 = vadd.f32 %v3930_v47, %v3560_v20  ;;  %v10700_v57 = vadd.f32 %v14884_v62, %v14869_v46 }
 0x41c   : > { %vm15019_vm4 = vmpackc.low %vm6729_vm11, %vm6728_vm10  ;;  %v11285_v3 = vpop.f32.mrf.mxu0  ;;  %v3562_v20 = vadd.f32 %v10697_v59, %v14672_v50 }
 0x41d   : > { %v18131_v1 = vsel %vm15019_vm4, 4294967295, %v18130_v1  ;;  %v3986_v53 = vadd.f32 %v3985_v10, %v15017_v9  ;;  %v4015_v25 = vmul.f32 %v15017_v9, %v15017_v9  ;;  %v15028_v58 = vpop.permute.xlu1 %6007 }
 0x41e   : > { %18132 = vst [vmem:[#allocation122_spill] sm:$0xff] %v18131_v1  ;;  %18133 = vst [vmem:[#allocation123_spill] sm:$0xff] %v15028_v58  ;;  %v15031_v41 = vpop.permute.xlu0 %6210  ;;  %v3935_v28 = vpop.f32.mrf.mxu0 }
 0x41f   : > { %18134 = vst [vmem:[#allocation124_spill] sm:$0xff] %v15031_v41  ;;  %v4035_v26 = vadd.f32 %v4034_v21, %v4015_v25  ;;  %v15033_v38 = vadd.f32 %v3935_v28, %v3561_v34  ;;  %v18137_v28 = vmov 0  ;;  %v11762_v41 = vld [vmem:[%s12065_s4 + $0x3b0] sm:$0xff]  }
 0x420   : > { %v11288_v7 = vpop.f32.mrf.mxu0 }
 0x421   : > { %v3987_v0 = vadd.f32 %v3986_v53, %v15033_v38  ;;  %v4016_v19 = vmul.f32 %v15033_v38, %v15033_v38  ;;  %v6677_v10 = vpop.permute.xlu1 %6676  ;;  %v3563_v53 = vadd.f32 %v10700_v57, %v14699_v13 }
 0x422   : > { %v15041_v56 = vpop.permute.xlu0 %6010  ;;  %v3938_v51 = vpop.f32.mrf.mxu0  ;;  %vm6730_vm5 = vcmp.eq.s32.totalorder %v6677_v10, 1 }
 0x423   : > { %18135 = vst [vmem:[#allocation125_spill] sm:$0xff] %v15041_v56  ;;  %v4036_v16 = vadd.f32 %v4035_v26, %v4016_v19  ;;  %v15043_v47 = vadd.f32 %v3938_v51, %v3562_v20 }
 0x424   : > { %v11289_v21 = vpop.f32.mrf.mxu0 }
 0x425   : > { %v3988_v3 = vadd.f32 %v3987_v0, %v15043_v47  ;;  %v4017_v62 = vmul.f32 %v15043_v47, %v15043_v47  ;;  %v15048_v46 = vpop.permute.xlu1 %6213 }
 0x426   : > { %18136 = vst [vmem:[#allocation126_spill] sm:$0xff] %v15048_v46  ;;  %v6680_v25 = vpop.permute.xlu0 %6679  ;;  %v3943_v34 = vpop.f32.mrf.mxu0 }
 0x427   : > { %v4037_v50 = vadd.f32 %v4036_v16, %v4017_v62  ;;  %vm6731_vm10 = vcmp.eq.s32.totalorder %v6680_v25, 1  ;;  %v15051_v59 = vadd.f32 %v3943_v34, %v3563_v53 }
 0x428   : > { %vm15053_vm11 = vmpackc.low %vm6731_vm10, %vm6730_vm5  ;;  %v11292_v26 = vpop.f32.mrf.mxu0 }
 0x429   : > { %v18138_v28 = vsel %vm15053_vm11, 4294967295, %v18137_v28  ;;  %v3989_v7 = vadd.f32 %v3988_v3, %v15051_v59  ;;  %v4018_v0 = vmul.f32 %v15051_v59, %v15051_v59  ;;  %v15060_v19 = vpop.permute.xlu1 %6013  ;;  %vm18178_vm11 = vcmp.eq.s32.totalorder %v13971_v61, 1 }
 0x42a   : > { %18139 = vst [vmem:[#allocation127_spill] sm:$0xff] %v18138_v28  ;;  %18140 = vst [vmem:[#allocation128_spill] sm:$0xff] %v15060_v19  ;;  %v15062_v13 = vpop.permute.xlu0 %6216  ;;  %v3946_v57 = vpop.f32.mrf.mxu0 }
 0x42b   : > { %18141 = vst [vmem:[#allocation129_spill] sm:$0xff] %v15062_v13  ;;  %v3990_v10 = vrot.slane %v3989_v7, 4  ;;  %v4038_v20 = vadd.f32 %v4037_v50, %v4018_v0  ;;  %v18144_v57 = vmov 0 }
 0x42c   : > { %v11293_v51 = vpop.f32.mrf.mxu0 }
 0x42d   : > { %v3991_v16 = vadd.f32 %v3990_v10, %v3989_v7  ;;  %v4039_v21 = vrot.slane %v4038_v20, 4  ;;  %v6683_v62 = vpop.permute.xlu1 %6682 }
 0x42e   : > { %v15064_v53 = vpop.permute.xlu0 %6016  ;;  %vm6732_vm5 = vcmp.eq.s32.totalorder %v6683_v62, 1 }
 0x42f   : > { %18142 = vst [vmem:[#allocation130_spill] sm:$0xff] %v15064_v53  ;;  %v3992_v25 = vrot.slane %v3991_v16, 2  ;;  %v4040_v34 = vadd.f32 %v4039_v21, %v4038_v20 }
 0x431   : > { %v3993_v26 = vadd.f32 %v3992_v25, %v3991_v16  ;;  %v4041_v3 = vrot.slane %v4040_v34, 2  ;;  %v15066_v28 = vpop.permute.xlu1 %6219 }
 0x432   : > { %18143 = vst [vmem:[#allocation131_spill] sm:$0xff] %v15066_v28  ;;  %v6686_v1 = vpop.permute.xlu0 %6685 }
 0x433   : > { %v3994_v11 = vrot.slane %v3993_v26, 1  ;;  %v4042_v19 = vadd.f32 %v4041_v3, %v4040_v34  ;;  %vm6733_vm10 = vcmp.eq.s32.totalorder %v6686_v1, 1 }
 0x434   : > { %vm15068_vm9 = vmpackc.low %vm6733_vm10, %vm6732_vm5 }
 0x435   : > { %v18145_v57 = vsel %vm15068_vm9, 4294967295, %v18144_v57  ;;  %v3995_v50 = vadd.f32 %v3994_v11, %v3993_v26  ;;  %v4043_v7 = vrot.slane %v4042_v19, 1  ;;  %v15072_v0 = vpop.permute.xlu1 %6019 }
 0x436   : > { %18146 = vst [vmem:[#allocation132_spill] sm:$0xff] %v18145_v57  ;;  %18147 = vst [vmem:[#allocation133_spill] sm:$0xff] %v15072_v0  ;;  %v15074_v10 = vpop.permute.xlu0 %6222 }
 0x437   : > { %18148 = vst [vmem:[#allocation134_spill] sm:$0xff] %v15074_v10  ;;  %v15076_v20 = vmul.f32 0.005952381, %v3995_v50  ;;  %v4044_v51 = vadd.f32 %v4043_v7, %v4042_v19 }
 0x439   : > { %v4045_v16 = vmul.f32 0.005952381, %v4044_v51  ;;  %v4046_v21 = vmul.f32 %v15076_v20, %v15076_v20  ;;  %v4068_v1 = vsub.f32 %v15051_v59, %v15076_v20  ;;  %v6689_v62 = vpop.permute.xlu1 %6688  ;;  %v4049_v19 = vsub.f32 %v14774_v6, %v15076_v20 }
 0x43a   : > { %v15082_v25 = vpop.permute.xlu0 %6022  ;;  %vm6734_vm5 = vcmp.eq.s32.totalorder %v6689_v62, 1  ;;  %v18151_v62 = vmov 0  ;;  %v4050_v26 = vsub.f32 %v14787_v31, %v15076_v20  ;;  %v4053_v6 = vsub.f32 %v14838_v63, %v15076_v20  ;;  %v18161_v31 = vld [vmem:[#allocation53_spill] sm:$0xff] }
 0x43b   : > { %18149 = vst [vmem:[#allocation135_spill] sm:$0xff] %v15082_v25  ;;  %v4047_v34 = vsub.f32 %v4045_v16, %v4046_v21  ;;  %v4048_v21 = vsub.f32 %v14784_v43, %v15076_v20  ;;  %v18158_v43 = vmov 0 }
 0x43d   : > { %v4069_v3 = vadd.f32 1e-05, %v4047_v34  ;;  %v15090_v50 = vpop.permute.xlu1 %6225 }
 0x43e   : > { %18150 = vst [vmem:[#allocation136_spill] sm:$0xff] %v15090_v50  ;;  %v6692_v16 = vpop.permute.xlu0 %6691 }
 0x43f   : > { %11800 = vrsqrt.f32 %v4069_v3  ;;  %vm6735_vm10 = vcmp.eq.s32.totalorder %v6692_v16, 1 }
 0x440   : > { %vm15108_vm9 = vmpackc.low %vm6735_vm10, %vm6734_vm5  ;;  %vm18181_vm5 = vcmp.eq.s32.totalorder %v14156_v42, 1 }
 0x441   : > { %v18152_v62 = vsel %vm15108_vm9, 4294967295, %v18151_v62  ;;  %v15116_v51 = vpop.permute.xlu1 %6025  ;;  %vm18182_vm9 = vcmp.eq.s32.totalorder %v14183_v45, 1  ;;  %v18189_v45 = vsub.f32 %v14960_v54, %v15076_v20 }
 0x442   : > { %18153 = vst [vmem:[#allocation137_spill] sm:$0xff] %v18152_v62  ;;  %18154 = vst [vmem:[#allocation138_spill] sm:$0xff] %v15116_v51  ;;  %v15118_v3 = vpop.permute.xlu0 %6228  ;;  %v18163_v51 = vld [vmem:[#allocation54_spill] sm:$0xff] }
 0x443   : > { %18155 = vst [vmem:[#allocation139_spill] sm:$0xff] %v15118_v3 }
 0x445   : > { %v6695_v16 = vpop.permute.xlu1 %6694 }
 0x446   : > { %v15120_v34 = vpop.permute.xlu0 %6028  ;;  %vm6736_vm8 = vcmp.eq.s32.totalorder %v6695_v16, 1  ;;  %v4051_v16 = vsub.f32 %v14807_v29, %v15076_v20 }
 0x447   : > { %18156 = vst [vmem:[#allocation140_spill] sm:$0xff] %v15120_v34 }
 0x449   : > { %v15122_v7 = vpop.permute.xlu1 %6231 }
 0x44a   : > { %18157 = vst [vmem:[#allocation141_spill] sm:$0xff] %v15122_v7  ;;  %v6698_v59 = vpop.permute.xlu0 %6697 }
 0x44b   : > { %vm6737_vm15 = vcmp.eq.s32.totalorder %v6698_v59, 1  ;;  %v4052_v59 = vsub.f32 %v14823_v18, %v15076_v20 }
 0x44c   : > { %v15135_v11 = vpop.eup %11800  ;;  %vm15139_vm10 = vmpackc.low %vm6737_vm15, %vm6736_vm8  ;;  %vm18177_vm15 = vcmp.eq.s32.totalorder %v13979_v2, 1  ;;  %v18187_v2 = vsub.f32 %v14933_v48, %v15076_v20  ;;  %vm18201_vm8 = vcmp.eq.s32.totalorder %v18161_v31, 1  ;;  %v18252_v31 = vld [vmem:[#allocation57_spill] sm:$0xff] }
 0x44d   : > { %v18159_v43 = vsel %vm15139_vm10, 4294967295, %v18158_v43  ;;  %v4091_v62 = vmul.f32 %v15135_v11, %v4068_v1  ;;  %v15152_v57 = vpop.permute.xlu1 %6031  ;;  %v4071_v7 = vmul.f32 %v15135_v11, %v4048_v21  ;;  %v4073_v29 = vmul.f32 %v15135_v11, %v4050_v26  ;;  %vm15218_vm4 = vmpackc.low %vm18178_vm11, %vm18177_vm15 }
 0x44e   : > { %18160 = vst [vmem:[#allocation142_spill] sm:$0xff] %v18159_v43  ;;  %18162 = vst [vmem:[#allocation53_spill] sm:$0xff] %v15152_v57  ;;  %v4072_v43 = vmul.f32 %v15135_v11, %v4049_v19  ;;  %v15158_v18 = vpop.permute.xlu0 %6234  ;;  %v4074_v63 = vmul.f32 %v15135_v11, %v4051_v16  ;;  %v4075_v34 = vmul.f32 %v15135_v11, %v4052_v59  ;;  %v18167_v16 = vld [vmem:[#allocation30_spill] sm:$0xff]  ;;  %v18168_v59 = vld [vmem:[#allocation31_spill] sm:$0xff]  ;;  %vm18191_vm11 = vcmp.eq.s32.totalorder %v14248_v32, 1 }
 0x44f   : > { %18164 = vst [vmem:[#allocation54_spill] sm:$0xff] %v15158_v18  ;;  %v4076_v50 = vmul.f32 %v15135_v11, %v4053_v6  ;;  %v4112_v0 = vmax.f32 %v4091_v62, 0.0  ;;  %v15163_v1 = vmax.f32 %v4071_v7, 0.0  ;;  %v4054_v19 = vsub.f32 %v14853_v17, %v15076_v20  ;;  %v18169_v62 = vld [vmem:[#allocation55_spill] sm:$0xff]  ;;  %vm15226_vm10 = vmpackc.low %vm18182_vm9, %vm18181_vm5 }
 0x450   : > { %v15165_v57 = vmax.f32 %v4072_v43, 0.0  ;;  %v15169_v21 = vmax.f32 %v4073_v29, 0.0  ;;  %v15171_v26 = vmax.f32 %v4074_v63, 0.0  ;;  %v15173_v3 = vmax.f32 %v4075_v34, 0.0  ;;  %v18172_v29 = vld [vmem:[#allocation51_spill] sm:$0xff] }
 0x451   : > { %18165 = vst [vmem:[#allocation143_spill] sm:$0xff] %v15163_v1  ;;  %v15175_v18 = vmax.f32 %v4076_v50, 0.0  ;;  %4133 = vst [vmem:[#allocation3 + $0xa8] sm:$0xff] %v4112_v0  ;;  %v6701_v7 = vpop.permute.xlu1 %6700  ;;  %v4077_v17 = vmul.f32 %v15135_v11, %v4054_v19  ;;  %v18170_v34 = vsub.f32 %v14882_v22, %v15076_v20  ;;  %v18171_v43 = vsub.f32 %v14902_v8, %v15076_v20  ;;  %v18173_v0 = vld [vmem:[#allocation56_spill] sm:$0xff] }
 0x452   : > { %18166 = vst [vmem:[#allocation144_spill] sm:$0xff] %v15173_v3  ;;  %4113 = vst [vmem:[#allocation3 + $0x8] sm:$0xff] %v15163_v1  ;;  %v15193_v63 = vpop.permute.xlu0 %6034  ;;  %v18175_v19 = vsub.f32 %v14922_v36, %v15076_v20  ;;  %v4081_v61 = vmul.f32 %v15135_v11, %v18187_v2  ;;  %vm18190_vm9 = vcmp.eq.s32.totalorder %v14224_v30, 1  ;;  %v18195_v32 = vsub.f32 %v14970_v15, %v15076_v20  ;;  %v11761_v30 = vld [vmem:[%s12065_s4 + $0x378] sm:$0xff]   ;;  %v18250_v15 = vld [vmem:[#allocation32_spill] sm:$0xff] }
 0x453   : > { %4114 = vst [vmem:[#allocation3 + $0x10] sm:$0xff] %v15165_v57  ;;  %v4078_v50 = vmul.f32 %v15135_v11, %v18170_v34  ;;  %v4079_v6 = vmul.f32 %v15135_v11, %v18171_v43  ;;  %18174 = vst [vmem:[#allocation30_spill] sm:$0xff] %v15193_v63  ;;  %v18176_v43 = vld [vmem:[#allocation58_spill] sm:$0xff]  ;;  %v15208_v63 = vmax.f32 %v4077_v17, 0.0  ;;  %v18185_v17 = vld [vmem:[#allocation49_spill] sm:$0xff]  ;;  %v18196_v2 = vsub.f32 %v14980_v55, %v15076_v20 }
 0x454   : > { %4115 = vst [vmem:[#allocation3 + $0x18] sm:$0xff] %v15169_v21  ;;  %4116 = vst [vmem:[#allocation3 + $0x20] sm:$0xff] %v15171_v26  ;;  %v4080_v34 = vmul.f32 %v15135_v11, %v18175_v19  ;;  %v4083_v19 = vmul.f32 %v15135_v11, %v18189_v45  ;;  %v4084_v54 = vmul.f32 %v15135_v11, %v18195_v32  ;;  %vm18197_vm15 = vcmp.eq.s32.totalorder %v14176_v14, 1 }
 0x455   : > { %4117 = vst [vmem:[#allocation3 + $0x28] sm:$0xff] %v15173_v3  ;;  %4118 = vst [vmem:[#allocation3 + $0x30] sm:$0xff] %v15175_v18  ;;  %v15210_v25 = vmax.f32 %v4078_v50, 0.0  ;;  %v15212_v28 = vmax.f32 %v4079_v6, 0.0  ;;  %v18188_v6 = vsub.f32 %v14948_v40, %v15076_v20  ;;  %v15253_v48 = vpop.permute.xlu1 %6237  ;;  %vm18202_vm14 = vcmp.eq.s32.totalorder %v18169_v62, 1  ;;  %v4134_v62 = vld [vmem:[#allocation3] sm:$0xff] }
 0x456   : > { %v15231_v50 = vmax.f32 %v4080_v34, 0.0  ;;  %vm15249_vm5 = vmpackc.low %vm18191_vm11, %vm18190_vm9  ;;  %18194 = vst [vmem:[#allocation55_spill] sm:$0xff] %v15253_v48  ;;  %vm18198_vm9 = vcmp.eq.s32.totalorder %v14201_v60, 1  ;;  %vm6738_vm1 = vcmp.eq.s32.totalorder %v6701_v7, 1  ;;  %v6704_v55 = vpop.permute.xlu0 %6703  ;;  %v15287_v14 = vmax.f32 %v4081_v61, 0.0 }
 0x457   : > { %v4082_v42 = vmul.f32 %v15135_v11, %v18188_v6  ;;  %4119 = vst [vmem:[#allocation3 + $0x38] sm:$0xff] %v15208_v63  ;;  %4120 = vst [vmem:[#allocation3 + $0x40] sm:$0xff] %v15210_v25  ;;  %v4085_v6 = vmul.f32 %v15135_v11, %v18196_v2  ;;  %v15291_v32 = vmax.f32 %v4083_v19, 0.0  ;;  %v15301_v7 = vmax.f32 %v4084_v54, 0.0 }
 0x458   : > { %18186 = vst [vmem:[#allocation31_spill] sm:$0xff] %v15231_v50  ;;  %4121 = vst [vmem:[#allocation3 + $0x48] sm:$0xff] %v15212_v28  ;;  %v18213_v61 = vsub.f32 %v14996_v49, %v15076_v20  ;;  %v18215_v19 = vmov 0  ;;  %v15320_v54 = vpack.c.bf16 %v15287_v14, %v15231_v50 }
 0x459   : > { %vm15274_vm11 = vmpackc.low %vm18198_vm9, %vm18197_vm15  ;;  %4122 = vst [vmem:[#allocation3 + $0x50] sm:$0xff] %v15231_v50  ;;  %v15289_v60 = vmax.f32 %v4082_v42, 0.0  ;;  %vm18208_vm15 = vcmp.eq.s32.totalorder %v18163_v51, 1  ;;  %vm18209_vm9 = vcmp.eq.s32.totalorder %v18173_v0, 1  ;;  %v15307_v2 = vmax.f32 %v4085_v6, 0.0  ;;  %v4766_v51 = vld [vmem:[#allocation3 + $0x7] sm:$0xff]  ;;  %v15335_v8 = vpop.permute.xlu1 %6037 }
 0x45a   : > { %vm15282_vm0 = vmpackc.low %vm18202_vm14, %vm18201_vm8  ;;  %18205 = vst [vmem:[#allocation51_spill] sm:$0xff] %v15287_v14  ;;  %vm6739_vm14 = vcmp.eq.s32.totalorder %v6704_v55, 1  ;;  %v4086_v42 = vmul.f32 %v15135_v11, %v18213_v61  ;;  %v15313_v0 = vld [vmem:[#allocation3 + $0xf] sm:$0xff]  ;;  %v18219_v6 = vsub.f32 %v15007_v52, %v15076_v20  ;;  %v18220_v61 = vsub.f32 %v15017_v9, %v15076_v20  ;;  %v4334_v48 = vld [vmem:[#allocation3 + $0x1] sm:$0xff] }
 0x45b   : > { %18206 = vst [vmem:[#allocation56_spill] sm:$0xff] %v15289_v60  ;;  %18207 = vst [vmem:[#allocation58_spill] sm:$0xff] %v15291_v32  ;;  %v15325_v49 = vpack.c.bf16 %v15291_v32, %v15289_v60  ;;  %v15338_v10 = vld [vmem:[#allocation3 + $0x9] sm:$0xff]  ;;  %v15346_v52 = vpack.c.bf16 %v15307_v2, %v15301_v7  ;;  %v18224_v9 = vsub.f32 %v15033_v38, %v15076_v20  ;;  %v15356_v58 = vld [vmem:[#allocation3 + $0x17] sm:$0xff] }
 0x45c   : > { %vm15297_vm6 = vmpackc.low %vm18209_vm9, %vm18208_vm15  ;;  %18212 = vst [vmem:[#allocation49_spill] sm:$0xff] %v15301_v7  ;;  %v4087_v55 = vmul.f32 %v15135_v11, %v18219_v6  ;;  %v4088_v40 = vmul.f32 %v15135_v11, %v18220_v61  ;;  %v4566_v53 = vld [vmem:[#allocation3 + $0x2] sm:$0xff]  ;;  %v15341_v46 = vmax.f32 %v4086_v42, 0.0  ;;  %v15353_v61 = vpop.permute.xlu0 %6240  ;;  %v4567_v42 = vld [vmem:[#allocation3 + $0xa] sm:$0xff]  ;;  %vm18235_vm9 = vcmp.eq.s32.totalorder %v18168_v59, 1 }
 0x45d   : > { %18214 = vst [vmem:[#allocation145_spill] sm:$0xff] %v15307_v2  ;;  %vm15309_vm8 = vmpackc.low %vm6739_vm14, %vm6738_vm1  ;;  %v18225_v6 = vld [vmem:[#allocation29_spill] sm:$0xff]  ;;  %v18231_v38 = vld [vmem:[#allocation60_spill] sm:$0xff]  ;;  %vm18239_vm15 = vcmp.eq.s32.totalorder %v18176_v43, 1 }
 0x45e   : > { %v18216_v19 = vsel %vm15309_vm8, 4294967295, %v18215_v19  ;;  %18218 = vst [vmem:[#allocation147_spill] sm:$0xff] %v15313_v0  ;;  %4123 = vst [vmem:[#allocation3 + $0x58] sm:$0xff] %v15287_v14  ;;  %vm4715_vm1 = vcmp.eq.s32.totalorder %v18225_v6, 1  ;;  %v15358_v13 = vld [vmem:[#allocation3 + $0x1f] sm:$0xff]  ;;  %v15360_v56 = vmax.f32 %v4087_v55, 0.0 }
 0x45f   : > { %18217 = vst [vmem:[#allocation146_spill] sm:$0xff] %v18216_v19  ;;  %4124 = vst [vmem:[#allocation3 + $0x60] sm:$0xff] %v15289_v60  ;;  %v9878_v19 = vpack.c.bf16 %v15313_v0, %v4766_v51  ;;  %v4089_v51 = vmul.f32 %v15135_v11, %v18224_v9  ;;  %v15362_v23 = vmax.f32 %v4088_v40, 0.0  ;;  %v9881_v9 = vpack.c.bf16 %v4567_v42, %v4566_v53  ;;  %v15370_v4 = vld [vmem:[#allocation3 + $0x19] sm:$0xff]  ;;  %v15433_v6 = vld [vmem:[#allocation3 + $0x21] sm:$0xff] }
 0x460   : > { %4125 = vst [vmem:[#allocation3 + $0x68] sm:$0xff] %v15291_v32  ;;  %18221 = vst [vmem:[#allocation148_spill] sm:$0xff] %v15335_v8  ;;  %v9960_v8 = vpack.c.bf16 %v15338_v10, %v4334_v48  ;;  %v9963_v48 = vpack.c.bf16 %v15163_v1, %v4134_v62  ;;  %v18234_v40 = vsub.f32 %v15043_v47, %v15076_v20  ;;  %v11763_v20 = vld [vmem:[%s12065_s4 + $0x370] sm:$0xff]   ;;  %v11764_v42 = vld [vmem:[%s12065_s4 + $0x3a8] sm:$0xff]  }
 0x461   : > { %18222 = vst [vmem:[#allocation149_spill] sm:$0xff] %v15338_v10  ;;  %4126 = vst [vmem:[#allocation3 + $0x70] sm:$0xff] %v15301_v7  ;;  %9879 = vmatprep.mubr.msk.bf16.mxu1 %vm15249_vm5, %v9878_v19  ;;  %vm18236_vm5 = vcmp.eq.s32.totalorder %v18167_v16, 1  ;;  %v9884_v47 = vpack.c.bf16 %v15358_v13, %v15356_v58  ;;  %v11774_v16 = vld [vmem:[%s12065_s4 + $0x430] sm:$0xff]   ;;  %v15405_v59 = vpack.c.bf16 %v15360_v56, %v15341_v46  ;;  %v15407_v43 = vmax.f32 %v4089_v51, 0.0  ;;  %v15425_v19 = vpop.permute.xlu1 %6706  ;;  %v15427_v51 = vld [vmem:[#allocation3 + $0x12] sm:$0xff] }
 0x462   : > { %18223 = vst [vmem:[#allocation150_spill] sm:$0xff] %v15341_v46  ;;  %4127 = vst [vmem:[#allocation3 + $0x78] sm:$0xff] %v15307_v2  ;;  %v4090_v55 = vmul.f32 %v15135_v11, %v18234_v40  ;;  %9961 = vmatprep.mubr.msk.bf16.mxu0 %vm15226_vm10, %v9960_v8  ;;  %v11773_v11 = vld [vmem:[%s12065_s4 + $0x3f8] sm:$0xff]   ;;  %vm18243_vm10 = vcmp.eq.s32.totalorder %v18185_v17, 1  ;;  %9882 = vmatmul.mubr.msk.bf16.vlgmr.msra.gmra.mxu1 %vm15282_vm0, %v9881_v9  ;;  %v15429_v17 = vld [vmem:[#allocation3 + $0x1a] sm:$0xff]  ;;  %v15444_v9 = vpop.permute.xlu0 %6040  ;;  %vm4286_vm0 = vcmp.eq.s32.totalorder %v18250_v15, 1 }
 0x463   : > { %18226 = vst [vmem:[#allocation29_spill] sm:$0xff] %v15353_v61  ;;  %18227 = vst [vmem:[#allocation151_spill] sm:$0xff] %v15356_v58  ;;  %v15368_v61 = vld [vmem:[#allocation3 + $0x11] sm:$0xff]  ;;  %9964 = vmatmul.mubr.msk.bf16.vlgmr.msra.gmra.mxu0 %vm15218_vm4, %v9963_v48  ;;  %10888 = vmatpush3.bf16.msra.mxu1 %v11761_v30  ;;  %v15448_v8 = vld [vmem:[#allocation3 + $0x29] sm:$0xff]  ;;  %v9887_v58 = vpack.c.bf16 %v15429_v17, %v15427_v51 }
 0x464   : > { %18228 = vst [vmem:[#allocation152_spill] sm:$0xff] %v15358_v13  ;;  %18229 = vst [vmem:[#allocation153_spill] sm:$0xff] %v15360_v56  ;;  %v9966_v62 = vpack.c.bf16 %v15370_v4, %v15368_v61  ;;  %v15436_v40 = vmax.f32 %v4090_v55, 0.0  ;;  %9885 = vmatprep.mubr.msk.bf16.mxu1 %vm15297_vm6, %v9884_v47  ;;  %v15446_v48 = vld [vmem:[#allocation3 + $0x2f] sm:$0xff]  ;;  %v15450_v44 = vld [vmem:[#allocation3 + $0x37] sm:$0xff]  ;;  %v15455_v55 = vpack.c.bf16 %v15407_v43, %v15362_v23  ;;  %vm4917_vm6 = vcmp.eq.s32.totalorder %v18252_v31, 1 }
 0x465   : > { %18230 = vst [vmem:[#allocation154_spill] sm:$0xff] %v15362_v23  ;;  %18232 = vst [vmem:[#allocation60_spill] sm:$0xff] %v15368_v61  ;;  %v18251_v30 = vld [vmem:[#allocation33_spill] sm:$0xff]  ;;  %10889 = vmatprep.subr.bf16.mxu1 %v11762_v41  ;;  %v15464_v22 = vld [vmem:[#allocation3 + $0x31] sm:$0xff]  ;;  %10970 = vmatpush3.bf16.msra.mxu0 %v11773_v11  ;;  %v15485_v1 = vpop.permute.xlu1 %6243  ;;  %v9972_v15 = vpack.c.bf16 %v15448_v8, %v15433_v6 }
 0x466   : > { %18233 = vst [vmem:[#allocation155_spill] sm:$0xff] %v15370_v4  ;;  %4128 = vst [vmem:[#allocation3 + $0x80] sm:$0xff] %v15341_v46  ;;  %vm4285_vm4 = vcmp.eq.s32.totalorder %v18251_v30, 1  ;;  %9967 = vmatprep.mubr.msk.bf16.mxu0 %vm15274_vm11, %v9966_v62  ;;  %v15462_v47 = vld [vmem:[#allocation3 + $0x3f] sm:$0xff]  ;;  %v11775_v41 = vld [vmem:[%s12065_s4 + $0x3f0] sm:$0xff]   ;;  %10971 = vmatprep.subr.bf16.mxu0 %v11774_v16 }
 0x467   : > { %vm15382_vm14 = vmpackc.low %vm18236_vm5, %vm18235_vm9  ;;  %4129 = vst [vmem:[#allocation3 + $0x88] sm:$0xff] %v15360_v56  ;;  %v11765_v4 = vld [vmem:[%s12065_s4 + $0x368] sm:$0xff]   ;;  %v15490_v37 = vld [vmem:[#allocation3 + $0x4f] sm:$0xff]  ;;  %10890 = vmatpush3.bf16.msra.mxu1 %v11763_v20 }
 0x468   : > { %vm15390_vm8 = vmpackc.low %vm18239_vm15, %vm4715_vm1  ;;  %4130 = vst [vmem:[#allocation3 + $0x90] sm:$0xff] %v15362_v23  ;;  %vm18244_vm1 = vcmp.eq.s32.totalorder %v18172_v29, 1  ;;  %v15431_v29 = vld [vmem:[#allocation3 + $0x27] sm:$0xff]  ;;  %v18262_v13 = vld [vmem:[#allocation59_spill] sm:$0xff]  ;;  %10891 = vmatprep.subr.bf16.mxu1 %v11764_v42  ;;  %v18267_v42 = vmov 0 }
 0x469   : > { %18242 = vst [vmem:[#allocation156_spill] sm:$0xff] %v15407_v43  ;;  %vm15415_vm15 = vmpackc.low %vm18244_vm1, %vm18243_vm10  ;;  %vm18257_vm10 = vcmp.eq.s32.totalorder %v18231_v38, 1  ;;  %vm4718_vm1 = vcmp.eq.s32.totalorder %v18260_v39, 1  ;;  %v15488_v38 = vld [vmem:[#allocation3 + $0x47] sm:$0xff]  ;;  %v11766_v61 = vld [vmem:[%s12065_s4 + $0x3a0] sm:$0xff]   ;;  %v9890_v62 = vpack.c.bf16 %v15446_v48, %v15431_v29  ;;  %10972 = vmatpush3.bf16.msra.mxu0 %v11775_v41  ;;  %v18274_v41 = vpack.c.bf16 %v15169_v21, %v15165_v57  ;;  %v15568_v31 = vpop.permute.xlu1 %6043 }
 0x46a   : > { %18247 = vst [vmem:[#allocation157_spill] sm:$0xff] %v15444_v9  ;;  %18248 = vst [vmem:[#allocation158_spill] sm:$0xff] %v15446_v48  ;;  %v15466_v9 = vld [vmem:[#allocation3 + $0x39] sm:$0xff]  ;;  %v15492_v0 = vld [vmem:[#allocation3 + $0x41] sm:$0xff]  ;;  %9888 = vmatmul.mubr.msk.bf16.gmra.mxu1 %vm15390_vm8, %v9887_v58 }
 0x46b   : > { %18249 = vst [vmem:[#allocation159_spill] sm:$0xff] %v15448_v8  ;;  %4131 = vst [vmem:[#allocation3 + $0x98] sm:$0xff] %v15407_v43  ;;  %v15503_v10 = vld [vmem:[#allocation3 + $0x49] sm:$0xff]  ;;  %v11776_v16 = vld [vmem:[%s12065_s4 + $0x428] sm:$0xff]   ;;  %9970 = vmatmul.mubr.msk.bf16.gmra.mxu0 %vm15382_vm14, %v18274_v41  ;;  %10892 = vmatpush3.bf16.msra.mxu1 %v11765_v4  ;;  %v9896_v43 = vpack.c.bf16 %v15462_v47, %v15450_v44  ;;  %v9978_v23 = vpack.c.bf16 %v15466_v9, %v15464_v22 }
 0x46c   : > { %18253 = vst [vmem:[#allocation32_spill] sm:$0xff] %v15462_v47  ;;  %18254 = vst [vmem:[#allocation33_spill] sm:$0xff] %v15466_v9  ;;  %v15514_v51 = vld [vmem:[#allocation3 + $0x57] sm:$0xff]  ;;  %v15516_v20 = vld [vmem:[#allocation3 + $0x5f] sm:$0xff]  ;;  %9973 = vmatprep.mubr.msk.bf16.mxu0 %vm15415_vm15, %v9972_v15  ;;  %10973 = vmatprep.subr.bf16.mxu0 %v11776_v16 }
 0x46d   : > { %4132 = vst [vmem:[#allocation3 + $0xa0] sm:$0xff] %v15436_v40  ;;  %vm15475_vm11 = vmpackc.low %vm18257_vm10, %vm4917_vm6  ;;  %vm4717_vm6 = vcmp.eq.s32.totalorder %v18262_v13, 1  ;;  %vm6740_vm10 = vcmp.eq.s32.totalorder %v15425_v19, 1  ;;  %v15518_v17 = vld [vmem:[#allocation3 + $0x51] sm:$0xff]  ;;  %v15544_v30 = vld [vmem:[#allocation3 + $0x59] sm:$0xff]  ;;  %10893 = vmatprep.subr.bf16.mxu1 %v11766_v61 }
 0x46e   : > { %18261 = vst [vmem:[#allocation57_spill] sm:$0xff] %v15485_v1  ;;  %v6710_v1 = vpop.permute.xlu0 %6709  ;;  %vm15526_vm9 = vmpackc.low %vm4286_vm0, %vm4285_vm4  ;;  %v11778_v11 = vld [vmem:[%s12065_s4 + $0x3e8] sm:$0xff]   ;;  %vm18270_vm0 = vcmp.eq.s32.totalorder %v18255_v35, 1  ;;  %vm18271_vm4 = vcmp.eq.s32.totalorder %v18256_v12, 1  ;;  %v11767_v35 = vld [vmem:[%s12065_s4 + $0x360] sm:$0xff]   ;;  %9891 = vmatprep.mubr.msk.bf16.mxu1 %vm15475_vm11, %v9890_v62  ;;  %v6713_v62 = vpop.permute.xlu1 %6712 }
 0x46f   : > { %vm6741_vm5 = vcmp.eq.s32.totalorder %v6710_v1, 1  ;;  %vm15534_vm12 = vmpackc.low %vm4718_vm1, %vm4717_vm6  ;;  %18275 = vst [vmem:[#allocation52_spill] sm:$0xff] %v15568_v31  ;;  %v15571_v39 = vld [vmem:[#allocation3 + $0x67] sm:$0xff]  ;;  %v15573_v12 = vld [vmem:[#allocation3 + $0x6f] sm:$0xff]  ;;  %10974 = vmatpush3.bf16.msra.mxu0 %v11778_v11  ;;  %10894 = vmatpush3.bf16.msra.mxu1 %v11767_v35  ;;  %vm6742_vm11 = vcmp.eq.s32.totalorder %v6713_v62, 1 }
 0x470   : > { %vm15538_vm3 = vmpackc.low %vm6741_vm5, %vm6740_vm10  ;;  %v11780_v13 = vld [vmem:[%s12065_s4 + $0x420] sm:$0xff]   ;;  %v15587_v41 = vld [vmem:[#allocation3 + $0x61] sm:$0xff] }
 0x471   : > { %v18268_v42 = vsel %vm15538_vm3, 4294967295, %v18267_v42  ;;  %vm15557_vm5 = vmpackc.low %vm18271_vm4, %vm18270_vm0  ;;  %v18276_v50 = vld [vmem:[#allocation64_spill] sm:$0xff]  ;;  %v15589_v31 = vld [vmem:[#allocation3 + $0x69] sm:$0xff]  ;;  %10975 = vmatprep.subr.bf16.mxu0 %v11780_v13 }
 0x472   : > { %18269 = vst [vmem:[#allocation50_spill] sm:$0xff] %v18268_v42  ;;  %vm4920_vm8 = vcmp.eq.s32.totalorder %v18276_v50, 1  ;;  %v15585_v53 = vpop.permute.xlu0 %6246  ;;  %v11768_v48 = vld [vmem:[%s12065_s4 + $0x398] sm:$0xff]   ;;  %v11781_v8 = vld [vmem:[%s12065_s4 + $0x3e0] sm:$0xff]   ;;  %v4570_v58 = vld [vmem:[#allocation3 + $0x22] sm:$0xff]  ;;  %v15657_v13 = vpop.permute.xlu1 %6249 }
 0x473   : > { %18277 = vst [vmem:[#allocation62_spill] sm:$0xff] %v15585_v53  ;;  %v15595_v32 = vld [vmem:[#allocation3 + $0x77] sm:$0xff]  ;;  %v15597_v45 = vld [vmem:[#allocation3 + $0x7f] sm:$0xff]  ;;  %v4571_v53 = vld [vmem:[#allocation3 + $0x2a] sm:$0xff]  ;;  %10895 = vmatprep.subr.bf16.mxu1 %v11768_v48  ;;  %10976 = vmatpush3.bf16.msra.mxu0 %v11781_v8 }
 0x474   : > { %v18278_v15 = vld [vmem:[#allocation61_spill] sm:$0xff]  ;;  %v15604_v7 = vld [vmem:[#allocation3 + $0x71] sm:$0xff]  ;;  %v15606_v34 = vld [vmem:[#allocation3 + $0x79] sm:$0xff]  ;;  %v9893_v61 = vpack.c.bf16 %v4571_v53, %v4570_v58  ;;  %v18282_v53 = vpack.c.bf16 %v15173_v3, %v15171_v26  ;;  %18283 = vst [vmem:[#allocation64_spill] sm:$0xff] %v15657_v13 }
 0x475   : > { %vm4919_vm14 = vcmp.eq.s32.totalorder %v18278_v15, 1  ;;  %v15616_v15 = vld [vmem:[#allocation3 + $0x87] sm:$0xff]  ;;  %v15626_v36 = vld [vmem:[#allocation3 + $0x8f] sm:$0xff]  ;;  %v15635_v11 = vld [vmem:[#allocation3 + $0x97] sm:$0xff] }
 0x476   : > { %vm15612_vm15 = vmpackc.low %vm4920_vm8, %vm4919_vm14  ;;  %v15624_v50 = vpop.permute.xlu0 %6046  ;;  %v15628_v2 = vld [vmem:[#allocation3 + $0x81] sm:$0xff]  ;;  %v15630_v46 = vld [vmem:[#allocation3 + $0x89] sm:$0xff]  ;;  %9894 = vmatmul.mubr.msk.bf16.gmra.mxu1 %vm15534_vm12, %v9893_v61  ;;  %9976 = vmatmul.mubr.msk.bf16.gmra.mxu0 %vm15526_vm9, %v18282_v53 }
 0x477   : > { %18281 = vst [vmem:[#allocation59_spill] sm:$0xff] %v15624_v50  ;;  %v11769_v14 = vld [vmem:[%s12065_s4 + $0x358] sm:$0xff]   ;;  %v11770_v50 = vld [vmem:[%s12065_s4 + $0x390] sm:$0xff]   ;;  %v15659_v48 = vld [vmem:[#allocation3 + $0x9f] sm:$0xff]  ;;  %9897 = vmatprep.mubr.msk.bf16.mxu1 %vm15612_vm15, %v9896_v43  ;;  %9979 = vmatprep.mubr.msk.bf16.mxu0 %vm15557_vm5, %v9978_v23  ;;  %v18287_v43 = vmov 0 }
 0x478   : > { %v11782_v56 = vld [vmem:[%s12065_s4 + $0x418] sm:$0xff]   ;;  %v15661_v8 = vld [vmem:[#allocation3 + $0x99] sm:$0xff]  ;;  %v11785_v4 = vld [vmem:[%s12065_s4 + $0x410] sm:$0xff]   ;;  %10896 = vmatpush3.bf16.msra.mxu1 %v11769_v14 }
 0x479   : > { %v15645_v60 = vld [vmem:[#allocation3 + $0x91] sm:$0xff]  ;;  %v15671_v53 = vld [vmem:[#allocation3 + $0xa7] sm:$0xff]  ;;  %10977 = vmatprep.subr.bf16.mxu0 %v11782_v56  ;;  %v4573_v42 = vld [vmem:[#allocation3 + $0x3a] sm:$0xff]  ;;  %10897 = vmatprep.subr.bf16.mxu1 %v11770_v50 }
 0x47a   : > { %v11783_v35 = vld [vmem:[%s12065_s4 + $0x3d8] sm:$0xff]   ;;  %v6716_v1 = vpop.permute.xlu0 %6715  ;;  %v15673_v58 = vld [vmem:[#allocation3 + $0xa1] sm:$0xff] }
 0x47b   : > { %v18284_v61 = vld [vmem:[#allocation34_spill] sm:$0xff]  ;;  %v18285_v13 = vld [vmem:[#allocation35_spill] sm:$0xff]  ;;  %vm6743_vm1 = vcmp.eq.s32.totalorder %v6716_v1, 1  ;;  %v11777_v19 = vld [vmem:[%s12065_s4 + $0x388] sm:$0xff]   ;;  %10978 = vmatpush3.bf16.msra.mxu0 %v11783_v35  ;;  %v15699_v1 = vpop.permute.xlu1 %6049 }
 0x47c   : > { %vm4288_vm12 = vcmp.eq.s32.totalorder %v18284_v61, 1  ;;  %vm4287_vm9 = vcmp.eq.s32.totalorder %v18285_v13, 1  ;;  %v11771_v47 = vld [vmem:[%s12065_s4 + $0x350] sm:$0xff]   ;;  %vm15680_vm10 = vmpackc.low %vm6743_vm1, %vm6742_vm11  ;;  %v4572_v23 = vld [vmem:[#allocation3 + $0x32] sm:$0xff]  ;;  %10979 = vmatprep.subr.bf16.mxu0 %v11785_v4  ;;  %18295 = vst [vmem:[#allocation34_spill] sm:$0xff] %v15699_v1 }
 0x47d   : > { %v11787_v9 = vld [vmem:[%s12065_s4 + $0x3d0] sm:$0xff]   ;;  %v18288_v43 = vsel %vm15680_vm10, 4294967295, %v18287_v43  ;;  %v18290_v56 = vld [vmem:[#allocation68_spill] sm:$0xff]  ;;  %vm15693_vm4 = vmpackc.low %vm4288_vm12, %vm4287_vm9  ;;  %v9899_v4 = vpack.c.bf16 %v4573_v42, %v4572_v23  ;;  %10898 = vmatpush3.bf16.msra.mxu1 %v11771_v47  ;;  %v18299_v47 = vpack.c.bf16 %v15208_v63, %v15175_v18 }
 0x47e   : > { %v18286_v3 = vld [vmem:[#allocation66_spill] sm:$0xff]  ;;  %18289 = vst [vmem:[#allocation61_spill] sm:$0xff] %v18288_v43  ;;  %vm4922_vm0 = vcmp.eq.s32.totalorder %v18290_v56, 1  ;;  %v18293_v50 = vld [vmem:[#allocation63_spill] sm:$0xff]  ;;  %v18294_v35 = vld [vmem:[#allocation97_spill] sm:$0xff]  ;;  %v15701_v14 = vpop.permute.xlu0 %6252  ;;  %v9984_v43 = vpack.c.bf16 %v15503_v10, %v15492_v0  ;;  %10899 = vmatprep.subr.bf16.mxu1 %v11777_v19 }
 0x47f   : > { %vm4720_vm6 = vcmp.eq.s32.totalorder %v18286_v3, 1  ;;  %vm4719_vm5 = vcmp.eq.s32.totalorder %v18293_v50, 1  ;;  %vm4490_vm8 = vcmp.eq.s32.totalorder %v18294_v35, 1  ;;  %18296 = vst [vmem:[#allocation35_spill] sm:$0xff] %v15701_v14  ;;  %v18297_v56 = vld [vmem:[#allocation65_spill] sm:$0xff]  ;;  %v18298_v62 = vld [vmem:[#allocation95_spill] sm:$0xff]  ;;  %v9902_v50 = vpack.c.bf16 %v15490_v37, %v15488_v38  ;;  %10980 = vmatpush3.bf16.msra.mxu0 %v11787_v9  ;;  %v6719_v1 = vpop.permute.xlu1 %6718 }
 0x480   : > { %vm4921_vm14 = vcmp.eq.s32.totalorder %v18297_v56, 1  ;;  %vm9898_vm15 = vmpackc.low %vm4720_vm6, %vm4719_vm5  ;;  %v11779_v13 = vld [vmem:[%s12065_s4 + $0x348] sm:$0xff]   ;;  %vm4489_vm9 = vcmp.eq.s32.totalorder %v18298_v62, 1  ;;  %v11784_v56 = vld [vmem:[%s12065_s4 + $0x380] sm:$0xff]   ;;  %9982 = vmatmul.mubr.msk.bf16.gmra.mxu0 %vm15693_vm4, %v18299_v47 }
 0x481   : > { %v11788_v61 = vld [vmem:[%s12065_s4 + $0x408] sm:$0xff]   ;;  %vm9901_vm12 = vmpackc.low %vm4922_vm0, %vm4921_vm14  ;;  %9900 = vmatmul.mubr.msk.bf16.gmra.mxu1 %vm9898_vm15, %v9899_v4  ;;  %v11790_v23 = vld [vmem:[%s12065_s4 + $0x400] sm:$0xff]  }
 0x482   : > { %v11789_v3 = vld [vmem:[%s12065_s4 + $0x3c8] sm:$0xff]   ;;  %vm9983_vm11 = vmpackc.low %vm4490_vm8, %vm4489_vm9  ;;  %9903 = vmatprep.mubr.msk.bf16.mxu1 %vm9901_vm12, %v9902_v50  ;;  %v15725_v9 = vpop.permute.xlu0 %6052  ;;  %v18302_v19 = vld [vmem:[#allocation70_spill] sm:$0xff]  ;;  %10900 = vmatpush3.bf16.msra.mxu1 %v11779_v13 }
 0x483   : > { %v18300_v42 = vld [vmem:[#allocation36_spill] sm:$0xff]  ;;  %v18301_v62 = vld [vmem:[#allocation37_spill] sm:$0xff]  ;;  %9985 = vmatprep.mubr.msk.bf16.mxu0 %vm9983_vm11, %v9984_v43  ;;  %vm4722_vm0 = vcmp.eq.s32.totalorder %v18302_v19, 1  ;;  %10981 = vmatprep.subr.bf16.mxu0 %v11788_v61  ;;  %v18306_v50 = vld [vmem:[#allocation67_spill] sm:$0xff]  ;;  %vm6744_vm11 = vcmp.eq.s32.totalorder %v6719_v1, 1  ;;  %v9908_v19 = vpack.c.bf16 %v15516_v20, %v15514_v51  ;;  %v18315_v1 = vpack.c.bf16 %v15212_v28, %v15210_v25 }
 0x484   : > { %vm4290_vm1 = vcmp.eq.s32.totalorder %v18300_v42, 1  ;;  %vm4289_vm6 = vcmp.eq.s32.totalorder %v18301_v62, 1  ;;  %v11786_v35 = vld [vmem:[%s12065_s4 + $0x340] sm:$0xff]   ;;  %v4574_v16 = vld [vmem:[#allocation3 + $0x42] sm:$0xff]  ;;  %v4575_v47 = vld [vmem:[#allocation3 + $0x4a] sm:$0xff]  ;;  %10901 = vmatprep.subr.bf16.mxu1 %v11784_v56  ;;  %10982 = vmatpush3.bf16.msra.mxu0 %v11789_v3  ;;  %vm4721_vm8 = vcmp.eq.s32.totalorder %v18306_v50, 1 }
 0x485   : > { %v18303_v4 = vld [vmem:[#allocation72_spill] sm:$0xff]  ;;  %vm15735_vm4 = vmpackc.low %vm4290_vm1, %vm4289_vm6  ;;  %10983 = vmatprep.subr.bf16.mxu0 %v11790_v23  ;;  %v18307_v13 = vld [vmem:[#allocation69_spill] sm:$0xff]  ;;  %v9905_v42 = vpack.c.bf16 %v4575_v47, %v4574_v16  ;;  %v18312_v23 = vmov 0  ;;  %v18314_v50 = vmov 0.0  }
 0x486   : > { %vm4924_vm5 = vcmp.eq.s32.totalorder %v18303_v4, 1  ;;  %v11791_v14 = vld [vmem:[%s12065_s4 + $0x3c0] sm:$0xff]   ;;  %vm4923_vm14 = vcmp.eq.s32.totalorder %v18307_v13, 1  ;;  %vm15743_vm15 = vmpackc.low %vm4722_vm0, %vm4721_vm8  ;;  %v6722_v3 = vpop.permute.xlu0 %6721  ;;  %10902 = vmatpush3.bf16.msra.mxu1 %v11786_v35  ;;  %v18311_v62 = vld [vmem:[#allocation98_spill] sm:$0xff]  ;;  %v9990_v4 = vpack.c.bf16 %v15544_v30, %v15518_v17 }
 0x487   : > { %v18310_v56 = vld [vmem:[#allocation100_spill] sm:$0xff]  ;;  %vm9907_vm9 = vmpackc.low %vm4924_vm5, %vm4923_vm14  ;;  %vm6745_vm1 = vcmp.eq.s32.totalorder %v6722_v3, 1  ;;  %vm4491_vm6 = vcmp.eq.s32.totalorder %v18311_v62, 1  ;;  %11294 = vmatprep.subr.bf16.mxu1 %v18314_v50  ;;  %v18316_v35 = vld [vmem:[#allocation38_spill] sm:$0xff] }
 0x488   : > { %vm4492_vm12 = vcmp.eq.s32.totalorder %v18310_v56, 1  ;;  %vm15749_vm10 = vmpackc.low %vm6745_vm1, %vm6744_vm11  ;;  %10984 = vmatpush3.bf16.msra.mxu0 %v11791_v14  ;;  %vm4292_vm5 = vcmp.eq.s32.totalorder %v18316_v35, 1  ;;  %v18317_v16 = vld [vmem:[#allocation39_spill] sm:$0xff]  ;;  %v18318_v47 = vld [vmem:[#allocation74_spill] sm:$0xff] }
 0x489   : > { %v18313_v23 = vsel %vm15749_vm10, 4294967295, %v18312_v23  ;;  %vm9989_vm0 = vmpackc.low %vm4492_vm12, %vm4491_vm6  ;;  %9906 = vmatmul.mubr.msk.bf16.gmra.mxu1 %vm15743_vm15, %v9905_v42  ;;  %9988 = vmatmul.mubr.msk.bf16.gmra.mxu0 %vm15735_vm4, %v18315_v1  ;;  %vm4291_vm8 = vcmp.eq.s32.totalorder %v18317_v16, 1  ;;  %vm4724_vm14 = vcmp.eq.s32.totalorder %v18318_v47, 1  ;;  %v4576_v14 = vld [vmem:[#allocation3 + $0x52] sm:$0xff]  ;;  %v4577_v13 = vld [vmem:[#allocation3 + $0x5a] sm:$0xff] }
 0x48a   : > { %9909 = vmatprep.mubr.msk.bf16.mxu1 %vm9907_vm9, %v9908_v19  ;;  %9991 = vmatprep.mubr.msk.bf16.mxu0 %vm9989_vm0, %v9990_v4  ;;  %v18319_v56 = vld [vmem:[#allocation76_spill] sm:$0xff]  ;;  %vm9992_vm11 = vmpackc.low %vm4292_vm5, %vm4291_vm8  ;;  %v18320_v61 = vld [vmem:[#allocation71_spill] sm:$0xff]  ;;  %v9911_v43 = vpack.c.bf16 %v4577_v13, %v4576_v14  ;;  %v9914_v19 = vpack.c.bf16 %v15573_v12, %v15571_v39  ;;  %v9996_v4 = vpack.c.bf16 %v15589_v31, %v15587_v41 }
 0x48b   : > { %vm4926_vm12 = vcmp.eq.s32.totalorder %v18319_v56, 1  ;;  %vm4723_vm15 = vcmp.eq.s32.totalorder %v18320_v61, 1  ;;  %v18321_v3 = vld [vmem:[#allocation103_spill] sm:$0xff]  ;;  %v18322_v42 = vld [vmem:[#allocation73_spill] sm:$0xff]  ;;  %v18324_v1 = vld [vmem:[#allocation40_spill] sm:$0xff] }
 0x48c   : > { %vm4494_vm1 = vcmp.eq.s32.totalorder %v18321_v3, 1  ;;  %vm4925_vm6 = vcmp.eq.s32.totalorder %v18322_v42, 1  ;;  %vm9910_vm4 = vmpackc.low %vm4724_vm14, %vm4723_vm15  ;;  %v18323_v62 = vld [vmem:[#allocation101_spill] sm:$0xff]  ;;  %vm4294_vm5 = vcmp.eq.s32.totalorder %v18324_v1, 1  ;;  %v18326_v16 = vld [vmem:[#allocation78_spill] sm:$0xff] }
 0x48d   : > { %vm9913_vm9 = vmpackc.low %vm4926_vm12, %vm4925_vm6  ;;  %vm4493_vm0 = vcmp.eq.s32.totalorder %v18323_v62, 1  ;;  %v18325_v35 = vld [vmem:[#allocation41_spill] sm:$0xff]  ;;  %vm4726_vm14 = vcmp.eq.s32.totalorder %v18326_v16, 1  ;;  %v18327_v13 = vld [vmem:[#allocation80_spill] sm:$0xff]  ;;  %v9920_v62 = vpack.c.bf16 %v15597_v45, %v15595_v32 }
 0x48e   : > { %vm9995_vm10 = vmpackc.low %vm4494_vm1, %vm4493_vm0  ;;  %vm4293_vm8 = vcmp.eq.s32.totalorder %v18325_v35, 1  ;;  %v4578_v47 = vld [vmem:[#allocation3 + $0x62] sm:$0xff]  ;;  %v4579_v14 = vld [vmem:[#allocation3 + $0x6a] sm:$0xff]  ;;  %vm4928_vm12 = vcmp.eq.s32.totalorder %v18327_v13, 1 }
 0x48f   : > { %vm9998_vm15 = vmpackc.low %vm4294_vm5, %vm4293_vm8  ;;  %v18328_v56 = vld [vmem:[#allocation75_spill] sm:$0xff]  ;;  %v18329_v61 = vld [vmem:[#allocation106_spill] sm:$0xff]  ;;  %v9917_v42 = vpack.c.bf16 %v4579_v14, %v4578_v47 }
 0x490   : > { %vm4725_vm6 = vcmp.eq.s32.totalorder %v18328_v56, 1  ;;  %vm4496_vm1 = vcmp.eq.s32.totalorder %v18329_v61, 1  ;;  %v18330_v3 = vld [vmem:[#allocation77_spill] sm:$0xff]  ;;  %v18333_v1 = vld [vmem:[#allocation43_spill] sm:$0xff]  ;;  %v18334_v35 = vld [vmem:[#allocation82_spill] sm:$0xff] }
 0x491   : > { %9912 = vmatmul.mubr.msk.bf16.gmra.mxu1 %vm9910_vm4, %v9911_v43  ;;  %9994 = vmatmul.mubr.msk.bf16.gmra.mxu0 %vm9992_vm11, %v15320_v54  ;;  %vm4927_vm4 = vcmp.eq.s32.totalorder %v18330_v3, 1  ;;  %vm9916_vm11 = vmpackc.low %vm4726_vm14, %vm4725_vm6  ;;  %v18331_v43 = vld [vmem:[#allocation104_spill] sm:$0xff]  ;;  %vm4295_vm8 = vcmp.eq.s32.totalorder %v18333_v1, 1  ;;  %vm4728_vm14 = vcmp.eq.s32.totalorder %v18334_v35, 1  ;;  %v4580_v16 = vld [vmem:[#allocation3 + $0x72] sm:$0xff] }
 0x492   : > { %9915 = vmatprep.mubr.msk.bf16.mxu1 %vm9913_vm9, %v9914_v19  ;;  %9997 = vmatprep.mubr.msk.bf16.mxu0 %vm9995_vm10, %v9996_v4  ;;  %vm9919_vm10 = vmpackc.low %vm4928_vm12, %vm4927_vm4  ;;  %vm4495_vm9 = vcmp.eq.s32.totalorder %v18331_v43, 1  ;;  %v10002_v19 = vpack.c.bf16 %v15606_v34, %v15604_v7  ;;  %v18332_v4 = vld [vmem:[#allocation42_spill] sm:$0xff]  ;;  %v4581_v47 = vld [vmem:[#allocation3 + $0x7a] sm:$0xff]  ;;  %v9926_v43 = vpack.c.bf16 %v15626_v36, %v15616_v15 }
 0x493   : > { %vm10001_vm0 = vmpackc.low %vm4496_vm1, %vm4495_vm9  ;;  %vm4296_vm5 = vcmp.eq.s32.totalorder %v18332_v4, 1  ;;  %v18335_v14 = vld [vmem:[#allocation84_spill] sm:$0xff]  ;;  %v18336_v13 = vld [vmem:[#allocation79_spill] sm:$0xff]  ;;  %v9923_v3 = vpack.c.bf16 %v4581_v47, %v4580_v16 }
 0x494   : > { %vm4930_vm12 = vcmp.eq.s32.totalorder %v18335_v14, 1  ;;  %vm10004_vm6 = vmpackc.low %vm4296_vm5, %vm4295_vm8  ;;  %vm4727_vm4 = vcmp.eq.s32.totalorder %v18336_v13, 1  ;;  %v18337_v56 = vld [vmem:[#allocation109_spill] sm:$0xff]  ;;  %v18342_v1 = vld [vmem:[#allocation86_spill] sm:$0xff] }
 0x495   : > { %vm4498_vm1 = vcmp.eq.s32.totalorder %v18337_v56, 1  ;;  %v18338_v61 = vld [vmem:[#allocation81_spill] sm:$0xff]  ;;  %v18343_v47 = vld [vmem:[#allocation88_spill] sm:$0xff]  ;;  %v18344_v14 = vld [vmem:[#allocation83_spill] sm:$0xff] }
 0x496   : > { %v18341_v4 = vld [vmem:[#allocation45_spill] sm:$0xff] }
 0x497   : > { %vm4297_vm8 = vcmp.eq.s32.totalorder %v18341_v4, 1  ;;  %v4582_v35 = vld [vmem:[#allocation3 + $0x82] sm:$0xff]  ;;  %v4583_v16 = vld [vmem:[#allocation3 + $0x8a] sm:$0xff]  ;;  %v4585_v4 = vld [vmem:[#allocation3 + $0x9a] sm:$0xff] }
 0x498   : > { %v18345_v13 = vld [vmem:[#allocation85_spill] sm:$0xff]  ;;  %v9929_v56 = vpack.c.bf16 %v4583_v16, %v4582_v35  ;;  %v18351_v35 = vld [vmem:[#allocation87_spill] sm:$0xff] }
 0x499   : > { %9918 = vmatmul.mubr.msk.bf16.gmra.mxu1 %vm9916_vm11, %v9917_v42  ;;  %10000 = vmatmul.mubr.msk.bf16.gmra.mxu0 %vm9998_vm15, %v15325_v49  ;;  %vm4929_vm11 = vcmp.eq.s32.totalorder %v18338_v61, 1  ;;  %vm9922_vm15 = vmpackc.low %vm4728_vm14, %vm4727_vm4  ;;  %v18339_v42 = vld [vmem:[#allocation107_spill] sm:$0xff]  ;;  %vm4730_vm14 = vcmp.eq.s32.totalorder %v18342_v1, 1  ;;  %v18346_v61 = vld [vmem:[#allocation110_spill] sm:$0xff] }
 0x49a   : > { %9921 = vmatprep.mubr.msk.bf16.mxu1 %vm9919_vm10, %v9920_v62  ;;  %10003 = vmatprep.mubr.msk.bf16.mxu0 %vm10001_vm0, %v10002_v19  ;;  %vm9925_vm10 = vmpackc.low %vm4930_vm12, %vm4929_vm11  ;;  %vm4497_vm9 = vcmp.eq.s32.totalorder %v18339_v42, 1  ;;  %v10008_v62 = vpack.c.bf16 %v15630_v46, %v15628_v2  ;;  %v18340_v19 = vld [vmem:[#allocation44_spill] sm:$0xff]  ;;  %vm4932_vm12 = vcmp.eq.s32.totalorder %v18343_v47, 1  ;;  %vm4729_vm11 = vcmp.eq.s32.totalorder %v18344_v14, 1  ;;  %v18350_v1 = vld [vmem:[#allocation90_spill] sm:$0xff] }
 0x49b   : > { %vm10007_vm0 = vmpackc.low %vm4498_vm1, %vm4497_vm9  ;;  %vm4298_vm5 = vcmp.eq.s32.totalorder %v18340_v19, 1  ;;  %vm4500_vm1 = vcmp.eq.s32.totalorder %v14916_v33, 1  ;;  %vm4499_vm9 = vcmp.eq.s32.totalorder %v18346_v61, 1  ;;  %v10014_v42 = vpack.c.bf16 %v15661_v8, %v15645_v60  ;;  %v18347_v33 = vld [vmem:[#allocation46_spill] sm:$0xff] }
 0x49c   : > { %vm10010_vm4 = vmpackc.low %vm4298_vm5, %vm4297_vm8  ;;  %vm4300_vm5 = vcmp.eq.s32.totalorder %v18347_v33, 1  ;;  %v4584_v19 = vld [vmem:[#allocation3 + $0x92] sm:$0xff]  ;;  %v9938_v47 = vpack.c.bf16 %v15671_v53, %v15671_v53  ;;  %v10020_v14 = vpack.c.bf16 %v15673_v58, %v15673_v58  ;;  %v18355_v33 = vld [vmem:[#allocation149_spill] sm:$0xff] }
 0x49d   : > { %v9935_v16 = vpack.c.bf16 %v4585_v4, %v4584_v19  ;;  %v18358_v19 = vld [vmem:[#allocation151_spill] sm:$0xff] }
 0x49e   : > { %v18359_v4 = vld [vmem:[#allocation147_spill] sm:$0xff] }
 0x4a1   : > { %9924 = vmatmul.mubr.msk.bf16.gmra.mxu1 %vm9922_vm15, %v9923_v3  ;;  %10006 = vmatmul.mubr.msk.bf16.gmra.mxu0 %vm10004_vm6, %v15346_v52  ;;  %vm4931_vm15 = vcmp.eq.s32.totalorder %v18345_v13, 1  ;;  %vm9928_vm6 = vmpackc.low %vm4730_vm14, %vm4729_vm11  ;;  %v9932_v3 = vpack.c.bf16 %v15659_v48, %v15635_v11  ;;  %v18352_v13 = vld [vmem:[#allocation48_spill] sm:$0xff] }
 0x4a2   : > { %9927 = vmatprep.mubr.msk.bf16.mxu1 %vm9925_vm10, %v9926_v43  ;;  %10009 = vmatprep.mubr.msk.bf16.mxu0 %vm10007_vm0, %v10008_v62  ;;  %vm9931_vm10 = vmpackc.low %vm4932_vm12, %vm4931_vm15  ;;  %v18348_v43 = vld [vmem:[#allocation47_spill] sm:$0xff]  ;;  %v18349_v62 = vld [vmem:[#allocation89_spill] sm:$0xff]  ;;  %vm4732_vm12 = vcmp.eq.s32.totalorder %v18350_v1, 1  ;;  %vm4501_vm15 = vcmp.eq.s32.totalorder %v14929_v24, 1 }
 0x4a3   : > { %vm10013_vm0 = vmpackc.low %vm4500_vm1, %vm4499_vm9  ;;  %vm4299_vm8 = vcmp.eq.s32.totalorder %v18348_v43, 1  ;;  %vm4933_vm14 = vcmp.eq.s32.totalorder %v18349_v62, 1  ;;  %vm4731_vm1 = vcmp.eq.s32.totalorder %v18351_v35, 1  ;;  %vm4301_vm9 = vcmp.eq.s32.totalorder %v18352_v13, 1  ;;  %v4586_v24 = vld [vmem:[#allocation3 + $0xa2] sm:$0xff]  ;;  %v5910_v1 = vld [vmem:[#allocation3 + $0xe] sm:$0xff] }
 0x4a4   : > { %vm10016_vm11 = vmpackc.low %vm4300_vm5, %vm4299_vm8  ;;  %vm6258_vm5 = vcmp.eq.s32.totalorder %v14957_v27, 1  ;;  %v9941_v61 = vpack.c.bf16 %v4586_v24, %v4586_v24  ;;  %v18360_v27 = vpack.c.bf16 %v18358_v19, %v18359_v4  ;;  %v5911_v35 = vld [vmem:[#allocation3 + $0x16] sm:$0xff]  ;;  %v5912_v4 = vld [vmem:[#allocation3 + $0x1e] sm:$0xff] }
 0x4a5   : > { %vm10022_vm8 = vmpackc.low %vm4301_vm9, %vm4301_vm9  ;;  %v10157_v13 = vpack.c.bf16 %v5911_v35, %v5910_v1  ;;  %v18364_v24 = vld [vmem:[#allocation116_spill] sm:$0xff]  ;;  %v18374_v35 = vld [vmem:[#allocation118_spill] sm:$0xff] }
 0x4a6   : > { %v18370_v62 = vld [vmem:[#allocation152_spill] sm:$0xff] }
 0x4a7   : > { %v18371_v19 = vpack.c.bf16 %v15431_v29, %v18370_v62  ;;  %v18373_v1 = vld [vmem:[#allocation124_spill] sm:$0xff]  ;;  %v18376_v29 = vpack.c.bf16 %v15171_v26, %v15169_v21  ;;  %v18383_v21 = vld [vmem:[#allocation129_spill] sm:$0xff]  ;;  %v18384_v26 = vld [vmem:[#allocation123_spill] sm:$0xff] }
 0x4a8   : > { %v18385_v62 = vld [vmem:[#allocation126_spill] sm:$0xff] }
 0x4a9   : > { %9930 = vmatmul.mubr.msk.bf16.gmra.mxu1 %vm9928_vm6, %v9929_v56  ;;  %10012 = vmatmul.mubr.msk.bf16.gmra.mxu0 %vm10010_vm4, %v15405_v59  ;;  %vm9937_vm6 = vmpackc.low %vm4933_vm14, %vm4933_vm14  ;;  %v18353_v56 = vld [vmem:[#allocation91_spill] sm:$0xff] }
 0x4aa   : > { %9933 = vmatprep.mubr.msk.bf16.mxu1 %vm9931_vm10, %v9932_v3  ;;  %10015 = vmatprep.mubr.msk.bf16.mxu0 %vm10013_vm0, %v10014_v42  ;;  %vm9934_vm4 = vmpackc.low %vm4732_vm12, %vm4731_vm1  ;;  %vm4733_vm0 = vcmp.eq.s32.totalorder %v18353_v56, 1  ;;  %v10023_v3 = vpack.c.bf16 %v15436_v40, %v15436_v40  ;;  %vm6257_vm12 = vcmp.eq.s32.totalorder %v14943_v5, 1  ;;  %v18354_v42 = vld [vmem:[#allocation60_spill] sm:$0xff]  ;;  %v18362_v5 = vld [vmem:[#allocation114_spill] sm:$0xff] }
 0x4ab   : > { %vm10019_vm10 = vmpackc.low %vm4501_vm15, %vm4501_vm15  ;;  %v18356_v43 = vpack.c.bf16 %v18354_v42, %v18355_v33  ;;  %vm6057_vm1 = vcmp.eq.s32.totalorder %v18362_v5, 1  ;;  %v18365_v56 = vld [vmem:[#allocation143_spill] sm:$0xff]  ;;  %v18382_v33 = vld [vmem:[#allocation125_spill] sm:$0xff] }
 0x4ac   : > { %vm9940_vm14 = vmpackc.low %vm4733_vm0, %vm4733_vm0  ;;  %vm6262_vm0 = vcmp.eq.s32.totalorder %v18373_v1, 1  ;;  %v18377_v5 = vld [vmem:[#allocation159_spill] sm:$0xff]  ;;  %v18392_v1 = vld [vmem:[#allocation32_spill] sm:$0xff] }
 0x4ad   : > { %vm10153_vm15 = vmpackc.low %vm6258_vm5, %vm6257_vm12  ;;  %vm6059_vm5 = vcmp.eq.s32.totalorder %v18374_v35, 1  ;;  %vm6062_vm12 = vcmp.eq.s32.totalorder %v18382_v33, 1  ;;  %v18393_v35 = vpack.c.bf16 %v15488_v38, %v18392_v1  ;;  %v18398_v38 = vpack.c.bf16 %v15210_v25, %v15208_v63  ;;  %v5919_v33 = vld [vmem:[#allocation3 + $0x56] sm:$0xff]  ;;  %v18405_v63 = vld [vmem:[#allocation133_spill] sm:$0xff] }
 0x4ae   : > { %v18404_v25 = vld [vmem:[#allocation139_spill] sm:$0xff] }
 0x4b1   : > { %9936 = vmatmul.mubr.msk.bf16.gmra.mxu1 %vm9934_vm4, %v9935_v16  ;;  %10018 = vmatmul.mubr.msk.bf16.gmra.mxu0 %vm10016_vm11, %v15455_v55  ;;  %v18361_v16 = vld [vmem:[#allocation115_spill] sm:$0xff] }
 0x4b2   : > { %9939 = vmatprep.mubr.msk.bf16.mxu1 %vm9937_vm6, %v9938_v47  ;;  %10021 = vmatprep.mubr.msk.bf16.mxu0 %vm10019_vm10, %v10020_v14  ;;  %vm6058_vm11 = vcmp.eq.s32.totalorder %v18361_v16, 1  ;;  %v11792_v47 = vld [vmem:[%s12065_s4 + $0x478] sm:$0xff]   ;;  %vm6259_vm10 = vcmp.eq.s32.totalorder %v18364_v24, 1  ;;  %v11794_v16 = vld [vmem:[%s12065_s4 + $0x468] sm:$0xff]  }
 0x4b3   : > { %v18363_v14 = vld [vmem:[#allocation119_spill] sm:$0xff]  ;;  %vm10156_vm4 = vmpackc.low %vm6058_vm11, %vm6057_vm1  ;;  %v18380_v24 = vld [vmem:[#allocation158_spill] sm:$0xff]  ;;  %vm6061_vm11 = vcmp.eq.s32.totalorder %v18384_v26, 1  ;;  %vm6263_vm1 = vcmp.eq.s32.totalorder %v18385_v62, 1  ;;  %v18409_v26 = vpack.c.bf16 %v15587_v41, %v15544_v30 }
 0x4b4   : > { %vm6260_vm6 = vcmp.eq.s32.totalorder %v18363_v14, 1  ;;  %v18378_v14 = vpack.c.bf16 %v15464_v22, %v18377_v5  ;;  %v18396_v5 = vld [vmem:[#allocation128_spill] sm:$0xff]  ;;  %v18418_v41 = vld [vmem:[#allocation51_spill] sm:$0xff] }
 0x4b5   : > { %v5920_v62 = vld [vmem:[#allocation3 + $0x5e] sm:$0xff] }
 0x4b6   : > { %v18417_v30 = vld [vmem:[#allocation56_spill] sm:$0xff] }
 0x4b7   : > { %v18419_v1 = vpack.c.bf16 %v18417_v30, %v18418_v41  ;;  %v18458_v30 = vld [vmem:[#allocation34_spill] sm:$0xff] }
 0x4b9   : > { %9942 = vmatmul.mubr.msk.bf16.gmra.mxu1 %vm9940_vm14, %v9941_v61  ;;  %10024 = vmatmul.mubr.msk.bf16.gmra.mxu0 %vm10022_vm8, %v10023_v3  ;;  %v18366_v61 = vpack.c.bf16 %v15165_v57, %v18365_v56  ;;  %v18367_v3 = vld [vmem:[#allocation155_spill] sm:$0xff]  ;;  %v5913_v57 = vld [vmem:[#allocation3 + $0x26] sm:$0xff]  ;;  %v18381_v56 = vpack.c.bf16 %v15450_v44, %v18380_v24  ;;  %v18386_v44 = vld [vmem:[#allocation144_spill] sm:$0xff]  ;;  %v18399_v24 = vpack.c.bf16 %v15518_v17, %v15503_v10 }
 0x4ba   : > { %10064 = vmatprep.mubr.msk.bf16.mxu1 %vm14608_vm2, %v18356_v43  ;;  %10155 = vmatprep.mubr.msk.bf16.mxu0 %vm10153_vm15, %v18360_v27  ;;  %vm10159_vm2 = vmpackc.low %vm6260_vm6, %vm6259_vm10  ;;  %v18368_v42 = vpack.c.bf16 %v15433_v6, %v18367_v3  ;;  %v11793_v43 = vld [vmem:[%s12065_s4 + $0x470] sm:$0xff]   ;;  %v18372_v27 = vld [vmem:[#allocation120_spill] sm:$0xff]  ;;  %v10163_v6 = vpack.c.bf16 %v5913_v57, %v5912_v4  ;;  %vm6264_vm15 = vcmp.eq.s32.totalorder %v18383_v21, 1 }
 0x4bb   : > { %vm6060_vm9 = vcmp.eq.s32.totalorder %v18372_v27, 1  ;;  %v5914_v3 = vld [vmem:[#allocation3 + $0x2e] sm:$0xff]  ;;  %vm10171_vm6 = vmpackc.low %vm6264_vm15, %vm6263_vm1  ;;  %v18388_v4 = vld [vmem:[#allocation33_spill] sm:$0xff]  ;;  %vm6065_vm15 = vcmp.eq.s32.totalorder %v18405_v63, 1 }
 0x4bc   : > { %v18389_v57 = vpack.c.bf16 %v15492_v0, %v18388_v4  ;;  %v18390_v27 = vld [vmem:[#allocation96_spill] sm:$0xff]  ;;  %v18403_v21 = vld [vmem:[#allocation135_spill] sm:$0xff]  ;;  %v18414_v4 = vld [vmem:[#allocation54_spill] sm:$0xff] }
 0x4bd   : > { %v18406_v17 = vld [vmem:[#allocation136_spill] sm:$0xff]  ;;  %v5926_v63 = vld [vmem:[#allocation3 + $0x8e] sm:$0xff] }
 0x4c1   : > { %5802 = vmatmul.mubr.bf16.vlgmr.msra.gmra.mxu1 %v18366_v61  ;;  %10158 = vmatmul.mubr.msk.bf16.vlgmr.msra.gmra.mxu0 %vm10156_vm4, %v10157_v13  ;;  %v11795_v61 = vld [vmem:[%s12065_s4 + $0x460] sm:$0xff]   ;;  %vm18391_vm4 = vnez %v18390_v27  ;;  %v18416_v27 = vld [vmem:[#allocation141_spill] sm:$0xff] }
 0x4c2   : > { %11295 = vmatpush3.bf16.msra.mxu1 %v11792_v47  ;;  %10067 = vmatprep.mubr.msk.bf16.mxu1 %vm14627_vm7, %v18368_v42  ;;  %vm10162_vm7 = vmpackc.low %vm6060_vm9, %vm6059_vm5  ;;  %v18375_v47 = vld [vmem:[#allocation121_spill] sm:$0xff]  ;;  %v5915_v42 = vld [vmem:[#allocation3 + $0x36] sm:$0xff]  ;;  %vm6063_vm9 = vcmp.eq.s32.totalorder %v18396_v5, 1 }
 0x4c3   : > { %10161 = vmatprep.mubr.msk.bf16.mxu0 %vm10159_vm2, %v18371_v19  ;;  %11296 = vmatprep.subr.bf16.mxu1 %v18314_v50  ;;  %vm6261_vm8 = vcmp.eq.s32.totalorder %v18375_v47, 1  ;;  %v10169_v22 = vpack.c.bf16 %v5915_v42, %v5914_v3  ;;  %v18387_v19 = vpack.c.bf16 %v15175_v18, %v18386_v44  ;;  %v5917_v47 = vld [vmem:[#allocation3 + $0x46] sm:$0xff]  ;;  %v18397_v13 = vld [vmem:[#allocation131_spill] sm:$0xff] }
 0x4c4   : > { %vm10165_vm14 = vmpackc.low %vm6262_vm0, %vm6261_vm8  ;;  %v18395_v18 = vld [vmem:[#allocation134_spill] sm:$0xff]  ;;  %vm6265_vm5 = vcmp.eq.s32.totalorder %v18397_v13, 1  ;;  %v11799_v3 = vld [vmem:[%s12065_s4 + $0x440] sm:$0xff]   ;;  %v18434_v13 = vpack.c.bf16 %v15616_v15, %v15597_v45  ;;  %v18442_v45 = vpack.c.bf16 %v15645_v60, %v15630_v46 }
 0x4c5   : > { %vm6266_vm2 = vcmp.eq.s32.totalorder %v18395_v18, 1  ;;  %v5918_v42 = vld [vmem:[#allocation3 + $0x4e] sm:$0xff]  ;;  %v5921_v44 = vld [vmem:[#allocation3 + $0x66] sm:$0xff] }
 0x4c6   : > { %11297 = vmatpush3.bf16.msra.mxu1 %v11793_v43  ;;  %v11796_v43 = vld [vmem:[%s12065_s4 + $0x458] sm:$0xff]   ;;  %v10181_v10 = vpack.c.bf16 %v5919_v33, %v5918_v42  ;;  %v18426_v18 = vld [vmem:[#allocation53_spill] sm:$0xff] }
 0x4c7   : > { %11298 = vmatprep.subr.bf16.mxu1 %v18314_v50  ;;  %v18438_v33 = vld [vmem:[#allocation57_spill] sm:$0xff]  ;;  %v18443_v15 = vld [vmem:[#allocation111_spill] sm:$0xff]  ;;  %v18450_v46 = vld [vmem:[#allocation154_spill] sm:$0xff] }
 0x4c8   : > { %v18451_v60 = vld [vmem:[#allocation153_spill] sm:$0xff] }
 0x4c9   : > { %5810 = vmatmul.mubr.bf16.gmra.mxu1 %v18376_v29  ;;  %10164 = vmatmul.mubr.msk.bf16.gmra.mxu0 %vm10162_vm7, %v10163_v6  ;;  %v11797_v6 = vld [vmem:[%s12065_s4 + $0x450] sm:$0xff]   ;;  %vm10177_vm7 = vmpackc.low %vm6266_vm2, %vm6265_vm5 }
 0x4ca   : > { %10070 = vmatprep.mubr.msk.bf16.mxu1 %vm14653_vm13, %v18378_v14  ;;  %10167 = vmatprep.mubr.msk.bf16.mxu0 %vm10165_vm14, %v18381_v56  ;;  %vm10168_vm13 = vmpackc.low %vm6062_vm12, %vm6061_vm11  ;;  %v18394_v29 = vld [vmem:[#allocation130_spill] sm:$0xff]  ;;  %v11798_v14 = vld [vmem:[%s12065_s4 + $0x448] sm:$0xff]   ;;  %vm6066_vm14 = vcmp.eq.s32.totalorder %v18403_v21, 1  ;;  %vm6268_vm12 = vcmp.eq.s32.totalorder %v18404_v25, 1  ;;  %v18445_v25 = vpack.c.bf16 %v15635_v11, %v15626_v36  ;;  %v18453_v36 = vpack.c.bf16 %v15673_v58, %v15661_v8 }
 0x4cb   : > { %11299 = vmatpush3.bf16.msra.mxu1 %v11794_v16  ;;  %v5916_v16 = vld [vmem:[#allocation3 + $0x3e] sm:$0xff]  ;;  %vm6064_vm10 = vcmp.eq.s32.totalorder %v18394_v29, 1  ;;  %v18400_v56 = vld [vmem:[#allocation99_spill] sm:$0xff]  ;;  %vm10180_vm11 = vmpackc.low %vm6066_vm14, %vm6065_vm15 }
 0x4cc   : > { %11300 = vmatprep.subr.bf16.mxu1 %v18314_v50  ;;  %v10175_v0 = vpack.c.bf16 %v5917_v47, %v5916_v16  ;;  %vm10174_vm0 = vmpackc.low %vm6064_vm10, %vm6063_vm9  ;;  %vm18401_vm8 = vnez %v18400_v56  ;;  %vm6270_vm10 = vcmp.eq.s32.totalorder %v18414_v4, 1  ;;  %v5923_v16 = vld [vmem:[#allocation3 + $0x76] sm:$0xff]  ;;  %v18424_v47 = vld [vmem:[#allocation30_spill] sm:$0xff] }
 0x4cd   : > { %v18425_v29 = vld [vmem:[#allocation29_spill] sm:$0xff]  ;;  %v18454_v11 = vld [vmem:[#allocation112_spill] sm:$0xff] }
 0x4ce   : > { %vm6272_vm14 = vcmp.eq.s32.totalorder %v18425_v29, 1  ;;  %v18435_v56 = vld [vmem:[#allocation157_spill] sm:$0xff] }
 0x4cf   : > { %11301 = vmatpush3.bf16.msra.mxu1 %v11795_v61  ;;  %v18402_v61 = vpack.c.bf16 %v15514_v51, %v15490_v37  ;;  %v18407_v37 = vld [vmem:[#allocation31_spill] sm:$0xff]  ;;  %v5928_v4 = vld [vmem:[#allocation3 + $0x9e] sm:$0xff] }
 0x4d0   : > { %11302 = vmatprep.subr.bf16.mxu1 %v18314_v50  ;;  %v18408_v51 = vpack.c.bf16 %v18407_v37, %v15212_v28  ;;  %v10187_v28 = vpack.c.bf16 %v5921_v44, %v5920_v62  ;;  %v18447_v37 = vld [vmem:[#allocation35_spill] sm:$0xff]  ;;  %v18456_v62 = vpack.c.bf16 %v15671_v53, %v15659_v48  ;;  %v6256_v44 = vpop.permute.xlu1 %6255  ;;  %v18459_v48 = vld [vmem:[#allocation156_spill] sm:$0xff] }
 0x4d1   : > { %5818 = vmatmul.mubr.bf16.gmra.mxu1 %v18387_v19  ;;  %10170 = vmatmul.mubr.msk.bf16.gmra.mxu0 %vm10168_vm13, %v10169_v22  ;;  %vm6267_vm13 = vcmp.eq.s32.totalorder %v18406_v17, 1  ;;  %v18410_v22 = vld [vmem:[#allocation102_spill] sm:$0xff]  ;;  %v18413_v19 = vld [vmem:[#allocation140_spill] sm:$0xff]  ;;  %v18446_v17 = vld [vmem:[#allocation59_spill] sm:$0xff]  ;;  %v18460_v53 = vpack.c.bf16 %v15436_v40, %v18459_v48 }
 0x4d2   : > { %10073 = vmatprep.mubr.msk.bf16.mxu1 %vm18391_vm4, %v18389_v57  ;;  %10173 = vmatprep.mubr.msk.bf16.mxu0 %vm10171_vm6, %v18393_v35  ;;  %vm10183_vm1 = vmpackc.low %vm6268_vm12, %vm6267_vm13  ;;  %vm18411_vm6 = vnez %v18410_v22  ;;  %vm6068_vm4 = vcmp.eq.s32.totalorder %v18413_v19, 1  ;;  %v18415_v57 = vld [vmem:[#allocation138_spill] sm:$0xff]  ;;  %v18423_v35 = vpack.c.bf16 %v15595_v32, %v15573_v12  ;;  %vm6069_vm12 = vcmp.eq.s32.totalorder %v18426_v18, 1  ;;  %v18432_v12 = vld [vmem:[#allocation108_spill] sm:$0xff] }
 0x4d3   : > { %11303 = vmatpush3.bf16.msra.mxu1 %v11796_v43  ;;  %v18412_v43 = vpack.c.bf16 %v15571_v39, %v15516_v20  ;;  %vm6067_vm2 = vcmp.eq.s32.totalorder %v18415_v57, 1  ;;  %v18420_v20 = vpack.c.bf16 %v15604_v7, %v15589_v31  ;;  %v18421_v39 = vld [vmem:[#allocation105_spill] sm:$0xff]  ;;  %v18429_v31 = vld [vmem:[#allocation58_spill] sm:$0xff]  ;;  %v18431_v32 = vpack.c.bf16 %v15628_v2, %v15606_v34  ;;  %v18449_v22 = vld [vmem:[#allocation64_spill] sm:$0xff] }
 0x4d4   : > { %11304 = vmatprep.subr.bf16.mxu1 %v18314_v50  ;;  %vm10186_vm9 = vmpackc.low %vm6068_vm4, %vm6067_vm2  ;;  %v18428_v7 = vld [vmem:[#allocation49_spill] sm:$0xff]  ;;  %v18439_v2 = vld [vmem:[#allocation150_spill] sm:$0xff] }
 0x4d5   : > { %v18440_v34 = vld [vmem:[#allocation145_spill] sm:$0xff] }
 0x4d6   : > { %v18441_v21 = vpack.c.bf16 %v18439_v2, %v18440_v34  ;;  %v18457_v19 = vld [vmem:[#allocation113_spill] sm:$0xff] }
 0x4d7   : > { %11305 = vmatpush3.bf16.msra.mxu1 %v11797_v6  ;;  %v5922_v6 = vld [vmem:[#allocation3 + $0x6e] sm:$0xff]  ;;  %v5929_v57 = vld [vmem:[#allocation3 + $0xa6] sm:$0xff] }
 0x4d8   : > { %11306 = vmatprep.subr.bf16.mxu1 %v18314_v50  ;;  %v10193_v5 = vpack.c.bf16 %v5923_v16, %v5922_v6  ;;  %v10211_v58 = vpack.c.bf16 %v5929_v57, %v5928_v4  ;;  %v6579_v6 = vld [vmem:[#allocation3 + $0x10] sm:$0xff]  ;;  %v6580_v16 = vld [vmem:[#allocation3 + $0x18] sm:$0xff]  ;;  %v18462_v40 = vld [vmem:[#allocation117_spill] sm:$0xff] }
 0x4d9   : > { %5826 = vmatmul.mubr.bf16.gmra.mxu1 %v18398_v38  ;;  %10176 = vmatmul.mubr.msk.bf16.gmra.mxu0 %vm10174_vm0, %v10175_v0  ;;  %vm6269_vm0 = vcmp.eq.s32.totalorder %v18416_v27, 1  ;;  %v18427_v0 = vld [vmem:[#allocation55_spill] sm:$0xff]  ;;  %v5924_v38 = vld [vmem:[#allocation3 + $0x7e] sm:$0xff]  ;;  %v6582_v18 = vld [vmem:[#allocation3 + $0x28] sm:$0xff] }
 0x4da   : > { %10076 = vmatprep.mubr.msk.bf16.mxu1 %vm18401_vm8, %v18399_v24  ;;  %10179 = vmatprep.mubr.msk.bf16.mxu0 %vm10177_vm7, %v18402_v61  ;;  %vm10189_vm5 = vmpackc.low %vm6270_vm10, %vm6269_vm0  ;;  %vm18422_vm7 = vnez %v18421_v39  ;;  %vm6070_vm8 = vcmp.eq.s32.totalorder %v18424_v47, 1  ;;  %v5925_v24 = vld [vmem:[#allocation3 + $0x86] sm:$0xff]  ;;  %v6130_v27 = vld [vmem:[#allocation3 + $0xaf] sm:$0xff]  ;;  %v10249_v47 = vpack.c.bf16 %v6580_v16, %v6579_v6 }
 0x4db   : > { %11307 = vmatpush3.bf16.msra.mxu1 %v11798_v14  ;;  %vm10192_vm15 = vmpackc.low %vm6070_vm8, %vm6069_vm12  ;;  %v18430_v14 = vpack.c.bf16 %v18428_v7, %v18429_v31  ;;  %v18436_v61 = vld [vmem:[#allocation62_spill] sm:$0xff]  ;;  %v10199_v42 = vpack.c.bf16 %v5925_v24, %v5924_v38  ;;  %vm6276_vm8 = vcmp.eq.s32.totalorder %v18447_v37, 1  ;;  %v10214_v41 = vpack.c.bf16 %v6130_v27, %v6130_v27  ;;  %v6581_v29 = vld [vmem:[#allocation3 + $0x20] sm:$0xff] }
 0x4dc   : > { %11308 = vmatprep.subr.bf16.mxu1 %v18314_v50  ;;  %vm6274_vm4 = vcmp.eq.s32.totalorder %v18436_v61, 1  ;;  %v6583_v7 = vld [vmem:[#allocation3 + $0x30] sm:$0xff]  ;;  %v6584_v31 = vld [vmem:[#allocation3 + $0x38] sm:$0xff]  ;;  %v18470_v27 = vld [vmem:[#allocation137_spill] sm:$0xff] }
 0x4dd   : > { %v18468_v37 = vld [vmem:[#allocation132_spill] sm:$0xff] }
 0x4df   : > { %11309 = vmatpush3.bf16.msra.mxu1 %v11799_v3  ;;  %v18437_v3 = vld [vmem:[#allocation148_spill] sm:$0xff] }
 0x4e0   : > { %vm6071_vm10 = vcmp.eq.s32.totalorder %v18437_v3, 1  ;;  %v6585_v3 = vld [vmem:[#allocation3 + $0x40] sm:$0xff] }
 0x4e1   : > { %5834 = vmatmul.mubr.bf16.gmra.mxu1 %v18408_v51  ;;  %10182 = vmatmul.mubr.msk.bf16.gmra.mxu0 %vm10180_vm11, %v10181_v10  ;;  %vm6271_vm11 = vcmp.eq.s32.totalorder %v18427_v0, 1  ;;  %v5927_v10 = vld [vmem:[#allocation3 + $0x96] sm:$0xff]  ;;  %v18464_v0 = vld [vmem:[#allocation122_spill] sm:$0xff] }
 0x4e2   : > { %10079 = vmatprep.mubr.msk.bf16.mxu1 %vm18411_vm6, %v18409_v26  ;;  %10185 = vmatprep.mubr.msk.bf16.mxu0 %vm10183_vm1, %v18412_v43  ;;  %vm10195_vm13 = vmpackc.low %vm6272_vm14, %vm6271_vm11  ;;  %vm18433_vm1 = vnez %v18432_v12  ;;  %vm6072_vm6 = vcmp.eq.s32.totalorder %v18435_v56, 1  ;;  %v18448_v51 = vld [vmem:[#allocation52_spill] sm:$0xff]  ;;  %v10205_v26 = vpack.c.bf16 %v5927_v10, %v5926_v63  ;;  %v18452_v43 = vpack.c.bf16 %v18450_v46, %v18451_v60 }
 0x4e3   : > { %vm10198_vm2 = vmpackc.low %vm6072_vm6, %vm6071_vm10  ;;  %vm6073_vm14 = vcmp.eq.s32.totalorder %v18448_v51, 1  ;;  %vm6076_vm6 = vcmp.eq.s32.totalorder %v15725_v9, 1  ;;  %v5930_v9 = vld [vmem:[#allocation3 + $0xae] sm:$0xff] }
 0x4e9   : > { %5842 = vmatmul.mubr.bf16.gmra.mxu1 %v18419_v1  ;;  %10188 = vmatmul.mubr.msk.bf16.gmra.mxu0 %vm10186_vm9, %v10187_v28  ;;  %vm6273_vm9 = vcmp.eq.s32.totalorder %v18438_v33, 1  ;;  %v5461_v28 = vld [vmem:[#allocation3 + $0xa9] sm:$0xff]  ;;  %v6056_v1 = vpop.permute.xlu0 %6055 }
 0x4ea   : > { %10082 = vmatprep.mubr.msk.bf16.mxu1 %vm18422_vm7, %v18420_v20  ;;  %10191 = vmatprep.mubr.msk.bf16.mxu0 %vm10189_vm5, %v18423_v35  ;;  %vm10201_vm0 = vmpackc.low %vm6274_vm4, %vm6273_vm9  ;;  %vm18444_vm5 = vnez %v18443_v15  ;;  %vm6074_vm7 = vcmp.eq.s32.totalorder %v18446_v17, 1  ;;  %vm6277_vm4 = vcmp.eq.s32.totalorder %v6256_v44, 1  ;;  %v10093_v8 = vpack.c.bf16 %v5461_v28, %v5461_v28  ;;  %v11841_v20 = vld [vmem:[#allocation3 + $0xa8] sm:$0xff] }
 0x4eb   : > { %vm10204_vm12 = vmpackc.low %vm6074_vm7, %vm6073_vm14  ;;  %v5440_v39 = vpack.c.bf16 %v11841_v20, %v11841_v20  ;;  %v10217_v35 = vpack.c.bf16 %v5930_v9, %v5930_v9  ;;  %vm18463_vm14 = vnez %v18462_v40 }
 0x4f1   : > { %5850 = vmatmul.mubr.bf16.gmra.mxu1 %v18430_v14  ;;  %10194 = vmatmul.mubr.msk.bf16.gmra.mxu0 %vm10192_vm15, %v10193_v5  ;;  %vm6275_vm15 = vcmp.eq.s32.totalorder %v18449_v22, 1  ;;  %v10252_v5 = vpack.c.bf16 %v6582_v18, %v6581_v29  ;;  %v10255_v14 = vpack.c.bf16 %v6584_v31, %v6583_v7 }
 0x4f2   : > { %10085 = vmatprep.mubr.msk.bf16.mxu1 %vm18433_vm1, %v18431_v32  ;;  %10197 = vmatprep.mubr.msk.bf16.mxu0 %vm10195_vm13, %v18434_v13  ;;  %vm10207_vm11 = vmpackc.low %vm6276_vm8, %vm6275_vm15  ;;  %vm18455_vm13 = vnez %v18454_v11  ;;  %vm5608_vm1 = vcmp.eq.s32.totalorder %v18457_v19, 1  ;;  %vm18461_vm8 = vmmov 0   ;;  %v18466_v13 = vld [vmem:[#allocation127_spill] sm:$0xff] }
 0x4f3   : > { %vm10092_vm10 = vmpackc.low %vm5608_vm1, %vm5608_vm1  ;;  %vm18467_vm15 = vnez %v18466_v13 }
 0x4f9   : > { %5858 = vmatmul.mubr.bf16.gmra.mxu1 %v18441_v21  ;;  %10200 = vmatmul.mubr.msk.bf16.gmra.mxu0 %vm10198_vm2, %v10199_v42  ;;  %vm6075_vm2 = vcmp.eq.s32.totalorder %v18458_v30, 1 }
 0x4fa   : > { %10088 = vmatprep.mubr.msk.bf16.mxu1 %vm18444_vm5, %v18442_v45  ;;  %10203 = vmatprep.mubr.msk.bf16.mxu0 %vm10201_vm0, %v18445_v25  ;;  %vm10210_vm9 = vmpackc.low %vm6076_vm6, %vm6075_vm2  ;;  %vm6077_vm5 = vcmp.eq.s32.totalorder %v6056_v1, 1  ;;  %v11842_v45 = vld [vmem:[#allocation3 + $0x48] sm:$0xff] }
 0x4fb   : > { %vm10213_vm0 = vmpackc.low %vm6277_vm4, %vm6277_vm4  ;;  %v10258_v15 = vpack.c.bf16 %v11842_v45, %v6585_v3  ;;  %vm18479_vm4 = vnez %v18313_v23 }
 0x4fc   : > { %vm10216_vm7 = vmpackc.low %vm6077_vm5, %vm6077_vm5 }
 0x501   : > { %5866 = vmatmul.mubr.bf16.gmra.mxu1 %v18452_v43  ;;  %10206 = vmatmul.mubr.msk.bf16.gmra.mxu0 %vm10204_vm12, %v10205_v26  ;;  %vm18465_vm12 = vnez %v18464_v0 }
 0x502   : > { %10091 = vmatprep.mubr.msk.bf16.mxu1 %vm18455_vm13, %v18453_v36  ;;  %10209 = vmatprep.mubr.msk.bf16.mxu0 %vm10207_vm11, %v18456_v62  ;;  %vm18469_vm11 = vnez %v18468_v37  ;;  %vm18471_vm13 = vnez %v18470_v27 }
 0x509   : > { %5874 = vmatmul.mubr.bf16.gmra.mxu1 %v18460_v53  ;;  %10212 = vmatmul.mubr.msk.bf16.gmra.mxu0 %vm10210_vm9, %v10211_v58 }
 0x50a   : > { %10094 = vmatprep.mubr.msk.bf16.mxu1 %vm10092_vm10, %v10093_v8  ;;  %10215 = vmatprep.mubr.msk.bf16.mxu0 %vm10213_vm0, %v10214_v41 }
 0x511   : > { %5882 = vmatmul.mubr.bf16.gmra.mxu1 %v5440_v39  ;;  %10218 = vmatmul.mubr.msk.bf16.gmra.mxu0 %vm10216_vm7, %v10217_v35 }
 0x512   : > { %11310 = vmatprep.mubr.msk.bf16.mxu1 %vm18461_vm8, %v18314_v50 }
 0x519   : > { %11311 = vmatmul.mubr.msk.bf16.vlgmr.msra.gmra.mxu1 %vm18463_vm14, %v10249_v47 }
 0x51a   : > { %11314 = vmatprep.mubr.msk.bf16.mxu1 %vm18461_vm8, %v18314_v50 }
 0x521   : > { %11315 = vmatmul.mubr.msk.bf16.gmra.mxu1 %vm18465_vm12, %v10252_v5 }
 0x522   : > { %11318 = vmatprep.mubr.msk.bf16.mxu1 %vm18461_vm8, %v18314_v50  ;;  %v10739_v32 = vpop.f32.mrf.mxu1 }
 0x523   : > { %v10821_v12 = vpop.f32.mrf.mxu0 }
 0x524   : > { %v10740_v38 = vpop.f32.mrf.mxu1 }
 0x525   : > { %v10822_v24 = vpop.f32.mrf.mxu0  ;;  %v10741_v56 = vadd.f32 %v10740_v38, %v10739_v32 }
 0x526   : > { %v10823_v61 = vadd.f32 %v10822_v24, %v10821_v12  ;;  %v10742_v42 = vpop.f32.mrf.mxu1 }
 0x527   : > { %v10824_v33 = vpop.f32.mrf.mxu0 }
 0x528   : > { %v16012_v2 = vadd.f32 %v10823_v61, %v10741_v56  ;;  %v10743_v34 = vpop.f32.mrf.mxu1 }
 0x529   : > { %11319 = vmatmul.mubr.msk.bf16.gmra.mxu1 %vm18467_vm15, %v10255_v14  ;;  %v10825_v21 = vpop.f32.mrf.mxu0  ;;  %v10744_v25 = vadd.f32 %v10743_v34, %v10742_v42 }
 0x52a   : > { %11322 = vmatprep.mubr.msk.bf16.mxu1 %vm18461_vm8, %v18314_v50  ;;  %v10826_v63 = vadd.f32 %v10825_v21, %v10824_v33  ;;  %v10745_v10 = vpop.f32.mrf.mxu1 }
 0x52b   : > { %v10827_v17 = vpop.f32.mrf.mxu0 }
 0x52c   : > { %v16016_v51 = vadd.f32 %v10826_v63, %v10744_v25  ;;  %v10746_v26 = vpop.f32.mrf.mxu1 }
 0x52d   : > { %v10828_v22 = vpop.f32.mrf.mxu0  ;;  %v10747_v46 = vadd.f32 %v10746_v26, %v10745_v10 }
 0x52e   : > { %v10829_v60 = vadd.f32 %v10828_v22, %v10827_v17  ;;  %v10748_v43 = vpop.f32.mrf.mxu1 }
 0x52f   : > { %v10830_v36 = vpop.f32.mrf.mxu0 }
 0x530   : > { %v16020_v11 = vadd.f32 %v10829_v60, %v10747_v46  ;;  %v10749_v62 = vpop.f32.mrf.mxu1 }
 0x531   : > { %11323 = vmatmul.mubr.msk.bf16.gmra.mxu1 %vm18469_vm11, %v10258_v15  ;;  %v10831_v44 = vpop.f32.mrf.mxu0  ;;  %v10750_v19 = vadd.f32 %v10749_v62, %v10748_v43 }
 0x532   : > { %11326 = vmatprep.mubr.msk.bf16.mxu1 %vm18461_vm8, %v18314_v50  ;;  %v10832_v4 = vadd.f32 %v10831_v44, %v10830_v36 }
 0x534   : > { %v16025_v30 = vadd.f32 %v10832_v4, %v10750_v19 }
 0x536   : > { %v10751_v57 = vpop.f32.mrf.mxu1  ;;  %v10833_v28 = vpop.f32.mrf.mxu0 }
 0x538   : > { %v10752_v58 = vpop.f32.mrf.mxu1  ;;  %v10834_v8 = vpop.f32.mrf.mxu0 }
 0x539   : > { %11327 = vmatmul.mubr.msk.bf16.gmra.mxu1 %vm18471_vm13, %v15320_v54  ;;  %v10753_v41 = vadd.f32 %v10752_v58, %v10751_v57  ;;  %v10835_v48 = vadd.f32 %v10834_v8, %v10833_v28  ;;  %v18472_v54 = vld [vmem:[#allocation142_spill] sm:$0xff] }
 0x53a   : > { %11330 = vmatprep.mubr.msk.bf16.mxu1 %vm18461_vm8, %v18314_v50  ;;  %v10754_v53 = vpop.f32.mrf.mxu1  ;;  %v10836_v1 = vpop.f32.mrf.mxu0  ;;  %vm18473_vm1 = vnez %v18472_v54 }
 0x53b   : > { %v16029_v9 = vadd.f32 %v10835_v48, %v10753_v41 }
 0x53c   : > { %v10755_v20 = vpop.f32.mrf.mxu1  ;;  %v10837_v39 = vpop.f32.mrf.mxu0 }
 0x53d   : > { %v10756_v35 = vadd.f32 %v10755_v20, %v10754_v53  ;;  %v10838_v6 = vadd.f32 %v10837_v39, %v10836_v1  ;;  %v6598_v39 = vld [vmem:[#allocation3 + $0xa8] sm:$0xff] }
 0x53f   : > { %v16034_v40 = vadd.f32 %v10838_v6, %v10756_v35 }
 0x540   : > { %v10839_v47 = vpop.f32.mrf.mxu0 }
 0x541   : > { %v10757_v16 = vpop.f32.mrf.mxu1  ;;  %11331 = vmatmul.mubr.msk.bf16.gmra.mxu1 %vm18473_vm1, %v15325_v49  ;;  %v18474_v49 = vld [vmem:[#allocation146_spill] sm:$0xff] }
 0x542   : > { %11334 = vmatprep.mubr.msk.bf16.mxu1 %vm18461_vm8, %v18314_v50  ;;  %v10840_v18 = vpop.f32.mrf.mxu0  ;;  %vm18475_vm6 = vnez %v18474_v49 }
 0x543   : > { %v10758_v29 = vpop.f32.mrf.mxu1  ;;  %v10841_v0 = vadd.f32 %v10840_v18, %v10839_v47 }
 0x544   : > { %v10759_v5 = vadd.f32 %v10758_v29, %v10757_v16  ;;  %v10842_v31 = vpop.f32.mrf.mxu0  ;;  %v11843_v29 = vld [vmem:[#allocation3 + $0xa0] sm:$0xff] }
 0x545   : > { %v10760_v7 = vpop.f32.mrf.mxu1  ;;  %v10276_v18 = vpack.c.bf16 %v6598_v39, %v11843_v29 }
 0x546   : > { %v16038_v14 = vadd.f32 %v10841_v0, %v10759_v5  ;;  %v10843_v12 = vpop.f32.mrf.mxu0 }
 0x547   : > { %v10761_v32 = vpop.f32.mrf.mxu1  ;;  %v10844_v38 = vadd.f32 %v10843_v12, %v10842_v31  ;;  %v6725_v31 = vpop.permute.xlu1 %6724  ;;  %v6599_v12 = vld [vmem:[#allocation3 + $0xb0] sm:$0xff] }
 0x548   : > { %v10762_v13 = vadd.f32 %v10761_v32, %v10760_v7  ;;  %vm6746_vm10 = vcmp.eq.s32.totalorder %v6725_v31, 1 }
 0x549   : > { %v10763_v24 = vpop.f32.mrf.mxu1  ;;  %v10845_v56 = vpop.f32.mrf.mxu0  ;;  %11335 = vmatmul.mubr.msk.bf16.gmra.mxu1 %vm18475_vm6, %v15346_v52  ;;  %vm10278_vm2 = vmpackc.low %vm6746_vm10, %vm6746_vm10 }
 0x54a   : > { %v16043_v61 = vadd.f32 %v10844_v38, %v10762_v13  ;;  %11338 = vmatprep.mubr.msk.bf16.mxu1 %vm18461_vm8, %v18314_v50 }
 0x54b   : > { %v10764_v3 = vpop.f32.mrf.mxu1  ;;  %v10846_v42 = vpop.f32.mrf.mxu0 }
 0x54c   : > { %v10765_v33 = vadd.f32 %v10764_v3, %v10763_v24  ;;  %v10847_v34 = vadd.f32 %v10846_v42, %v10845_v56  ;;  %v10279_v42 = vpack.c.bf16 %v6599_v12, %v6599_v12 }
 0x54d   : > { %v10766_v21 = vpop.f32.mrf.mxu1  ;;  %v10848_v45 = vpop.f32.mrf.mxu0 }
 0x54e   : > { %v16047_v15 = vadd.f32 %v10847_v34, %v10765_v33 }
 0x54f   : > { %v10767_v25 = vpop.f32.mrf.mxu1  ;;  %v10849_v63 = vpop.f32.mrf.mxu0 }
 0x550   : > { %v10768_v10 = vadd.f32 %v10767_v25, %v10766_v21  ;;  %v10850_v17 = vadd.f32 %v10849_v63, %v10848_v45 }
 0x551   : > { %v10769_v37 = vpop.f32.mrf.mxu1  ;;  %v10851_v26 = vpop.f32.mrf.mxu0  ;;  %11339 = vmatmul.mubr.msk.bf16.gmra.mxu1 %vm15538_vm3, %v15405_v59  ;;  %v18477_v59 = vld [vmem:[#allocation61_spill] sm:$0xff] }
 0x552   : > { %v16052_v22 = vadd.f32 %v10850_v17, %v10768_v10  ;;  %11342 = vmatprep.mubr.msk.bf16.mxu1 %vm18461_vm8, %v18314_v50  ;;  %vm18478_vm3 = vnez %v18477_v59 }
 0x553   : > { %v10770_v46 = vpop.f32.mrf.mxu1  ;;  %v10852_v60 = vpop.f32.mrf.mxu0 }
 0x554   : > { %v10771_v43 = vadd.f32 %v10770_v46, %v10769_v37  ;;  %v10853_v36 = vadd.f32 %v10852_v60, %v10851_v26 }
 0x555   : > { %v10772_v62 = vpop.f32.mrf.mxu1  ;;  %v10854_v44 = vpop.f32.mrf.mxu0 }
 0x556   : > { %v16056_v19 = vadd.f32 %v10853_v36, %v10771_v43 }
 0x557   : > { %v10773_v4 = vpop.f32.mrf.mxu1  ;;  %v10855_v57 = vpop.f32.mrf.mxu0 }
 0x558   : > { %v10774_v28 = vadd.f32 %v10773_v4, %v10772_v62  ;;  %v10856_v27 = vadd.f32 %v10855_v57, %v10854_v44 }
 0x559   : > { %v10775_v58 = vpop.f32.mrf.mxu1  ;;  %v10857_v8 = vpop.f32.mrf.mxu0  ;;  %11343 = vmatmul.mubr.msk.bf16.gmra.mxu1 %vm18478_vm3, %v15455_v55 }
 0x55a   : > { %v16061_v41 = vadd.f32 %v10856_v27, %v10774_v28  ;;  %11346 = vmatprep.mubr.msk.bf16.mxu1 %vm18461_vm8, %v18314_v50 }
 0x55b   : > { %v10776_v48 = vpop.f32.mrf.mxu1  ;;  %v10858_v53 = vpop.f32.mrf.mxu0 }
 0x55c   : > { %v10777_v1 = vadd.f32 %v10776_v48, %v10775_v58  ;;  %v10859_v20 = vadd.f32 %v10858_v53, %v10857_v8 }
 0x55d   : > { %v10778_v35 = vpop.f32.mrf.mxu1  ;;  %v10860_v6 = vpop.f32.mrf.mxu0 }
 0x55e   : > { %v16065_v16 = vadd.f32 %v10859_v20, %v10777_v1 }
 0x55f   : > { %v10779_v47 = vpop.f32.mrf.mxu1  ;;  %v10861_v54 = vpop.f32.mrf.mxu0 }
 0x560   : > { %v10780_v5 = vadd.f32 %v10779_v47, %v10778_v35  ;;  %v10862_v55 = vadd.f32 %v10861_v54, %v10860_v6 }
 0x561   : > { %v10781_v0 = vpop.f32.mrf.mxu1  ;;  %v10863_v7 = vpop.f32.mrf.mxu0  ;;  %11347 = vmatmul.mubr.msk.bf16.gmra.mxu1 %vm18479_vm4, %v10276_v18 }
 0x562   : > { %v16069_v32 = vadd.f32 %v10862_v55, %v10780_v5  ;;  %11350 = vmatprep.mubr.msk.bf16.mxu1 %vm18461_vm8, %v18314_v50 }
 0x563   : > { %v10782_v13 = vpop.f32.mrf.mxu1  ;;  %v10864_v38 = vpop.f32.mrf.mxu0 }
 0x564   : > { %v10783_v24 = vadd.f32 %v10782_v13, %v10781_v0  ;;  %v10865_v56 = vadd.f32 %v10864_v38, %v10863_v7 }
 0x565   : > { %v10784_v49 = vpop.f32.mrf.mxu1  ;;  %v10866_v3 = vpop.f32.mrf.mxu0 }
 0x566   : > { %v16073_v33 = vadd.f32 %v10865_v56, %v10783_v24 }
 0x567   : > { %v10785_v34 = vpop.f32.mrf.mxu1  ;;  %v10867_v23 = vpop.f32.mrf.mxu0 }
 0x568   : > { %v10786_v21 = vadd.f32 %v10785_v34, %v10784_v49  ;;  %v10868_v45 = vadd.f32 %v10867_v23, %v10866_v3 }
 0x569   : > { %v10787_v25 = vpop.f32.mrf.mxu1  ;;  %v10869_v63 = vpop.f32.mrf.mxu0  ;;  %11351 = vmatmul.mubr.msk.bf16.gmra.mxu1 %vm10278_vm2, %v10279_v42 }
 0x56a   : > { %v16075_v50 = vadd.f32 %v10868_v45, %v10786_v21 }
 0x56b   : > { %v10788_v10 = vpop.f32.mrf.mxu1  ;;  %v10870_v17 = vpop.f32.mrf.mxu0 }
 0x56c   : > { %v10789_v37 = vadd.f32 %v10788_v10, %v10787_v25  ;;  %v10871_v26 = vadd.f32 %v10870_v17, %v10869_v63 }
 0x56d   : > { %v10790_v52 = vpop.f32.mrf.mxu1  ;;  %v10872_v46 = vpop.f32.mrf.mxu0 }
 0x56e   : > { %v16077_v60 = vadd.f32 %v10871_v26, %v10789_v37 }
 0x56f   : > { %v10791_v43 = vpop.f32.mrf.mxu1  ;;  %v10873_v36 = vpop.f32.mrf.mxu0 }
 0x570   : > { %v10792_v62 = vadd.f32 %v10791_v43, %v10790_v52  ;;  %v10874_v44 = vadd.f32 %v10873_v36, %v10872_v46 }
 0x571   : > { %v10793_v4 = vpop.f32.mrf.mxu1  ;;  %v10875_v57 = vpop.f32.mrf.mxu0 }
 0x572   : > { %v16079_v28 = vadd.f32 %v10874_v44, %v10792_v62 }
 0x573   : > { %v10794_v27 = vpop.f32.mrf.mxu1  ;;  %v10876_v58 = vpop.f32.mrf.mxu0 }
 0x574   : > { %v10795_v8 = vadd.f32 %v10794_v27, %v10793_v4  ;;  %v10877_v59 = vadd.f32 %v10876_v58, %v10875_v57 }
 0x575   : > { %v10796_v48 = vpop.f32.mrf.mxu1  ;;  %v10878_v53 = vpop.f32.mrf.mxu0 }
 0x576   : > { %v16081_v1 = vadd.f32 %v10877_v59, %v10795_v8 }
 0x577   : > { %v10797_v20 = vpop.f32.mrf.mxu1  ;;  %v10879_v39 = vpop.f32.mrf.mxu0 }
 0x578   : > { %v10798_v35 = vadd.f32 %v10797_v20, %v10796_v48  ;;  %v10880_v6 = vadd.f32 %v10879_v39, %v10878_v53 }
 0x579   : > { %v10799_v47 = vpop.f32.mrf.mxu1  ;;  %v10881_v54 = vpop.f32.mrf.mxu0 }
 0x57a   : > { %v16083_v29 = vadd.f32 %v10880_v6, %v10798_v35 }
 0x57b   : > { %v10800_v18 = vpop.f32.mrf.mxu1  ;;  %v10882_v5 = vpop.f32.mrf.mxu0 }
 0x57c   : > { %v10801_v55 = vadd.f32 %v10800_v18, %v10799_v47  ;;  %v10883_v0 = vadd.f32 %v10882_v5, %v10881_v54 }
 0x57d   : > { %v10802_v7 = vpop.f32.mrf.mxu1  ;;  %v10884_v31 = vpop.f32.mrf.mxu0 }
 0x57e   : > { %v16085_v12 = vadd.f32 %v10883_v0, %v10801_v55 }
 0x57f   : > { %v10803_v13 = vpop.f32.mrf.mxu1  ;;  %v10885_v38 = vpop.f32.mrf.mxu0 }
 0x581   : > { %v10903_v24 = vpop.f32.mrf.mxu1  ;;  %v10985_v56 = vpop.f32.mrf.mxu0 }
 0x583   : > { %v10904_v49 = vpop.f32.mrf.mxu1  ;;  %v10986_v3 = vpop.f32.mrf.mxu0 }
 0x584   : > { %v10905_v42 = vadd.f32 %v10904_v49, %v10903_v24  ;;  %v10987_v34 = vadd.f32 %v10986_v3, %v10985_v56 }
 0x585   : > { %v10906_v23 = vpop.f32.mrf.mxu1  ;;  %v10988_v21 = vpop.f32.mrf.mxu0 }
 0x586   : > { %v5889_v45 = vadd.f32 %v10905_v42, %v16012_v2 }
 0x587   : > { %v10907_v25 = vpop.f32.mrf.mxu1  ;;  %v10989_v63 = vpop.f32.mrf.mxu0 }
 0x588   : > { %v10908_v10 = vadd.f32 %v10907_v25, %v10906_v23  ;;  %v10990_v17 = vadd.f32 %v10989_v63, %v10988_v21  ;;  %v16088_v37 = vadd.f32 %v10987_v34, %v5889_v45 }
 0x589   : > { %v10909_v26 = vpop.f32.mrf.mxu1  ;;  %v10991_v52 = vpop.f32.mrf.mxu0 }
 0x58a   : > { %v5890_v46 = vadd.f32 %v10908_v10, %v16016_v51 }
 0x58b   : > { %v10910_v43 = vpop.f32.mrf.mxu1  ;;  %v10992_v36 = vpop.f32.mrf.mxu0 }
 0x58c   : > { %v10911_v62 = vadd.f32 %v10910_v43, %v10909_v26  ;;  %v10993_v44 = vadd.f32 %v10992_v36, %v10991_v52  ;;  %v16091_v4 = vadd.f32 %v10990_v17, %v5890_v46 }
 0x58d   : > { %v10912_v57 = vpop.f32.mrf.mxu1  ;;  %v10994_v27 = vpop.f32.mrf.mxu0 }
 0x58e   : > { %v5891_v2 = vadd.f32 %v10911_v62, %v16020_v11 }
 0x58f   : > { %v10913_v58 = vpop.f32.mrf.mxu1  ;;  %v10995_v8 = vpop.f32.mrf.mxu0 }
 0x590   : > { %v10914_v59 = vadd.f32 %v10913_v58, %v10912_v57  ;;  %v10996_v48 = vadd.f32 %v10995_v8, %v10994_v27  ;;  %v16094_v53 = vadd.f32 %v10993_v44, %v5891_v2 }
 0x591   : > { %v10915_v20 = vpop.f32.mrf.mxu1  ;;  %v10997_v39 = vpop.f32.mrf.mxu0 }
 0x592   : > { %v5892_v51 = vadd.f32 %v10914_v59, %v16025_v30 }
 0x593   : > { %v10916_v35 = vpop.f32.mrf.mxu1  ;;  %v10998_v6 = vpop.f32.mrf.mxu0 }
 0x594   : > { %v10917_v47 = vadd.f32 %v10916_v35, %v10915_v20  ;;  %v10999_v54 = vadd.f32 %v10998_v6, %v10997_v39  ;;  %v16097_v18 = vadd.f32 %v10996_v48, %v5892_v51 }
 0x595   : > { %v10918_v5 = vpop.f32.mrf.mxu1  ;;  %v11000_v55 = vpop.f32.mrf.mxu0 }
 0x596   : > { %v5893_v11 = vadd.f32 %v10917_v47, %v16029_v9 }
 0x597   : > { %v10919_v0 = vpop.f32.mrf.mxu1  ;;  %v11001_v7 = vpop.f32.mrf.mxu0 }
 0x598   : > { %v10920_v31 = vadd.f32 %v10919_v0, %v10918_v5  ;;  %v11002_v13 = vadd.f32 %v11001_v7, %v11000_v55  ;;  %v16100_v38 = vadd.f32 %v10999_v54, %v5893_v11 }
 0x599   : > { %v10921_v24 = vpop.f32.mrf.mxu1  ;;  %v11003_v56 = vpop.f32.mrf.mxu0 }
 0x59a   : > { %v5894_v30 = vadd.f32 %v10920_v31, %v16034_v40 }
 0x59b   : > { %v10922_v49 = vpop.f32.mrf.mxu1  ;;  %v11004_v3 = vpop.f32.mrf.mxu0 }
 0x59c   : > { %v10923_v42 = vadd.f32 %v10922_v49, %v10921_v24  ;;  %v11005_v34 = vadd.f32 %v11004_v3, %v11003_v56  ;;  %v16103_v23 = vadd.f32 %v11002_v13, %v5894_v30 }
 0x59d   : > { %v10924_v21 = vpop.f32.mrf.mxu1  ;;  %v11006_v45 = vpop.f32.mrf.mxu0 }
 0x59e   : > { %v5895_v9 = vadd.f32 %v10923_v42, %v16038_v14 }
 0x59f   : > { %v10925_v25 = vpop.f32.mrf.mxu1  ;;  %v11007_v63 = vpop.f32.mrf.mxu0 }
 0x5a0   : > { %v10926_v10 = vadd.f32 %v10925_v25, %v10924_v21  ;;  %v11008_v17 = vadd.f32 %v11007_v63, %v11006_v45  ;;  %v16106_v26 = vadd.f32 %v11005_v34, %v5895_v9 }
 0x5a1   : > { %v10927_v52 = vpop.f32.mrf.mxu1  ;;  %v11009_v46 = vpop.f32.mrf.mxu0 }
 0x5a2   : > { %v5896_v40 = vadd.f32 %v10926_v10, %v16043_v61 }
 0x5a3   : > { %v10928_v43 = vpop.f32.mrf.mxu1  ;;  %v11010_v36 = vpop.f32.mrf.mxu0 }
 0x5a4   : > { %v10929_v62 = vadd.f32 %v10928_v43, %v10927_v52  ;;  %v11011_v44 = vadd.f32 %v11010_v36, %v11009_v46  ;;  %v16109_v57 = vadd.f32 %v11008_v17, %v5896_v40 }
 0x5a5   : > { %v10930_v27 = vpop.f32.mrf.mxu1  ;;  %v11012_v2 = vpop.f32.mrf.mxu0 }
 0x5a6   : > { %v5897_v14 = vadd.f32 %v10929_v62, %v16047_v15 }
 0x5a7   : > { %v10931_v58 = vpop.f32.mrf.mxu1  ;;  %v11013_v8 = vpop.f32.mrf.mxu0 }
 0x5a8   : > { %v10932_v59 = vadd.f32 %v10931_v58, %v10930_v27  ;;  %v11014_v48 = vadd.f32 %v11013_v8, %v11012_v2  ;;  %v16112_v20 = vadd.f32 %v11011_v44, %v5897_v14 }
 0x5a9   : > { %v10933_v39 = vpop.f32.mrf.mxu1  ;;  %v11015_v51 = vpop.f32.mrf.mxu0 }
 0x5aa   : > { %v5898_v61 = vadd.f32 %v10932_v59, %v16052_v22 }
 0x5ab   : > { %v10934_v35 = vpop.f32.mrf.mxu1  ;;  %v11016_v6 = vpop.f32.mrf.mxu0 }
 0x5ac   : > { %v10935_v47 = vadd.f32 %v10934_v35, %v10933_v39  ;;  %v11017_v54 = vadd.f32 %v11016_v6, %v11015_v51  ;;  %v16115_v5 = vadd.f32 %v11014_v48, %v5898_v61 }
 0x5ad   : > { %v10936_v55 = vpop.f32.mrf.mxu1  ;;  %v11018_v11 = vpop.f32.mrf.mxu0 }
 0x5ae   : > { %v5899_v15 = vadd.f32 %v10935_v47, %v16056_v19 }
 0x5af   : > { %v10937_v0 = vpop.f32.mrf.mxu1  ;;  %v11019_v7 = vpop.f32.mrf.mxu0 }
 0x5b0   : > { %v10938_v31 = vadd.f32 %v10937_v0, %v10936_v55  ;;  %v11020_v13 = vadd.f32 %v11019_v7, %v11018_v11  ;;  %v16118_v24 = vadd.f32 %v11017_v54, %v5899_v15 }
 0x5b1   : > { %v10939_v56 = vpop.f32.mrf.mxu1  ;;  %v11021_v30 = vpop.f32.mrf.mxu0 }
 0x5b2   : > { %v5900_v22 = vadd.f32 %v10938_v31, %v16061_v41 }
 0x5b3   : > { %v10940_v49 = vpop.f32.mrf.mxu1  ;;  %v11022_v3 = vpop.f32.mrf.mxu0 }
 0x5b4   : > { %v10941_v42 = vadd.f32 %v10940_v49, %v10939_v56  ;;  %v11023_v34 = vadd.f32 %v11022_v3, %v11021_v30  ;;  %v16121_v21 = vadd.f32 %v11020_v13, %v5900_v22 }
 0x5b5   : > { %v10942_v45 = vpop.f32.mrf.mxu1  ;;  %v11024_v9 = vpop.f32.mrf.mxu0 }
 0x5b6   : > { %v5901_v19 = vadd.f32 %v10941_v42, %v16065_v16 }
 0x5b7   : > { %v10943_v25 = vpop.f32.mrf.mxu1  ;;  %v11025_v63 = vpop.f32.mrf.mxu0 }
 0x5b8   : > { %v10944_v10 = vadd.f32 %v10943_v25, %v10942_v45  ;;  %v11026_v17 = vadd.f32 %v11025_v63, %v11024_v9  ;;  %v16124_v52 = vadd.f32 %v11023_v34, %v5901_v19 }
 0x5b9   : > { %v10945_v46 = vpop.f32.mrf.mxu1  ;;  %v11027_v40 = vpop.f32.mrf.mxu0 }
 0x5ba   : > { %v5902_v41 = vadd.f32 %v10944_v10, %v16069_v32 }
 0x5bb   : > { %v10946_v43 = vpop.f32.mrf.mxu1  ;;  %v11028_v36 = vpop.f32.mrf.mxu0 }
 0x5bc   : > { %v10947_v62 = vadd.f32 %v10946_v43, %v10945_v46  ;;  %v11029_v44 = vadd.f32 %v11028_v36, %v11027_v40  ;;  %v16127_v27 = vadd.f32 %v11026_v17, %v5902_v41 }
 0x5bd   : > { %v10948_v2 = vpop.f32.mrf.mxu1  ;;  %v11030_v14 = vpop.f32.mrf.mxu0 }
 0x5be   : > { %v5903_v16 = vadd.f32 %v10947_v62, %v16073_v33 }
 0x5bf   : > { %v10949_v58 = vpop.f32.mrf.mxu1  ;;  %v11031_v8 = vpop.f32.mrf.mxu0 }
 0x5c0   : > { %v10950_v59 = vadd.f32 %v10949_v58, %v10948_v2  ;;  %v11032_v48 = vadd.f32 %v11031_v8, %v11030_v14  ;;  %v16130_v39 = vadd.f32 %v11029_v44, %v5903_v16 }
 0x5c1   : > { %v10951_v51 = vpop.f32.mrf.mxu1  ;;  %v11033_v61 = vpop.f32.mrf.mxu0 }
 0x5c2   : > { %v5904_v32 = vadd.f32 %v10950_v59, %v16075_v50 }
 0x5c3   : > { %v10952_v35 = vpop.f32.mrf.mxu1  ;;  %v11034_v6 = vpop.f32.mrf.mxu0 }
 0x5c4   : > { %v10953_v47 = vadd.f32 %v10952_v35, %v10951_v51  ;;  %v11035_v54 = vadd.f32 %v11034_v6, %v11033_v61  ;;  %v16133_v55 = vadd.f32 %v11032_v48, %v5904_v32 }
 0x5c5   : > { %v10954_v11 = vpop.f32.mrf.mxu1  ;;  %v11036_v15 = vpop.f32.mrf.mxu0 }
 0x5c6   : > { %v5905_v33 = vadd.f32 %v10953_v47, %v16077_v60 }
 0x5c7   : > { %v10955_v0 = vpop.f32.mrf.mxu1  ;;  %v11037_v7 = vpop.f32.mrf.mxu0 }
 0x5c8   : > { %v10956_v31 = vadd.f32 %v10955_v0, %v10954_v11  ;;  %v11038_v13 = vadd.f32 %v11037_v7, %v11036_v15  ;;  %v16136_v56 = vadd.f32 %v11035_v54, %v5905_v33 }
 0x5c9   : > { %v10957_v30 = vpop.f32.mrf.mxu1  ;;  %v11039_v22 = vpop.f32.mrf.mxu0 }
 0x5ca   : > { %v5906_v50 = vadd.f32 %v10956_v31, %v16079_v28 }
 0x5cb   : > { %v10958_v49 = vpop.f32.mrf.mxu1  ;;  %v11040_v3 = vpop.f32.mrf.mxu0 }
 0x5cc   : > { %v10959_v42 = vadd.f32 %v10958_v49, %v10957_v30  ;;  %v11041_v34 = vadd.f32 %v11040_v3, %v11039_v22  ;;  %v16139_v45 = vadd.f32 %v11038_v13, %v5906_v50 }
 0x5cd   : > { %v10960_v9 = vpop.f32.mrf.mxu1  ;;  %v11042_v19 = vpop.f32.mrf.mxu0 }
 0x5ce   : > { %v5907_v60 = vadd.f32 %v10959_v42, %v16081_v1 }
 0x5cf   : > { %v10961_v25 = vpop.f32.mrf.mxu1  ;;  %v11043_v63 = vpop.f32.mrf.mxu0 }
 0x5d0   : > { %v10962_v10 = vadd.f32 %v10961_v25, %v10960_v9  ;;  %v11044_v17 = vadd.f32 %v11043_v63, %v11042_v19  ;;  %v16142_v46 = vadd.f32 %v11041_v34, %v5907_v60 }
 0x5d1   : > { %v10963_v40 = vpop.f32.mrf.mxu1  ;;  %v11045_v41 = vpop.f32.mrf.mxu0 }
 0x5d2   : > { %v5908_v28 = vadd.f32 %v10962_v10, %v16083_v29 }
 0x5d3   : > { %v10964_v43 = vpop.f32.mrf.mxu1  ;;  %v11046_v36 = vpop.f32.mrf.mxu0 }
 0x5d4   : > { %v10965_v62 = vadd.f32 %v10964_v43, %v10963_v40  ;;  %v11047_v44 = vadd.f32 %v11046_v36, %v11045_v41  ;;  %v16145_v2 = vadd.f32 %v11044_v17, %v5908_v28 }
 0x5d5   : > { %v10966_v14 = vpop.f32.mrf.mxu1  ;;  %v11048_v16 = vpop.f32.mrf.mxu0 }
 0x5d6   : > { %v5909_v1 = vadd.f32 %v10965_v62, %v16085_v12 }
 0x5d7   : > { %v10967_v58 = vpop.f32.mrf.mxu1  ;;  %v11049_v8 = vpop.f32.mrf.mxu0 }
 0x5d8   : > { %v16148_v59 = vadd.f32 %v11047_v44, %v5909_v1 }
 0x5d9   : > { %v6877_v48 = vpop.f32.mrf.mxu1 }
 0x5da   : > { %v16154_v11 = vadd.f32 %v6877_v48, %v16088_v37 }
 0x5db   : > { %v11312_v51 = vpop.f32.mrf.mxu1 }
 0x5dc   : > { %v7011_v31 = vmul.f32 %v16154_v11, %v16154_v11 }
 0x5dd   : > { %v6880_v61 = vpop.f32.mrf.mxu1 }
 0x5de   : > { %v16151_v47 = vadd.f32 %v6880_v61, %v16091_v4 }
 0x5df   : > { %v11313_v32 = vpop.f32.mrf.mxu1 }
 0x5e0   : > { %v7012_v33 = vmul.f32 %v16151_v47, %v16151_v47  ;;  %v6984_v4 = vadd.f32 %v16151_v47, %v16154_v11 }
 0x5e1   : > { %v6885_v35 = vpop.f32.mrf.mxu1 }
 0x5e2   : > { %v16157_v12 = vadd.f32 %v6885_v35, %v16094_v53  ;;  %v7032_v30 = vadd.f32 %v7012_v33, %v7011_v31 }
 0x5e3   : > { %v11316_v29 = vpop.f32.mrf.mxu1 }
 0x5e4   : > { %v7013_v37 = vmul.f32 %v16157_v12, %v16157_v12  ;;  %v6985_v22 = vadd.f32 %v6984_v4, %v16157_v12 }
 0x5e5   : > { %v6888_v6 = vpop.f32.mrf.mxu1 }
 0x5e6   : > { %v16162_v0 = vadd.f32 %v6888_v6, %v16097_v18  ;;  %v7033_v3 = vadd.f32 %v7032_v30, %v7013_v37 }
 0x5e7   : > { %v11317_v54 = vpop.f32.mrf.mxu1 }
 0x5e8   : > { %v7014_v18 = vmul.f32 %v16162_v0, %v16162_v0  ;;  %v6986_v42 = vadd.f32 %v6985_v22, %v16162_v0 }
 0x5e9   : > { %v6893_v15 = vpop.f32.mrf.mxu1 }
 0x5ea   : > { %v16171_v53 = vadd.f32 %v6893_v15, %v16100_v38  ;;  %v7034_v38 = vadd.f32 %v7033_v3, %v7014_v18 }
 0x5eb   : > { %v11320_v7 = vpop.f32.mrf.mxu1 }
 0x5ec   : > { %v7015_v34 = vmul.f32 %v16171_v53, %v16171_v53  ;;  %v6987_v19 = vadd.f32 %v6986_v42, %v16171_v53 }
 0x5ed   : > { %v6896_v13 = vpop.f32.mrf.mxu1 }
 0x5ee   : > { %v16177_v50 = vadd.f32 %v6896_v13, %v16103_v23  ;;  %v7035_v23 = vadd.f32 %v7034_v38, %v7015_v34 }
 0x5ef   : > { %v11321_v49 = vpop.f32.mrf.mxu1 }
 0x5f0   : > { %v7016_v60 = vmul.f32 %v16177_v50, %v16177_v50  ;;  %v6988_v10 = vadd.f32 %v6987_v19, %v16177_v50 }
 0x5f1   : > { %v6901_v9 = vpop.f32.mrf.mxu1 }
 0x5f2   : > { %v16186_v25 = vadd.f32 %v6901_v9, %v16106_v26  ;;  %v7036_v41 = vadd.f32 %v7035_v23, %v7016_v60 }
 0x5f3   : > { %v11324_v63 = vpop.f32.mrf.mxu1 }
 0x5f4   : > { %v7017_v17 = vmul.f32 %v16186_v25, %v16186_v25  ;;  %v6989_v28 = vadd.f32 %v6988_v10, %v16186_v25 }
 0x5f5   : > { %v6904_v40 = vpop.f32.mrf.mxu1 }
 0x5f6   : > { %v16193_v43 = vadd.f32 %v6904_v40, %v16109_v57  ;;  %v7037_v62 = vadd.f32 %v7036_v41, %v7017_v17 }
 0x5f7   : > { %v11325_v36 = vpop.f32.mrf.mxu1 }
 0x5f8   : > { %v6990_v44 = vadd.f32 %v6989_v28, %v16193_v43  ;;  %v7018_v26 = vmul.f32 %v16193_v43, %v16193_v43 }
 0x5f9   : > { %v6909_v14 = vpop.f32.mrf.mxu1 }
 0x5fa   : > { %v7038_v16 = vadd.f32 %v7037_v62, %v7018_v26  ;;  %v16199_v1 = vadd.f32 %v6909_v14, %v16112_v20 }
 0x5fb   : > { %v11328_v58 = vpop.f32.mrf.mxu1 }
 0x5fc   : > { %v6991_v8 = vadd.f32 %v6990_v44, %v16199_v1  ;;  %v7019_v48 = vmul.f32 %v16199_v1, %v16199_v1 }
 0x5fd   : > { %v6912_v57 = vpop.f32.mrf.mxu1 }
 0x5fe   : > { %v7039_v51 = vadd.f32 %v7038_v16, %v7019_v48  ;;  %v16205_v61 = vadd.f32 %v6912_v57, %v16115_v5 }
 0x5ff   : > { %v11329_v32 = vpop.f32.mrf.mxu1 }
 0x600   : > { %v6992_v35 = vadd.f32 %v6991_v8, %v16205_v61  ;;  %v7020_v29 = vmul.f32 %v16205_v61, %v16205_v61 }
 0x601   : > { %v6917_v6 = vpop.f32.mrf.mxu1 }
 0x602   : > { %v7040_v20 = vadd.f32 %v7039_v51, %v7020_v29  ;;  %v16211_v54 = vadd.f32 %v6917_v6, %v16118_v24 }
 0x603   : > { %v11332_v15 = vpop.f32.mrf.mxu1 }
 0x604   : > { %v6993_v33 = vadd.f32 %v6992_v35, %v16211_v54  ;;  %v7021_v7 = vmul.f32 %v16211_v54, %v16211_v54 }
 0x605   : > { %v6920_v31 = vpop.f32.mrf.mxu1 }
 0x606   : > { %v7041_v5 = vadd.f32 %v7040_v20, %v7021_v7  ;;  %v16217_v4 = vadd.f32 %v6920_v31, %v16121_v21 }
 0x607   : > { %v11333_v37 = vpop.f32.mrf.mxu1 }
 0x608   : > { %v6994_v13 = vadd.f32 %v6993_v33, %v16217_v4  ;;  %v7022_v30 = vmul.f32 %v16217_v4, %v16217_v4 }
 0x609   : > { %v6925_v22 = vpop.f32.mrf.mxu1 }
 0x60a   : > { %v7042_v24 = vadd.f32 %v7041_v5, %v7022_v30  ;;  %v16223_v18 = vadd.f32 %v6925_v22, %v16124_v52 }
 0x60b   : > { %v11336_v49 = vpop.f32.mrf.mxu1 }
 0x60c   : > { %v6995_v3 = vadd.f32 %v6994_v13, %v16223_v18  ;;  %v7023_v42 = vmul.f32 %v16223_v18, %v16223_v18 }
 0x60d   : > { %v6928_v34 = vpop.f32.mrf.mxu1 }
 0x60e   : > { %v7043_v21 = vadd.f32 %v7042_v24, %v7023_v42  ;;  %v16229_v9 = vadd.f32 %v6928_v34, %v16127_v27 }
 0x60f   : > { %v11337_v38 = vpop.f32.mrf.mxu1 }
 0x610   : > { %v6996_v19 = vadd.f32 %v6995_v3, %v16229_v9  ;;  %v7024_v60 = vmul.f32 %v16229_v9, %v16229_v9 }
 0x611   : > { %v6933_v63 = vpop.f32.mrf.mxu1 }
 0x612   : > { %v7044_v52 = vadd.f32 %v7043_v21, %v7024_v60  ;;  %v16235_v23 = vadd.f32 %v6933_v63, %v16130_v39 }
 0x613   : > { %v11340_v10 = vpop.f32.mrf.mxu1 }
 0x614   : > { %v6997_v17 = vadd.f32 %v6996_v19, %v16235_v23  ;;  %v7025_v40 = vmul.f32 %v16235_v23, %v16235_v23 }
 0x615   : > { %v6936_v41 = vpop.f32.mrf.mxu1 }
 0x616   : > { %v7045_v27 = vadd.f32 %v7044_v52, %v7025_v40  ;;  %v16241_v28 = vadd.f32 %v6936_v41, %v16133_v55 }
 0x617   : > { %v11341_v36 = vpop.f32.mrf.mxu1 }
 0x618   : > { %v6998_v62 = vadd.f32 %v6997_v17, %v16241_v28  ;;  %v7026_v44 = vmul.f32 %v16241_v28, %v16241_v28 }
 0x619   : > { %v6941_v26 = vpop.f32.mrf.mxu1 }
 0x61a   : > { %v7046_v39 = vadd.f32 %v7045_v27, %v7026_v44  ;;  %v16247_v14 = vadd.f32 %v6941_v26, %v16136_v56 }
 0x61b   : > { %v11344_v16 = vpop.f32.mrf.mxu1 }
 0x61c   : > { %v6999_v58 = vadd.f32 %v6998_v62, %v16247_v14  ;;  %v7027_v8 = vmul.f32 %v16247_v14, %v16247_v14 }
 0x61d   : > { %v6944_v48 = vpop.f32.mrf.mxu1 }
 0x61e   : > { %v7047_v55 = vadd.f32 %v7046_v39, %v7027_v8  ;;  %v16253_v57 = vadd.f32 %v6944_v48, %v16139_v45 }
 0x61f   : > { %v11345_v51 = vpop.f32.mrf.mxu1 }
 0x620   : > { %v7000_v32 = vadd.f32 %v6999_v58, %v16253_v57  ;;  %v7028_v35 = vmul.f32 %v16253_v57, %v16253_v57 }
 0x621   : > { %v6949_v29 = vpop.f32.mrf.mxu1 }
 0x622   : > { %v7048_v56 = vadd.f32 %v7047_v55, %v7028_v35  ;;  %v16259_v6 = vadd.f32 %v6949_v29, %v16142_v46 }
 0x623   : > { %v11348_v20 = vpop.f32.mrf.mxu1 }
 0x624   : > { %v7001_v15 = vadd.f32 %v7000_v32, %v16259_v6  ;;  %v7029_v33 = vmul.f32 %v16259_v6, %v16259_v6 }
 0x625   : > { %v6952_v7 = vpop.f32.mrf.mxu1 }
 0x626   : > { %v7049_v45 = vadd.f32 %v7048_v56, %v7029_v33  ;;  %v16265_v31 = vadd.f32 %v6952_v7, %v16145_v2 }
 0x627   : > { %v11349_v5 = vpop.f32.mrf.mxu1 }
 0x628   : > { %v7002_v37 = vadd.f32 %v7001_v15, %v16265_v31  ;;  %v7030_v13 = vmul.f32 %v16265_v31, %v16265_v31 }
 0x629   : > { %v6957_v30 = vpop.f32.mrf.mxu1 }
 0x62a   : > { %v7050_v46 = vadd.f32 %v7049_v45, %v7030_v13  ;;  %v16271_v22 = vadd.f32 %v6957_v30, %v16148_v59 }
 0x62b   : > { %v11352_v24 = vpop.f32.mrf.mxu1 }
 0x62c   : > { %v7003_v49 = vadd.f32 %v7002_v37, %v16271_v22  ;;  %v7031_v3 = vmul.f32 %v16271_v22, %v16271_v22 }
 0x62d   : > { %v6960_v42 = vpop.f32.mrf.mxu1 }
 0x62e   : > { %v7004_v2 = vrot.slane %v7003_v49, 4  ;;  %v7051_v34 = vadd.f32 %v7050_v46, %v7031_v3  ;;  %v18480_v3 = vld [vmem:[#allocation8_spill] sm:$0xff] }
 0x62f   : > { %v11353_v21 = vpop.f32.mrf.mxu1 }
 0x630   : > { %v7005_v38 = vadd.f32 %v7004_v2, %v7003_v49  ;;  %v7052_v19 = vrot.slane %v7051_v34, 4  ;;  %v18481_v2 = vld [vmem:[#allocation9_spill] sm:$0xff]  ;;  %v18482_v21 = vld [vmem:[#allocation10_spill] sm:$0xff] }
 0x632   : > { %v7006_v60 = vrot.slane %v7005_v38, 2  ;;  %v7053_v63 = vadd.f32 %v7052_v19, %v7051_v34  ;;  %v18483_v19 = vld [vmem:[#allocation11_spill] sm:$0xff] }
 0x634   : > { %v7007_v52 = vadd.f32 %v7006_v60, %v7005_v38  ;;  %v7054_v10 = vrot.slane %v7053_v63, 2 }
 0x636   : > { %v7008_v17 = vrot.slane %v7007_v52, 1  ;;  %v7055_v40 = vadd.f32 %v7054_v10, %v7053_v63  ;;  %v18484_v63 = vld [vmem:[#allocation12_spill] sm:$0xff]  ;;  %v18485_v10 = vld [vmem:[#allocation13_spill] sm:$0xff] }
 0x638   : > { %v7009_v59 = vadd.f32 %v7008_v17, %v7007_v52  ;;  %v7056_v41 = vrot.slane %v7055_v40, 1 }
 0x63a   : > { %v7010_v27 = vmul.f32 0.005952381, %v7009_v59  ;;  %v7057_v36 = vadd.f32 %v7056_v41, %v7055_v40  ;;  %v18486_v40 = vld [vmem:[#allocation14_spill] sm:$0xff]  ;;  %v18487_v41 = vld [vmem:[#allocation15_spill] sm:$0xff] }
 0x63c   : > { %v7058_v62 = vmul.f32 0.005952381, %v7057_v36  ;;  %v7059_v44 = vmul.f32 %v7010_v27, %v7010_v27  ;;  %v7067_v39 = vsub.f32 %v16186_v25, %v7010_v27  ;;  %v7068_v16 = vsub.f32 %v16193_v43, %v7010_v27  ;;  %v18488_v36 = vld [vmem:[#allocation16_spill] sm:$0xff] }
 0x63d   : > { %v7069_v58 = vsub.f32 %v16199_v1, %v7010_v27  ;;  %v7070_v8 = vsub.f32 %v16205_v61, %v7010_v27  ;;  %v7071_v48 = vsub.f32 %v16211_v54, %v7010_v27  ;;  %v7072_v55 = vsub.f32 %v16217_v4, %v7010_v27 }
 0x63e   : > { %v7060_v26 = vsub.f32 %v7058_v62, %v7059_v44  ;;  %v7073_v51 = vsub.f32 %v16223_v18, %v7010_v27  ;;  %v7074_v32 = vsub.f32 %v16229_v9, %v7010_v27  ;;  %v7075_v35 = vsub.f32 %v16235_v23, %v7010_v27  ;;  %v18489_v44 = vld [vmem:[#allocation17_spill] sm:$0xff] }
 0x63f   : > { %v7076_v29 = vsub.f32 %v16241_v28, %v7010_v27  ;;  %v7077_v25 = vsub.f32 %v16247_v14, %v7010_v27  ;;  %v7078_v43 = vsub.f32 %v16253_v57, %v7010_v27  ;;  %v7079_v1 = vsub.f32 %v16259_v6, %v7010_v27 }
 0x640   : > { %v7080_v61 = vsub.f32 %v16265_v31, %v7010_v27  ;;  %v7081_v54 = vsub.f32 %v16271_v22, %v7010_v27  ;;  %v7082_v56 = vadd.f32 1e-05, %v7060_v26  ;;  %v7061_v4 = vsub.f32 %v16154_v11, %v7010_v27 }
 0x641   : > { %v7062_v18 = vsub.f32 %v16151_v47, %v7010_v27  ;;  %v7063_v9 = vsub.f32 %v16157_v12, %v7010_v27  ;;  %v7064_v23 = vsub.f32 %v16162_v0, %v7010_v27  ;;  %v7065_v14 = vsub.f32 %v16171_v53, %v7010_v27 }
 0x642   : > { %11802 = vrsqrt.f32 %v7082_v56  ;;  %v7066_v57 = vsub.f32 %v16177_v50, %v7010_v27 }
 0x64f   : > { %v11803_v28 = vpop.eup %11802 }
 0x650   : > { %v7084_v6 = vmul.f32 %v11803_v28, %v7061_v4  ;;  %v7085_v20 = vmul.f32 %v11803_v28, %v7062_v18  ;;  %v7086_v15 = vmul.f32 %v11803_v28, %v7063_v9  ;;  %v7087_v33 = vmul.f32 %v11803_v28, %v7064_v23  ;;  %v18498_v4 = vld [vmem:[#allocation26_spill] sm:$0xff]  ;;  %v18499_v9 = vld [vmem:[#allocation27_spill] sm:$0xff] }
 0x651   : > { %v7088_v7 = vmul.f32 %v11803_v28, %v7065_v14  ;;  %v7089_v45 = vmul.f32 %v11803_v28, %v7066_v57  ;;  %v7090_v31 = vmul.f32 %v11803_v28, %v7067_v39  ;;  %v7091_v5 = vmul.f32 %v11803_v28, %v7068_v16  ;;  %v18490_v39 = vld [vmem:[#allocation18_spill] sm:$0xff] }
 0x652   : > { %v7092_v11 = vmul.f32 %v11803_v28, %v7069_v58  ;;  %v7093_v37 = vmul.f32 %v11803_v28, %v7070_v8  ;;  %v7094_v47 = vmul.f32 %v11803_v28, %v7071_v48  ;;  %v7095_v13 = vmul.f32 %v11803_v28, %v7072_v55  ;;  %v18491_v58 = vld [vmem:[#allocation19_spill] sm:$0xff]  ;;  %v18492_v48 = vld [vmem:[#allocation20_spill] sm:$0xff] }
 0x653   : > { %v7096_v12 = vmul.f32 %v11803_v28, %v7073_v51  ;;  %v7097_v30 = vmul.f32 %v11803_v28, %v7074_v32  ;;  %v7098_v0 = vmul.f32 %v11803_v28, %v7075_v35  ;;  %v7099_v46 = vmul.f32 %v11803_v28, %v7076_v29  ;;  %v18493_v51 = vld [vmem:[#allocation21_spill] sm:$0xff]  ;;  %v18494_v35 = vld [vmem:[#allocation22_spill] sm:$0xff] }
 0x654   : > { %v7100_v22 = vmul.f32 %v11803_v28, %v7077_v25  ;;  %v7101_v53 = vmul.f32 %v11803_v28, %v7078_v43  ;;  %v7102_v24 = vmul.f32 %v11803_v28, %v7079_v1  ;;  %v7103_v50 = vmul.f32 %v11803_v28, %v7080_v61  ;;  %v18495_v25 = vld [vmem:[#allocation23_spill] sm:$0xff]  ;;  %v18496_v1 = vld [vmem:[#allocation24_spill] sm:$0xff] }
 0x655   : > { %v7104_v49 = vmul.f32 %v11803_v28, %v7081_v54  ;;  %v16298_v42 = vadd.f32 %v18480_v3, %v7084_v6  ;;  %v16301_v34 = vadd.f32 %v18481_v2, %v7085_v20  ;;  %v16304_v38 = vadd.f32 %v18482_v21, %v7086_v15  ;;  %v18497_v54 = vld [vmem:[#allocation25_spill] sm:$0xff]  ;;  %v18500_v28 = vld [vmem:[#allocation28_spill] sm:$0xff] }
 0x656   : > { %v16307_v60 = vadd.f32 %v18483_v19, %v7087_v33  ;;  %v16310_v52 = vadd.f32 %v18484_v63, %v7088_v7  ;;  %v16313_v17 = vadd.f32 %v18485_v10, %v7089_v45  ;;  %v16316_v59 = vadd.f32 %v18486_v40, %v7090_v31 }
 0x657   : > { %v16319_v27 = vadd.f32 %v18487_v41, %v7091_v5  ;;  %v16322_v62 = vadd.f32 %v18488_v36, %v7092_v11  ;;  %v16325_v26 = vadd.f32 %v18489_v44, %v7093_v37  ;;  %v16328_v16 = vadd.f32 %v18490_v39, %v7094_v47 }
 0x658   : > { %v16331_v8 = vadd.f32 %v18491_v58, %v7095_v13  ;;  %v16334_v55 = vadd.f32 %v18492_v48, %v7096_v12  ;;  %v16337_v32 = vadd.f32 %v18493_v51, %v7097_v30  ;;  %v16340_v29 = vadd.f32 %v18494_v35, %v7098_v0 }
 0x659   : > { %v16343_v43 = vadd.f32 %v18495_v25, %v7099_v46  ;;  %v16346_v61 = vadd.f32 %v18496_v1, %v7100_v22  ;;  %v16349_v56 = vadd.f32 %v18497_v54, %v7101_v53  ;;  %v16352_v18 = vadd.f32 %v18498_v4, %v7102_v24 }
 0x65a   : > { %v16355_v23 = vadd.f32 %v18499_v9, %v7103_v50  ;;  %v7125_v14 = vadd.f32 %v18500_v28, %v7104_v49  ;;  %v7126_v57 = vmax.f32 %v16298_v42, 0.0  ;;  %v7127_v6 = vmax.f32 %v16301_v34, 0.0 }
 0x65b   : > { %v7128_v20 = vmax.f32 %v16304_v38, 0.0  ;;  %v7129_v15 = vmax.f32 %v16307_v60, 0.0  ;;  %v7130_v33 = vmax.f32 %v16310_v52, 0.0  ;;  %v7131_v7 = vmax.f32 %v16313_v17, 0.0 }
 0x65c   : > { %v7132_v45 = vmax.f32 %v16316_v59, 0.0  ;;  %v7133_v31 = vmax.f32 %v16319_v27, 0.0  ;;  %v7134_v5 = vmax.f32 %v16322_v62, 0.0  ;;  %v7135_v11 = vmax.f32 %v16325_v26, 0.0  ;;  %7147 = vst [vmem:[#allocation2] sm:$0xff] %v7126_v57  ;;  %7148 = vst [vmem:[#allocation2 + $0x38] sm:$0xff] %v7127_v6 }
 0x65d   : > { %v7136_v37 = vmax.f32 %v16328_v16, 0.0  ;;  %v7137_v47 = vmax.f32 %v16331_v8, 0.0  ;;  %v7138_v13 = vmax.f32 %v16334_v55, 0.0  ;;  %v7139_v12 = vmax.f32 %v16337_v32, 0.0  ;;  %7149 = vst [vmem:[#allocation2 + $0x50] sm:$0xff] %v7128_v20  ;;  %7150 = vst [vmem:[#allocation2 + $0x18] sm:$0xff] %v7129_v15 }
 0x65e   : > { %7151 = vst [vmem:[#allocation2 + $0x30] sm:$0xff] %v7130_v33  ;;  %7152 = vst [vmem:[#allocation2 + $0x68] sm:$0xff] %v7131_v7  ;;  %v7140_v30 = vmax.f32 %v16340_v29, 0.0  ;;  %v7141_v0 = vmax.f32 %v16343_v43, 0.0  ;;  %v7142_v46 = vmax.f32 %v16346_v61, 0.0  ;;  %v7143_v22 = vmax.f32 %v16349_v56, 0.0 }
 0x65f   : > { %7153 = vst [vmem:[#allocation2 + $0x78] sm:$0xff] %v7132_v45  ;;  %7154 = vst [vmem:[#allocation2 + $0x80] sm:$0xff] %v7133_v31  ;;  %v7144_v53 = vmax.f32 %v16352_v18, 0.0  ;;  %v7145_v24 = vmax.f32 %v16355_v23, 0.0  ;;  %v16398_v50 = vmax.f32 %v7125_v14, 0.0 }
 0x660   : > { %7155 = vst [vmem:[#allocation2 + $0x8] sm:$0xff] %v7134_v5  ;;  %7156 = vst [vmem:[#allocation2 + $0x88] sm:$0xff] %v7135_v11 }
 0x661   : > { %7157 = vst [vmem:[#allocation2 + $0x28] sm:$0xff] %v7136_v37  ;;  %7158 = vst [vmem:[#allocation2 + $0x40] sm:$0xff] %v7137_v47 }
 0x662   : > { %7159 = vst [vmem:[#allocation2 + $0x60] sm:$0xff] %v7138_v13  ;;  %7160 = vst [vmem:[#allocation2 + $0x90] sm:$0xff] %v7139_v12  ;;  %7171 = sbr.rel (%p10281_p5) target bundleno = 4115 (0x1013), region = 108 }
 0x663   : > { %7161 = vst [vmem:[#allocation2 + $0x98] sm:$0xff] %v7140_v30  ;;  %7162 = vst [vmem:[#allocation2 + $0x58] sm:$0xff] %v7141_v0 }
 0x664   : > { %7163 = vst [vmem:[#allocation2 + $0x20] sm:$0xff] %v7142_v46  ;;  %7164 = vst [vmem:[#allocation2 + $0x48] sm:$0xff] %v7143_v22 }
 0x665   : > { %7165 = vst [vmem:[#allocation2 + $0x70] sm:$0xff] %v7144_v53  ;;  %7166 = vst [vmem:[#allocation2 + $0x10] sm:$0xff] %v7145_v24 }
 0x666   : > { %7167 = vst [vmem:[#allocation2 + $0xa0] sm:$0xff] %v16398_v50 }
 0x667   : > { %v11844_v49 = vld [vmem:[%s18501_s30 + $0x38] sm:$0xff]   ;;  %v11932_v3 = vmov 0.0   ;;  %v11845_v2 = vld [vmem:[%s18501_s30 + $0x30] sm:$0xff]   ;;  %vm11933_vm9 = vmmov 0   ;;  %v11846_v21 = vld [vmem:[%s18501_s30 + $0x28] sm:$0xff]   ;;  %v16463_v36 = vpack.c.bf16 %v7127_v6, %v7126_v57  ;;  %v16473_v44 = vpack.c.bf16 %v7129_v15, %v7128_v20 }
 0x668   : > { %11354 = vmatprep.subr.bf16.mxu0 %v11932_v3  ;;  %11414 = vmatprep.subr.bf16.mxu1 %v11932_v3  ;;  %v11847_v19 = vld [vmem:[%s18501_s30 + $0x20] sm:$0xff]   ;;  %v11848_v63 = vld [vmem:[%s18501_s30 + $0x18] sm:$0xff]   ;;  %v11849_v10 = vld [vmem:[%s18501_s30 + $0x10] sm:$0xff]   ;;  %v16482_v42 = vpack.c.bf16 %v7131_v7, %v7130_v33  ;;  %v16491_v34 = vpack.c.bf16 %v7133_v31, %v7132_v45  ;;  %v16500_v38 = vpack.c.bf16 %v7135_v11, %v7134_v5  ;;  %vm7605_vm0 = vcmask 1040384  }
 0x669   : > { %11355 = vmatpush3.bf16.msra.mxu0 %v11844_v49  ;;  %11370 = vmatprep.mubr.msk.bf16.mxu0 %vm11933_vm9, %v11932_v3  ;;  %v11850_v40 = vld [vmem:[%s18501_s30 + $0x8] sm:$0xff]   ;;  %v11851_v41 = vld [vmem:[%s18501_s30] sm:$0xff]   ;;  %v16509_v60 = vpack.c.bf16 %v7137_v47, %v7136_v37  ;;  %v16518_v52 = vpack.c.bf16 %v7139_v12, %v7138_v13  ;;  %v16527_v17 = vpack.c.bf16 %v7141_v0, %v7140_v30  ;;  %vm7606_vm5 = vcmask 1041408  }
 0x66a   : > { %11356 = vmatprep.subr.bf16.mxu0 %v11932_v3  ;;  %11416 = vmatprep.mubr.msk.bf16.mxu1 %vm11933_vm9, %v11932_v3  ;;  %v16536_v59 = vpack.c.bf16 %v7143_v22, %v7142_v46  ;;  %v16545_v27 = vpack.c.bf16 %v7145_v24, %v7144_v53  ;;  %v16552_v62 = vpack.c.bf16 %v16398_v50, %v16398_v50  ;;  %v11934_v26 = vmov 65535   ;;  %v7571_v16 = vld [vmem:[%s17868_s9] sm:$0x3] }
 0x66b   : > { %v7607_v39 = vsel %vm7605_vm0, 4294967295, %v11934_v26  ;;  %v16564_v57 = vld [vmem:[%s17865_s6] ss:$0 sm:$0xff]  ;;  %vm7375_vm7 = vcmask 23552   ;;  %vm7776_vm8 = vcmask 326656   ;;  %vm7924_vm14 = vcmask 1046528  }
 0x66c   : > { %v7608_v58 = vsel %vm7606_vm5, %v7607_v39, 0  ;;  %vm7920_vm12 = vcmask 1031168   ;;  %vm7993_vm15 = vcmask 261120   ;;  %vm8038_vm11 = vcmask 3072  }
 0x66d   : > { %11357 = vmatpush3.bf16.msra.mxu0 %v11845_v2  ;;  %v7610_v8 = vand.u32 %v7608_v58, %v7571_v16  ;;  %vm9075_vm13 = vcmask 1045504   ;;  %vm9071_vm1 = vcmask 310272   ;;  %vm9219_vm6 = vcmask 52224  }
 0x66e   : > { %11358 = vmatprep.subr.bf16.mxu0 %v11932_v3 }
 0x66f   : > { %11415 = vmatpush3.bf16.msra.mxu1 %v7610_v8 }
 0x670   : > { %7779 = vmatprep.subr.mxu1 %v11932_v3 }
 0x671   : > { %11359 = vmatpush3.bf16.msra.mxu0 %v11846_v21 }
 0x672   : > { %11360 = vmatprep.subr.bf16.mxu0 %v11932_v3 }
 0x675   : > { %11361 = vmatpush3.bf16.msra.mxu0 %v11847_v19 }
 0x676   : > { %11362 = vmatprep.subr.bf16.mxu0 %v11932_v3 }
 0x679   : > { %11363 = vmatpush3.bf16.msra.mxu0 %v11848_v63 }
 0x67a   : > { %11364 = vmatprep.subr.bf16.mxu0 %v11932_v3 }
 0x67d   : > { %11365 = vmatpush3.bf16.msra.mxu0 %v11849_v10 }
 0x67e   : > { %11366 = vmatprep.subr.bf16.mxu0 %v11932_v3 }
 0x681   : > { %11367 = vmatpush3.bf16.msra.mxu0 %v11850_v40 }
 0x682   : > { %11368 = vmatprep.subr.bf16.mxu0 %v11932_v3 }
 0x685   : > { %11369 = vmatpush3.bf16.msra.mxu0 %v11851_v41 }
 0x686   : > { %11460 = vmatprep.subr.bf16.mxu0 %v11932_v3 }
 0x688   : > { %11371 = vmatmul.mubr.bf16.vlgmr.msra.gmra.mxu0 %v16463_v36 }
 0x689   : > { %11374 = vmatprep.mubr.msk.bf16.mxu0 %vm11933_vm9, %v11932_v3 }
 0x690   : > { %11375 = vmatmul.mubr.bf16.gmra.mxu0 %v16473_v44 }
 0x691   : > { %11378 = vmatprep.mubr.msk.bf16.mxu0 %vm11933_vm9, %v11932_v3 }
 0x698   : > { %11379 = vmatmul.mubr.bf16.gmra.mxu0 %v16482_v42 }
 0x699   : > { %11382 = vmatprep.mubr.msk.bf16.mxu0 %vm11933_vm9, %v11932_v3 }
 0x6a0   : > { %11383 = vmatmul.mubr.bf16.gmra.mxu0 %v16491_v34 }
 0x6a1   : > { %11386 = vmatprep.mubr.msk.bf16.mxu0 %vm11933_vm9, %v11932_v3 }
 0x6a8   : > { %11387 = vmatmul.mubr.bf16.gmra.mxu0 %v16500_v38 }
 0x6a9   : > { %11390 = vmatprep.mubr.msk.bf16.mxu0 %vm11933_vm9, %v11932_v3 }
 0x6b0   : > { %11391 = vmatmul.mubr.bf16.gmra.mxu0 %v16509_v60 }
 0x6b1   : > { %11394 = vmatprep.mubr.msk.bf16.mxu0 %vm11933_vm9, %v11932_v3 }
 0x6b8   : > { %11395 = vmatmul.mubr.bf16.gmra.mxu0 %v16518_v52 }
 0x6b9   : > { %11398 = vmatprep.mubr.msk.bf16.mxu0 %vm11933_vm9, %v11932_v3 }
 0x6c0   : > { %11399 = vmatmul.mubr.bf16.gmra.mxu0 %v16527_v17 }
 0x6c1   : > { %11402 = vmatprep.mubr.msk.bf16.mxu0 %vm11933_vm9, %v11932_v3 }
 0x6c8   : > { %11403 = vmatmul.mubr.bf16.gmra.mxu0 %v16536_v59 }
 0x6c9   : > { %11406 = vmatprep.mubr.msk.bf16.mxu0 %vm11933_vm9, %v11932_v3 }
 0x6d0   : > { %11407 = vmatmul.mubr.bf16.gmra.mxu0 %v16545_v27 }
 0x6d1   : > { %11410 = vmatprep.mubr.msk.bf16.mxu0 %vm11933_vm9, %v11932_v3 }
 0x6d8   : > { %11411 = vmatmul.mubr.bf16.gmra.mxu0 %v16552_v62 }
 0x6d9   : > { %11476 = vmatprep.mubr.msk.bf16.mxu0 %vm11933_vm9, %v11932_v3 }
 0x748   : > { %v7289_v48 = vpop.f32.mrf.mxu0 }
 0x749   : > { %v16570_v15 = vadd.f32 %v16564_v57, %v7289_v48 }
 0x74a   : > { %v11372_v55 = vpop.f32.mrf.mxu0 }
 0x74b   : > { %v7424_v11 = vmul.f32 %v16570_v15, %v16570_v15  ;;  %v7376_v30 = vsel %vm7375_vm7, %v16570_v15, 0.0 }
 0x74c   : > { %v7292_v51 = vpop.f32.mrf.mxu0 }
 0x74d   : > { %v16567_v20 = vadd.f32 %v16564_v57, %v7292_v51  ;;  %v7445_v50 = vsel %vm7375_vm7, %v7424_v11, 0.0 }
 0x74e   : > { %v11373_v32 = vpop.f32.mrf.mxu0 }
 0x74f   : > { %v7425_v31 = vmul.f32 %v16567_v20, %v16567_v20  ;;  %v7377_v47 = vsel %vm7375_vm7, %v16567_v20, 0.0 }
 0x750   : > { %v7297_v35 = vpop.f32.mrf.mxu0  ;;  %v7378_v49 = vadd.f32 %v7377_v47, %v7376_v30 }
 0x751   : > { %v16573_v7 = vadd.f32 %v16564_v57, %v7297_v35  ;;  %v7446_v46 = vsel %vm7375_vm7, %v7425_v31, 0.0 }
 0x752   : > { %v11376_v29 = vpop.f32.mrf.mxu0  ;;  %v7447_v40 = vadd.f32 %v7446_v46, %v7445_v50 }
 0x753   : > { %v7426_v13 = vmul.f32 %v16573_v7, %v16573_v7  ;;  %v7379_v22 = vsel %vm7375_vm7, %v16573_v7, 0.0 }
 0x754   : > { %v7300_v25 = vpop.f32.mrf.mxu0  ;;  %v7380_v41 = vadd.f32 %v7379_v22, %v7378_v49 }
 0x755   : > { %v16578_v5 = vadd.f32 %v16564_v57, %v7300_v25  ;;  %v7448_v21 = vsel %vm7375_vm7, %v7426_v13, 0.0 }
 0x756   : > { %v11377_v43 = vpop.f32.mrf.mxu0  ;;  %v7449_v48 = vadd.f32 %v7448_v21, %v7447_v40 }
 0x757   : > { %v7427_v53 = vmul.f32 %v16578_v5, %v16578_v5  ;;  %v7381_v19 = vsel %vm7375_vm7, %v16578_v5, 0.0 }
 0x758   : > { %v7305_v1 = vpop.f32.mrf.mxu0  ;;  %v7382_v55 = vadd.f32 %v7381_v19, %v7380_v41 }
 0x759   : > { %v16587_v12 = vadd.f32 %v16564_v57, %v7305_v1  ;;  %v7450_v39 = vsel %vm7375_vm7, %v7427_v53, 0.0 }
 0x75a   : > { %v11380_v61 = vpop.f32.mrf.mxu0  ;;  %v7451_v43 = vadd.f32 %v7450_v39, %v7449_v48 }
 0x75b   : > { %v7428_v63 = vmul.f32 %v16587_v12, %v16587_v12  ;;  %v7383_v16 = vsel %vm7375_vm7, %v16587_v12, 0.0 }
 0x75c   : > { %v7308_v54 = vpop.f32.mrf.mxu0  ;;  %v7384_v1 = vadd.f32 %v7383_v16, %v7382_v55 }
 0x75d   : > { %v16597_v24 = vadd.f32 %v16564_v57, %v7308_v54  ;;  %v7452_v32 = vsel %vm7375_vm7, %v7428_v63, 0.0 }
 0x75e   : > { %v11381_v56 = vpop.f32.mrf.mxu0 }
 0x75f   : > { %v7429_v58 = vmul.f32 %v16597_v24, %v16597_v24  ;;  %v7385_v35 = vsel %vm7375_vm7, %v16597_v24, 0.0 }
 0x760   : > { %v7313_v4 = vpop.f32.mrf.mxu0 }
 0x761   : > { %v16606_v10 = vadd.f32 %v16564_v57, %v7313_v4  ;;  %v7454_v54 = vsel %vm7375_vm7, %v7429_v58, 0.0 }
 0x762   : > { %v11384_v18 = vpop.f32.mrf.mxu0 }
 0x763   : > { %v7430_v29 = vmul.f32 %v16606_v10, %v16606_v10  ;;  %v7387_v56 = vsel %vm7375_vm7, %v16606_v10, 0.0 }
 0x764   : > { %v7316_v9 = vpop.f32.mrf.mxu0 }
 0x765   : > { %v16614_v8 = vadd.f32 %v16564_v57, %v7316_v9  ;;  %v7453_v9 = vadd.f32 %v7452_v32, %v7451_v43 }
 0x766   : > { %v11385_v23 = vpop.f32.mrf.mxu0 }
 0x767   : > { %v7431_v4 = vmul.f32 %v16614_v8, %v16614_v8  ;;  %v7386_v23 = vadd.f32 %v7385_v35, %v7384_v1 }
 0x768   : > { %v7321_v28 = vpop.f32.mrf.mxu0 }
 0x769   : > { %v16622_v25 = vadd.f32 %v16564_v57, %v7321_v28  ;;  %v7456_v28 = vsel %vm7375_vm7, %v7430_v29, 0.0  ;;  %v7388_v47 = vadd.f32 %v7387_v56, %v7386_v23 }
 0x76a   : > { %v11388_v14 = vpop.f32.mrf.mxu0 }
 0x76b   : > { %v7432_v31 = vmul.f32 %v16622_v25, %v16622_v25  ;;  %v7391_v30 = vsel %vm7375_vm7, %v16622_v25, 0.0 }
 0x76c   : > { %v7324_v6 = vpop.f32.mrf.mxu0 }
 0x76d   : > { %v16630_v18 = vadd.f32 %v16564_v57, %v7324_v6  ;;  %v7458_v6 = vsel %vm7375_vm7, %v7431_v4, 0.0 }
 0x76e   : > { %v11389_v33 = vpop.f32.mrf.mxu0 }
 0x76f   : > { %v7389_v33 = vsel %vm7375_vm7, %v16614_v8, 0.0  ;;  %v7433_v46 = vmul.f32 %v16630_v18, %v16630_v18 }
 0x770   : > { %v7329_v45 = vpop.f32.mrf.mxu0  ;;  %v7390_v50 = vadd.f32 %v7389_v33, %v7388_v47 }
 0x771   : > { %v16638_v11 = vadd.f32 %v16564_v57, %v7329_v45  ;;  %v7460_v45 = vsel %vm7375_vm7, %v7432_v31, 0.0 }
 0x772   : > { %v11392_v37 = vpop.f32.mrf.mxu0  ;;  %v7392_v40 = vadd.f32 %v7391_v30, %v7390_v50 }
 0x773   : > { %v7455_v37 = vadd.f32 %v7454_v54, %v7453_v9  ;;  %v7434_v21 = vmul.f32 %v16638_v11, %v16638_v11  ;;  %v7395_v39 = vsel %vm7375_vm7, %v16638_v11, 0.0 }
 0x774   : > { %v7332_v0 = vpop.f32.mrf.mxu0 }
 0x775   : > { %v16646_v22 = vadd.f32 %v16564_v57, %v7332_v0  ;;  %v7457_v53 = vadd.f32 %v7456_v28, %v7455_v37  ;;  %v7462_v0 = vsel %vm7375_vm7, %v7433_v46, 0.0 }
 0x776   : > { %v11393_v2 = vpop.f32.mrf.mxu0 }
 0x777   : > { %v7393_v2 = vsel %vm7375_vm7, %v16630_v18, 0.0  ;;  %v7459_v63 = vadd.f32 %v7458_v6, %v7457_v53  ;;  %v7435_v16 = vmul.f32 %v16646_v22, %v16646_v22  ;;  %v7397_v32 = vsel %vm7375_vm7, %v16646_v22, 0.0 }
 0x778   : > { %v7337_v26 = vpop.f32.mrf.mxu0  ;;  %v7394_v55 = vadd.f32 %v7393_v2, %v7392_v40 }
 0x779   : > { %v16654_v19 = vadd.f32 %v16564_v57, %v7337_v26  ;;  %v7461_v48 = vadd.f32 %v7460_v45, %v7459_v63  ;;  %v7464_v26 = vsel %vm7375_vm7, %v7434_v21, 0.0 }
 0x77a   : > { %v11396_v51 = vpop.f32.mrf.mxu0  ;;  %v7396_v1 = vadd.f32 %v7395_v39, %v7394_v55 }
 0x77b   : > { %v7436_v35 = vmul.f32 %v16654_v19, %v16654_v19  ;;  %v7463_v43 = vadd.f32 %v7462_v0, %v7461_v48  ;;  %v7399_v56 = vsel %vm7375_vm7, %v16654_v19, 0.0 }
 0x77c   : > { %v7340_v61 = vpop.f32.mrf.mxu0 }
 0x77d   : > { %v16662_v58 = vadd.f32 %v16564_v57, %v7340_v61  ;;  %v7466_v61 = vsel %vm7375_vm7, %v7435_v16, 0.0  ;;  %v7465_v23 = vadd.f32 %v7464_v26, %v7463_v43  ;;  %v7468_v33 = vsel %vm7375_vm7, %v7436_v35, 0.0 }
 0x77e   : > { %v11397_v14 = vpop.f32.mrf.mxu0 }
 0x77f   : > { %v7437_v4 = vmul.f32 %v16662_v58, %v16662_v58  ;;  %v7398_v14 = vadd.f32 %v7397_v32, %v7396_v1  ;;  %v7401_v31 = vsel %vm7375_vm7, %v16662_v58, 0.0 }
 0x780   : > { %v7345_v13 = vpop.f32.mrf.mxu0 }
 0x781   : > { %v16670_v29 = vadd.f32 %v16564_v57, %v7345_v13  ;;  %v7467_v13 = vadd.f32 %v7466_v61, %v7465_v23  ;;  %v7400_v6 = vadd.f32 %v7399_v56, %v7398_v14  ;;  %v7470_v46 = vsel %vm7375_vm7, %v7437_v4, 0.0 }
 0x782   : > { %v11400_v49 = vpop.f32.mrf.mxu0 }
 0x783   : > { %v7438_v37 = vmul.f32 %v16670_v29, %v16670_v29  ;;  %v7403_v53 = vsel %vm7375_vm7, %v16670_v29, 0.0  ;;  %v7469_v45 = vadd.f32 %v7468_v33, %v7467_v13  ;;  %v7402_v2 = vadd.f32 %v7401_v31, %v7400_v6 }
 0x784   : > { %v7348_v41 = vpop.f32.mrf.mxu0 }
 0x785   : > { %v16678_v9 = vadd.f32 %v16564_v57, %v7348_v41  ;;  %v7472_v63 = vsel %vm7375_vm7, %v7438_v37, 0.0  ;;  %v7471_v0 = vadd.f32 %v7470_v46, %v7469_v45  ;;  %v7404_v39 = vadd.f32 %v7403_v53, %v7402_v2 }
 0x786   : > { %v11401_v51 = vpop.f32.mrf.mxu0 }
 0x787   : > { %v7439_v50 = vmul.f32 %v16678_v9, %v16678_v9  ;;  %v7405_v40 = vsel %vm7375_vm7, %v16678_v9, 0.0  ;;  %v7473_v32 = vadd.f32 %v7472_v63, %v7471_v0 }
 0x788   : > { %v7353_v54 = vpop.f32.mrf.mxu0  ;;  %v7406_v35 = vadd.f32 %v7405_v40, %v7404_v39 }
 0x789   : > { %v16686_v47 = vadd.f32 %v16564_v57, %v7353_v54  ;;  %v7474_v48 = vsel %vm7375_vm7, %v7439_v50, 0.0 }
 0x78a   : > { %v11404_v28 = vpop.f32.mrf.mxu0  ;;  %v7475_v56 = vadd.f32 %v7474_v48, %v7473_v32 }
 0x78b   : > { %v7440_v41 = vmul.f32 %v16686_v47, %v16686_v47  ;;  %v7407_v55 = vsel %vm7375_vm7, %v16686_v47, 0.0 }
 0x78c   : > { %v7356_v30 = vpop.f32.mrf.mxu0  ;;  %v7408_v4 = vadd.f32 %v7407_v55, %v7406_v35 }
 0x78d   : > { %v16694_v49 = vadd.f32 %v16564_v57, %v7356_v30  ;;  %v7476_v1 = vsel %vm7375_vm7, %v7440_v41, 0.0 }
 0x78e   : > { %v11405_v21 = vpop.f32.mrf.mxu0  ;;  %v7477_v31 = vadd.f32 %v7476_v1, %v7475_v56 }
 0x78f   : > { %v7441_v51 = vmul.f32 %v16694_v49, %v16694_v49  ;;  %v7409_v54 = vsel %vm7375_vm7, %v16694_v49, 0.0 }
 0x790   : > { %v7361_v16 = vpop.f32.mrf.mxu0  ;;  %v7410_v37 = vadd.f32 %v7409_v54, %v7408_v4 }
 0x791   : > { %v16707_v26 = vadd.f32 %v16564_v57, %v7361_v16  ;;  %v7478_v14 = vsel %vm7375_vm7, %v7441_v51, 0.0 }
 0x792   : > { %v11408_v43 = vpop.f32.mrf.mxu0  ;;  %v7479_v53 = vadd.f32 %v7478_v14, %v7477_v31 }
 0x793   : > { %v7442_v61 = vmul.f32 %v16707_v26, %v16707_v26  ;;  %v7411_v28 = vsel %vm7375_vm7, %v16707_v26, 0.0 }
 0x794   : > { %v7364_v23 = vpop.f32.mrf.mxu0  ;;  %v7412_v50 = vadd.f32 %v7411_v28, %v7410_v37 }
 0x795   : > { %v16718_v33 = vadd.f32 %v16564_v57, %v7364_v23  ;;  %v7480_v6 = vsel %vm7375_vm7, %v7442_v61, 0.0 }
 0x796   : > { %v11409_v13 = vpop.f32.mrf.mxu0  ;;  %v7481_v63 = vadd.f32 %v7480_v6, %v7479_v53 }
 0x797   : > { %v7413_v30 = vsel %vm7375_vm7, %v16718_v33, 0.0  ;;  %v7443_v46 = vmul.f32 %v16718_v33, %v16718_v33 }
 0x798   : > { %v7369_v45 = vpop.f32.mrf.mxu0  ;;  %v7414_v40 = vadd.f32 %v7413_v30, %v7412_v50 }
 0x799   : > { %v7482_v2 = vsel %vm7375_vm7, %v7443_v46, 0.0  ;;  %v7370_v21 = vadd.f32 %v16564_v57, %v7369_v45 }
 0x79a   : > { %v11412_v41 = vpop.f32.mrf.mxu0  ;;  %v7483_v16 = vadd.f32 %v7482_v2, %v7481_v63 }
 0x79b   : > { %v7415_v0 = vsel %vm7375_vm7, %v7370_v21, 0.0  ;;  %v7444_v39 = vmul.f32 %v7370_v21, %v7370_v21 }
 0x79c   : > { %v7416_v48 = vadd.f32 %v7415_v0, %v7414_v40  ;;  %v7372_v55 = vpop.f32.mrf.mxu0 }
 0x79d   : > { %v7484_v51 = vsel %vm7375_vm7, %v7444_v39, 0.0 }
 0x79e   : > { %v7417_v32 = vrot.slane %v7416_v48, 4  ;;  %v7485_v35 = vadd.f32 %v7484_v51, %v7483_v16  ;;  %v11413_v43 = vpop.f32.mrf.mxu0 }
 0x7a0   : > { %v7418_v1 = vadd.f32 %v7417_v32, %v7416_v48  ;;  %v7486_v54 = vrot.slane %v7485_v35, 4 }
 0x7a2   : > { %v7419_v61 = vrot.slane %v7418_v1, 2  ;;  %v7487_v56 = vadd.f32 %v7486_v54, %v7485_v35 }
 0x7a4   : > { %v7420_v4 = vadd.f32 %v7419_v61, %v7418_v1  ;;  %v7488_v57 = vrot.slane %v7487_v56, 2 }
 0x7a6   : > { %v7421_v23 = vrot.slane %v7420_v4, 1  ;;  %v7489_v14 = vadd.f32 %v7488_v57, %v7487_v56 }
 0x7a8   : > { %v7422_v28 = vadd.f32 %v7421_v23, %v7420_v4  ;;  %v7490_v31 = vrot.slane %v7489_v14, 1 }
 0x7aa   : > { %v16729_v37 = vmul.f32 0.005952381, %v7422_v28  ;;  %v7491_v13 = vadd.f32 %v7490_v31, %v7489_v14 }
 0x7ac   : > { %v7492_v6 = vmul.f32 0.005952381, %v7491_v13  ;;  %v7493_v30 = vmul.f32 %v16729_v37, %v16729_v37  ;;  %v7515_v46 = vsub.f32 %v7370_v21, %v16729_v37  ;;  %v7507_v45 = vsub.f32 %v16654_v19, %v16729_v37 }
 0x7ad   : > { %v7508_v2 = vsub.f32 %v16662_v58, %v16729_v37  ;;  %v7509_v63 = vsub.f32 %v16670_v29, %v16729_v37  ;;  %v7510_v40 = vsub.f32 %v16678_v9, %v16729_v37  ;;  %v7511_v41 = vsub.f32 %v16686_v47, %v16729_v37 }
 0x7ae   : > { %v7494_v53 = vsub.f32 %v7492_v6, %v7493_v30  ;;  %v7512_v21 = vsub.f32 %v16694_v49, %v16729_v37  ;;  %v7513_v0 = vsub.f32 %v16707_v26, %v16729_v37  ;;  %v7514_v19 = vsub.f32 %v16718_v33, %v16729_v37 }
 0x7af   : > { %v7495_v58 = vsub.f32 %v16570_v15, %v16729_v37  ;;  %v7496_v29 = vsub.f32 %v16567_v20, %v16729_v37  ;;  %v7497_v26 = vsub.f32 %v16573_v7, %v16729_v37  ;;  %v7498_v15 = vsub.f32 %v16578_v5, %v16729_v37 }
 0x7b0   : > { %v7516_v50 = vadd.f32 1e-05, %v7494_v53  ;;  %v7505_v20 = vsub.f32 %v16638_v11, %v16729_v37  ;;  %v7499_v32 = vsub.f32 %v16587_v12, %v16729_v37  ;;  %v7506_v35 = vsub.f32 %v16646_v22, %v16729_v37 }
 0x7b1   : > { %v7500_v5 = vsub.f32 %v16597_v24, %v16729_v37 }
 0x7b2   : > { %11879 = vrsqrt.f32 %v7516_v50 }
 0x7bf   : > { %v16754_v9 = vpop.eup %11879 }
 0x7c0   : > { %v16757_v47 = vmul.f32 %v16754_v9, %v7515_v46  ;;  %v7518_v49 = vmul.f32 %v16754_v9, %v7495_v58  ;;  %v7519_v39 = vmul.f32 %v16754_v9, %v7496_v29  ;;  %v7520_v48 = vmul.f32 %v16754_v9, %v7497_v26 }
 0x7c1   : > { %v7521_v51 = vmul.f32 %v16754_v9, %v7498_v15  ;;  %v7528_v7 = vmul.f32 %v16754_v9, %v7505_v20  ;;  %v7522_v43 = vmul.f32 %v16754_v9, %v7499_v32  ;;  %v7529_v11 = vmul.f32 %v16754_v9, %v7506_v35 }
 0x7c2   : > { %v7539_v16 = vmax.f32 %v7518_v49, 0.0  ;;  %v7540_v33 = vmax.f32 %v7519_v39, 0.0  ;;  %v7530_v1 = vmul.f32 %v16754_v9, %v7507_v45  ;;  %v7541_v12 = vmax.f32 %v7520_v48, 0.0 }
 0x7c3   : > { %v7549_v54 = vmax.f32 %v7528_v7, 0.0  ;;  %v7531_v22 = vmul.f32 %v16754_v9, %v7508_v2  ;;  %v7532_v61 = vmul.f32 %v16754_v9, %v7509_v63  ;;  %v7542_v56 = vmax.f32 %v7521_v51, 0.0 }
 0x7c4   : > { %v7560_v55 = vpack.c.bf16 %v7540_v33, %v7539_v16  ;;  %v7550_v4 = vmax.f32 %v7529_v11, 0.0  ;;  %v7551_v57 = vmax.f32 %v7530_v1, 0.0  ;;  %v7533_v24 = vmul.f32 %v16754_v9, %v7510_v40  ;;  %v11855_v11 = vld [vmem:[%s17871_s12 + $0x28] sm:$0xff]   ;;  %v11856_v1 = vld [vmem:[%s17871_s12 + $0x20] sm:$0xff]  }
 0x7c5   : > { %v7552_v23 = vmax.f32 %v7531_v22, 0.0  ;;  %v7553_v14 = vmax.f32 %v7532_v61, 0.0  ;;  %v7534_v28 = vmul.f32 %v16754_v9, %v7511_v41  ;;  %v7535_v31 = vmul.f32 %v16754_v9, %v7512_v21  ;;  %v11859_v22 = vld [vmem:[%s17871_s12 + $0x8] sm:$0xff]  }
 0x7c6   : > { %11417 = vmatmul.mubr.msk.bf16.vlgmr.msra.gmra.mxu1 %vm7375_vm7, %v7560_v55  ;;  %v7565_v13 = vpack.c.bf16 %v7550_v4, %v7549_v54  ;;  %v7554_v6 = vmax.f32 %v7533_v24, 0.0  ;;  %v7536_v30 = vmul.f32 %v16754_v9, %v7513_v0  ;;  %v7537_v46 = vmul.f32 %v16754_v9, %v7514_v19  ;;  %v11858_v54 = vld [vmem:[%s17871_s12 + $0x10] sm:$0xff]  }
 0x7c7   : > { %11420 = vmatprep.mubr.msk.bf16.mxu1 %vm11933_vm9, %v11932_v3  ;;  %v7523_v53 = vmul.f32 %v16754_v9, %v7500_v5  ;;  %v7566_v50 = vpack.c.bf16 %v7552_v23, %v7551_v57  ;;  %v7555_v45 = vmax.f32 %v7534_v28, 0.0  ;;  %v7556_v2 = vmax.f32 %v7535_v31, 0.0  ;;  %v11853_v5 = vld [vmem:[%s17871_s12 + $0x38] sm:$0x7f]  }
 0x7c8   : > { %v7561_v63 = vpack.c.bf16 %v7542_v56, %v7541_v12  ;;  %v7567_v58 = vpack.c.bf16 %v7554_v6, %v7553_v14  ;;  %v7557_v40 = vmax.f32 %v7536_v30, 0.0  ;;  %v7558_v29 = vmax.f32 %v7537_v46, 0.0  ;;  %v11857_v12 = vld [vmem:[%s17871_s12 + $0x18] sm:$0xff]  }
 0x7c9   : > { %v7568_v49 = vpack.c.bf16 %v7556_v2, %v7555_v45  ;;  %v7543_v21 = vmax.f32 %v7522_v43, 0.0  ;;  %v7544_v0 = vmax.f32 %v7523_v53, 0.0  ;;  %v7501_v19 = vsub.f32 %v16606_v10, %v16729_v37  ;;  %v11854_v43 = vld [vmem:[%s17871_s12 + $0x30] sm:$0xff]  }
 0x7ca   : > { %v7569_v41 = vpack.c.bf16 %v7558_v29, %v7557_v40  ;;  %v7502_v39 = vsub.f32 %v16614_v8, %v16729_v37  ;;  %v7503_v20 = vsub.f32 %v16622_v25, %v16729_v37  ;;  %v7504_v10 = vsub.f32 %v16630_v18, %v16729_v37  ;;  %v16834_v37 = vld [vmem:[%s17870_s11] sm:$0xff] }
 0x7cb   : > { %v7562_v26 = vpack.c.bf16 %v7544_v0, %v7543_v21  ;;  %v7524_v16 = vmul.f32 %v16754_v9, %v7501_v19  ;;  %v7559_v25 = vmax.f32 %v16757_v47, 0.0  ;;  %v7926_v47 = vsel %vm7924_vm14, %v11853_v5, 0 }
 0x7cc   : > { %v7525_v33 = vmul.f32 %v16754_v9, %v7502_v39  ;;  %v7526_v8 = vmul.f32 %v16754_v9, %v7503_v20  ;;  %v7527_v51 = vmul.f32 %v16754_v9, %v7504_v10  ;;  %v16838_v9 = vcombine.high %v16834_v37, %v16834_v37  ;;  %11461 = vmatpush3.bf16.msra.mxu0 %v7926_v47  ;;  %v7742_v47 = vld [vmem:[%s17869_s10 + $0x50] sm:$0xff] }
 0x7cd   : > { %v7545_v15 = vmax.f32 %v7524_v16, 0.0  ;;  %v7570_v18 = vpack.c.bf16 %v7559_v25, %v7559_v25  ;;  %11462 = vmatprep.subr.bf16.mxu0 %v11932_v3  ;;  %v7743_v25 = vld [vmem:[%s17869_s10 + $0x58] sm:$0xff] }
 0x7ce   : > { %11421 = vmatmul.mubr.msk.bf16.gmra.mxu1 %vm7375_vm7, %v7561_v63  ;;  %v7546_v48 = vmax.f32 %v7525_v33, 0.0  ;;  %v7547_v32 = vmax.f32 %v7526_v8, 0.0  ;;  %v7548_v35 = vmax.f32 %v7527_v51, 0.0 }
 0x7cf   : > { %11424 = vmatprep.mubr.msk.bf16.mxu1 %vm11933_vm9, %v11932_v3 }
 0x7d0   : > { %v7563_v55 = vpack.c.bf16 %v7546_v48, %v7545_v15  ;;  %v7564_v7 = vpack.c.bf16 %v7548_v35, %v7547_v32  ;;  %11463 = vmatpush3.bf16.msra.mxu0 %v11854_v43  ;;  %v7747_v15 = vld [vmem:[%s17869_s10 + $0x78] sm:$0xff]  ;;  %v7746_v48 = vld [vmem:[%s17869_s10 + $0x70] sm:$0xff]  ;;  %v7744_v32 = vld [vmem:[%s17869_s10 + $0x60] sm:$0xff] }
 0x7d1   : > { %11464 = vmatprep.subr.bf16.mxu0 %v11932_v3 }
 0x7d4   : > { %11465 = vmatpush3.bf16.msra.mxu0 %v11855_v11 }
 0x7d5   : > { %11466 = vmatprep.subr.bf16.mxu0 %v11932_v3 }
 0x7d6   : > { %11425 = vmatmul.mubr.msk.bf16.gmra.mxu1 %vm7375_vm7, %v7562_v26 }
 0x7d7   : > { %11428 = vmatprep.mubr.msk.bf16.mxu1 %vm11933_vm9, %v11932_v3 }
 0x7d8   : > { %11467 = vmatpush3.bf16.msra.mxu0 %v11856_v1  ;;  %v7741_v1 = vld [vmem:[%s17869_s10 + $0x48] sm:$0xff] }
 0x7d9   : > { %11468 = vmatprep.subr.bf16.mxu0 %v11932_v3 }
 0x7dc   : > { %11469 = vmatpush3.bf16.msra.mxu0 %v11857_v12 }
 0x7dd   : > { %11470 = vmatprep.subr.bf16.mxu0 %v11932_v3 }
 0x7de   : > { %11429 = vmatmul.mubr.msk.bf16.gmra.mxu1 %vm7375_vm7, %v7563_v55  ;;  %v7745_v55 = vld [vmem:[%s17869_s10 + $0x68] sm:$0xff] }
 0x7df   : > { %11432 = vmatprep.mubr.msk.bf16.mxu1 %vm11933_vm9, %v11932_v3 }
 0x7e0   : > { %11471 = vmatpush3.bf16.msra.mxu0 %v11858_v54 }
 0x7e1   : > { %11472 = vmatprep.subr.bf16.mxu0 %v11932_v3 }
 0x7e4   : > { %11473 = vmatpush3.bf16.msra.mxu0 %v11859_v22  ;;  %v7740_v22 = vld [vmem:[%s17869_s10 + $0x40] sm:$0xff] }
 0x7e5   : > { %11474 = vmatprep.subr.bf16.mxu0 %v11932_v3 }
 0x7e6   : > { %11433 = vmatmul.mubr.msk.bf16.gmra.mxu1 %vm7375_vm7, %v7564_v7 }
 0x7e7   : > { %11436 = vmatprep.mubr.msk.bf16.mxu1 %vm11933_vm9, %v11932_v3 }
 0x7ee   : > { %11437 = vmatmul.mubr.msk.bf16.gmra.mxu1 %vm7375_vm7, %v7565_v13 }
 0x7ef   : > { %11440 = vmatprep.mubr.msk.bf16.mxu1 %vm11933_vm9, %v11932_v3 }
 0x7f6   : > { %11441 = vmatmul.mubr.msk.bf16.gmra.mxu1 %vm7375_vm7, %v7566_v50 }
 0x7f7   : > { %11444 = vmatprep.mubr.msk.bf16.mxu1 %vm11933_vm9, %v11932_v3 }
 0x7fe   : > { %11445 = vmatmul.mubr.msk.bf16.gmra.mxu1 %vm7375_vm7, %v7567_v58 }
 0x7ff   : > { %11448 = vmatprep.mubr.msk.bf16.mxu1 %vm11933_vm9, %v11932_v3 }
 0x806   : > { %11449 = vmatmul.mubr.msk.bf16.gmra.mxu1 %vm7375_vm7, %v7568_v49 }
 0x807   : > { %11452 = vmatprep.mubr.msk.bf16.mxu1 %vm11933_vm9, %v11932_v3 }
 0x80e   : > { %11453 = vmatmul.mubr.msk.bf16.gmra.mxu1 %vm7375_vm7, %v7569_v41 }
 0x80f   : > { %11456 = vmatprep.mubr.msk.bf16.mxu1 %vm11933_vm9, %v11932_v3 }
 0x816   : > { %11457 = vmatmul.mubr.msk.bf16.gmra.mxu1 %vm7375_vm7, %v7570_v18 }
 0x817   : > { %10302 = vmatprep.mubr.msk.f32.mxu1 %vm7776_vm8, %v16838_v9 }
 0x886   : > { %v16868_v61 = vpop.f32.mrf.mxu1 }
 0x888   : > { %v11418_v56 = vpop.f32.mrf.mxu1 }
 0x88a   : > { %v16871_v4 = vpop.f32.mrf.mxu1 }
 0x88c   : > { %v11419_v57 = vpop.f32.mrf.mxu1 }
 0x88e   : > { %v16874_v24 = vpop.f32.mrf.mxu1 }
 0x890   : > { %v11422_v23 = vpop.f32.mrf.mxu1 }
 0x891   : > { %v7739_v23 = vld [vmem:[%s17869_s10 + $0x38] sm:$0xff] }
 0x892   : > { %v16876_v14 = vpop.f32.mrf.mxu1 }
 0x894   : > { %v11423_v28 = vpop.f32.mrf.mxu1 }
 0x896   : > { %v16878_v31 = vpop.f32.mrf.mxu1 }
 0x898   : > { %v11426_v13 = vpop.f32.mrf.mxu1 }
 0x89a   : > { %v16880_v6 = vpop.f32.mrf.mxu1 }
 0x89c   : > { %v11427_v30 = vpop.f32.mrf.mxu1 }
 0x89d   : > { %v7738_v30 = vld [vmem:[%s17869_s10 + $0x30] sm:$0xff] }
 0x89e   : > { %v16882_v46 = vpop.f32.mrf.mxu1 }
 0x8a0   : > { %v11430_v53 = vpop.f32.mrf.mxu1 }
 0x8a2   : > { %v7673_v50 = vpop.f32.mrf.mxu1 }
 0x8a4   : > { %v11431_v45 = vpop.f32.mrf.mxu1 }
 0x8a5   : > { %v7760_v45 = vmul.f32 %v7739_v23, %v7673_v50  ;;  %v11866_v23 = vld [vmem:[%s17866_s7 + $0x20] sm:$0xff]  }
 0x8a6   : > { %v7678_v2 = vpop.f32.mrf.mxu1 }
 0x8a7   : > { %v7761_v13 = vmul.f32 %v7740_v22, %v7678_v2  ;;  %v7736_v2 = vld [vmem:[%s17869_s10 + $0x20] sm:$0xff] }
 0x8a8   : > { %v11434_v63 = vpop.f32.mrf.mxu1 }
 0x8a9   : > { %v7737_v63 = vld [vmem:[%s17869_s10 + $0x28] sm:$0xff] }
 0x8aa   : > { %v7681_v58 = vpop.f32.mrf.mxu1  ;;  %v7758_v50 = vmul.f32 %v7737_v63, %v16880_v6 }
 0x8ab   : > { %v7762_v57 = vmul.f32 %v7741_v1, %v7681_v58  ;;  %v11863_v1 = vld [vmem:[%s17866_s7 + $0x38] sm:$0xff]  }
 0x8ac   : > { %v11435_v40 = vpop.f32.mrf.mxu1 }
 0x8ad   : > { %v7759_v40 = vmul.f32 %v7738_v30, %v16882_v46  ;;  %v7757_v46 = vmul.f32 %v7736_v2, %v16878_v31  ;;  %v11869_v30 = vld [vmem:[%s17866_s7 + $0x8] sm:$0xff]  }
 0x8ae   : > { %v7686_v29 = vpop.f32.mrf.mxu1 }
 0x8af   : > { %v7763_v54 = vmul.f32 %v7742_v47, %v7686_v29 }
 0x8b0   : > { %v11438_v49 = vpop.f32.mrf.mxu1 }
 0x8b1   : > { %v7735_v49 = vld [vmem:[%s17869_s10 + $0x18] sm:$0xff] }
 0x8b2   : > { %v7689_v41 = vpop.f32.mrf.mxu1  ;;  %v7756_v6 = vmul.f32 %v7735_v49, %v16876_v14  ;;  %v7752_v14 = vld [vmem:[%s17869_s10 + $0xa0] sm:$0xff] }
 0x8b3   : > { %v7764_v11 = vmul.f32 %v7743_v25, %v7689_v41  ;;  %v11862_v25 = vld [vmem:[%s17873_s14] sm:$0xff]  }
 0x8b4   : > { %v11439_v21 = vpop.f32.mrf.mxu1 }
 0x8b5   : > { %v7734_v21 = vld [vmem:[%s17869_s10 + $0x10] sm:$0xff] }
 0x8b6   : > { %v7694_v0 = vpop.f32.mrf.mxu1  ;;  %v7755_v31 = vmul.f32 %v7734_v21, %v16874_v24  ;;  %v7751_v24 = vld [vmem:[%s17869_s10 + $0x98] sm:$0xff] }
 0x8b7   : > { %v7765_v5 = vmul.f32 %v7744_v32, %v7694_v0  ;;  %v11861_v32 = vld [vmem:[%s17873_s14 + $0x8] sm:$0xff]  }
 0x8b8   : > { %v11442_v19 = vpop.f32.mrf.mxu1 }
 0x8b9   : > { %v7733_v19 = vld [vmem:[%s17869_s10 + $0x8] sm:$0xff] }
 0x8ba   : > { %v7697_v39 = vpop.f32.mrf.mxu1 }
 0x8bb   : > { %v7766_v7 = vmul.f32 %v7745_v55, %v7697_v39 }
 0x8bc   : > { %v11443_v26 = vpop.f32.mrf.mxu1 }
 0x8bd   : > { %v7732_v26 = vld [vmem:[%s17869_s10] sm:$0xff] }
 0x8be   : > { %v7702_v16 = vpop.f32.mrf.mxu1 }
 0x8bf   : > { %v7767_v51 = vmul.f32 %v7746_v48, %v7702_v16  ;;  %v7754_v16 = vmul.f32 %v7733_v19, %v16871_v4  ;;  %v7750_v4 = vld [vmem:[%s17869_s10 + $0x90] sm:$0xff] }
 0x8c0   : > { %v11446_v33 = vpop.f32.mrf.mxu1 }
 0x8c1   : > { %v7753_v33 = vmul.f32 %v7732_v26, %v16868_v61  ;;  %v7749_v61 = vld [vmem:[%s17869_s10 + $0x88] sm:$0xff] }
 0x8c2   : > { %v7705_v20 = vpop.f32.mrf.mxu1 }
 0x8c3   : > { %v7768_v10 = vmul.f32 %v7747_v15, %v7705_v20 }
 0x8c4   : > { %v11447_v8 = vpop.f32.mrf.mxu1 }
 0x8c5   : > { %7780 = vmatpush1.msra.mxu1 %v7768_v10  ;;  %v7748_v10 = vld [vmem:[%s17869_s10 + $0x80] sm:$0xff] }
 0x8c6   : > { %v16896_v35 = vpop.f32.mrf.mxu1  ;;  %7781 = vmatprep.subr.mxu1 %v11932_v3 }
 0x8c7   : > { %7782 = vmatpush1.msra.mxu1 %v7767_v51  ;;  %v7769_v8 = vmul.f32 %v7748_v10, %v16896_v35  ;;  %v11860_v51 = vld [vmem:[%s17871_s12] sm:$0xff]  }
 0x8c8   : > { %v11450_v18 = vpop.f32.mrf.mxu1  ;;  %7783 = vmatprep.subr.mxu1 %v11932_v3  ;;  %11475 = vmatpush3.bf16.msra.mxu0 %v11860_v51 }
 0x8c9   : > { %7784 = vmatpush1.msra.mxu1 %v7766_v7  ;;  %v10303_v18 = vld [vmem:[%s17872_s13] ss:$0 sm:$0xff] }
 0x8ca   : > { %v16906_v43 = vpop.f32.mrf.mxu1  ;;  %7785 = vmatprep.subr.mxu1 %v11932_v3 }
 0x8cb   : > { %7786 = vmatpush1.msra.mxu1 %v7765_v5  ;;  %v7770_v55 = vmul.f32 %v7749_v61, %v16906_v43 }
 0x8cc   : > { %v11451_v12 = vpop.f32.mrf.mxu1  ;;  %7787 = vmatprep.subr.mxu1 %v11932_v3 }
 0x8cd   : > { %7788 = vmatpush1.msra.mxu1 %v7764_v11 }
 0x8ce   : > { %v7718_v56 = vpop.f32.mrf.mxu1  ;;  %7789 = vmatprep.subr.mxu1 %v11932_v3 }
 0x8cf   : > { %7790 = vmatpush1.msra.mxu1 %v7763_v54  ;;  %v7771_v20 = vmul.f32 %v7750_v4, %v7718_v56  ;;  %v11864_v56 = vld [vmem:[%s17866_s7 + $0x30] sm:$0xff]  }
 0x8d0   : > { %v11454_v28 = vpop.f32.mrf.mxu1  ;;  %7791 = vmatprep.subr.mxu1 %v11932_v3 }
 0x8d1   : > { %7792 = vmatpush1.msra.mxu1 %v7762_v57  ;;  %v11865_v57 = vld [vmem:[%s17866_s7 + $0x28] sm:$0xff]   ;;  %v11867_v28 = vld [vmem:[%s17866_s7 + $0x18] sm:$0xff]  }
 0x8d2   : > { %v7721_v53 = vpop.f32.mrf.mxu1  ;;  %7793 = vmatprep.subr.mxu1 %v11932_v3 }
 0x8d3   : > { %7794 = vmatpush1.msra.mxu1 %v7761_v13  ;;  %v7772_v48 = vmul.f32 %v7751_v24, %v7721_v53  ;;  %v11868_v13 = vld [vmem:[%s17866_s7 + $0x10] sm:$0xff]   ;;  %v11870_v53 = vld [vmem:[%s17866_s7] sm:$0xff]  }
 0x8d4   : > { %v11455_v58 = vpop.f32.mrf.mxu1  ;;  %7795 = vmatprep.subr.mxu1 %v11932_v3 }
 0x8d5   : > { %7796 = vmatpush1.msra.mxu1 %v7760_v45  ;;  %v11874_v45 = vld [vmem:[%s17875_s16] ss:$12 sps:$4 sm:$0xff]  }
 0x8d6   : > { %v7726_v29 = vpop.f32.mrf.mxu1  ;;  %7797 = vmatprep.subr.mxu1 %v11932_v3 }
 0x8d7   : > { %7798 = vmatpush1.msra.mxu1 %v7759_v40  ;;  %v7773_v15 = vmul.f32 %v7752_v14, %v7726_v29 }
 0x8d8   : > { %v11458_v41 = vpop.f32.mrf.mxu1  ;;  %7799 = vmatprep.subr.mxu1 %v11932_v3 }
 0x8d9   : > { %7800 = vmatpush1.msra.mxu1 %v7758_v50 }
 0x8da   : > { %v7729_v0 = vpop.f32.mrf.mxu1  ;;  %7801 = vmatprep.subr.mxu1 %v11932_v3 }
 0x8db   : > { %7802 = vmatpush1.msra.mxu1 %v7757_v46 }
 0x8dc   : > { %v11459_v39 = vpop.f32.mrf.mxu1  ;;  %7803 = vmatprep.subr.mxu1 %v11932_v3 }
 0x8dd   : > { %7804 = vmatpush1.msra.mxu1 %v7756_v6 }
 0x8de   : > { %7805 = vmatprep.subr.mxu1 %v11932_v3 }
 0x8df   : > { %7806 = vmatpush1.msra.mxu1 %v7755_v31 }
 0x8e0   : > { %7807 = vmatprep.subr.mxu1 %v11932_v3 }
 0x8e1   : > { %7808 = vmatpush1.msra.mxu1 %v7754_v16 }
 0x8e2   : > { %7809 = vmatprep.subr.mxu1 %v11932_v3 }
 0x8e3   : > { %7810 = vmatpush1.msra.mxu1 %v7753_v33  ;;  %v17085_v33 = vld [vmem:[%s17867_s8] ss:$0 sm:$0xff] }
 0x8e4   : > { %7833 = vmatprep.subr.mxu1 %v11932_v3 }
 0x8e5   : > { %7834 = vmatpush2.msra.mxu1 %v7773_v15 }
 0x8e6   : > { %7835 = vmatprep.subr.mxu1 %v11932_v3 }
 0x8e7   : > { %7836 = vmatpush2.msra.mxu1 %v7772_v48 }
 0x8e8   : > { %7837 = vmatprep.subr.mxu1 %v11932_v3 }
 0x8e9   : > { %7838 = vmatpush2.msra.mxu1 %v7771_v20 }
 0x8ea   : > { %7839 = vmatprep.subr.mxu1 %v11932_v3 }
 0x8eb   : > { %7840 = vmatpush2.msra.mxu1 %v7770_v55 }
 0x8ec   : > { %7841 = vmatprep.subr.mxu1 %v11932_v3 }
 0x8ed   : > { %7842 = vmatpush2.msra.mxu1 %v7769_v8 }
 0x8ee   : > { %7844 = vmatmul.mubr.f32.vlgmr.msra.gmra.mxu1 %v16834_v37  ;;  %11480 = vmatprep.subr.bf16.mxu1 %v11932_v3 }
 0x8ef   : > { %11484 = vmatprep.mubr.msk.bf16.mxu1 %vm11933_vm9, %v11932_v3  ;;  %11481 = vmatpush3.bf16.msra.mxu1 %v11861_v32 }
 0x8f0   : > { %11482 = vmatprep.subr.bf16.mxu1 %v11932_v3 }
 0x8f3   : > { %11483 = vmatpush3.bf16.msra.mxu1 %v11862_v25 }
 0x8f4   : > { %11488 = vmatprep.subr.bf16.mxu1 %v11932_v3 }
 0x9ae   : > { %v7845_v35 = vpop.f32.mrf.mxu1 }
 0x9af   : > { %v7849_v37 = vpack.c.bf16 %v7845_v35, %v7845_v35 }
 0x9b0   : > { %v7847_v7 = vpop.f32.mrf.mxu1 }
 0x9b1   : > { %11477 = vmatmul.mubr.msk.bf16.vlgmr.msra.gmra.mxu0 %vm7920_vm12, %v7849_v37 }
 0xa71   : > { %v7962_v5 = vpop.f32.mrf.mxu0 }
 0xa72   : > { %v7963_v47 = vadd.f32 %v10303_v18, %v7962_v5 }
 0xa73   : > { %v11478_v43 = vpop.f32.mrf.mxu0 }
 0xa74   : > { %v7968_v11 = vmax.f32 %v7963_v47, 0.0 }
 0xa75   : > { %v7965_v12 = vpop.f32.mrf.mxu0 }
 0xa76   : > { %v7969_v54 = vpack.c.bf16 %v7968_v11, %v7968_v11 }
 0xa77   : > { %v11479_v22 = vpop.f32.mrf.mxu0 }
 0xa78   : > { %11485 = vmatmul.mubr.msk.bf16.vlgmr.msra.gmra.mxu1 %vm7993_vm15, %v7969_v54 }
 0xa79   : > { %11489 = vmatpush3.bf16.msra.mxu1 %v11863_v1  ;;  %11504 = vmatprep.mubr.msk.bf16.mxu1 %vm11933_vm9, %v11932_v3 }
 0xa7a   : > { %11490 = vmatprep.subr.bf16.mxu1 %v11932_v3 }
 0xa7d   : > { %11491 = vmatpush3.bf16.msra.mxu1 %v11864_v56 }
 0xa7e   : > { %11492 = vmatprep.subr.bf16.mxu1 %v11932_v3 }
 0xa81   : > { %11493 = vmatpush3.bf16.msra.mxu1 %v11865_v57 }
 0xa82   : > { %11494 = vmatprep.subr.bf16.mxu1 %v11932_v3 }
 0xa85   : > { %11495 = vmatpush3.bf16.msra.mxu1 %v11866_v23 }
 0xa86   : > { %11496 = vmatprep.subr.bf16.mxu1 %v11932_v3 }
 0xa89   : > { %11497 = vmatpush3.bf16.msra.mxu1 %v11867_v28 }
 0xa8a   : > { %11498 = vmatprep.subr.bf16.mxu1 %v11932_v3 }
 0xa8d   : > { %11499 = vmatpush3.bf16.msra.mxu1 %v11868_v13 }
 0xa8e   : > { %11500 = vmatprep.subr.bf16.mxu1 %v11932_v3 }
 0xa91   : > { %11501 = vmatpush3.bf16.msra.mxu1 %v11869_v30 }
 0xa92   : > { %11502 = vmatprep.subr.bf16.mxu1 %v11932_v3 }
 0xa95   : > { %11503 = vmatpush3.bf16.msra.mxu1 %v11870_v53 }
 0xa98   : > { %11505 = vmatmul.mubr.bf16.vlgmr.msra.gmra.mxu1 %v16463_v36  ;;  %v10313_v36 = vld [vmem:[#allocation4] ss:$0 sm:$0xff] }
 0xa99   : > { %11508 = vmatprep.mubr.msk.bf16.mxu1 %vm11933_vm9, %v11932_v3 }
 0xaa0   : > { %11509 = vmatmul.mubr.bf16.gmra.mxu1 %v16473_v44 }
 0xaa1   : > { %11512 = vmatprep.mubr.msk.bf16.mxu1 %vm11933_vm9, %v11932_v3 }
 0xaa8   : > { %11513 = vmatmul.mubr.bf16.gmra.mxu1 %v16482_v42 }
 0xaa9   : > { %11516 = vmatprep.mubr.msk.bf16.mxu1 %vm11933_vm9, %v11932_v3 }
 0xab0   : > { %11517 = vmatmul.mubr.bf16.gmra.mxu1 %v16491_v34 }
 0xab1   : > { %11520 = vmatprep.mubr.msk.bf16.mxu1 %vm11933_vm9, %v11932_v3 }
 0xab8   : > { %11521 = vmatmul.mubr.bf16.gmra.mxu1 %v16500_v38 }
 0xab9   : > { %11524 = vmatprep.mubr.msk.bf16.mxu1 %vm11933_vm9, %v11932_v3 }
 0xac0   : > { %11525 = vmatmul.mubr.bf16.gmra.mxu1 %v16509_v60 }
 0xac1   : > { %11528 = vmatprep.mubr.msk.bf16.mxu1 %vm11933_vm9, %v11932_v3 }
 0xac8   : > { %11529 = vmatmul.mubr.bf16.gmra.mxu1 %v16518_v52 }
 0xac9   : > { %11532 = vmatprep.mubr.msk.bf16.mxu1 %vm11933_vm9, %v11932_v3 }
 0xad0   : > { %11533 = vmatmul.mubr.bf16.gmra.mxu1 %v16527_v17  ;;  %v11871_v17 = vld [vmem:[%s17875_s16 + $0x18] ss:$12 sps:$4 sm:$0xff]  }
 0xad1   : > { %11536 = vmatprep.mubr.msk.bf16.mxu1 %vm11933_vm9, %v11932_v3 }
 0xad8   : > { %11537 = vmatmul.mubr.bf16.gmra.mxu1 %v16536_v59  ;;  %v11873_v59 = vld [vmem:[%s17875_s16 + $0x1c] ss:$12 sps:$4 sm:$0xff]  }
 0xad9   : > { %11540 = vmatprep.mubr.msk.bf16.mxu1 %vm11933_vm9, %v11932_v3  ;;  %8511 = vmatprep.subr.bf16.mxu0 %v11873_v59 }
 0xada   : > { %8512 = vmatpush1.bf16.msra.mxu0 %v11871_v17 }
 0xae0   : > { %11541 = vmatmul.mubr.bf16.gmra.mxu1 %v16545_v27  ;;  %v11876_v27 = vld [vmem:[%s17875_s16 + $0x4] ss:$12 sps:$4 sm:$0xff]  }
 0xae1   : > { %11544 = vmatprep.mubr.msk.bf16.mxu1 %vm11933_vm9, %v11932_v3  ;;  %8513 = vmatprep.subr.bf16.mxu0 %v11876_v27 }
 0xae2   : > { %8514 = vmatpush1.bf16.msra.mxu0 %v11874_v45 }
 0xae3   : > { %11548 = vmatprep.subr.bf16.mxu0 %v11932_v3 }
 0xae8   : > { %11545 = vmatmul.mubr.bf16.gmra.mxu1 %v16552_v62  ;;  %v11935_v62 = vmov 0  }
 0xae9   : > { %10354 = vmatprep.mubr.msk.f32.mxu1 %vm7776_vm8, %v16838_v9  ;;  %8531 = vmatprep.mubr.bf16.mxu0 %v11935_v62 }
 0xb38   : > { %v8031_v44 = vpop.f32.mrf.mxu1 }
 0xb39   : > { %v8032_v42 = vadd.f32 %v10313_v36, %v8031_v44 }
 0xb3a   : > { %v11486_v34 = vpop.f32.mrf.mxu1 }
 0xb3b   : > { %11881 = vtanh.f32 %v8032_v42 }
 0xb3c   : > { %v8034_v38 = vpop.f32.mrf.mxu1 }
 0xb3e   : > { %v11487_v60 = vpop.f32.mrf.mxu1 }
 0xb48   : > { %v11882_v52 = vpop.eup %11881 }
 0xb49   : > { %8039 = vst.msk [vmem:[%s17880_s21] sm:$0xf] %vm8038_vm11, %v11882_v52 }
 0xb58   : > { %v8145_v63 = vpop.f32.mrf.mxu1 }
 0xb59   : > { %v17091_v4 = vadd.f32 %v17085_v33, %v8145_v63 }
 0xb5a   : > { %v11506_v58 = vpop.f32.mrf.mxu1 }
 0xb5b   : > { %v8279_v8 = vmul.f32 %v17091_v4, %v17091_v4  ;;  %v8231_v7 = vsel %vm7993_vm15, %v17091_v4, 0.0 }
 0xb5c   : > { %v8148_v40 = vpop.f32.mrf.mxu1 }
 0xb5d   : > { %v17088_v15 = vadd.f32 %v17085_v33, %v8148_v40  ;;  %v8300_v11 = vsel %vm7993_vm15, %v8279_v8, 0.0 }
 0xb5e   : > { %v11507_v2 = vpop.f32.mrf.mxu1 }
 0xb5f   : > { %v8280_v10 = vmul.f32 %v17088_v15, %v17088_v15  ;;  %v8232_v32 = vsel %vm7993_vm15, %v17088_v15, 0.0 }
 0xb60   : > { %v8153_v29 = vpop.f32.mrf.mxu1  ;;  %v8233_v1 = vadd.f32 %v8232_v32, %v8231_v7 }
 0xb61   : > { %v17094_v61 = vadd.f32 %v17085_v33, %v8153_v29  ;;  %v8301_v18 = vsel %vm7993_vm15, %v8280_v10, 0.0 }
 0xb62   : > { %v11510_v50 = vpop.f32.mrf.mxu1  ;;  %v8302_v23 = vadd.f32 %v8301_v18, %v8300_v11 }
 0xb63   : > { %v8281_v35 = vmul.f32 %v17094_v61, %v17094_v61  ;;  %v8234_v5 = vsel %vm7993_vm15, %v17094_v61, 0.0 }
 0xb64   : > { %v8156_v49 = vpop.f32.mrf.mxu1  ;;  %v8235_v28 = vadd.f32 %v8234_v5, %v8233_v1 }
 0xb65   : > { %v17099_v55 = vadd.f32 %v17085_v33, %v8156_v49  ;;  %v8303_v54 = vsel %vm7993_vm15, %v8281_v35, 0.0 }
 0xb66   : > { %v11511_v41 = vpop.f32.mrf.mxu1  ;;  %v8304_v42 = vadd.f32 %v8303_v54, %v8302_v23 }
 0xb67   : > { %v8282_v47 = vmul.f32 %v17099_v55, %v17099_v55  ;;  %v8236_v22 = vsel %vm7993_vm15, %v17099_v55, 0.0 }
 0xb68   : > { %v8161_v46 = vpop.f32.mrf.mxu1  ;;  %v8237_v34 = vadd.f32 %v8236_v22, %v8235_v28 }
 0xb69   : > { %v17108_v37 = vadd.f32 %v17085_v33, %v8161_v46  ;;  %v8305_v30 = vsel %vm7993_vm15, %v8282_v47, 0.0 }
 0xb6a   : > { %v11514_v21 = vpop.f32.mrf.mxu1  ;;  %v8306_v27 = vadd.f32 %v8305_v30, %v8304_v42 }
 0xb6b   : > { %v8283_v56 = vmul.f32 %v17108_v37, %v17108_v37  ;;  %v8238_v53 = vsel %vm7993_vm15, %v17108_v37, 0.0 }
 0xb6c   : > { %v8164_v0 = vpop.f32.mrf.mxu1  ;;  %v8239_v45 = vadd.f32 %v8238_v53, %v8237_v34 }
 0xb6d   : > { %v17118_v43 = vadd.f32 %v17085_v33, %v8164_v0  ;;  %v8307_v60 = vsel %vm7993_vm15, %v8283_v56, 0.0 }
 0xb6e   : > { %v11515_v6 = vpop.f32.mrf.mxu1  ;;  %v8308_v50 = vadd.f32 %v8307_v60, %v8306_v27 }
 0xb6f   : > { %v8284_v36 = vmul.f32 %v17118_v43, %v17118_v43  ;;  %v8240_v52 = vsel %vm7993_vm15, %v17118_v43, 0.0 }
 0xb70   : > { %v8169_v19 = vpop.f32.mrf.mxu1  ;;  %v8241_v49 = vadd.f32 %v8240_v52, %v8239_v45 }
 0xb71   : > { %v17127_v57 = vadd.f32 %v17085_v33, %v8169_v19  ;;  %v8309_v58 = vsel %vm7993_vm15, %v8284_v36, 0.0 }
 0xb72   : > { %v11518_v39 = vpop.f32.mrf.mxu1  ;;  %v8310_v19 = vadd.f32 %v8309_v58, %v8308_v50 }
 0xb73   : > { %v8285_v17 = vmul.f32 %v17127_v57, %v17127_v57  ;;  %v8242_v40 = vsel %vm7993_vm15, %v17127_v57, 0.0 }
 0xb74   : > { %v8172_v31 = vpop.f32.mrf.mxu1  ;;  %v8243_v39 = vadd.f32 %v8242_v40, %v8241_v49 }
 0xb75   : > { %v17135_v44 = vadd.f32 %v17085_v33, %v8172_v31  ;;  %v8311_v46 = vsel %vm7993_vm15, %v8285_v17, 0.0 }
 0xb76   : > { %v11519_v26 = vpop.f32.mrf.mxu1 }
 0xb77   : > { %v8286_v2 = vmul.f32 %v17135_v44, %v17135_v44  ;;  %v8244_v21 = vsel %vm7993_vm15, %v17135_v44, 0.0 }
 0xb78   : > { %v8177_v16 = vpop.f32.mrf.mxu1  ;;  %v8245_v10 = vadd.f32 %v8244_v21, %v8243_v39 }
 0xb79   : > { %v17143_v59 = vadd.f32 %v17085_v33, %v8177_v16  ;;  %v8313_v26 = vsel %vm7993_vm15, %v8286_v2, 0.0 }
 0xb7a   : > { %v11522_v14 = vpop.f32.mrf.mxu1 }
 0xb7b   : > { %v8287_v0 = vmul.f32 %v17143_v59, %v17143_v59  ;;  %v8246_v16 = vsel %vm7993_vm15, %v17143_v59, 0.0 }
 0xb7c   : > { %v8180_v24 = vpop.f32.mrf.mxu1  ;;  %v8247_v18 = vadd.f32 %v8246_v16, %v8245_v10 }
 0xb7d   : > { %v17151_v29 = vadd.f32 %v17085_v33, %v8180_v24 }
 0xb7e   : > { %v11523_v48 = vpop.f32.mrf.mxu1 }
 0xb7f   : > { %v8288_v14 = vmul.f32 %v17151_v29, %v17151_v29  ;;  %v8312_v48 = vadd.f32 %v8311_v46, %v8310_v19 }
 0xb80   : > { %v8185_v20 = vpop.f32.mrf.mxu1 }
 0xb81   : > { %v17159_v6 = vadd.f32 %v17085_v33, %v8185_v20  ;;  %v8315_v20 = vsel %vm7993_vm15, %v8287_v0, 0.0  ;;  %v8314_v7 = vadd.f32 %v8313_v26, %v8312_v48 }
 0xb82   : > { %v11526_v51 = vpop.f32.mrf.mxu1 }
 0xb83   : > { %v8248_v51 = vsel %vm7993_vm15, %v17151_v29, 0.0  ;;  %v8289_v32 = vmul.f32 %v17159_v6, %v17159_v6  ;;  %v8250_v47 = vsel %vm7993_vm15, %v17159_v6, 0.0 }
 0xb84   : > { %v8188_v25 = vpop.f32.mrf.mxu1  ;;  %v8249_v54 = vadd.f32 %v8248_v51, %v8247_v18 }
 0xb85   : > { %v17167_v24 = vadd.f32 %v17085_v33, %v8188_v25  ;;  %v8317_v25 = vsel %vm7993_vm15, %v8288_v14, 0.0  ;;  %v8319_v56 = vsel %vm7993_vm15, %v8289_v32, 0.0 }
 0xb86   : > { %v11527_v12 = vpop.f32.mrf.mxu1  ;;  %v8251_v53 = vadd.f32 %v8250_v47, %v8249_v54 }
 0xb87   : > { %v8290_v11 = vmul.f32 %v17167_v24, %v17167_v24  ;;  %v8316_v12 = vadd.f32 %v8315_v20, %v8314_v7  ;;  %v8252_v23 = vsel %vm7993_vm15, %v17167_v24, 0.0 }
 0xb88   : > { %v8193_v13 = vpop.f32.mrf.mxu1  ;;  %v8253_v17 = vadd.f32 %v8252_v23, %v8251_v53 }
 0xb89   : > { %v17175_v35 = vadd.f32 %v17085_v33, %v8193_v13  ;;  %v8318_v30 = vadd.f32 %v8317_v25, %v8316_v12  ;;  %v8321_v42 = vsel %vm7993_vm15, %v8290_v11, 0.0 }
 0xb8a   : > { %v11530_v38 = vpop.f32.mrf.mxu1 }
 0xb8b   : > { %v8291_v28 = vmul.f32 %v17175_v35, %v17175_v35  ;;  %v8254_v34 = vsel %vm7993_vm15, %v17175_v35, 0.0  ;;  %v8320_v52 = vadd.f32 %v8319_v56, %v8318_v30 }
 0xb8c   : > { %v8196_v63 = vpop.f32.mrf.mxu1  ;;  %v8255_v50 = vadd.f32 %v8254_v34, %v8253_v17 }
 0xb8d   : > { %v17183_v1 = vadd.f32 %v17085_v33, %v8196_v63  ;;  %v8323_v45 = vsel %vm7993_vm15, %v8291_v28, 0.0  ;;  %v8322_v2 = vadd.f32 %v8321_v42, %v8320_v52 }
 0xb8e   : > { %v11531_v41 = vpop.f32.mrf.mxu1 }
 0xb8f   : > { %v8292_v38 = vmul.f32 %v17183_v1, %v17183_v1  ;;  %v8256_v63 = vsel %vm7993_vm15, %v17183_v1, 0.0  ;;  %v8324_v19 = vadd.f32 %v8323_v45, %v8322_v2 }
 0xb90   : > { %v8201_v31 = vpop.f32.mrf.mxu1  ;;  %v8257_v39 = vadd.f32 %v8256_v63, %v8255_v50 }
 0xb91   : > { %v17191_v13 = vadd.f32 %v17085_v33, %v8201_v31  ;;  %v8325_v41 = vsel %vm7993_vm15, %v8292_v38, 0.0 }
 0xb92   : > { %v11534_v8 = vpop.f32.mrf.mxu1  ;;  %v8326_v48 = vadd.f32 %v8325_v41, %v8324_v19 }
 0xb93   : > { %v8293_v58 = vmul.f32 %v17191_v13, %v17191_v13  ;;  %v8258_v46 = vsel %vm7993_vm15, %v17191_v13, 0.0 }
 0xb94   : > { %v8204_v5 = vpop.f32.mrf.mxu1  ;;  %v8259_v10 = vadd.f32 %v8258_v46, %v8257_v39 }
 0xb95   : > { %v17199_v60 = vadd.f32 %v17085_v33, %v8204_v5  ;;  %v8327_v26 = vsel %vm7993_vm15, %v8293_v58, 0.0 }
 0xb96   : > { %v11535_v22 = vpop.f32.mrf.mxu1  ;;  %v8328_v18 = vadd.f32 %v8327_v26, %v8326_v48 }
 0xb97   : > { %v8294_v21 = vmul.f32 %v17199_v60, %v17199_v60  ;;  %v8260_v16 = vsel %vm7993_vm15, %v17199_v60, 0.0 }
 0xb98   : > { %v8209_v36 = vpop.f32.mrf.mxu1  ;;  %v8261_v5 = vadd.f32 %v8260_v16, %v8259_v10 }
 0xb99   : > { %v17207_v40 = vadd.f32 %v17085_v33, %v8209_v36  ;;  %v8329_v20 = vsel %vm7993_vm15, %v8294_v21, 0.0 }
 0xb9a   : > { %v11538_v27 = vpop.f32.mrf.mxu1  ;;  %v8330_v54 = vadd.f32 %v8329_v20, %v8328_v18 }
 0xb9b   : > { %v8295_v14 = vmul.f32 %v17207_v40, %v17207_v40  ;;  %v8262_v51 = vsel %vm7993_vm15, %v17207_v40, 0.0 }
 0xb9c   : > { %v8212_v49 = vpop.f32.mrf.mxu1  ;;  %v8263_v22 = vadd.f32 %v8262_v51, %v8261_v5 }
 0xb9d   : > { %v17215_v0 = vadd.f32 %v17085_v33, %v8212_v49  ;;  %v8331_v47 = vsel %vm7993_vm15, %v8295_v14, 0.0 }
 0xb9e   : > { %v11539_v31 = vpop.f32.mrf.mxu1  ;;  %v8332_v53 = vadd.f32 %v8331_v47, %v8330_v54 }
 0xb9f   : > { %v8296_v32 = vmul.f32 %v17215_v0, %v17215_v0  ;;  %v8264_v11 = vsel %vm7993_vm15, %v17215_v0, 0.0 }
 0xba0   : > { %v8217_v8 = vpop.f32.mrf.mxu1  ;;  %v8265_v36 = vadd.f32 %v8264_v11, %v8263_v22 }
 0xba1   : > { %v17228_v7 = vadd.f32 %v17085_v33, %v8217_v8  ;;  %v8333_v23 = vsel %vm7993_vm15, %v8296_v32, 0.0 }
 0xba2   : > { %v11542_v25 = vpop.f32.mrf.mxu1  ;;  %v8334_v17 = vadd.f32 %v8333_v23, %v8332_v53 }
 0xba3   : > { %v8297_v12 = vmul.f32 %v17228_v7, %v17228_v7  ;;  %v8266_v28 = vsel %vm7993_vm15, %v17228_v7, 0.0 }
 0xba4   : > { %v8220_v56 = vpop.f32.mrf.mxu1  ;;  %v8267_v27 = vadd.f32 %v8266_v28, %v8265_v36 }
 0xba5   : > { %v17239_v30 = vadd.f32 %v17085_v33, %v8220_v56  ;;  %v8335_v34 = vsel %vm7993_vm15, %v8297_v12, 0.0 }
 0xba6   : > { %v11543_v42 = vpop.f32.mrf.mxu1  ;;  %v8336_v2 = vadd.f32 %v8335_v34, %v8334_v17 }
 0xba7   : > { %v8268_v38 = vsel %vm7993_vm15, %v17239_v30, 0.0  ;;  %v8298_v52 = vmul.f32 %v17239_v30, %v17239_v30 }
 0xba8   : > { %v8225_v45 = vpop.f32.mrf.mxu1  ;;  %v8269_v50 = vadd.f32 %v8268_v38, %v8267_v27 }
 0xba9   : > { %v8337_v63 = vsel %vm7993_vm15, %v8298_v52, 0.0  ;;  %v8226_v58 = vadd.f32 %v17085_v33, %v8225_v45 }
 0xbaa   : > { %v11546_v49 = vpop.f32.mrf.mxu1  ;;  %v8338_v21 = vadd.f32 %v8337_v63, %v8336_v2  ;;  %v11877_v63 = vld [vmem:[%s17875_s16 + $0x20] ss:$12 sps:$4 sm:$0xff]  }
 0xbab   : > { %v8270_v41 = vsel %vm7993_vm15, %v8226_v58, 0.0  ;;  %v8299_v46 = vmul.f32 %v8226_v58, %v8226_v58 }
 0xbac   : > { %v8271_v19 = vadd.f32 %v8270_v41, %v8269_v50  ;;  %v8228_v39 = vpop.f32.mrf.mxu1 }
 0xbad   : > { %v8339_v31 = vsel %vm7993_vm15, %v8299_v46, 0.0  ;;  %v11878_v39 = vld [vmem:[%s17875_s16 + $0x8] ss:$12 sps:$4 sm:$0xff]  }
 0xbae   : > { %v8272_v26 = vrot.slane %v8271_v19, 4  ;;  %v8340_v16 = vadd.f32 %v8339_v31, %v8338_v21  ;;  %v11547_v14 = vpop.f32.mrf.mxu1 }
 0xbb0   : > { %v8273_v48 = vadd.f32 %v8272_v26, %v8271_v19  ;;  %v8341_v10 = vrot.slane %v8340_v16, 4 }
 0xbb2   : > { %v8274_v8 = vrot.slane %v8273_v48, 2  ;;  %v8342_v20 = vadd.f32 %v8341_v10, %v8340_v16 }
 0xbb4   : > { %v8275_v51 = vadd.f32 %v8274_v8, %v8273_v48  ;;  %v8343_v33 = vrot.slane %v8342_v20, 2 }
 0xbb6   : > { %v8276_v32 = vrot.slane %v8275_v51, 1  ;;  %v8344_v18 = vadd.f32 %v8343_v33, %v8342_v20 }
 0xbb8   : > { %v8277_v5 = vadd.f32 %v8276_v32, %v8275_v51  ;;  %v8345_v25 = vrot.slane %v8344_v18, 1 }
 0xbba   : > { %v17250_v47 = vmul.f32 0.005952381, %v8277_v5  ;;  %v8346_v11 = vadd.f32 %v8345_v25, %v8344_v18 }
 0xbbc   : > { %v8347_v12 = vmul.f32 0.005952381, %v8346_v11  ;;  %v8348_v54 = vmul.f32 %v17250_v47, %v17250_v47  ;;  %v8370_v22 = vsub.f32 %v8226_v58, %v17250_v47  ;;  %v8362_v28 = vsub.f32 %v17175_v35, %v17250_v47 }
 0xbbd   : > { %v8363_v53 = vsub.f32 %v17183_v1, %v17250_v47  ;;  %v8364_v36 = vsub.f32 %v17191_v13, %v17250_v47  ;;  %v8365_v42 = vsub.f32 %v17199_v60, %v17250_v47  ;;  %v8366_v34 = vsub.f32 %v17207_v40, %v17250_v47 }
 0xbbe   : > { %v8349_v56 = vsub.f32 %v8347_v12, %v8348_v54  ;;  %v8367_v38 = vsub.f32 %v17215_v0, %v17250_v47  ;;  %v8368_v52 = vsub.f32 %v17228_v7, %v17250_v47  ;;  %v8369_v35 = vsub.f32 %v17239_v30, %v17250_v47 }
 0xbbf   : > { %v8350_v1 = vsub.f32 %v17091_v4, %v17250_v47  ;;  %v8351_v13 = vsub.f32 %v17088_v15, %v17250_v47  ;;  %v8352_v7 = vsub.f32 %v17094_v61, %v17250_v47  ;;  %v8353_v4 = vsub.f32 %v17099_v55, %v17250_v47 }
 0xbc0   : > { %v8371_v23 = vadd.f32 1e-05, %v8349_v56  ;;  %v8360_v15 = vsub.f32 %v17159_v6, %v17250_v47  ;;  %v8354_v61 = vsub.f32 %v17108_v37, %v17250_v47  ;;  %v8361_v50 = vsub.f32 %v17167_v24, %v17250_v47 }
 0xbc1   : > { %v8355_v6 = vsub.f32 %v17118_v43, %v17250_v47 }
 0xbc2   : > { %11883 = vrsqrt.f32 %v8371_v23 }
 0xbcf   : > { %v17275_v60 = vpop.eup %11883 }
 0xbd0   : > { %v17278_v40 = vmul.f32 %v17275_v60, %v8370_v22  ;;  %v8373_v0 = vmul.f32 %v17275_v60, %v8350_v1  ;;  %v8374_v17 = vmul.f32 %v17275_v60, %v8351_v13  ;;  %v8375_v45 = vmul.f32 %v17275_v60, %v8352_v7 }
 0xbd1   : > { %v8376_v2 = vmul.f32 %v17275_v60, %v8353_v4  ;;  %v8383_v55 = vmul.f32 %v17275_v60, %v8360_v15  ;;  %v8377_v49 = vmul.f32 %v17275_v60, %v8354_v61  ;;  %v8384_v41 = vmul.f32 %v17275_v60, %v8361_v50 }
 0xbd2   : > { %v8394_v27 = vmax.f32 %v8373_v0, 0.0  ;;  %v8395_v30 = vmax.f32 %v8374_v17, 0.0  ;;  %v8385_v46 = vmul.f32 %v17275_v60, %v8362_v28  ;;  %v8396_v37 = vmax.f32 %v8375_v45, 0.0 }
 0xbd3   : > { %v8404_v21 = vmax.f32 %v8383_v55, 0.0  ;;  %v8386_v24 = vmul.f32 %v17275_v60, %v8363_v53  ;;  %v8387_v19 = vmul.f32 %v17275_v60, %v8364_v36  ;;  %v8397_v43 = vmax.f32 %v8376_v2, 0.0 }
 0xbd4   : > { %v17292_v58 = vpack.c.bf16 %v8395_v30, %v8394_v27  ;;  %v8405_v31 = vmax.f32 %v8384_v41, 0.0  ;;  %v8406_v26 = vmax.f32 %v8385_v46, 0.0  ;;  %v8388_v16 = vmul.f32 %v17275_v60, %v8365_v42 }
 0xbd5   : > { %v8407_v14 = vmax.f32 %v8386_v24, 0.0  ;;  %v8408_v48 = vmax.f32 %v8387_v19, 0.0  ;;  %v8389_v10 = vmul.f32 %v17275_v60, %v8366_v34  ;;  %v8390_v8 = vmul.f32 %v17275_v60, %v8367_v38 }
 0xbd6   : > { %10332 = vmatmul.mubr.msk.bf16.vlgmr.msra.gmra.mxu0 %vm7993_vm15, %v17292_v58  ;;  %v17317_v20 = vpack.c.bf16 %v8405_v31, %v8404_v21  ;;  %v8409_v51 = vmax.f32 %v8388_v16, 0.0  ;;  %v8391_v33 = vmul.f32 %v17275_v60, %v8368_v52  ;;  %v8392_v32 = vmul.f32 %v17275_v60, %v8369_v35 }
 0xbd7   : > { %8541 = vmatprep.mubr.bf16.mxu0 %v11935_v62  ;;  %11549 = vmatpush3.bf16.msra.mxu0 %v11877_v63  ;;  %v8378_v18 = vmul.f32 %v17275_v60, %v8355_v6  ;;  %v8421_v5 = vpack.c.bf16 %v8407_v14, %v8406_v26  ;;  %v8410_v25 = vmax.f32 %v8389_v10, 0.0  ;;  %v8411_v11 = vmax.f32 %v8390_v8, 0.0 }
 0xbd8   : > { %11550 = vmatprep.subr.bf16.mxu0 %v11932_v3  ;;  %v8416_v12 = vpack.c.bf16 %v8397_v43, %v8396_v37  ;;  %v8422_v54 = vpack.c.bf16 %v8409_v51, %v8408_v48  ;;  %v8412_v22 = vmax.f32 %v8391_v33, 0.0  ;;  %v8413_v56 = vmax.f32 %v8392_v32, 0.0  ;;  %v8806_v33 = vld [vmem:[%s17877_s18 + $0x170] sm:$0xff]  ;;  %v8805_v32 = vld [vmem:[%s17877_s18 + $0x168] sm:$0xff] }
 0xbd9   : > { %v8423_v23 = vpack.c.bf16 %v8411_v11, %v8410_v25  ;;  %v8398_v53 = vmax.f32 %v8377_v49, 0.0  ;;  %v8399_v36 = vmax.f32 %v8378_v18, 0.0  ;;  %v8356_v42 = vsub.f32 %v17127_v57, %v17250_v47  ;;  %v8803_v18 = vld [vmem:[%s17877_s18 + $0x158] sm:$0xff]  ;;  %v8802_v25 = vld [vmem:[%s17877_s18 + $0x150] sm:$0xff] }
 0xbda   : > { %v8424_v28 = vpack.c.bf16 %v8413_v56, %v8412_v22  ;;  %v8357_v34 = vsub.f32 %v17135_v44, %v17250_v47  ;;  %v8358_v0 = vsub.f32 %v17143_v59, %v17250_v47  ;;  %v8359_v57 = vsub.f32 %v17151_v29, %v17250_v47  ;;  %v9063_v56 = vld [vmem:[%s17878_s19 + $0x120] sm:$0x3f] }
 0xbdb   : > { %11551 = vmatpush3.bf16.msra.mxu0 %v11878_v39  ;;  %v8417_v38 = vpack.c.bf16 %v8399_v36, %v8398_v53  ;;  %v8379_v52 = vmul.f32 %v17275_v60, %v8356_v42  ;;  %v8414_v59 = vmax.f32 %v17278_v40, 0.0  ;;  %v8797_v53 = vld [vmem:[%s17877_s18 + $0x128] sm:$0xff] }
 0xbdc   : > { %11596 = vmatprep.subr.mxu0 %v11932_v3  ;;  %v8380_v35 = vmul.f32 %v17275_v60, %v8357_v34  ;;  %v8381_v44 = vmul.f32 %v17275_v60, %v8358_v0  ;;  %v8382_v7 = vmul.f32 %v17275_v60, %v8359_v57  ;;  %v8796_v34 = vld [vmem:[%s17877_s18 + $0x120] sm:$0xff]  ;;  %v8791_v57 = vld [vmem:[%s17877_s18 + $0xf8] sm:$0xff] }
 0xbdd   : > { %v8400_v1 = vmax.f32 %v8379_v52, 0.0  ;;  %v8425_v29 = vpack.c.bf16 %v8414_v59, %v8414_v59  ;;  %v8794_v52 = vld [vmem:[%s17877_s18 + $0x110] sm:$0xff] }
 0xbde   : > { %10333 = vmatmul.mubr.msk.bf16.gmra.mxu0 %vm7993_vm15, %v8416_v12  ;;  %v8401_v13 = vmax.f32 %v8380_v35, 0.0  ;;  %v8402_v27 = vmax.f32 %v8381_v44, 0.0  ;;  %v8403_v30 = vmax.f32 %v8382_v7, 0.0  ;;  %v8790_v7 = vld [vmem:[%s17877_s18 + $0xf0] sm:$0xff] }
 0xbdf   : > { %8551 = vmatprep.mubr.bf16.mxu0 %v11935_v62 }
 0xbe0   : > { %v8418_v17 = vpack.c.bf16 %v8401_v13, %v8400_v1  ;;  %v8419_v4 = vpack.c.bf16 %v8403_v30, %v8402_v27  ;;  %v8793_v13 = vld [vmem:[%s17877_s18 + $0x108] sm:$0xff]  ;;  %v8788_v30 = vld [vmem:[%s17877_s18 + $0xe0] sm:$0xff] }
 0xbe6   : > { %10334 = vmatmul.mubr.msk.bf16.gmra.mxu0 %vm7993_vm15, %v8417_v38 }
 0xbe7   : > { %8561 = vmatprep.mubr.bf16.mxu0 %v11935_v62 }
 0xbee   : > { %10335 = vmatmul.mubr.msk.bf16.gmra.mxu0 %vm7993_vm15, %v8418_v17 }
 0xbef   : > { %8571 = vmatprep.mubr.bf16.mxu0 %v11935_v62 }
 0xbf6   : > { %10336 = vmatmul.mubr.msk.bf16.gmra.mxu0 %vm7993_vm15, %v8419_v4 }
 0xbf7   : > { %8581 = vmatprep.mubr.bf16.mxu0 %v11935_v62 }
 0xbfe   : > { %10337 = vmatmul.mubr.msk.bf16.gmra.mxu0 %vm7993_vm15, %v17317_v20 }
 0xbff   : > { %8591 = vmatprep.mubr.bf16.mxu0 %v11935_v62 }
 0xc06   : > { %10338 = vmatmul.mubr.msk.bf16.gmra.mxu0 %vm7993_vm15, %v8421_v5 }
 0xc07   : > { %8601 = vmatprep.mubr.bf16.mxu0 %v11935_v62 }
 0xc0e   : > { %10339 = vmatmul.mubr.msk.bf16.gmra.mxu0 %vm7993_vm15, %v8422_v54 }
 0xc0f   : > { %8611 = vmatprep.mubr.bf16.mxu0 %v11935_v62 }
 0xc16   : > { %10340 = vmatmul.mubr.msk.bf16.gmra.mxu0 %vm7993_vm15, %v8423_v23 }
 0xc17   : > { %8621 = vmatprep.mubr.bf16.mxu0 %v11935_v62 }
 0xc1e   : > { %10341 = vmatmul.mubr.msk.bf16.gmra.mxu0 %vm7993_vm15, %v8424_v28 }
 0xc1f   : > { %8631 = vmatprep.mubr.bf16.mxu0 %v11935_v62 }
 0xc26   : > { %10342 = vmatmul.mubr.msk.bf16.gmra.mxu0 %vm7993_vm15, %v8425_v29 }
 0xc27   : > { %11552 = vmatprep.mubr.msk.bf16.mxu0 %vm11933_vm9, %v11932_v3 }
 0xc2e   : > { %11553 = vmatmul.mubr.msk.bf16.vlgmr.msra.gmra.mxu0 %vm7993_vm15, %v17292_v58 }
 0xc2f   : > { %11556 = vmatprep.mubr.msk.bf16.mxu0 %vm11933_vm9, %v11932_v3  ;;  %11597 = vmatpush3.msk.msra.mxu0 %vm9075_vm13, %v9063_v56 }
 0xc30   : > { %11598 = vmatprep.subr.mxu0 %v11932_v3 }
 0xc36   : > { %11557 = vmatmul.mubr.msk.bf16.gmra.mxu0 %vm7993_vm15, %v8416_v12  ;;  %v8800_v12 = vld [vmem:[%s17877_s18 + $0x140] sm:$0xff] }
 0xc37   : > { %11560 = vmatprep.mubr.msk.bf16.mxu0 %vm11933_vm9, %v11932_v3 }
 0xc3e   : > { %11561 = vmatmul.mubr.msk.bf16.gmra.mxu0 %vm7993_vm15, %v8417_v38 }
 0xc3f   : > { %11564 = vmatprep.mubr.msk.bf16.mxu0 %vm11933_vm9, %v11932_v3 }
 0xc46   : > { %11565 = vmatmul.mubr.msk.bf16.gmra.mxu0 %vm7993_vm15, %v8418_v17 }
 0xc47   : > { %11568 = vmatprep.mubr.msk.bf16.mxu0 %vm11933_vm9, %v11932_v3 }
 0xc4e   : > { %11569 = vmatmul.mubr.msk.bf16.gmra.mxu0 %vm7993_vm15, %v8419_v4 }
 0xc4f   : > { %11572 = vmatprep.mubr.msk.bf16.mxu0 %vm11933_vm9, %v11932_v3 }
 0xc56   : > { %11573 = vmatmul.mubr.msk.bf16.gmra.mxu0 %vm7993_vm15, %v17317_v20 }
 0xc57   : > { %11576 = vmatprep.mubr.msk.bf16.mxu0 %vm11933_vm9, %v11932_v3 }
 0xc5e   : > { %11577 = vmatmul.mubr.msk.bf16.gmra.mxu0 %vm7993_vm15, %v8421_v5 }
 0xc5f   : > { %11580 = vmatprep.mubr.msk.bf16.mxu0 %vm11933_vm9, %v11932_v3 }
 0xc66   : > { %11581 = vmatmul.mubr.msk.bf16.gmra.mxu0 %vm7993_vm15, %v8422_v54 }
 0xc67   : > { %11584 = vmatprep.mubr.msk.bf16.mxu0 %vm11933_vm9, %v11932_v3 }
 0xc6e   : > { %11585 = vmatmul.mubr.msk.bf16.gmra.mxu0 %vm7993_vm15, %v8423_v23  ;;  %v8799_v23 = vld [vmem:[%s17877_s18 + $0x138] sm:$0xff] }
 0xc6f   : > { %11588 = vmatprep.mubr.msk.bf16.mxu0 %vm11933_vm9, %v11932_v3 }
 0xc76   : > { %11589 = vmatmul.mubr.msk.bf16.gmra.mxu0 %vm7993_vm15, %v8424_v28 }
 0xc77   : > { %11592 = vmatprep.mubr.msk.bf16.mxu0 %vm11933_vm9, %v11932_v3 }
 0xc7e   : > { %11593 = vmatmul.mubr.msk.bf16.gmra.mxu0 %vm7993_vm15, %v8425_v29  ;;  %v8787_v29 = vld [vmem:[%s17877_s18 + $0xd8] sm:$0xff] }
 0xc7f   : > { %11606 = vmatprep.mubr.msk.f32.mxu0 %vm11933_vm9, %v11932_v3 }
 0xc96   : > { %v17393_v62 = vpop.f32.mrf.mxu0 }
 0xc98   : > { %v17395_v47 = vpop.f32.mrf.mxu0 }
 0xc9a   : > { %v17397_v60 = vpop.f32.mrf.mxu0 }
 0xc9c   : > { %v17399_v40 = vpop.f32.mrf.mxu0 }
 0xc9e   : > { %v17401_v45 = vpop.f32.mrf.mxu0 }
 0xca0   : > { %v17403_v15 = vpop.f32.mrf.mxu0 }
 0xca2   : > { %v17405_v63 = vpop.f32.mrf.mxu0 }
 0xca4   : > { %v17407_v58 = vpop.f32.mrf.mxu0 }
 0xca6   : > { %v17409_v2 = vpop.f32.mrf.mxu0 }
 0xca8   : > { %v17411_v61 = vpop.f32.mrf.mxu0 }
 0xcaa   : > { %v17413_v50 = vpop.f32.mrf.mxu0 }
 0xcac   : > { %v17415_v55 = vpop.f32.mrf.mxu0 }
 0xcae   : > { %v17417_v6 = vpop.f32.mrf.mxu0 }
 0xcb0   : > { %v17419_v49 = vpop.f32.mrf.mxu0 }
 0xcb2   : > { %v17421_v41 = vpop.f32.mrf.mxu0 }
 0xcb4   : > { %v17423_v46 = vpop.f32.mrf.mxu0 }
 0xcb6   : > { %v17425_v37 = vpop.f32.mrf.mxu0 }
 0xcb8   : > { %v17427_v21 = vpop.f32.mrf.mxu0 }
 0xcba   : > { %v17429_v24 = vpop.f32.mrf.mxu0 }
 0xcbc   : > { %v8579_v19 = vpop.f32.mrf.mxu0 }
 0xcbe   : > { %v8583_v39 = vpop.f32.mrf.mxu0 }
 0xcc0   : > { %v8585_v43 = vpop.f32.mrf.mxu0 }
 0xcc2   : > { %v8587_v31 = vpop.f32.mrf.mxu0 }
 0xcc3   : > { %v8856_v4 = vmul.f32 %v8793_v13, %v8587_v31  ;;  %v8784_v31 = vld [vmem:[%s17877_s18 + $0xc0] sm:$0xff] }
 0xcc4   : > { %v8589_v26 = vpop.f32.mrf.mxu0 }
 0xcc5   : > { %v8857_v27 = vmul.f32 %v8794_v52, %v8589_v26  ;;  %v8853_v26 = vmul.f32 %v8790_v7, %v8583_v39  ;;  %v8781_v39 = vld [vmem:[%s17877_s18 + $0xa8] sm:$0xff] }
 0xcc6   : > { %v8593_v16 = vpop.f32.mrf.mxu0 }
 0xcc7   : > { %v8859_v17 = vmul.f32 %v8796_v34, %v8593_v16  ;;  %v8854_v16 = vmul.f32 %v8791_v57, %v8585_v43  ;;  %v8850_v43 = vmul.f32 %v8787_v29, %v17429_v24  ;;  %v8778_v24 = vld [vmem:[%s17877_s18 + $0x90] sm:$0xff] }
 0xcc8   : > { %v8595_v14 = vpop.f32.mrf.mxu0 }
 0xcc9   : > { %v8860_v0 = vmul.f32 %v8797_v53, %v8595_v14  ;;  %v8785_v14 = vld [vmem:[%s17877_s18 + $0xc8] sm:$0xff] }
 0xcca   : > { %v8597_v48 = vpop.f32.mrf.mxu0 }
 0xccb   : > { %v8862_v35 = vmul.f32 %v8799_v23, %v8597_v48 }
 0xccc   : > { %v8599_v10 = vpop.f32.mrf.mxu0 }
 0xccd   : > { %v8863_v38 = vmul.f32 %v8800_v12, %v8599_v10  ;;  %v8851_v10 = vmul.f32 %v8788_v30, %v8579_v19  ;;  %v8779_v19 = vld [vmem:[%s17877_s18 + $0x98] sm:$0xff]  ;;  %v8773_v12 = vld [vmem:[%s17877_s18 + $0x68] sm:$0xff] }
 0xcce   : > { %v8603_v8 = vpop.f32.mrf.mxu0 }
 0xccf   : > { %v8865_v36 = vmul.f32 %v8802_v25, %v8603_v8  ;;  %v8782_v8 = vld [vmem:[%s17877_s18 + $0xb0] sm:$0xff] }
 0xcd0   : > { %v8605_v20 = vpop.f32.mrf.mxu0 }
 0xcd1   : > { %v8866_v28 = vmul.f32 %v8803_v18, %v8605_v20  ;;  %v8845_v18 = vmul.f32 %v8782_v8, %v17423_v46  ;;  %v8842_v46 = vmul.f32 %v8779_v19, %v17419_v49  ;;  %v8770_v49 = vld [vmem:[%s17877_s18 + $0x50] sm:$0xff]  ;;  %v8812_v8 = vld [vmem:[%s17877_s18 + $0x1a0] sm:$0xff] }
 0xcd2   : > { %v8607_v51 = vpop.f32.mrf.mxu0  ;;  %v8833_v52 = vmul.f32 %v8770_v49, %v17407_v58  ;;  %v8761_v58 = vld [vmem:[%s17877_s18 + $0x8] sm:$0xff] }
 0xcd3   : > { %v8868_v54 = vmul.f32 %v8805_v32, %v8607_v51  ;;  %v8848_v51 = vmul.f32 %v8785_v14, %v17427_v21  ;;  %v9062_v21 = vld [vmem:[%s17878_s19 + $0x118] sm:$0xff] }
 0xcd4   : > { %v8609_v5 = vpop.f32.mrf.mxu0  ;;  %11599 = vmatpush3.msra.mxu0 %v9062_v21 }
 0xcd5   : > { %v8869_v11 = vmul.f32 %v8806_v33, %v8609_v5  ;;  %v8847_v33 = vmul.f32 %v8784_v31, %v17425_v37  ;;  %v8776_v5 = vld [vmem:[%s17877_s18 + $0x80] sm:$0xff]  ;;  %v8844_v37 = vmul.f32 %v8781_v39, %v17421_v41  ;;  %11600 = vmatprep.subr.mxu0 %v11932_v3 }
 0xcd6   : > { %v17446_v22 = vpop.f32.mrf.mxu0  ;;  %v8772_v41 = vld [vmem:[%s17877_s18 + $0x60] sm:$0xff]  ;;  %v8839_v23 = vmul.f32 %v8776_v5, %v17415_v55  ;;  %v8767_v55 = vld [vmem:[%s17877_s18 + $0x38] sm:$0xff] }
 0xcd7   : > { %8886 = vmatprep.subr.mxu1 %v8869_v11  ;;  %v8775_v11 = vld [vmem:[%s17877_s18 + $0x78] sm:$0xff]  ;;  %v8835_v34 = vmul.f32 %v8772_v41, %v17409_v2 }
 0xcd8   : > { %v17457_v42 = vpop.f32.mrf.mxu0  ;;  %8887 = vmatpush1.msra.mxu1 %v8868_v54  ;;  %v8841_v54 = vmul.f32 %v8778_v24, %v17417_v6  ;;  %v8769_v6 = vld [vmem:[%s17877_s18 + $0x48] sm:$0xff]  ;;  %v8763_v2 = vld [vmem:[%s17877_s18 + $0x18] sm:$0xff] }
 0xcd9   : > { %8888 = vmatprep.subr.mxu1 %v8866_v28  ;;  %v8838_v28 = vmul.f32 %v8775_v11, %v17413_v50  ;;  %v8766_v50 = vld [vmem:[%s17877_s18 + $0x30] sm:$0xff] }
 0xcda   : > { %v17466_v1 = vpop.f32.mrf.mxu0  ;;  %8889 = vmatpush1.msra.mxu1 %v8865_v36  ;;  %v8836_v36 = vmul.f32 %v8773_v12, %v17411_v61  ;;  %v8764_v61 = vld [vmem:[%s17877_s18 + $0x20] sm:$0xff]  ;;  %v8829_v57 = vmul.f32 %v8766_v50, %v17401_v45  ;;  %v8824_v45 = vmul.f32 %v8761_v58, %v17395_v47  ;;  %v8815_v47 = vld [vmem:[%s17877_s18 + $0x1b8] sm:$0xff] }
 0xcdb   : > { %8890 = vmatprep.subr.mxu1 %v8863_v38  ;;  %v8827_v7 = vmul.f32 %v8764_v61, %v17399_v40  ;;  %v8804_v61 = vld [vmem:[%s17877_s18 + $0x160] sm:$0xff] }
 0xcdc   : > { %v17474_v44 = vpop.f32.mrf.mxu0  ;;  %8891 = vmatpush1.msra.mxu1 %v8862_v35  ;;  %v8832_v35 = vmul.f32 %v8769_v6, %v17405_v63  ;;  %v8760_v63 = vld [vmem:[%s17877_s18] sm:$0xff] }
 0xcdd   : > { %8892 = vmatprep.subr.mxu1 %v8860_v0  ;;  %v8830_v0 = vmul.f32 %v8767_v55, %v17403_v15  ;;  %v8821_v15 = vld [vmem:[%s17877_s18 + $0x1e8] sm:$0xff]  ;;  %v8823_v29 = vmul.f32 %v8760_v63, %v17393_v62  ;;  %v8814_v62 = vld [vmem:[%s17877_s18 + $0x1b0] sm:$0xff] }
 0xcde   : > { %v17482_v59 = vpop.f32.mrf.mxu0  ;;  %8893 = vmatpush1.msra.mxu1 %v8859_v17 }
 0xcdf   : > { %8894 = vmatprep.subr.mxu1 %v8857_v27  ;;  %v8826_v27 = vmul.f32 %v8763_v2, %v17397_v60  ;;  %v8818_v60 = vld [vmem:[%s17877_s18 + $0x1d0] sm:$0xff] }
 0xce0   : > { %v17490_v48 = vpop.f32.mrf.mxu0  ;;  %8895 = vmatpush1.msra.mxu1 %v8856_v4  ;;  %v8820_v4 = vld [vmem:[%s17877_s18 + $0x1e0] sm:$0xff] }
 0xce1   : > { %8896 = vmatprep.subr.mxu1 %v8854_v16  ;;  %v8817_v16 = vld [vmem:[%s17877_s18 + $0x1c8] sm:$0xff]  ;;  %v8878_v19 = vmul.f32 %v8815_v47, %v17490_v48  ;;  %v8786_v47 = vld [vmem:[%s17877_s18 + $0xd0] sm:$0xff] }
 0xce2   : > { %v17499_v20 = vpop.f32.mrf.mxu0  ;;  %8897 = vmatpush1.msra.mxu1 %v8853_v26 }
 0xce3   : > { %8898 = vmatprep.subr.mxu1 %v8851_v10 }
 0xce4   : > { %v17509_v32 = vpop.f32.mrf.mxu0  ;;  %8899 = vmatpush1.msra.mxu1 %v8850_v43  ;;  %v8880_v43 = vmul.f32 %v8817_v16, %v17499_v20  ;;  %v8808_v20 = vld [vmem:[%s17877_s18 + $0x180] sm:$0xff] }
 0xce5   : > { %8900 = vmatprep.subr.mxu1 %v8848_v51  ;;  %v8881_v10 = vmul.f32 %v8818_v60, %v17509_v32  ;;  %v8811_v51 = vld [vmem:[%s17877_s18 + $0x198] sm:$0xff]  ;;  %v8877_v32 = vmul.f32 %v8814_v62, %v17482_v59 }
 0xce6   : > { %v8633_v25 = vpop.f32.mrf.mxu0  ;;  %8901 = vmatpush1.msra.mxu1 %v8847_v33  ;;  %v8809_v33 = vld [vmem:[%s17877_s18 + $0x188] sm:$0xff]  ;;  %v8874_v21 = vmul.f32 %v8811_v51, %v17466_v1 }
 0xce7   : > { %8902 = vmatprep.subr.mxu1 %v8845_v18  ;;  %v8883_v26 = vmul.f32 %v8820_v4, %v8633_v25  ;;  %v8875_v18 = vmul.f32 %v8812_v8, %v17474_v44  ;;  %v8872_v5 = vmul.f32 %v8809_v33, %v17457_v42  ;;  %v17622_v44 = vld [vmem:[%s17870_s11] sm:$0xff]  ;;  %v8777_v33 = vld [vmem:[%s17877_s18 + $0x88] sm:$0xff] }
 0xce8   : > { %v8635_v56 = vpop.f32.mrf.mxu0  ;;  %8903 = vmatpush1.msra.mxu1 %v8844_v37  ;;  %v8871_v37 = vmul.f32 %v8808_v20, %v17446_v22  ;;  %v8792_v4 = vld [vmem:[%s17877_s18 + $0x100] sm:$0xff] }
 0xce9   : > { %8904 = vmatprep.subr.mxu1 %v8842_v46  ;;  %v8884_v14 = vmul.f32 %v8821_v15, %v8635_v56 }
 0xcea   : > { %v8637_v53 = vpop.f32.mrf.mxu0  ;;  %8905 = vmatpush1.msra.mxu1 %v8841_v54 }
 0xceb   : > { %8906 = vmatprep.subr.mxu1 %v8839_v23 }
 0xcec   : > { %v8638_v38 = vpop.f32.mrf.mxu0  ;;  %8907 = vmatpush1.msra.mxu1 %v8838_v28 }
 0xced   : > { %8908 = vmatprep.subr.mxu1 %v8836_v36 }
 0xcee   : > { %v17555_v13 = vpop.f32.mrf.mxu0  ;;  %8909 = vmatpush1.msra.mxu1 %v8835_v34 }
 0xcef   : > { %8910 = vmatprep.subr.mxu1 %v8833_v52  ;;  %v8807_v52 = vld [vmem:[%s17877_s18 + $0x178] sm:$0xff] }
 0xcf0   : > { %v11554_v17 = vpop.f32.mrf.mxu0  ;;  %8911 = vmatpush1.msra.mxu1 %v8832_v35 }
 0xcf1   : > { %8912 = vmatprep.subr.mxu1 %v8830_v0  ;;  %v8801_v0 = vld [vmem:[%s17877_s18 + $0x148] sm:$0xff]  ;;  %v8798_v17 = vld [vmem:[%s17877_s18 + $0x130] sm:$0xff] }
 0xcf2   : > { %v17573_v30 = vpop.f32.mrf.mxu0  ;;  %8913 = vmatpush1.msra.mxu1 %v8829_v57 }
 0xcf3   : > { %8914 = vmatprep.subr.mxu1 %v8827_v7 }
 0xcf4   : > { %v11555_v40 = vpop.f32.mrf.mxu0  ;;  %8915 = vmatpush1.msra.mxu1 %v8826_v27  ;;  %v8795_v27 = vld [vmem:[%s17877_s18 + $0x118] sm:$0xff] }
 0xcf5   : > { %8916 = vmatprep.subr.mxu1 %v8824_v45  ;;  %v8789_v40 = vld [vmem:[%s17877_s18 + $0xe8] sm:$0xff] }
 0xcf6   : > { %v17589_v31 = vpop.f32.mrf.mxu0  ;;  %8917 = vmatpush1.msra.mxu1 %v8823_v29 }
 0xcf7   : > { %8940 = vmatprep.subr.mxu1 %v8884_v14 }
 0xcf8   : > { %v11558_v39 = vpop.f32.mrf.mxu0  ;;  %8941 = vmatpush2.msra.mxu1 %v8883_v26 }
 0xcf9   : > { %8942 = vmatprep.subr.mxu1 %v8881_v10  ;;  %v8783_v10 = vld [vmem:[%s17877_s18 + $0xb8] sm:$0xff]  ;;  %v8780_v39 = vld [vmem:[%s17877_s18 + $0xa0] sm:$0xff] }
 0xcfa   : > { %v17607_v24 = vpop.f32.mrf.mxu0  ;;  %8943 = vmatpush2.msra.mxu1 %v8880_v43 }
 0xcfb   : > { %8944 = vmatprep.subr.mxu1 %v8878_v19 }
 0xcfc   : > { %v11559_v48 = vpop.f32.mrf.mxu0  ;;  %8945 = vmatpush2.msra.mxu1 %v8877_v32 }
 0xcfd   : > { %8946 = vmatprep.subr.mxu1 %v8875_v18  ;;  %v8774_v18 = vld [vmem:[%s17877_s18 + $0x70] sm:$0xff] }
 0xcfe   : > { %v17616_v59 = vpop.f32.mrf.mxu0  ;;  %8947 = vmatpush2.msra.mxu1 %v8874_v21 }
 0xcff   : > { %8948 = vmatprep.subr.mxu1 %v8872_v5  ;;  %v8771_v5 = vld [vmem:[%s17877_s18 + $0x58] sm:$0xff] }
 0xd00   : > { %v11562_v25 = vpop.f32.mrf.mxu0  ;;  %8949 = vmatpush2.msra.mxu1 %v8871_v37 }
 0xd01   : > { %8957 = vmatprep.subr.mxu1 %v11932_v3  ;;  %8951 = vmatmul.mubr.f32.vlgmr.msra.gmra.mxu1 %v17622_v44  ;;  %v8837_v25 = vmul.f32 %v8774_v18, %v17616_v59 }
 0xd02   : > { %v17625_v1 = vpop.f32.mrf.mxu0  ;;  %10355 = vmatprep.mubr.msk.f32.mxu1 %vm7776_vm8, %v16838_v9 }
 0xd03   : > { %v8840_v48 = vmul.f32 %v8777_v33, %v17625_v1  ;;  %v8834_v1 = vmul.f32 %v8771_v5, %v17607_v24  ;;  %v8762_v24 = vld [vmem:[%s17877_s18 + $0x10] sm:$0xff]  ;;  %v10356_v5 = vld [vmem:[%s17876_s17] ss:$0 sm:$0xff] }
 0xd04   : > { %v11563_v22 = vpop.f32.mrf.mxu0 }
 0xd05   : > { %v8768_v22 = vld [vmem:[%s17877_s18 + $0x40] sm:$0xff] }
 0xd06   : > { %v17629_v42 = vpop.f32.mrf.mxu0  ;;  %v8831_v59 = vmul.f32 %v8768_v22, %v17589_v31  ;;  %v8822_v31 = vld [vmem:[%s17877_s18 + $0x1f0] sm:$0xff] }
 0xd07   : > { %v8843_v20 = vmul.f32 %v8780_v39, %v17629_v42  ;;  %v9027_v39 = vld [vmem:[%s17878_s19] sm:$0xff] }
 0xd08   : > { %v11566_v11 = vpop.f32.mrf.mxu0 }
 0xd09   : > { %v8765_v11 = vld [vmem:[%s17877_s18 + $0x28] sm:$0xff] }
 0xd0a   : > { %v8701_v46 = vpop.f32.mrf.mxu0 }
 0xd0b   : > { %v8846_v19 = vmul.f32 %v8783_v10, %v8701_v46  ;;  %v9044_v10 = vld [vmem:[%s17878_s19 + $0x88] sm:$0xff] }
 0xd0c   : > { %v11567_v12 = vpop.f32.mrf.mxu0 }
 0xd0d   : > { %v9061_v12 = vld [vmem:[%s17878_s19 + $0x110] sm:$0xff] }
 0xd0e   : > { %v8706_v54 = vpop.f32.mrf.mxu0  ;;  %11601 = vmatpush3.msra.mxu0 %v9061_v12 }
 0xd0f   : > { %v8849_v43 = vmul.f32 %v8786_v47, %v8706_v54  ;;  %v9060_v54 = vld [vmem:[%s17878_s19 + $0x108] sm:$0xff]  ;;  %11602 = vmatprep.subr.mxu0 %v11932_v3  ;;  %v9030_v47 = vld [vmem:[%s17878_s19 + $0x18] sm:$0xff] }
 0xd10   : > { %v11570_v56 = vpop.f32.mrf.mxu0  ;;  %11603 = vmatpush3.msra.mxu0 %v9060_v54 }
 0xd11   : > { %v8828_v56 = vmul.f32 %v8765_v11, %v17573_v30  ;;  %11604 = vmatprep.subr.mxu0 %v11932_v3 }
 0xd12   : > { %v8709_v41 = vpop.f32.mrf.mxu0 }
 0xd13   : > { %v8852_v62 = vmul.f32 %v8789_v40, %v8709_v41  ;;  %v8825_v41 = vmul.f32 %v8762_v24, %v17555_v13  ;;  %v8813_v13 = vld [vmem:[%s17877_s18 + $0x1a8] sm:$0xff]  ;;  %v9047_v40 = vld [vmem:[%s17878_s19 + $0xa0] sm:$0xff] }
 0xd14   : > { %v11571_v23 = vpop.f32.mrf.mxu0 }
 0xd15   : > { %v8819_v23 = vld [vmem:[%s17877_s18 + $0x1d8] sm:$0xff] }
 0xd16   : > { %v8714_v49 = vpop.f32.mrf.mxu0 }
 0xd17   : > { %v8855_v14 = vmul.f32 %v8792_v4, %v8714_v49  ;;  %v8816_v49 = vld [vmem:[%s17877_s18 + $0x1c0] sm:$0xff]  ;;  %v9033_v4 = vld [vmem:[%s17878_s19 + $0x30] sm:$0xff] }
 0xd18   : > { %v11574_v28 = vpop.f32.mrf.mxu0 }
 0xd1a   : > { %v8717_v53 = vpop.f32.mrf.mxu0 }
 0xd1b   : > { %v8858_v60 = vmul.f32 %v8795_v27, %v8717_v53  ;;  %v9050_v27 = vld [vmem:[%s17878_s19 + $0xb8] sm:$0xff] }
 0xd1c   : > { %v11575_v6 = vpop.f32.mrf.mxu0 }
 0xd1d   : > { %v8810_v6 = vld [vmem:[%s17877_s18 + $0x190] sm:$0xff] }
 0xd1e   : > { %v8722_v36 = vpop.f32.mrf.mxu0 }
 0xd1f   : > { %v8861_v45 = vmul.f32 %v8798_v17, %v8722_v36  ;;  %v9036_v17 = vld [vmem:[%s17878_s19 + $0x48] sm:$0xff] }
 0xd20   : > { %v11578_v55 = vpop.f32.mrf.mxu0 }
 0xd22   : > { %v8725_v34 = vpop.f32.mrf.mxu0 }
 0xd23   : > { %v8864_v7 = vmul.f32 %v8801_v0, %v8725_v34  ;;  %v9058_v34 = vld [vmem:[%s17878_s19 + $0xf8] sm:$0xff]  ;;  %v9053_v0 = vld [vmem:[%s17878_s19 + $0xd0] sm:$0xff] }
 0xd24   : > { %v11579_v38 = vpop.f32.mrf.mxu0 }
 0xd25   : > { %v9042_v38 = vld [vmem:[%s17878_s19 + $0x78] sm:$0xff] }
 0xd26   : > { %v8730_v50 = vpop.f32.mrf.mxu0 }
 0xd27   : > { %v8867_v57 = vmul.f32 %v8804_v61, %v8730_v50  ;;  %v9057_v50 = vld [vmem:[%s17878_s19 + $0xf0] sm:$0xff]  ;;  %v9039_v61 = vld [vmem:[%s17878_s19 + $0x60] sm:$0xff] }
 0xd28   : > { %v11582_v9 = vpop.f32.mrf.mxu0 }
 0xd29   : > { %v9041_v9 = vld [vmem:[%s17878_s19 + $0x70] sm:$0xff] }
 0xd2a   : > { %v8733_v35 = vpop.f32.mrf.mxu0 }
 0xd2b   : > { %v8870_v2 = vmul.f32 %v8807_v52, %v8733_v35  ;;  %v9040_v52 = vld [vmem:[%s17878_s19 + $0x68] sm:$0xff]  ;;  %v9054_v35 = vld [vmem:[%s17878_s19 + $0xd8] sm:$0xff] }
 0xd2c   : > { %v11583_v58 = vpop.f32.mrf.mxu0 }
 0xd2d   : > { %8958 = vmatpush1.msra.mxu1 %v8870_v2  ;;  %v9038_v2 = vld [vmem:[%s17878_s19 + $0x58] sm:$0xff]  ;;  %v9037_v58 = vld [vmem:[%s17878_s19 + $0x50] sm:$0xff] }
 0xd2e   : > { %v17643_v63 = vpop.f32.mrf.mxu0  ;;  %8959 = vmatprep.subr.mxu1 %v11932_v3 }
 0xd2f   : > { %8960 = vmatpush1.msra.mxu1 %v8867_v57  ;;  %v8873_v55 = vmul.f32 %v8810_v6, %v17643_v63  ;;  %v9052_v57 = vld [vmem:[%s17878_s19 + $0xc8] sm:$0xff]  ;;  %v9051_v63 = vld [vmem:[%s17878_s19 + $0xc0] sm:$0xff] }
 0xd30   : > { %v11586_v15 = vpop.f32.mrf.mxu0  ;;  %8961 = vmatprep.subr.mxu1 %v11932_v3 }
 0xd31   : > { %8962 = vmatpush1.msra.mxu1 %v8864_v7  ;;  %v9035_v7 = vld [vmem:[%s17878_s19 + $0x40] sm:$0xff]  ;;  %v9034_v15 = vld [vmem:[%s17878_s19 + $0x38] sm:$0xff] }
 0xd32   : > { %v17653_v29 = vpop.f32.mrf.mxu0  ;;  %8963 = vmatprep.subr.mxu1 %v11932_v3 }
 0xd33   : > { %8964 = vmatpush1.msra.mxu1 %v8861_v45  ;;  %v8876_v36 = vmul.f32 %v8813_v13, %v17653_v29  ;;  %v9049_v45 = vld [vmem:[%s17878_s19 + $0xb0] sm:$0xff]  ;;  %v9048_v29 = vld [vmem:[%s17878_s19 + $0xa8] sm:$0xff] }
 0xd34   : > { %v11587_v16 = vpop.f32.mrf.mxu0  ;;  %8965 = vmatprep.subr.mxu1 %v11932_v3 }
 0xd35   : > { %8966 = vmatpush1.msra.mxu1 %v8858_v60  ;;  %v9032_v60 = vld [vmem:[%s17878_s19 + $0x28] sm:$0xff]  ;;  %v9031_v16 = vld [vmem:[%s17878_s19 + $0x20] sm:$0xff] }
 0xd36   : > { %v17663_v26 = vpop.f32.mrf.mxu0  ;;  %8967 = vmatprep.subr.mxu1 %v11932_v3 }
 0xd37   : > { %8968 = vmatpush1.msra.mxu1 %v8855_v14  ;;  %v8879_v53 = vmul.f32 %v8816_v49, %v17663_v26  ;;  %v9046_v14 = vld [vmem:[%s17878_s19 + $0x98] sm:$0xff]  ;;  %v9045_v26 = vld [vmem:[%s17878_s19 + $0x90] sm:$0xff] }
 0xd38   : > { %v11590_v8 = vpop.f32.mrf.mxu0  ;;  %8969 = vmatprep.subr.mxu1 %v11932_v3 }
 0xd39   : > { %8970 = vmatpush1.msra.mxu1 %v8852_v62  ;;  %v9029_v62 = vld [vmem:[%s17878_s19 + $0x10] sm:$0xff]  ;;  %v9028_v8 = vld [vmem:[%s17878_s19 + $0x8] sm:$0xff] }
 0xd3a   : > { %v8749_v51 = vpop.f32.mrf.mxu0  ;;  %8971 = vmatprep.subr.mxu1 %v11932_v3 }
 0xd3b   : > { %8972 = vmatpush1.msra.mxu1 %v8849_v43  ;;  %v8882_v28 = vmul.f32 %v8819_v23, %v8749_v51  ;;  %v9043_v43 = vld [vmem:[%s17878_s19 + $0x80] sm:$0xff] }
 0xd3c   : > { %v11591_v32 = vpop.f32.mrf.mxu0  ;;  %8973 = vmatprep.subr.mxu1 %v11932_v3  ;;  %v9059_v51 = vld [vmem:[%s17878_s19 + $0x100] sm:$0xff] }
 0xd3d   : > { %8974 = vmatpush1.msra.mxu1 %v8846_v19  ;;  %11605 = vmatpush3.msra.mxu0 %v9059_v51 }
 0xd3e   : > { %v8754_v21 = vpop.f32.mrf.mxu0  ;;  %8975 = vmatprep.subr.mxu1 %v11932_v3 }
 0xd3f   : > { %8976 = vmatpush1.msra.mxu1 %v8843_v20  ;;  %v8885_v30 = vmul.f32 %v8822_v31, %v8754_v21 }
 0xd40   : > { %v11594_v37 = vpop.f32.mrf.mxu0  ;;  %8977 = vmatprep.subr.mxu1 %v11932_v3 }
 0xd41   : > { %8978 = vmatpush1.msra.mxu1 %v8840_v48 }
 0xd42   : > { %v8757_v42 = vpop.f32.mrf.mxu0  ;;  %8979 = vmatprep.subr.mxu1 %v11932_v3 }
 0xd43   : > { %8980 = vmatpush1.msra.mxu1 %v8837_v25 }
 0xd44   : > { %v11595_v46 = vpop.f32.mrf.mxu0  ;;  %8981 = vmatprep.subr.mxu1 %v11932_v3 }
 0xd45   : > { %8982 = vmatpush1.msra.mxu1 %v8834_v1 }
 0xd46   : > { %8983 = vmatprep.subr.mxu1 %v11932_v3 }
 0xd47   : > { %8984 = vmatpush1.msra.mxu1 %v8831_v59 }
 0xd48   : > { %8985 = vmatprep.subr.mxu1 %v11932_v3 }
 0xd49   : > { %8986 = vmatpush1.msra.mxu1 %v8828_v56 }
 0xd4a   : > { %8987 = vmatprep.subr.mxu1 %v11932_v3 }
 0xd4b   : > { %8988 = vmatpush1.msra.mxu1 %v8825_v41 }
 0xd4c   : > { %9011 = vmatprep.subr.mxu1 %v11932_v3 }
 0xd4d   : > { %9012 = vmatpush2.msra.mxu1 %v8885_v30 }
 0xd4e   : > { %9013 = vmatprep.subr.mxu1 %v11932_v3 }
 0xd4f   : > { %9014 = vmatpush2.msra.mxu1 %v8882_v28 }
 0xd50   : > { %9015 = vmatprep.subr.mxu1 %v11932_v3 }
 0xd51   : > { %9016 = vmatpush2.msra.mxu1 %v8879_v53 }
 0xd52   : > { %9017 = vmatprep.subr.mxu1 %v11932_v3 }
 0xd53   : > { %9018 = vmatpush2.msra.mxu1 %v8876_v36 }
 0xd54   : > { %9019 = vmatprep.subr.mxu1 %v11932_v3  ;;  %v9056_v3 = vld [vmem:[%s17878_s19 + $0xe8] sm:$0xff] }
 0xd55   : > { %9020 = vmatpush2.msra.mxu1 %v8873_v55 }
 0xd56   : > { %9022 = vmatmul.mubr.f32.vlgmr.msra.gmra.mxu1 %v17622_v44  ;;  %11145 = vmatprep.subr.mxu1 %v9058_v34  ;;  %v9055_v44 = vld [vmem:[%s17878_s19 + $0xe0] sm:$0xff] }
 0xd57   : > { %11146 = vmatpush3.msra.mxu1 %v9042_v38 }
 0xd58   : > { %11147 = vmatprep.subr.mxu1 %v9057_v50 }
 0xd59   : > { %11148 = vmatpush3.msra.mxu1 %v9041_v9 }
 0xd5a   : > { %11149 = vmatprep.subr.mxu1 %v9056_v3 }
 0xd5b   : > { %11150 = vmatpush3.msra.mxu1 %v9040_v52 }
 0xd5c   : > { %11151 = vmatprep.subr.mxu1 %v9055_v44 }
 0xd5d   : > { %11152 = vmatpush3.msra.mxu1 %v9039_v61 }
 0xd5e   : > { %11153 = vmatprep.subr.mxu1 %v9054_v35 }
 0xd5f   : > { %11154 = vmatpush3.msra.mxu1 %v9038_v2 }
 0xd60   : > { %11155 = vmatprep.subr.mxu1 %v9053_v0 }
 0xd61   : > { %11156 = vmatpush3.msra.mxu1 %v9037_v58 }
 0xd62   : > { %11157 = vmatprep.subr.mxu1 %v9052_v57 }
 0xd63   : > { %11158 = vmatpush3.msra.mxu1 %v9036_v17 }
 0xd64   : > { %11159 = vmatprep.subr.mxu1 %v9051_v63 }
 0xd65   : > { %11160 = vmatpush3.msra.mxu1 %v9035_v7 }
 0xd66   : > { %11161 = vmatprep.subr.mxu1 %v9050_v27 }
 0xd67   : > { %11162 = vmatpush3.msra.mxu1 %v9034_v15 }
 0xd68   : > { %11163 = vmatprep.subr.mxu1 %v9049_v45 }
 0xd69   : > { %11164 = vmatpush3.msra.mxu1 %v9033_v4 }
 0xd6a   : > { %11165 = vmatprep.subr.mxu1 %v9048_v29 }
 0xd6b   : > { %11166 = vmatpush3.msra.mxu1 %v9032_v60 }
 0xd6c   : > { %11167 = vmatprep.subr.mxu1 %v9047_v40 }
 0xd6d   : > { %11168 = vmatpush3.msra.mxu1 %v9031_v16 }
 0xd6e   : > { %11169 = vmatprep.subr.mxu1 %v9046_v14 }
 0xd6f   : > { %11170 = vmatpush3.msra.mxu1 %v9030_v47 }
 0xd70   : > { %11171 = vmatprep.subr.mxu1 %v9045_v26 }
 0xd71   : > { %11172 = vmatpush3.msra.mxu1 %v9029_v62 }
 0xd72   : > { %11173 = vmatprep.subr.mxu1 %v9044_v10 }
 0xd73   : > { %11174 = vmatpush3.msra.mxu1 %v9028_v8 }
 0xd74   : > { %11175 = vmatprep.subr.mxu1 %v9043_v43 }
 0xd75   : > { %11176 = vmatpush3.msra.mxu1 %v9027_v39 }
 0xdc1   : > { %v8952_v19 = vpop.f32.mrf.mxu1 }
 0xdc3   : > { %v8954_v33 = vpop.f32.mrf.mxu1 }
 0xdc4   : > { %9143 = vmatprep.mubr.f32.mxu1 %v8954_v33 }
 0xdc5   : > { %9144 = vmatmul.mubr.f32.vlgmr.msra.gmra.mxu1 %v8952_v19 }
 0xe16   : > { %v9023_v32 = vpop.f32.mrf.mxu1 }
 0xe17   : > { %11607 = vmatmul.mubr.msk.f32.vlgmr.msra.gmra.mxu0 %vm9071_vm1, %v9023_v32 }
 0xe18   : > { %v9025_v20 = vpop.f32.mrf.mxu1 }
 0xe85   : > { %v11177_v18 = vpop.f32.mrf.mxu1 }
 0xe87   : > { %v11178_v21 = vpop.f32.mrf.mxu1 }
 0xe88   : > { %v11179_v48 = vadd.f32 %v11178_v21, %v11177_v18 }
 0xe8a   : > { %v9146_v37 = vadd.f32 %v11179_v48, %v10356_v5 }
 0xed7   : > { %v9215_v25 = vpop.f32.mrf.mxu0 }
 0xed8   : > { %v9216_v22 = vadd.f32 %v9215_v25, %v9146_v37 }
 0xed9   : > { %v11608_v42 = vpop.f32.mrf.mxu0 }
 0xeda   : > { %v9220_v1 = vsel %vm9219_vm6, %v9216_v22, -inf }
 0xedb   : > { %9221 = vmax.xlane.f32.xlu0 %v9220_v1 }
 0xf64   : > { %v9222_v11 = vpop.xlane.xlu0 %9221 }
 0xf65   : > { %v9223_v46 = vsub.f32 %v9216_v22, %v9222_v11 }
 0xf67   : > { %v9224_v59 = vmul.f32 1.442695, %v9223_v46 }
 0xf69   : > { %11885 = vpow2.f32 %v9224_v59 }
 0xf76   : > { %v11886_v12 = vpop.eup %11885 }
 0xf77   : > { %v9226_v54 = vsel %vm9219_vm6, %v11886_v12, 0.0 }
 0xf78   : > { %9227 = vadd.xlane.f32.xlu0 %v9226_v54 }
0x1001   : > { %v9228_v24 = vpop.xlane.xlu0 %9227 }
0x1002   : > { %11887 = vrcp.f32 %v9228_v24 }
0x100f   : > { %v11888_v56 = vpop.eup %11887 }
0x1010   : > { %v9230_v31 = vmul.f32 %v11888_v56, %v11886_v12 }
0x1012   : > { %9231 = vst.msk [vmem:[#allocation5] sm:$0xf] %vm9219_vm6, %v9230_v31 }
0x1013 PF: > { %p11618_p6 = scmp.eq.s32.totalorder %s12056_s27, 4  ;;  %s11936_s5 = smov [#allocation5]  }
0x1014   : > { %s9239_s23 = sshll.u32 %s11936_s5, 4  ;;  %s9240_s23 = int_to_ptr.vmem [resolvable:$true] %s9239_s23 }
0x1015   : > { %s11890_s1 = scalar_lea.vmem %s9240_s23, 64  ;;  %p11897_p10 = scmp.lt.s32.totalorder %s9240_s23, %s9240_s23 }
0x1016   : > { %p11891_p7 = scmp.ne.s32.totalorder %s9240_s23, %s11890_s1  ;;  %p11898_p11 = scmp.lt.s32.totalorder %s11890_s1, %s11890_s1 }
0x1018   : > { %p11892_p8 = pnand %p11891_p7, %p11618_p6  ;;  %p11899_p12 = por %p11898_p11, %p11897_p10 }
0x101a   : > { %p11893_p9 = pneg %p11892_p8 }
0x101c   : > { %p11900_p13 = pnand %p11899_p12, %p11893_p9 }
0x101e   : > { %11903 = shalt.err (!%p11900_p13)
}
0x101f   : > { %11615 = dma.vmem_to_hbm [thread:$0]  (%p11618_p6), %s9240_s23, 64, %s17879_s20, [#allocation6]  }
0x1020   : > { %11919 = dma.done.wait (%p11618_p6), [#allocation6], 64  }
0x1021   : > { %11921 = vsyncadd (%p11618_p6), [#allocation6], 4294967232 }
0x1022 PF: > { %s35_s26 = sadd.s32 1, %s11924_s26  }
0x1023   : > { %p32_p0 = scmp.ge.s32.totalorder %s35_s26, 7  }
0x1025   :  { %34 = sbr.rel (!%p32_p0) target bundleno = 8 (0x8), region = 150 }
0x102a   :  { %9258 = vsyncpa [#allocation6], 1 }
0x102b   :  { %9260 = vsyncpa [#allocation6 + $0x1], 1 }

</bundles_post_ra>
